<compile_context>
chip_gen: v7x
topology: tpu7x:2x2x1
jax: 0.10.0
libtpu: 0.0.40
codegen_flags: <defaults>
</compile_context>

<pallas_src>
import functools
import math

import jax
import jax.numpy as jnp
from jax import lax
from jax.experimental import pallas as pl
from jax.experimental.pallas import tpu as pltpu


def _round_up(v, m):
    return ((v + m - 1) // m) * m


def _pick_tile_m(m, cap):
    """Row-tile: >=2 grid steps when possible (v7x has 2 TCs), 8-row aligned."""
    if m <= 8:
        return m                      # full extent; nothing worth splitting
    return min(cap, _round_up(pl.cdiv(m, 2), 8))


def _fma_k(v, w):
    """(M, k) @ (k, H) with tiny k expanded as VPU broadcast-FMAs (skips an MXU pass)."""
    acc = v[:, 0:1].astype(jnp.float32) * w[0:1, :].astype(jnp.float32)
    for j in range(1, v.shape[1]):
        acc = acc + v[:, j:j + 1].astype(jnp.float32) * w[j:j + 1, :].astype(jnp.float32)
    return acc


# ----------------------------------------------------------------------------
# Pre-pass kernel: center-independent layer-1 term  a = x@W1x + pos@W1p + b1
# (pre-ReLU), computed once per point.  Output bf16.
# ----------------------------------------------------------------------------
def _edge_pre_kernel(x_ref, pos_ref, w1x_ref, w1p_ref, b1_ref, o_ref):
    if x_ref.shape[1] <= 4:                           # sa1: K=3 feature path -> VPU
        ax = _fma_k(x_ref[...], w1x_ref[...])
    else:
        ax = jnp.dot(x_ref[...], w1x_ref[...], preferred_element_type=jnp.float32)
    a = ax + _fma_k(pos_ref[...], w1p_ref[...]) + b1_ref[...]
    o_ref[...] = a.astype(o_ref.dtype)


def _edge_pre(x, pos, w1x, w1p, b1, tile_m=1024):
    M, C = x.shape
    H1 = w1x.shape[1]
    tm = _pick_tile_m(M, tile_m)
    grid_m = pl.cdiv(M, tm)
    return pl.pallas_call(
        _edge_pre_kernel,
        out_shape=jax.ShapeDtypeStruct((M, H1), jnp.bfloat16),
        grid=(grid_m,),
        in_specs=[
            pl.BlockSpec((tm, C), lambda i: (i, 0)),
            pl.BlockSpec((tm, 3), lambda i: (i, 0)),
            pl.BlockSpec((C, H1), lambda i: (0, 0)),
            pl.BlockSpec((3, H1), lambda i: (0, 0)),
            pl.BlockSpec((1, H1), lambda i: (0, 0)),
        ],
        out_specs=pl.BlockSpec((tm, H1), lambda i: (i, 0)),
        compiler_params=pltpu.CompilerParams(dimension_semantics=("parallel",)),
    )(x, pos, w1x, w1p, b1)


# ----------------------------------------------------------------------------
# Fused SAModule kernel: h1 = relu(a - c) built in VMEM, 2 more MLP layers,
# radius mask, running max over neighbor chunks.
# Grid: (batch, center_tile [parallel], neighbor_chunk [arbitrary, innermost]).
# ----------------------------------------------------------------------------
def _sa_kernel(pos_c_ref, pos_n_ref, a_ref, w1p_ref, w2_ref, b2_ref,
               w3_ref, b3_ref, o_ref, acc_ref, c_ref, *, r2):
    nj = pl.program_id(2)

    @pl.when(nj == 0)
    def _():
        acc_ref[...] = jnp.full(acc_ref.shape, -jnp.inf, acc_ref.dtype)
        # Per-center term c = pos_i @ W1p, computed once per (b, ci) (K=3 -> VPU FMAs).
        c_ref[...] = _fma_k(pos_c_ref[...], w1p_ref[...])

    pos_c = pos_c_ref[...]                     # (Tc, 3) f32 centers
    pos_n = pos_n_ref[...]                     # (Tn, 3) f32 neighbors
    tc = pos_c.shape[0]
    tn = pos_n.shape[0]
    h3_dim = acc_ref.shape[1]

    # Layer 1: relu(concat(x_j, pos_j - pos_i)@W1 + b1) = relu(a_j - c_i).
    a = a_ref[...].astype(jnp.float32)                               # (Tn, H1)
    c = c_ref[...]                                                   # (Tc, H1)
    h1 = jnp.maximum(a[None, :, :] - c[:, None, :], 0.0)            # (Tc, Tn, H1)
    h1 = h1.reshape(tc * tn, -1).astype(jnp.bfloat16)

    h2 = jnp.maximum(
        jnp.dot(h1, w2_ref[...], preferred_element_type=jnp.float32) + b2_ref[...], 0.0)
    h2 = h2.astype(jnp.bfloat16)
    h3 = jnp.maximum(
        jnp.dot(h2, w3_ref[...], preferred_element_type=jnp.float32) + b3_ref[...], 0.0)
    h3 = h3.reshape(tc, tn, h3_dim)                                  # (Tc, Tn, H3)

    # Radius mask + chunk-local max folded into a running-max accumulator.
    d2 = jnp.sum((pos_n[None, :, :] - pos_c[:, None, :]) ** 2, axis=-1, keepdims=True)
    h3 = jnp.where(d2 <= r2, h3, -jnp.inf)
    acc_ref[...] = jnp.maximum(acc_ref[...], jnp.max(h3, axis=1))

    @pl.when(nj == pl.num_programs(2) - 1)
    def _():
        o_ref[...] = acc_ref[...].astype(o_ref.dtype)


def sa_module(x, pos, ratio, r, p, tc=64, tn=128):
    """SAModule: FPS -> radius neighborhoods -> PointNetConv (fused MLP + max agg)."""
    B, N, C = x.shape
    n_s = int(math.ceil(ratio * N))
    idx = fps_dense(pos, n_s)                                   # (B, n_s) irregular
    pos_c = batched_gather(pos, idx)                            # (B, n_s, 3)

    tc_eff = min(tc, _round_up(n_s, 8))
    sp = _round_up(n_s, tc_eff)
    tn_eff = min(tn, _round_up(N, 8))
    npad = _round_up(N, tn_eff)

    # Pad the small per-point arrays only (never the edge tensor).  Padded points sit
    # at 1e6 so they fail the radius test against all real points.
    pos_c_p = jnp.pad(pos_c, ((0, 0), (0, sp - n_s), (0, 0)), constant_values=1e6)
    pos_p = jnp.pad(pos, ((0, 0), (0, npad - N), (0, 0)), constant_values=1e6)
    x_p = jnp.pad(x, ((0, 0), (0, npad - N), (0, 0))).astype(jnp.bfloat16)

    H1 = p["w1x"].shape[1]
    H2 = p["w2"].shape[1]
    H3 = p["w3"].shape[1]

    # Hoisted center-independent layer-1 term (computed once per point).
    a = _edge_pre(x_p.reshape(B * npad, C), pos_p.reshape(B * npad, 3),
                  p["w1x"], p["w1p"], p["b1"]).reshape(B, npad, H1)

    out = pl.pallas_call(
        functools.partial(_sa_kernel, r2=float(r * r)),
        out_shape=jax.ShapeDtypeStruct((B, sp, H3), jnp.bfloat16),
        grid=(B, sp // tc_eff, npad // tn_eff),
        in_specs=[
            pl.BlockSpec((None, tc_eff, 3), lambda b, ci, nj: (b, ci, 0)),
            pl.BlockSpec((None, tn_eff, 3), lambda b, ci, nj: (b, nj, 0)),
            pl.BlockSpec((None, tn_eff, H1), lambda b, ci, nj: (b, nj, 0)),
            # Weights: constant index maps (block re-fetched from the same HBM slab;
            # sizes are small relative to the 48 MiB VMEM budget below).
            pl.BlockSpec((3, H1), lambda b, ci, nj: (0, 0)),
            pl.BlockSpec((H1, H2), lambda b, ci, nj: (0, 0)),
            pl.BlockSpec((1, H2), lambda b, ci, nj: (0, 0)),
            pl.BlockSpec((H2, H3), lambda b, ci, nj: (0, 0)),
            pl.BlockSpec((1, H3), lambda b, ci, nj: (0, 0)),
        ],
        out_specs=pl.BlockSpec((None, tc_eff, H3), lambda b, ci, nj: (b, ci, 0)),
        scratch_shapes=[pltpu.VMEM((tc_eff, H3), jnp.float32),
                        pltpu.VMEM((tc_eff, H1), jnp.float32)],
        compiler_params=pltpu.CompilerParams(
            dimension_semantics=("parallel", "parallel", "arbitrary"),
            vmem_limit_bytes=48 * 1024 * 1024),
    )(pos_c_p, pos_p, a, p["w1p"], p["w2"], p["b2"], p["w3"], p["b3"])
    # Rows n_s..sp are padded centers (garbage / -inf): the slice is REQUIRED.
    return out[:, :n_s], pos_c


# ----------------------------------------------------------------------------
# Fused GlobalSAModule kernel: MLP(concat(x, pos)) + masked global max per batch.
# ----------------------------------------------------------------------------
def _global_sa_kernel(x_ref, pos_ref, w1x_ref, w1p_ref, b1_ref,
                      w2_ref, b2_ref, w3_ref, b3_ref, o_ref, acc_ref, *, n_valid):
    nj = pl.program_id(1)

    @pl.when(nj == 0)
    def _():
        acc_ref[...] = jnp.full(acc_ref.shape, -jnp.inf, acc_ref.dtype)

    pos = pos_ref[...]
    tn = pos.shape[0]
    h = (jnp.dot(x_ref[...], w1x_ref[...], preferred_element_type=jnp.float32)
         + _fma_k(pos, w1p_ref[...]) + b1_ref[...])
    h = jnp.maximum(h, 0.0).astype(jnp.bfloat16)
    h = jnp.maximum(
        jnp.dot(h, w2_ref[...], preferred_element_type=jnp.float32) + b2_ref[...], 0.0)
    h = h.astype(jnp.bfloat16)
    h = jnp.maximum(
        jnp.dot(h, w3_ref[...], preferred_element_type=jnp.float32) + b3_ref[...], 0.0)
    # Mask padded rows (index-based; no HBM mask array).
    row = nj * tn + lax.broadcasted_iota(jnp.int32, (tn, 1), 0)
    h = jnp.where(row < n_valid, h, -jnp.inf)
    acc_ref[...] = jnp.maximum(acc_ref[...], jnp.max(h, axis=0, keepdims=True))

    @pl.when(nj == pl.num_programs(1) - 1)
    def _():
        o_ref[...] = acc_ref[...].astype(o_ref.dtype)


def global_sa_module(x, pos, p, tn=512):
    B, N, C = x.shape
    tn_eff = min(tn, _round_up(N, 8))
    npad = _round_up(N, tn_eff)
    x_p = jnp.pad(x, ((0, 0), (0, npad - N), (0, 0))).astype(jnp.bfloat16)
    pos_p = jnp.pad(pos, ((0, 0), (0, npad - N), (0, 0)))

    H1 = p["w1x"].shape[1]
    H2 = p["w2"].shape[1]
    H3 = p["w3"].shape[1]

    out = pl.pallas_call(
        functools.partial(_global_sa_kernel, n_valid=N),
        out_shape=jax.ShapeDtypeStruct((B, 1, H3), jnp.bfloat16),
        grid=(B, npad // tn_eff),
        in_specs=[
            pl.BlockSpec((None, tn_eff, C), lambda b, nj: (b, nj, 0)),
            pl.BlockSpec((None, tn_eff, 3), lambda b, nj: (b, nj, 0)),
            pl.BlockSpec((C, H1), lambda b, nj: (0, 0)),
            pl.BlockSpec((3, H1), lambda b, nj: (0, 0)),
            pl.BlockSpec((1, H1), lambda b, nj: (0, 0)),
            pl.BlockSpec((H1, H2), lambda b, nj: (0, 0)),
            pl.BlockSpec((1, H2), lambda b, nj: (0, 0)),
            pl.BlockSpec((H2, H3), lambda b, nj: (0, 0)),
            pl.BlockSpec((1, H3), lambda b, nj: (0, 0)),
        ],
        out_specs=pl.BlockSpec((None, 1, H3), lambda b, nj: (b, 0, 0)),
        scratch_shapes=[pltpu.VMEM((1, H3), jnp.float32)],
        compiler_params=pltpu.CompilerParams(
            dimension_semantics=("parallel", "arbitrary"),
            vmem_limit_bytes=48 * 1024 * 1024),
    )(x_p, pos_p, p["w1x"], p["w1p"], p["b1"], p["w2"], p["b2"], p["w3"], p["b3"])
    posg = jnp.zeros((B, 1, 3), pos.dtype)
    return out, posg


# ----------------------------------------------------------------------------
# Generic fused MLP (all layers relu) — used by the FP modules.  bf16 output.
# ----------------------------------------------------------------------------
def _mlp_kernel(*refs, n_layers):
    x_ref = refs[0]
    o_ref = refs[-1]
    h = x_ref[...]
    for l in range(n_layers):
        w = refs[1 + 2 * l][...]
        b = refs[2 + 2 * l][...]
        h = jnp.dot(h, w, preferred_element_type=jnp.float32) + b
        h = jnp.maximum(h, 0.0)
        if l < n_layers - 1:
            h = h.astype(jnp.bfloat16)
    o_ref[...] = h.astype(o_ref.dtype)


def fused_mlp(x, layers, tile_m=512, out_dtype=jnp.bfloat16):
    M, K = x.shape
    n_layers = len(layers)
    n_out = layers[-1][0].shape[1]
    tm = _pick_tile_m(M, tile_m)
    grid_m = pl.cdiv(M, tm)

    in_specs = [pl.BlockSpec((tm, K), lambda i: (i, 0))]
    flat = []
    for (w, b) in layers:
        kin, kout = w.shape
        in_specs.append(pl.BlockSpec((kin, kout), lambda i: (0, 0)))
        in_specs.append(pl.BlockSpec((1, kout), lambda i: (0, 0)))
        flat += [w, b]

    return pl.pallas_call(
        functools.partial(_mlp_kernel, n_layers=n_layers),
        out_shape=jax.ShapeDtypeStruct((M, n_out), out_dtype),
        grid=(grid_m,),
        in_specs=in_specs,
        out_specs=pl.BlockSpec((tm, n_out), lambda i: (i, 0)),
        compiler_params=pltpu.CompilerParams(dimension_semantics=("parallel",)),
    )(x.astype(jnp.bfloat16), *flat)


# ----------------------------------------------------------------------------
# Fused classification head: relu(lin1) -> lin2 -> lin3 -> log_softmax.
# Class dim zero-padded to 128 lanes (dense stores); padded lanes masked to -inf.
# ----------------------------------------------------------------------------
def _head_kernel(x_ref, w1_ref, b1_ref, w2_ref, b2_ref, w3_ref, b3_ref, o_ref, *, n_valid):
    h = jnp.dot(x_ref[...], w1_ref[...], preferred_element_type=jnp.float32) + b1_ref[...]
    h = jnp.maximum(h, 0.0).astype(jnp.bfloat16)      # dropout(eval) == identity
    h = jnp.dot(h, w2_ref[...], preferred_element_type=jnp.float32) + b2_ref[...]
    h = h.astype(jnp.bfloat16)                        # dropout(eval) == identity
    h = jnp.dot(h, w3_ref[...], preferred_element_type=jnp.float32) + b3_ref[...]
    col = lax.broadcasted_iota(jnp.int32, h.shape, 1)
    h = jnp.where(col < n_valid, h, -jnp.inf)
    m = jnp.max(h, axis=-1, keepdims=True)
    s = h - m
    lse = jnp.log(jnp.sum(jnp.exp(s), axis=-1, keepdims=True))
    o_ref[...] = (s - lse).astype(o_ref.dtype)


def pallas_head(x, hp, num_classes, tile_m=512):
    M, K = x.shape
    H1 = hp["w1"].shape[1]
    H2 = hp["w2"].shape[1]
    CP = hp["w3"].shape[1]
    tm = _pick_tile_m(M, tile_m)
    grid_m = pl.cdiv(M, tm)
    out = pl.pallas_call(
        functools.partial(_head_kernel, n_valid=num_classes),
        out_shape=jax.ShapeDtypeStruct((M, CP), jnp.float32),
        grid=(grid_m,),
        in_specs=[
            pl.BlockSpec((tm, K), lambda i: (i, 0)),
            pl.BlockSpec((K, H1), lambda i: (0, 0)),
            pl.BlockSpec((1, H1), lambda i: (0, 0)),
            pl.BlockSpec((H1, H2), lambda i: (0, 0)),
            pl.BlockSpec((1, H2), lambda i: (0, 0)),
            pl.BlockSpec((H2, CP), lambda i: (0, 0)),
            pl.BlockSpec((1, CP), lambda i: (0, 0)),
        ],
        out_specs=pl.BlockSpec((tm, CP), lambda i: (i, 0)),
        compiler_params=pltpu.CompilerParams(dimension_semantics=("parallel",)),
    )(x.astype(jnp.bfloat16), hp["w1"], hp["b1"], hp["w2"], hp["b2"], hp["w3"], hp["b3"])
    return out[:, :num_classes]


# ----------------------------------------------------------------------------
# Plain-JAX glue: FPS, per-batch gather, kNN interpolation (irregular indexing)
# ----------------------------------------------------------------------------
def batched_gather(a, idx):
    return jax.vmap(lambda ab, ib: ab[ib])(a, idx)


def fps_dense(pos, n_samples):
    """Farthest point sampling per batch (deterministic start at index 0)."""
    N = pos.shape[1]

    def one(p):
        idx0 = jnp.zeros((n_samples,), jnp.int32)
        mind0 = jnp.full((N,), jnp.inf, jnp.float32)

        def body(i, st):
            idx, mind = st
            last = p[idx[i - 1]]
            d = jnp.sum((p - last) ** 2, axis=-1)
            mind = jnp.minimum(mind, d)
            nxt = jnp.argmax(mind).astype(jnp.int32)
            return idx.at[i].set(nxt), mind

        idx, _ = lax.fori_loop(1, n_samples, body, (idx0, mind0))
        return idx

    return jax.vmap(one)(pos)


def knn_interpolate(x, pos, pos_skip, k):
    """Inverse-squared-distance weighted kNN interpolation (torch_geometric semantics)."""
    # TODO(synk): fuse d2 + top_k + gather into a Pallas kernel (scalar-prefetched
    #             indices + pl.Element row gather) at realistic N; kept in JAX here.
    n_src = pos.shape[1]
    keff = min(k, n_src)
    d2 = jnp.sum((pos_skip[:, :, None, :] - pos[:, None, :, :]) ** 2, axis=-1)
    neg_d, idx = lax.top_k(-d2, keff)                           # (B, Ns, keff)
    w = 1.0 / jnp.maximum(-neg_d, 1e-16)
    xk = jax.vmap(lambda xb, ib: xb[ib])(x, idx)                # (B, Ns, keff, C)
    num = jnp.sum(w[..., None] * xk.astype(jnp.float32), axis=2)
    den = jnp.sum(w, axis=2, keepdims=True)
    return num / den


def fp_module(x, pos, x_skip, pos_skip, k, layers):
    y = knn_interpolate(x, pos, pos_skip, k).astype(jnp.bfloat16)
    y = jnp.concatenate([y, x_skip.astype(jnp.bfloat16)], axis=-1)
    B, Ns, C = y.shape
    return fused_mlp(y.reshape(B * Ns, C), layers).reshape(B, Ns, -1)


# ----------------------------------------------------------------------------
# Parameter init (f32) + preparation into kernel-friendly layouts / dtypes
# ----------------------------------------------------------------------------
def init_mlp(key, channels):
    params = []
    for cin, cout in zip(channels[:-1], channels[1:]):
        key, k1, k2 = jax.random.split(key, 3)
        w = jax.random.normal(k1, (cin, cout), jnp.float32) * (2.0 / cin) ** 0.5
        b = jax.random.normal(k2, (cout,), jnp.float32) * 0.01
        params.append((w, b))
    return key, params


def _pad_to(a, shape):
    return jnp.pad(a, [(0, t - s) for s, t in zip(a.shape, shape)])


def _prep_pointconv(layers, c_in):
    """Split layer-1 weight into feature/position paths; zero-pad hidden dims to a
    multiple of 128 (exact: relu(0)=0 rows/cols contribute nothing); bf16 MXU operands."""
    (w1, b1), (w2, b2), (w3, b3) = layers
    h1 = _round_up(w1.shape[1], 128)
    h2 = _round_up(w2.shape[1], 128)
    h3 = w3.shape[1]          # output channel count: must stay unpadded (consumed as-is)
    return dict(
        w1x=_pad_to(w1[:c_in], (c_in, h1)).astype(jnp.bfloat16),
        w1p=_pad_to(w1[c_in:], (3, h1)).astype(jnp.float32),
        b1=_pad_to(b1, (h1,)).reshape(1, -1).astype(jnp.float32),
        w2=_pad_to(w2, (h1, h2)).astype(jnp.bfloat16),
        b2=_pad_to(b2, (h2,)).reshape(1, -1).astype(jnp.float32),
        w3=_pad_to(w3, (h2, h3)).astype(jnp.bfloat16),
        b3=b3.reshape(1, -1).astype(jnp.float32),
    )


def _prep_mlp(layers):
    return [(w.astype(jnp.bfloat16), b.reshape(1, -1).astype(jnp.float32))
            for (w, b) in layers]


def _prep_head(layers, num_classes):
    (w1, b1), (w2, b2), (w3, b3) = layers
    cp = _round_up(num_classes, 128)
    w3p = jnp.zeros((w3.shape[0], cp), jnp.float32).at[:, :num_classes].set(w3)
    b3p = jnp.zeros((cp,), jnp.float32).at[:num_classes].set(b3)
    return dict(
        w1=w1.astype(jnp.bfloat16), b1=b1.reshape(1, -1).astype(jnp.float32),
        w2=w2.astype(jnp.bfloat16), b2=b2.reshape(1, -1).astype(jnp.float32),
        w3=w3p.astype(jnp.bfloat16), b3=b3p.reshape(1, -1).astype(jnp.float32),
    )


def init_pointnet_params(key, num_classes):
    raw = {}
    key, raw["sa1"] = init_mlp(key, [3 + 3, 64, 64, 128])
    key, raw["sa2"] = init_mlp(key, [128 + 3, 128, 128, 256])
    key, raw["sa3"] = init_mlp(key, [256 + 3, 256, 512, 1024])
    key, raw["fp3"] = init_mlp(key, [1024 + 256, 256, 256])
    key, raw["fp2"] = init_mlp(key, [256 + 128, 256, 128])
    key, raw["fp1"] = init_mlp(key, [128 + 3, 128, 128, 128])
    key, raw["head"] = init_mlp(key, [128, 128, 128, num_classes])
    return {
        "sa1": _prep_pointconv(raw["sa1"], 3),
        "sa2": _prep_pointconv(raw["sa2"], 128),
        "sa3": _prep_pointconv(raw["sa3"], 256),
        "fp3": _prep_mlp(raw["fp3"]),
        "fp2": _prep_mlp(raw["fp2"]),
        "fp1": _prep_mlp(raw["fp1"]),
        "head": _prep_head(raw["head"], num_classes),
    }


# ----------------------------------------------------------------------------
# Forward
# ----------------------------------------------------------------------------
def pointnet_forward(params, x0, pos0, num_classes):
    B, N0, _ = pos0.shape
    x1, pos1 = sa_module(x0, pos0, 0.2, 0.2, params["sa1"])
    x2, pos2 = sa_module(x1, pos1, 0.25, 0.4, params["sa2"])
    x3, pos3 = global_sa_module(x2, pos2, params["sa3"])
    xf3 = fp_module(x3, pos3, x2, pos2, 1, params["fp3"])
    xf2 = fp_module(xf3, pos2, x1, pos1, 3, params["fp2"])
    xf1 = fp_module(xf2, pos1, x0, pos0, 3, params["fp1"])
    h = xf1.reshape(B * N0, -1)                          # (num_points, 128) bf16
    return pallas_head(h, params["head"], num_classes)   # (num_points, num_classes) f32


# ----------------------------------------------------------------------------
if __name__ == "__main__":
    B = 2            # batches
    N0 = 32          # points per batch (equal-sized, batch-contiguous)
    NUM_CLASSES = 10

    key = jax.random.PRNGKey(0)
    key, kpos, kx = jax.random.split(key, 3)
    pos0 = jax.random.uniform(kpos, (B, N0, 3), jnp.float32)   # point coordinates
    x0 = jax.random.normal(kx, (B, N0, 3), jnp.float32)
    x0 = x0 / jnp.linalg.norm(x0, axis=-1, keepdims=True)      # unit normals (data.x)

    params = init_pointnet_params(jax.random.PRNGKey(42), NUM_CLASSES)

    fwd = jax.jit(functools.partial(pointnet_forward, num_classes=NUM_CLASSES))
    out = fwd(params, x0, pos0)
    jax.block_until_ready(out)

    assert out.shape == (B * N0, NUM_CLASSES)
    assert bool(jnp.all(jnp.isfinite(out)))
    # log_softmax sanity: probabilities sum to 1 per point.
    assert bool(jnp.all(jnp.abs(jnp.sum(jnp.exp(out), axis=-1) - 1.0) < 5e-2))
    print("KERNEL_OK")
</pallas_src>

<mosaic_0001>
module attributes {stable_mosaic.version = 11 : i64} {
  func.func @_edge_pre_kernel(%arg0: i32, %arg1: memref<32x3xbf16, #tpu.memory_space<vmem>>, %arg2: memref<32x3xf32, #tpu.memory_space<vmem>>, %arg3: memref<3x128xbf16, #tpu.memory_space<vmem>>, %arg4: memref<3x128xf32, #tpu.memory_space<vmem>>, %arg5: memref<1x128xf32, #tpu.memory_space<vmem>>, %arg6: memref<32x128xbf16, #tpu.memory_space<vmem>>) attributes {dimension_semantics = [#tpu.dimension_semantics<parallel>], iteration_bounds = array<i64: 2>, scalar_prefetch = 0 : i64, scratch_operands = 0 : i64, tpu.core_type = #tpu.core_type<tc>, window_params = [{transform_indices = @transform_0, window_bounds = array<i64: 32, 3>}, {transform_indices = @transform_1, window_bounds = array<i64: 32, 3>}, {pipeline_mode = #tpu.pipeline_mode<synchronous>, transform_indices = @transform_2, window_bounds = array<i64: 3, 128>}, {pipeline_mode = #tpu.pipeline_mode<synchronous>, transform_indices = @transform_3, window_bounds = array<i64: 3, 128>}, {pipeline_mode = #tpu.pipeline_mode<synchronous>, transform_indices = @transform_4, window_bounds = array<i64: 1, 128>}, {transform_indices = @transform_5, window_bounds = array<i64: 32, 128>}]} {
    %c0 = arith.constant 0 : index
    %c0_0 = arith.constant 0 : index
    %0 = vector.load %arg1[%c0, %c0_0] : memref<32x3xbf16, #tpu.memory_space<vmem>>, vector<32x3xbf16>
    %c0_1 = arith.constant 0 : index
    %c0_2 = arith.constant 0 : index
    %1 = vector.load %arg3[%c0_1, %c0_2] : memref<3x128xbf16, #tpu.memory_space<vmem>>, vector<3x128xbf16>
    %2 = vector.extract_strided_slice %0 {offsets = [0, 0], sizes = [32, 1], strides = [1, 1]} : vector<32x3xbf16> to vector<32x1xbf16>
    %3 = arith.extf %2 : vector<32x1xbf16> to vector<32x1xf32>
    %4 = vector.extract_strided_slice %1 {offsets = [0, 0], sizes = [1, 128], strides = [1, 1]} : vector<3x128xbf16> to vector<1x128xbf16>
    %5 = arith.extf %4 : vector<1x128xbf16> to vector<1x128xf32>
    %6 = vector.broadcast %3 : vector<32x1xf32> to vector<32x128xf32>
    %7 = vector.broadcast %5 : vector<1x128xf32> to vector<32x128xf32>
    %8 = arith.mulf %6, %7 : vector<32x128xf32>
    %9 = vector.extract_strided_slice %0 {offsets = [0, 1], sizes = [32, 1], strides = [1, 1]} : vector<32x3xbf16> to vector<32x1xbf16>
    %10 = arith.extf %9 : vector<32x1xbf16> to vector<32x1xf32>
    %11 = vector.extract_strided_slice %1 {offsets = [1, 0], sizes = [1, 128], strides = [1, 1]} : vector<3x128xbf16> to vector<1x128xbf16>
    %12 = arith.extf %11 : vector<1x128xbf16> to vector<1x128xf32>
    %13 = vector.broadcast %10 : vector<32x1xf32> to vector<32x128xf32>
    %14 = vector.broadcast %12 : vector<1x128xf32> to vector<32x128xf32>
    %15 = arith.mulf %13, %14 : vector<32x128xf32>
    %16 = arith.addf %8, %15 : vector<32x128xf32>
    %17 = vector.extract_strided_slice %0 {offsets = [0, 2], sizes = [32, 1], strides = [1, 1]} : vector<32x3xbf16> to vector<32x1xbf16>
    %18 = arith.extf %17 : vector<32x1xbf16> to vector<32x1xf32>
    %19 = vector.extract_strided_slice %1 {offsets = [2, 0], sizes = [1, 128], strides = [1, 1]} : vector<3x128xbf16> to vector<1x128xbf16>
    %20 = arith.extf %19 : vector<1x128xbf16> to vector<1x128xf32>
    %21 = vector.broadcast %18 : vector<32x1xf32> to vector<32x128xf32>
    %22 = vector.broadcast %20 : vector<1x128xf32> to vector<32x128xf32>
    %23 = arith.mulf %21, %22 : vector<32x128xf32>
    %24 = arith.addf %16, %23 : vector<32x128xf32>
    %c0_3 = arith.constant 0 : index
    %c0_4 = arith.constant 0 : index
    %25 = vector.load %arg2[%c0_3, %c0_4] : memref<32x3xf32, #tpu.memory_space<vmem>>, vector<32x3xf32>
    %c0_5 = arith.constant 0 : index
    %c0_6 = arith.constant 0 : index
    %26 = vector.load %arg4[%c0_5, %c0_6] : memref<3x128xf32, #tpu.memory_space<vmem>>, vector<3x128xf32>
    %27 = vector.extract_strided_slice %25 {offsets = [0, 0], sizes = [32, 1], strides = [1, 1]} : vector<32x3xf32> to vector<32x1xf32>
    %28 = vector.extract_strided_slice %26 {offsets = [0, 0], sizes = [1, 128], strides = [1, 1]} : vector<3x128xf32> to vector<1x128xf32>
    %29 = vector.broadcast %27 : vector<32x1xf32> to vector<32x128xf32>
    %30 = vector.broadcast %28 : vector<1x128xf32> to vector<32x128xf32>
    %31 = arith.mulf %29, %30 : vector<32x128xf32>
    %32 = vector.extract_strided_slice %25 {offsets = [0, 1], sizes = [32, 1], strides = [1, 1]} : vector<32x3xf32> to vector<32x1xf32>
    %33 = vector.extract_strided_slice %26 {offsets = [1, 0], sizes = [1, 128], strides = [1, 1]} : vector<3x128xf32> to vector<1x128xf32>
    %34 = vector.broadcast %32 : vector<32x1xf32> to vector<32x128xf32>
    %35 = vector.broadcast %33 : vector<1x128xf32> to vector<32x128xf32>
    %36 = arith.mulf %34, %35 : vector<32x128xf32>
    %37 = arith.addf %31, %36 : vector<32x128xf32>
    %38 = vector.extract_strided_slice %25 {offsets = [0, 2], sizes = [32, 1], strides = [1, 1]} : vector<32x3xf32> to vector<32x1xf32>
    %39 = vector.extract_strided_slice %26 {offsets = [2, 0], sizes = [1, 128], strides = [1, 1]} : vector<3x128xf32> to vector<1x128xf32>
    %40 = vector.broadcast %38 : vector<32x1xf32> to vector<32x128xf32>
    %41 = vector.broadcast %39 : vector<1x128xf32> to vector<32x128xf32>
    %42 = arith.mulf %40, %41 : vector<32x128xf32>
    %43 = arith.addf %37, %42 : vector<32x128xf32>
    %44 = arith.addf %24, %43 : vector<32x128xf32>
    %c0_7 = arith.constant 0 : index
    %c0_8 = arith.constant 0 : index
    %45 = vector.load %arg5[%c0_7, %c0_8] : memref<1x128xf32, #tpu.memory_space<vmem>>, vector<1x128xf32>
    %46 = vector.broadcast %45 : vector<1x128xf32> to vector<32x128xf32>
    %47 = arith.addf %44, %46 : vector<32x128xf32>
    %48 = arith.truncf %47 : vector<32x128xf32> to vector<32x128xbf16>
    %c0_9 = arith.constant 0 : index
    %c0_10 = arith.constant 0 : index
    %49 = vector.load %arg6[%c0_9, %c0_10] : memref<32x128xbf16, #tpu.memory_space<vmem>>, vector<32x128xbf16>
    tpu.vector_store %arg6[%c0_9, %c0_10], %48 {strides = array<i32>} : memref<32x128xbf16, #tpu.memory_space<vmem>>, vector<32x128xbf16>,
    return
  }
  func.func @transform_0(%arg0: i32) -> (i32, i32) {
    %c0_i32 = arith.constant 0 : i32
    %c0_i32_0 = arith.constant 0 : i32
    return %arg0, %c0_i32 : i32, i32
  }
  func.func @transform_1(%arg0: i32) -> (i32, i32) {
    %c0_i32 = arith.constant 0 : i32
    %c0_i32_0 = arith.constant 0 : i32
    return %arg0, %c0_i32 : i32, i32
  }
  func.func @transform_2(%arg0: i32) -> (i32, i32) {
    %c0_i32 = arith.constant 0 : i32
    %c0_i32_0 = arith.constant 0 : i32
    %c0_i32_1 = arith.constant 0 : i32
    return %c0_i32, %c0_i32_0 : i32, i32
  }
  func.func @transform_3(%arg0: i32) -> (i32, i32) {
    %c0_i32 = arith.constant 0 : i32
    %c0_i32_0 = arith.constant 0 : i32
    %c0_i32_1 = arith.constant 0 : i32
    return %c0_i32, %c0_i32_0 : i32, i32
  }
  func.func @transform_4(%arg0: i32) -> (i32, i32) {
    %c0_i32 = arith.constant 0 : i32
    %c0_i32_0 = arith.constant 0 : i32
    %c0_i32_1 = arith.constant 0 : i32
    return %c0_i32, %c0_i32_0 : i32, i32
  }
  func.func @transform_5(%arg0: i32) -> (i32, i32) {
    %c0_i32 = arith.constant 0 : i32
    %c0_i32_0 = arith.constant 0 : i32
    return %arg0, %c0_i32 : i32, i32
  }
}

module attributes {stable_mosaic.version = 11 : i64} {
  func.func @_sa_kernel(%arg0: i32, %arg1: i32, %arg2: i32, %arg3: memref<1x8x3xf32, #tpu.memory_space<vmem>>, %arg4: memref<1x32x3xf32, #tpu.memory_space<vmem>>, %arg5: memref<1x32x128xbf16, #tpu.memory_space<vmem>>, %arg6: memref<3x128xf32, #tpu.memory_space<vmem>>, %arg7: memref<128x128xbf16, #tpu.memory_space<vmem>>, %arg8: memref<1x128xf32, #tpu.memory_space<vmem>>, %arg9: memref<128x128xbf16, #tpu.memory_space<vmem>>, %arg10: memref<1x128xf32, #tpu.memory_space<vmem>>, %arg11: memref<1x8x128xbf16, #tpu.memory_space<vmem>>, %arg12: memref<8x128xf32, #tpu.memory_space<vmem>>, %arg13: memref<8x128xf32, #tpu.memory_space<vmem>>) attributes {dimension_semantics = [#tpu.dimension_semantics<parallel>, #tpu.dimension_semantics<parallel>, #tpu.dimension_semantics<arbitrary>], iteration_bounds = array<i64: 2, 1, 1>, scalar_prefetch = 0 : i64, scratch_operands = 2 : i64, tpu.core_type = #tpu.core_type<tc>, window_params = [{transform_indices = @transform_0, window_bounds = array<i64: 1, 8, 3>}, {transform_indices = @transform_1, window_bounds = array<i64: 1, 32, 3>}, {transform_indices = @transform_2, window_bounds = array<i64: 1, 32, 128>}, {pipeline_mode = #tpu.pipeline_mode<synchronous>, transform_indices = @transform_3, window_bounds = array<i64: 3, 128>}, {pipeline_mode = #tpu.pipeline_mode<synchronous>, transform_indices = @transform_4, window_bounds = array<i64: 128, 128>}, {pipeline_mode = #tpu.pipeline_mode<synchronous>, transform_indices = @transform_5, window_bounds = array<i64: 1, 128>}, {pipeline_mode = #tpu.pipeline_mode<synchronous>, transform_indices = @transform_6, window_bounds = array<i64: 128, 128>}, {pipeline_mode = #tpu.pipeline_mode<synchronous>, transform_indices = @transform_7, window_bounds = array<i64: 1, 128>}, {transform_indices = @transform_8, window_bounds = array<i64: 1, 8, 128>}]} {
    %c0_i32 = arith.constant 0 : i32
    %0 = arith.cmpi eq, %arg2, %c0_i32 : i32
    %1 = arith.extui %0 : i1 to i32
    %c0_i32_0 = arith.constant 0 : i32
    %2 = arith.cmpi ne, %1, %c0_i32_0 : i32
    scf.if %2 {
      %cst_33 = arith.constant 0xFF800000 : f32
      %57 = vector.broadcast %cst_33 : f32 to vector<8x128xf32>
      %c0_34 = arith.constant 0 : index
      %c0_35 = arith.constant 0 : index
      %58 = vector.load %arg12[%c0_34, %c0_35] : memref<8x128xf32, #tpu.memory_space<vmem>>, vector<8x128xf32>
      tpu.vector_store %arg12[%c0_34, %c0_35], %57 {strides = array<i32>} : memref<8x128xf32, #tpu.memory_space<vmem>>, vector<8x128xf32>,
      %c0_36 = arith.constant 0 : index
      %c0_37 = arith.constant 0 : index
      %c0_38 = arith.constant 0 : index
      %59 = vector.load %arg3[%c0_36, %c0_37, %c0_38] : memref<1x8x3xf32, #tpu.memory_space<vmem>>, vector<1x8x3xf32>
      %60 = vector.shape_cast %59 : vector<1x8x3xf32> to vector<8x3xf32>
      %c0_39 = arith.constant 0 : index
      %c0_40 = arith.constant 0 : index
      %61 = vector.load %arg6[%c0_39, %c0_40] : memref<3x128xf32, #tpu.memory_space<vmem>>, vector<3x128xf32>
      %62 = vector.extract_strided_slice %60 {offsets = [0, 0], sizes = [8, 1], strides = [1, 1]} : vector<8x3xf32> to vector<8x1xf32>
      %63 = vector.extract_strided_slice %61 {offsets = [0, 0], sizes = [1, 128], strides = [1, 1]} : vector<3x128xf32> to vector<1x128xf32>
      %64 = vector.broadcast %62 : vector<8x1xf32> to vector<8x128xf32>
      %65 = vector.broadcast %63 : vector<1x128xf32> to vector<8x128xf32>
      %66 = arith.mulf %64, %65 : vector<8x128xf32>
      %67 = vector.extract_strided_slice %60 {offsets = [0, 1], sizes = [8, 1], strides = [1, 1]} : vector<8x3xf32> to vector<8x1xf32>
      %68 = vector.extract_strided_slice %61 {offsets = [1, 0], sizes = [1, 128], strides = [1, 1]} : vector<3x128xf32> to vector<1x128xf32>
      %69 = vector.broadcast %67 : vector<8x1xf32> to vector<8x128xf32>
      %70 = vector.broadcast %68 : vector<1x128xf32> to vector<8x128xf32>
      %71 = arith.mulf %69, %70 : vector<8x128xf32>
      %72 = arith.addf %66, %71 : vector<8x128xf32>
      %73 = vector.extract_strided_slice %60 {offsets = [0, 2], sizes = [8, 1], strides = [1, 1]} : vector<8x3xf32> to vector<8x1xf32>
      %74 = vector.extract_strided_slice %61 {offsets = [2, 0], sizes = [1, 128], strides = [1, 1]} : vector<3x128xf32> to vector<1x128xf32>
      %75 = vector.broadcast %73 : vector<8x1xf32> to vector<8x128xf32>
      %76 = vector.broadcast %74 : vector<1x128xf32> to vector<8x128xf32>
      %77 = arith.mulf %75, %76 : vector<8x128xf32>
      %78 = arith.addf %72, %77 : vector<8x128xf32>
      %c0_41 = arith.constant 0 : index
      %c0_42 = arith.constant 0 : index
      %79 = vector.load %arg13[%c0_41, %c0_42] : memref<8x128xf32, #tpu.memory_space<vmem>>, vector<8x128xf32>
      tpu.vector_store %arg13[%c0_41, %c0_42], %78 {strides = array<i32>} : memref<8x128xf32, #tpu.memory_space<vmem>>, vector<8x128xf32>,
    } else {
    }
    %c0 = arith.constant 0 : index
    %c0_1 = arith.constant 0 : index
    %c0_2 = arith.constant 0 : index
    %3 = vector.load %arg3[%c0, %c0_1, %c0_2] : memref<1x8x3xf32, #tpu.memory_space<vmem>>, vector<1x8x3xf32>
    %4 = vector.shape_cast %3 : vector<1x8x3xf32> to vector<8x3xf32>
    %c0_3 = arith.constant 0 : index
    %c0_4 = arith.constant 0 : index
    %c0_5 = arith.constant 0 : index
    %5 = vector.load %arg4[%c0_3, %c0_4, %c0_5] : memref<1x32x3xf32, #tpu.memory_space<vmem>>, vector<1x32x3xf32>
    %6 = vector.shape_cast %5 : vector<1x32x3xf32> to vector<32x3xf32>
    %c0_6 = arith.constant 0 : index
    %c0_7 = arith.constant 0 : index
    %c0_8 = arith.constant 0 : index
    %7 = vector.load %arg5[%c0_6, %c0_7, %c0_8] : memref<1x32x128xbf16, #tpu.memory_space<vmem>>, vector<1x32x128xbf16>
    %8 = vector.shape_cast %7 : vector<1x32x128xbf16> to vector<32x128xbf16>
    %9 = arith.extf %8 : vector<32x128xbf16> to vector<32x128xf32>
    %c0_9 = arith.constant 0 : index
    %c0_10 = arith.constant 0 : index
    %10 = vector.load %arg13[%c0_9, %c0_10] : memref<8x128xf32, #tpu.memory_space<vmem>>, vector<8x128xf32>
    %11 = vector.shape_cast %9 : vector<32x128xf32> to vector<1x32x128xf32>
    %12 = vector.shape_cast %10 : vector<8x128xf32> to vector<8x1x128xf32>
    %13 = vector.broadcast %11 : vector<1x32x128xf32> to vector<8x32x128xf32>
    %14 = vector.broadcast %12 : vector<8x1x128xf32> to vector<8x32x128xf32>
    %15 = arith.subf %13, %14 : vector<8x32x128xf32>
    %cst = arith.constant 0.000000e+00 : f32
    %16 = vector.broadcast %cst : f32 to vector<8x32x128xf32>
    %17 = arith.maximumf %15, %16 : vector<8x32x128xf32>
    %18 = vector.shape_cast %17 : vector<8x32x128xf32> to vector<256x128xf32>
    %19 = arith.truncf %18 : vector<256x128xf32> to vector<256x128xbf16>
    %c0_11 = arith.constant 0 : index
    %c0_12 = arith.constant 0 : index
    %20 = vector.load %arg7[%c0_11, %c0_12] : memref<128x128xbf16, #tpu.memory_space<vmem>>, vector<128x128xbf16>
    %cst_13 = arith.constant dense<0.000000e+00> : vector<256x128xf32>
    %21 = tpu.matmul %19, %20, %cst_13 {dimension_numbers = #tpu.dot_dimension_numbers<[1], [0], [0], [1], [0, 0, 1, 1], [], []>} : vector<256x128xbf16>, vector<128x128xbf16>, vector<256x128xf32> -> vector<256x128xf32>
    %c0_14 = arith.constant 0 : index
    %c0_15 = arith.constant 0 : index
    %22 = vector.load %arg8[%c0_14, %c0_15] : memref<1x128xf32, #tpu.memory_space<vmem>>, vector<1x128xf32>
    %23 = vector.broadcast %22 : vector<1x128xf32> to vector<256x128xf32>
    %24 = arith.addf %21, %23 : vector<256x128xf32>
    %cst_16 = arith.constant 0.000000e+00 : f32
    %25 = vector.broadcast %cst_16 : f32 to vector<256x128xf32>
    %26 = arith.maximumf %24, %25 : vector<256x128xf32>
    %27 = arith.truncf %26 : vector<256x128xf32> to vector<256x128xbf16>
    %c0_17 = arith.constant 0 : index
    %c0_18 = arith.constant 0 : index
    %28 = vector.load %arg9[%c0_17, %c0_18] : memref<128x128xbf16, #tpu.memory_space<vmem>>, vector<128x128xbf16>
    %cst_19 = arith.constant dense<0.000000e+00> : vector<256x128xf32>
    %29 = tpu.matmul %27, %28, %cst_19 {dimension_numbers = #tpu.dot_dimension_numbers<[1], [0], [0], [1], [0, 0, 1, 1], [], []>} : vector<256x128xbf16>, vector<128x128xbf16>, vector<256x128xf32> -> vector<256x128xf32>
    %c0_20 = arith.constant 0 : index
    %c0_21 = arith.constant 0 : index
    %30 = vector.load %arg10[%c0_20, %c0_21] : memref<1x128xf32, #tpu.memory_space<vmem>>, vector<1x128xf32>
    %31 = vector.broadcast %30 : vector<1x128xf32> to vector<256x128xf32>
    %32 = arith.addf %29, %31 : vector<256x128xf32>
    %cst_22 = arith.constant 0.000000e+00 : f32
    %33 = vector.broadcast %cst_22 : f32 to vector<256x128xf32>
    %34 = arith.maximumf %32, %33 : vector<256x128xf32>
    %35 = vector.shape_cast %34 : vector<256x128xf32> to vector<8x32x128xf32>
    %36 = vector.shape_cast %6 : vector<32x3xf32> to vector<1x32x3xf32>
    %37 = vector.shape_cast %4 : vector<8x3xf32> to vector<8x1x3xf32>
    %38 = vector.broadcast %36 : vector<1x32x3xf32> to vector<8x32x3xf32>
    %39 = vector.broadcast %37 : vector<8x1x3xf32> to vector<8x32x3xf32>
    %40 = arith.subf %38, %39 : vector<8x32x3xf32>
    %41 = arith.mulf %40, %40 : vector<8x32x3xf32>
    %cst_23 = arith.constant dense<0.000000e+00> : vector<8x32xf32>
    %42 = vector.multi_reduction <add>, %41, %cst_23 [2] : vector<8x32x3xf32> to vector<8x32xf32>
    %43 = vector.shape_cast %42 : vector<8x32xf32> to vector<8x32x1xf32>
    %cst_24 = arith.constant 4.000000e-02 : f32
    %44 = vector.broadcast %cst_24 : f32 to vector<8x32x1xf32>
    %45 = arith.cmpf ole, %43, %44 : vector<8x32x1xf32>
    %cst_25 = arith.constant 0xFF800000 : f32
    %46 = vector.shape_cast %45 : vector<8x32x1xi1> to vector<8x32x1xi1>
    %47 = vector.broadcast %46 : vector<8x32x1xi1> to vector<8x32x128xi1>
    %48 = vector.broadcast %cst_25 : f32 to vector<8x32x128xf32>
    %49 = arith.select %47, %35, %48 : vector<8x32x128xi1>, vector<8x32x128xf32>
    %c0_26 = arith.constant 0 : index
    %c0_27 = arith.constant 0 : index
    %50 = vector.load %arg12[%c0_26, %c0_27] : memref<8x128xf32, #tpu.memory_space<vmem>>, vector<8x128xf32>
    %cst_28 = arith.constant dense<0xFF800000> : vector<8x128xf32>
    %51 = vector.multi_reduction <maximumf>, %49, %cst_28 [1] : vector<8x32x128xf32> to vector<8x128xf32>
    %52 = arith.maximumf %50, %51 : vector<8x128xf32>
    %c0_29 = arith.constant 0 : index
    %c0_30 = arith.constant 0 : index
    %53 = vector.load %arg12[%c0_29, %c0_30] : memref<8x128xf32, #tpu.memory_space<vmem>>, vector<8x128xf32>
    tpu.vector_store %arg12[%c0_29, %c0_30], %52 {strides = array<i32>} : memref<8x128xf32, #tpu.memory_space<vmem>>, vector<8x128xf32>,
    %c0_i32_31 = arith.constant 0 : i32
    %54 = arith.cmpi eq, %arg2, %c0_i32_31 : i32
    %55 = arith.extui %54 : i1 to i32
    %c0_i32_32 = arith.constant 0 : i32
    %56 = arith.cmpi ne, %55, %c0_i32_32 : i32
    scf.if %56 {
      %c0_33 = arith.constant 0 : index
      %c0_34 = arith.constant 0 : index
      %57 = vector.load %arg12[%c0_33, %c0_34] : memref<8x128xf32, #tpu.memory_space<vmem>>, vector<8x128xf32>
      %58 = arith.truncf %57 : vector<8x128xf32> to vector<8x128xbf16>
      %c0_35 = arith.constant 0 : index
      %c0_36 = arith.constant 0 : index
      %c0_37 = arith.constant 0 : index
      %59 = vector.load %arg11[%c0_35, %c0_36, %c0_37] : memref<1x8x128xbf16, #tpu.memory_space<vmem>>, vector<1x8x128xbf16>
      %60 = vector.shape_cast %59 : vector<1x8x128xbf16> to vector<8x128xbf16>
      %61 = vector.shape_cast %58 : vector<8x128xbf16> to vector<1x8x128xbf16>
      tpu.vector_store %arg11[%c0_35, %c0_36, %c0_37], %61 {strides = array<i32>} : memref<1x8x128xbf16, #tpu.memory_space<vmem>>, vector<1x8x128xbf16>,
    } else {
    }
    return
  }
  func.func @transform_0(%arg0: i32, %arg1: i32, %arg2: i32) -> (i32, i32, i32) {
    %c0_i32 = arith.constant 0 : i32
    %c0_i32_0 = arith.constant 0 : i32
    return %arg0, %arg1, %c0_i32 : i32, i32, i32
  }
  func.func @transform_1(%arg0: i32, %arg1: i32, %arg2: i32) -> (i32, i32, i32) {
    %c0_i32 = arith.constant 0 : i32
    %c0_i32_0 = arith.constant 0 : i32
    return %arg0, %arg2, %c0_i32 : i32, i32, i32
  }
  func.func @transform_2(%arg0: i32, %arg1: i32, %arg2: i32) -> (i32, i32, i32) {
    %c0_i32 = arith.constant 0 : i32
    %c0_i32_0 = arith.constant 0 : i32
    return %arg0, %arg2, %c0_i32 : i32, i32, i32
  }
  func.func @transform_3(%arg0: i32, %arg1: i32, %arg2: i32) -> (i32, i32) {
    %c0_i32 = arith.constant 0 : i32
    %c0_i32_0 = arith.constant 0 : i32
    %c0_i32_1 = arith.constant 0 : i32
    return %c0_i32, %c0_i32_0 : i32, i32
  }
  func.func @transform_4(%arg0: i32, %arg1: i32, %arg2: i32) -> (i32, i32) {
    %c0_i32 = arith.constant 0 : i32
    %c0_i32_0 = arith.constant 0 : i32
    %c0_i32_1 = arith.constant 0 : i32
    return %c0_i32, %c0_i32_0 : i32, i32
  }
  func.func @transform_5(%arg0: i32, %arg1: i32, %arg2: i32) -> (i32, i32) {
    %c0_i32 = arith.constant 0 : i32
    %c0_i32_0 = arith.constant 0 : i32
    %c0_i32_1 = arith.constant 0 : i32
    return %c0_i32, %c0_i32_0 : i32, i32
  }
  func.func @transform_6(%arg0: i32, %arg1: i32, %arg2: i32) -> (i32, i32) {
    %c0_i32 = arith.constant 0 : i32
    %c0_i32_0 = arith.constant 0 : i32
    %c0_i32_1 = arith.constant 0 : i32
    return %c0_i32, %c0_i32_0 : i32, i32
  }
  func.func @transform_7(%arg0: i32, %arg1: i32, %arg2: i32) -> (i32, i32) {
    %c0_i32 = arith.constant 0 : i32
    %c0_i32_0 = arith.constant 0 : i32
    %c0_i32_1 = arith.constant 0 : i32
    return %c0_i32, %c0_i32_0 : i32, i32
  }
  func.func @transform_8(%arg0: i32, %arg1: i32, %arg2: i32) -> (i32, i32, i32) {
    %c0_i32 = arith.constant 0 : i32
    %c0_i32_0 = arith.constant 0 : i32
    return %arg0, %arg1, %c0_i32 : i32, i32, i32
  }
}

module attributes {stable_mosaic.version = 11 : i64} {
  func.func @_sa_kernel(%arg0: i32, %arg1: i32, %arg2: i32, %arg3: memref<1x8x3xf32, #tpu.memory_space<vmem>>, %arg4: memref<1x8x3xf32, #tpu.memory_space<vmem>>, %arg5: memref<1x8x128xbf16, #tpu.memory_space<vmem>>, %arg6: memref<3x128xf32, #tpu.memory_space<vmem>>, %arg7: memref<128x128xbf16, #tpu.memory_space<vmem>>, %arg8: memref<1x128xf32, #tpu.memory_space<vmem>>, %arg9: memref<128x256xbf16, #tpu.memory_space<vmem>>, %arg10: memref<1x256xf32, #tpu.memory_space<vmem>>, %arg11: memref<1x8x256xbf16, #tpu.memory_space<vmem>>, %arg12: memref<8x256xf32, #tpu.memory_space<vmem>>, %arg13: memref<8x128xf32, #tpu.memory_space<vmem>>) attributes {dimension_semantics = [#tpu.dimension_semantics<parallel>, #tpu.dimension_semantics<parallel>, #tpu.dimension_semantics<arbitrary>], iteration_bounds = array<i64: 2, 1, 1>, scalar_prefetch = 0 : i64, scratch_operands = 2 : i64, tpu.core_type = #tpu.core_type<tc>, window_params = [{transform_indices = @transform_0, window_bounds = array<i64: 1, 8, 3>}, {transform_indices = @transform_1, window_bounds = array<i64: 1, 8, 3>}, {transform_indices = @transform_2, window_bounds = array<i64: 1, 8, 128>}, {pipeline_mode = #tpu.pipeline_mode<synchronous>, transform_indices = @transform_3, window_bounds = array<i64: 3, 128>}, {pipeline_mode = #tpu.pipeline_mode<synchronous>, transform_indices = @transform_4, window_bounds = array<i64: 128, 128>}, {pipeline_mode = #tpu.pipeline_mode<synchronous>, transform_indices = @transform_5, window_bounds = array<i64: 1, 128>}, {pipeline_mode = #tpu.pipeline_mode<synchronous>, transform_indices = @transform_6, window_bounds = array<i64: 128, 256>}, {pipeline_mode = #tpu.pipeline_mode<synchronous>, transform_indices = @transform_7, window_bounds = array<i64: 1, 256>}, {transform_indices = @transform_8, window_bounds = array<i64: 1, 8, 256>}]} {
    %c0_i32 = arith.constant 0 : i32
    %0 = arith.cmpi eq, %arg2, %c0_i32 : i32
    %1 = arith.extui %0 : i1 to i32
    %c0_i32_0 = arith.constant 0 : i32
    %2 = arith.cmpi ne, %1, %c0_i32_0 : i32
    scf.if %2 {
      %cst_33 = arith.constant 0xFF800000 : f32
      %57 = vector.broadcast %cst_33 : f32 to vector<8x256xf32>
      %c0_34 = arith.constant 0 : index
      %c0_35 = arith.constant 0 : index
      %58 = vector.load %arg12[%c0_34, %c0_35] : memref<8x256xf32, #tpu.memory_space<vmem>>, vector<8x256xf32>
      tpu.vector_store %arg12[%c0_34, %c0_35], %57 {strides = array<i32>} : memref<8x256xf32, #tpu.memory_space<vmem>>, vector<8x256xf32>,
      %c0_36 = arith.constant 0 : index
      %c0_37 = arith.constant 0 : index
      %c0_38 = arith.constant 0 : index
      %59 = vector.load %arg3[%c0_36, %c0_37, %c0_38] : memref<1x8x3xf32, #tpu.memory_space<vmem>>, vector<1x8x3xf32>
      %60 = vector.shape_cast %59 : vector<1x8x3xf32> to vector<8x3xf32>
      %c0_39 = arith.constant 0 : index
      %c0_40 = arith.constant 0 : index
      %61 = vector.load %arg6[%c0_39, %c0_40] : memref<3x128xf32, #tpu.memory_space<vmem>>, vector<3x128xf32>
      %62 = vector.extract_strided_slice %60 {offsets = [0, 0], sizes = [8, 1], strides = [1, 1]} : vector<8x3xf32> to vector<8x1xf32>
      %63 = vector.extract_strided_slice %61 {offsets = [0, 0], sizes = [1, 128], strides = [1, 1]} : vector<3x128xf32> to vector<1x128xf32>
      %64 = vector.broadcast %62 : vector<8x1xf32> to vector<8x128xf32>
      %65 = vector.broadcast %63 : vector<1x128xf32> to vector<8x128xf32>
      %66 = arith.mulf %64, %65 : vector<8x128xf32>
      %67 = vector.extract_strided_slice %60 {offsets = [0, 1], sizes = [8, 1], strides = [1, 1]} : vector<8x3xf32> to vector<8x1xf32>
      %68 = vector.extract_strided_slice %61 {offsets = [1, 0], sizes = [1, 128], strides = [1, 1]} : vector<3x128xf32> to vector<1x128xf32>
      %69 = vector.broadcast %67 : vector<8x1xf32> to vector<8x128xf32>
      %70 = vector.broadcast %68 : vector<1x128xf32> to vector<8x128xf32>
      %71 = arith.mulf %69, %70 : vector<8x128xf32>
      %72 = arith.addf %66, %71 : vector<8x128xf32>
      %73 = vector.extract_strided_slice %60 {offsets = [0, 2], sizes = [8, 1], strides = [1, 1]} : vector<8x3xf32> to vector<8x1xf32>
      %74 = vector.extract_strided_slice %61 {offsets = [2, 0], sizes = [1, 128], strides = [1, 1]} : vector<3x128xf32> to vector<1x128xf32>
      %75 = vector.broadcast %73 : vector<8x1xf32> to vector<8x128xf32>
      %76 = vector.broadcast %74 : vector<1x128xf32> to vector<8x128xf32>
      %77 = arith.mulf %75, %76 : vector<8x128xf32>
      %78 = arith.addf %72, %77 : vector<8x128xf32>
      %c0_41 = arith.constant 0 : index
      %c0_42 = arith.constant 0 : index
      %79 = vector.load %arg13[%c0_41, %c0_42] : memref<8x128xf32, #tpu.memory_space<vmem>>, vector<8x128xf32>
      tpu.vector_store %arg13[%c0_41, %c0_42], %78 {strides = array<i32>} : memref<8x128xf32, #tpu.memory_space<vmem>>, vector<8x128xf32>,
    } else {
    }
    %c0 = arith.constant 0 : index
    %c0_1 = arith.constant 0 : index
    %c0_2 = arith.constant 0 : index
    %3 = vector.load %arg3[%c0, %c0_1, %c0_2] : memref<1x8x3xf32, #tpu.memory_space<vmem>>, vector<1x8x3xf32>
    %4 = vector.shape_cast %3 : vector<1x8x3xf32> to vector<8x3xf32>
    %c0_3 = arith.constant 0 : index
    %c0_4 = arith.constant 0 : index
    %c0_5 = arith.constant 0 : index
    %5 = vector.load %arg4[%c0_3, %c0_4, %c0_5] : memref<1x8x3xf32, #tpu.memory_space<vmem>>, vector<1x8x3xf32>
    %6 = vector.shape_cast %5 : vector<1x8x3xf32> to vector<8x3xf32>
    %c0_6 = arith.constant 0 : index
    %c0_7 = arith.constant 0 : index
    %c0_8 = arith.constant 0 : index
    %7 = vector.load %arg5[%c0_6, %c0_7, %c0_8] : memref<1x8x128xbf16, #tpu.memory_space<vmem>>, vector<1x8x128xbf16>
    %8 = vector.shape_cast %7 : vector<1x8x128xbf16> to vector<8x128xbf16>
    %9 = arith.extf %8 : vector<8x128xbf16> to vector<8x128xf32>
    %c0_9 = arith.constant 0 : index
    %c0_10 = arith.constant 0 : index
    %10 = vector.load %arg13[%c0_9, %c0_10] : memref<8x128xf32, #tpu.memory_space<vmem>>, vector<8x128xf32>
    %11 = vector.shape_cast %9 : vector<8x128xf32> to vector<1x8x128xf32>
    %12 = vector.shape_cast %10 : vector<8x128xf32> to vector<8x1x128xf32>
    %13 = vector.broadcast %11 : vector<1x8x128xf32> to vector<8x8x128xf32>
    %14 = vector.broadcast %12 : vector<8x1x128xf32> to vector<8x8x128xf32>
    %15 = arith.subf %13, %14 : vector<8x8x128xf32>
    %cst = arith.constant 0.000000e+00 : f32
    %16 = vector.broadcast %cst : f32 to vector<8x8x128xf32>
    %17 = arith.maximumf %15, %16 : vector<8x8x128xf32>
    %18 = vector.shape_cast %17 : vector<8x8x128xf32> to vector<64x128xf32>
    %19 = arith.truncf %18 : vector<64x128xf32> to vector<64x128xbf16>
    %c0_11 = arith.constant 0 : index
    %c0_12 = arith.constant 0 : index
    %20 = vector.load %arg7[%c0_11, %c0_12] : memref<128x128xbf16, #tpu.memory_space<vmem>>, vector<128x128xbf16>
    %cst_13 = arith.constant dense<0.000000e+00> : vector<64x128xf32>
    %21 = tpu.matmul %19, %20, %cst_13 {dimension_numbers = #tpu.dot_dimension_numbers<[1], [0], [0], [1], [0, 0, 1, 1], [], []>} : vector<64x128xbf16>, vector<128x128xbf16>, vector<64x128xf32> -> vector<64x128xf32>
    %c0_14 = arith.constant 0 : index
    %c0_15 = arith.constant 0 : index
    %22 = vector.load %arg8[%c0_14, %c0_15] : memref<1x128xf32, #tpu.memory_space<vmem>>, vector<1x128xf32>
    %23 = vector.broadcast %22 : vector<1x128xf32> to vector<64x128xf32>
    %24 = arith.addf %21, %23 : vector<64x128xf32>
    %cst_16 = arith.constant 0.000000e+00 : f32
    %25 = vector.broadcast %cst_16 : f32 to vector<64x128xf32>
    %26 = arith.maximumf %24, %25 : vector<64x128xf32>
    %27 = arith.truncf %26 : vector<64x128xf32> to vector<64x128xbf16>
    %c0_17 = arith.constant 0 : index
    %c0_18 = arith.constant 0 : index
    %28 = vector.load %arg9[%c0_17, %c0_18] : memref<128x256xbf16, #tpu.memory_space<vmem>>, vector<128x256xbf16>
    %cst_19 = arith.constant dense<0.000000e+00> : vector<64x256xf32>
    %29 = tpu.matmul %27, %28, %cst_19 {dimension_numbers = #tpu.dot_dimension_numbers<[1], [0], [0], [1], [0, 0, 1, 1], [], []>} : vector<64x128xbf16>, vector<128x256xbf16>, vector<64x256xf32> -> vector<64x256xf32>
    %c0_20 = arith.constant 0 : index
    %c0_21 = arith.constant 0 : index
    %30 = vector.load %arg10[%c0_20, %c0_21] : memref<1x256xf32, #tpu.memory_space<vmem>>, vector<1x256xf32>
    %31 = vector.broadcast %30 : vector<1x256xf32> to vector<64x256xf32>
    %32 = arith.addf %29, %31 : vector<64x256xf32>
    %cst_22 = arith.constant 0.000000e+00 : f32
    %33 = vector.broadcast %cst_22 : f32 to vector<64x256xf32>
    %34 = arith.maximumf %32, %33 : vector<64x256xf32>
    %35 = vector.shape_cast %34 : vector<64x256xf32> to vector<8x8x256xf32>
    %36 = vector.shape_cast %6 : vector<8x3xf32> to vector<1x8x3xf32>
    %37 = vector.shape_cast %4 : vector<8x3xf32> to vector<8x1x3xf32>
    %38 = vector.broadcast %36 : vector<1x8x3xf32> to vector<8x8x3xf32>
    %39 = vector.broadcast %37 : vector<8x1x3xf32> to vector<8x8x3xf32>
    %40 = arith.subf %38, %39 : vector<8x8x3xf32>
    %41 = arith.mulf %40, %40 : vector<8x8x3xf32>
    %cst_23 = arith.constant dense<0.000000e+00> : vector<8x8xf32>
    %42 = vector.multi_reduction <add>, %41, %cst_23 [2] : vector<8x8x3xf32> to vector<8x8xf32>
    %43 = vector.shape_cast %42 : vector<8x8xf32> to vector<8x8x1xf32>
    %cst_24 = arith.constant 1.600000e-01 : f32
    %44 = vector.broadcast %cst_24 : f32 to vector<8x8x1xf32>
    %45 = arith.cmpf ole, %43, %44 : vector<8x8x1xf32>
    %cst_25 = arith.constant 0xFF800000 : f32
    %46 = vector.shape_cast %45 : vector<8x8x1xi1> to vector<8x8x1xi1>
    %47 = vector.broadcast %46 : vector<8x8x1xi1> to vector<8x8x256xi1>
    %48 = vector.broadcast %cst_25 : f32 to vector<8x8x256xf32>
    %49 = arith.select %47, %35, %48 : vector<8x8x256xi1>, vector<8x8x256xf32>
    %c0_26 = arith.constant 0 : index
    %c0_27 = arith.constant 0 : index
    %50 = vector.load %arg12[%c0_26, %c0_27] : memref<8x256xf32, #tpu.memory_space<vmem>>, vector<8x256xf32>
    %cst_28 = arith.constant dense<0xFF800000> : vector<8x256xf32>
    %51 = vector.multi_reduction <maximumf>, %49, %cst_28 [1] : vector<8x8x256xf32> to vector<8x256xf32>
    %52 = arith.maximumf %50, %51 : vector<8x256xf32>
    %c0_29 = arith.constant 0 : index
    %c0_30 = arith.constant 0 : index
    %53 = vector.load %arg12[%c0_29, %c0_30] : memref<8x256xf32, #tpu.memory_space<vmem>>, vector<8x256xf32>
    tpu.vector_store %arg12[%c0_29, %c0_30], %52 {strides = array<i32>} : memref<8x256xf32, #tpu.memory_space<vmem>>, vector<8x256xf32>,
    %c0_i32_31 = arith.constant 0 : i32
    %54 = arith.cmpi eq, %arg2, %c0_i32_31 : i32
    %55 = arith.extui %54 : i1 to i32
    %c0_i32_32 = arith.constant 0 : i32
    %56 = arith.cmpi ne, %55, %c0_i32_32 : i32
    scf.if %56 {
      %c0_33 = arith.constant 0 : index
      %c0_34 = arith.constant 0 : index
      %57 = vector.load %arg12[%c0_33, %c0_34] : memref<8x256xf32, #tpu.memory_space<vmem>>, vector<8x256xf32>
      %58 = arith.truncf %57 : vector<8x256xf32> to vector<8x256xbf16>
      %c0_35 = arith.constant 0 : index
      %c0_36 = arith.constant 0 : index
      %c0_37 = arith.constant 0 : index
      %59 = vector.load %arg11[%c0_35, %c0_36, %c0_37] : memref<1x8x256xbf16, #tpu.memory_space<vmem>>, vector<1x8x256xbf16>
      %60 = vector.shape_cast %59 : vector<1x8x256xbf16> to vector<8x256xbf16>
      %61 = vector.shape_cast %58 : vector<8x256xbf16> to vector<1x8x256xbf16>
      tpu.vector_store %arg11[%c0_35, %c0_36, %c0_37], %61 {strides = array<i32>} : memref<1x8x256xbf16, #tpu.memory_space<vmem>>, vector<1x8x256xbf16>,
    } else {
    }
    return
  }
  func.func @transform_0(%arg0: i32, %arg1: i32, %arg2: i32) -> (i32, i32, i32) {
    %c0_i32 = arith.constant 0 : i32
    %c0_i32_0 = arith.constant 0 : i32
    return %arg0, %arg1, %c0_i32 : i32, i32, i32
  }
  func.func @transform_1(%arg0: i32, %arg1: i32, %arg2: i32) -> (i32, i32, i32) {
    %c0_i32 = arith.constant 0 : i32
    %c0_i32_0 = arith.constant 0 : i32
    return %arg0, %arg2, %c0_i32 : i32, i32, i32
  }
  func.func @transform_2(%arg0: i32, %arg1: i32, %arg2: i32) -> (i32, i32, i32) {
    %c0_i32 = arith.constant 0 : i32
    %c0_i32_0 = arith.constant 0 : i32
    return %arg0, %arg2, %c0_i32 : i32, i32, i32
  }
  func.func @transform_3(%arg0: i32, %arg1: i32, %arg2: i32) -> (i32, i32) {
    %c0_i32 = arith.constant 0 : i32
    %c0_i32_0 = arith.constant 0 : i32
    %c0_i32_1 = arith.constant 0 : i32
    return %c0_i32, %c0_i32_0 : i32, i32
  }
  func.func @transform_4(%arg0: i32, %arg1: i32, %arg2: i32) -> (i32, i32) {
    %c0_i32 = arith.constant 0 : i32
    %c0_i32_0 = arith.constant 0 : i32
    %c0_i32_1 = arith.constant 0 : i32
    return %c0_i32, %c0_i32_0 : i32, i32
  }
  func.func @transform_5(%arg0: i32, %arg1: i32, %arg2: i32) -> (i32, i32) {
    %c0_i32 = arith.constant 0 : i32
    %c0_i32_0 = arith.constant 0 : i32
    %c0_i32_1 = arith.constant 0 : i32
    return %c0_i32, %c0_i32_0 : i32, i32
  }
  func.func @transform_6(%arg0: i32, %arg1: i32, %arg2: i32) -> (i32, i32) {
    %c0_i32 = arith.constant 0 : i32
    %c0_i32_0 = arith.constant 0 : i32
    %c0_i32_1 = arith.constant 0 : i32
    return %c0_i32, %c0_i32_0 : i32, i32
  }
  func.func @transform_7(%arg0: i32, %arg1: i32, %arg2: i32) -> (i32, i32) {
    %c0_i32 = arith.constant 0 : i32
    %c0_i32_0 = arith.constant 0 : i32
    %c0_i32_1 = arith.constant 0 : i32
    return %c0_i32, %c0_i32_0 : i32, i32
  }
  func.func @transform_8(%arg0: i32, %arg1: i32, %arg2: i32) -> (i32, i32, i32) {
    %c0_i32 = arith.constant 0 : i32
    %c0_i32_0 = arith.constant 0 : i32
    return %arg0, %arg1, %c0_i32 : i32, i32, i32
  }
}

module attributes {stable_mosaic.version = 11 : i64} {
  func.func @_edge_pre_kernel(%arg0: i32, %arg1: memref<8x128xbf16, #tpu.memory_space<vmem>>, %arg2: memref<8x3xf32, #tpu.memory_space<vmem>>, %arg3: memref<128x128xbf16, #tpu.memory_space<vmem>>, %arg4: memref<3x128xf32, #tpu.memory_space<vmem>>, %arg5: memref<1x128xf32, #tpu.memory_space<vmem>>, %arg6: memref<8x128xbf16, #tpu.memory_space<vmem>>) attributes {dimension_semantics = [#tpu.dimension_semantics<parallel>], iteration_bounds = array<i64: 2>, scalar_prefetch = 0 : i64, scratch_operands = 0 : i64, tpu.core_type = #tpu.core_type<tc>, window_params = [{transform_indices = @transform_0, window_bounds = array<i64: 8, 128>}, {transform_indices = @transform_1, window_bounds = array<i64: 8, 3>}, {pipeline_mode = #tpu.pipeline_mode<synchronous>, transform_indices = @transform_2, window_bounds = array<i64: 128, 128>}, {pipeline_mode = #tpu.pipeline_mode<synchronous>, transform_indices = @transform_3, window_bounds = array<i64: 3, 128>}, {pipeline_mode = #tpu.pipeline_mode<synchronous>, transform_indices = @transform_4, window_bounds = array<i64: 1, 128>}, {transform_indices = @transform_5, window_bounds = array<i64: 8, 128>}]} {
    %c0 = arith.constant 0 : index
    %c0_0 = arith.constant 0 : index
    %0 = vector.load %arg1[%c0, %c0_0] : memref<8x128xbf16, #tpu.memory_space<vmem>>, vector<8x128xbf16>
    %c0_1 = arith.constant 0 : index
    %c0_2 = arith.constant 0 : index
    %1 = vector.load %arg3[%c0_1, %c0_2] : memref<128x128xbf16, #tpu.memory_space<vmem>>, vector<128x128xbf16>
    %cst = arith.constant dense<0.000000e+00> : vector<8x128xf32>
    %2 = tpu.matmul %0, %1, %cst {dimension_numbers = #tpu.dot_dimension_numbers<[1], [0], [0], [1], [0, 0, 1, 1], [], []>} : vector<8x128xbf16>, vector<128x128xbf16>, vector<8x128xf32> -> vector<8x128xf32>
    %c0_3 = arith.constant 0 : index
    %c0_4 = arith.constant 0 : index
    %3 = vector.load %arg2[%c0_3, %c0_4] : memref<8x3xf32, #tpu.memory_space<vmem>>, vector<8x3xf32>
    %c0_5 = arith.constant 0 : index
    %c0_6 = arith.constant 0 : index
    %4 = vector.load %arg4[%c0_5, %c0_6] : memref<3x128xf32, #tpu.memory_space<vmem>>, vector<3x128xf32>
    %5 = vector.extract_strided_slice %3 {offsets = [0, 0], sizes = [8, 1], strides = [1, 1]} : vector<8x3xf32> to vector<8x1xf32>
    %6 = vector.extract_strided_slice %4 {offsets = [0, 0], sizes = [1, 128], strides = [1, 1]} : vector<3x128xf32> to vector<1x128xf32>
    %7 = vector.broadcast %5 : vector<8x1xf32> to vector<8x128xf32>
    %8 = vector.broadcast %6 : vector<1x128xf32> to vector<8x128xf32>
    %9 = arith.mulf %7, %8 : vector<8x128xf32>
    %10 = vector.extract_strided_slice %3 {offsets = [0, 1], sizes = [8, 1], strides = [1, 1]} : vector<8x3xf32> to vector<8x1xf32>
    %11 = vector.extract_strided_slice %4 {offsets = [1, 0], sizes = [1, 128], strides = [1, 1]} : vector<3x128xf32> to vector<1x128xf32>
    %12 = vector.broadcast %10 : vector<8x1xf32> to vector<8x128xf32>
    %13 = vector.broadcast %11 : vector<1x128xf32> to vector<8x128xf32>
    %14 = arith.mulf %12, %13 : vector<8x128xf32>
    %15 = arith.addf %9, %14 : vector<8x128xf32>
    %16 = vector.extract_strided_slice %3 {offsets = [0, 2], sizes = [8, 1], strides = [1, 1]} : vector<8x3xf32> to vector<8x1xf32>
    %17 = vector.extract_strided_slice %4 {offsets = [2, 0], sizes = [1, 128], strides = [1, 1]} : vector<3x128xf32> to vector<1x128xf32>
    %18 = vector.broadcast %16 : vector<8x1xf32> to vector<8x128xf32>
    %19 = vector.broadcast %17 : vector<1x128xf32> to vector<8x128xf32>
    %20 = arith.mulf %18, %19 : vector<8x128xf32>
    %21 = arith.addf %15, %20 : vector<8x128xf32>
    %22 = arith.addf %2, %21 : vector<8x128xf32>
    %c0_7 = arith.constant 0 : index
    %c0_8 = arith.constant 0 : index
    %23 = vector.load %arg5[%c0_7, %c0_8] : memref<1x128xf32, #tpu.memory_space<vmem>>, vector<1x128xf32>
    %24 = vector.broadcast %23 : vector<1x128xf32> to vector<8x128xf32>
    %25 = arith.addf %22, %24 : vector<8x128xf32>
    %26 = arith.truncf %25 : vector<8x128xf32> to vector<8x128xbf16>
    %c0_9 = arith.constant 0 : index
    %c0_10 = arith.constant 0 : index
    %27 = vector.load %arg6[%c0_9, %c0_10] : memref<8x128xbf16, #tpu.memory_space<vmem>>, vector<8x128xbf16>
    tpu.vector_store %arg6[%c0_9, %c0_10], %26 {strides = array<i32>} : memref<8x128xbf16, #tpu.memory_space<vmem>>, vector<8x128xbf16>,
    return
  }
  func.func @transform_0(%arg0: i32) -> (i32, i32) {
    %c0_i32 = arith.constant 0 : i32
    %c0_i32_0 = arith.constant 0 : i32
    return %arg0, %c0_i32 : i32, i32
  }
  func.func @transform_1(%arg0: i32) -> (i32, i32) {
    %c0_i32 = arith.constant 0 : i32
    %c0_i32_0 = arith.constant 0 : i32
    return %arg0, %c0_i32 : i32, i32
  }
  func.func @transform_2(%arg0: i32) -> (i32, i32) {
    %c0_i32 = arith.constant 0 : i32
    %c0_i32_0 = arith.constant 0 : i32
    %c0_i32_1 = arith.constant 0 : i32
    return %c0_i32, %c0_i32_0 : i32, i32
  }
  func.func @transform_3(%arg0: i32) -> (i32, i32) {
    %c0_i32 = arith.constant 0 : i32
    %c0_i32_0 = arith.constant 0 : i32
    %c0_i32_1 = arith.constant 0 : i32
    return %c0_i32, %c0_i32_0 : i32, i32
  }
  func.func @transform_4(%arg0: i32) -> (i32, i32) {
    %c0_i32 = arith.constant 0 : i32
    %c0_i32_0 = arith.constant 0 : i32
    %c0_i32_1 = arith.constant 0 : i32
    return %c0_i32, %c0_i32_0 : i32, i32
  }
  func.func @transform_5(%arg0: i32) -> (i32, i32) {
    %c0_i32 = arith.constant 0 : i32
    %c0_i32_0 = arith.constant 0 : i32
    return %arg0, %c0_i32 : i32, i32
  }
}

module attributes {stable_mosaic.version = 11 : i64} {
  func.func @_global_sa_kernel(%arg0: i32, %arg1: i32, %arg2: memref<1x8x256xbf16, #tpu.memory_space<vmem>>, %arg3: memref<1x8x3xf32, #tpu.memory_space<vmem>>, %arg4: memref<256x256xbf16, #tpu.memory_space<vmem>>, %arg5: memref<3x256xf32, #tpu.memory_space<vmem>>, %arg6: memref<1x256xf32, #tpu.memory_space<vmem>>, %arg7: memref<256x512xbf16, #tpu.memory_space<vmem>>, %arg8: memref<1x512xf32, #tpu.memory_space<vmem>>, %arg9: memref<512x1024xbf16, #tpu.memory_space<vmem>>, %arg10: memref<1x1024xf32, #tpu.memory_space<vmem>>, %arg11: memref<1x1x1024xbf16, #tpu.memory_space<vmem>>, %arg12: memref<1x1024xf32, #tpu.memory_space<vmem>>) attributes {dimension_semantics = [#tpu.dimension_semantics<parallel>, #tpu.dimension_semantics<arbitrary>], iteration_bounds = array<i64: 2, 1>, scalar_prefetch = 0 : i64, scratch_operands = 1 : i64, tpu.core_type = #tpu.core_type<tc>, window_params = [{transform_indices = @transform_0, window_bounds = array<i64: 1, 8, 256>}, {transform_indices = @transform_1, window_bounds = array<i64: 1, 8, 3>}, {pipeline_mode = #tpu.pipeline_mode<synchronous>, transform_indices = @transform_2, window_bounds = array<i64: 256, 256>}, {pipeline_mode = #tpu.pipeline_mode<synchronous>, transform_indices = @transform_3, window_bounds = array<i64: 3, 256>}, {pipeline_mode = #tpu.pipeline_mode<synchronous>, transform_indices = @transform_4, window_bounds = array<i64: 1, 256>}, {pipeline_mode = #tpu.pipeline_mode<synchronous>, transform_indices = @transform_5, window_bounds = array<i64: 256, 512>}, {pipeline_mode = #tpu.pipeline_mode<synchronous>, transform_indices = @transform_6, window_bounds = array<i64: 1, 512>}, {pipeline_mode = #tpu.pipeline_mode<synchronous>, transform_indices = @transform_7, window_bounds = array<i64: 512, 1024>}, {pipeline_mode = #tpu.pipeline_mode<synchronous>, transform_indices = @transform_8, window_bounds = array<i64: 1, 1024>}, {transform_indices = @transform_9, window_bounds = array<i64: 1, 1, 1024>}]} {
    %c0_i32 = arith.constant 0 : i32
    %0 = arith.cmpi eq, %arg1, %c0_i32 : i32
    %1 = arith.extui %0 : i1 to i32
    %c0_i32_0 = arith.constant 0 : i32
    %2 = arith.cmpi ne, %1, %c0_i32_0 : i32
    scf.if %2 {
      %cst_33 = arith.constant 0xFF800000 : f32
      %67 = vector.broadcast %cst_33 : f32 to vector<1x1024xf32>
      %c0_34 = arith.constant 0 : index
      %c0_35 = arith.constant 0 : index
      %68 = vector.load %arg12[%c0_34, %c0_35] : memref<1x1024xf32, #tpu.memory_space<vmem>>, vector<1x1024xf32>
      tpu.vector_store %arg12[%c0_34, %c0_35], %67 {strides = array<i32>} : memref<1x1024xf32, #tpu.memory_space<vmem>>, vector<1x1024xf32>,
    } else {
    }
    %c0 = arith.constant 0 : index
    %c0_1 = arith.constant 0 : index
    %c0_2 = arith.constant 0 : index
    %3 = vector.load %arg3[%c0, %c0_1, %c0_2] : memref<1x8x3xf32, #tpu.memory_space<vmem>>, vector<1x8x3xf32>
    %4 = vector.shape_cast %3 : vector<1x8x3xf32> to vector<8x3xf32>
    %c0_3 = arith.constant 0 : index
    %c0_4 = arith.constant 0 : index
    %c0_5 = arith.constant 0 : index
    %5 = vector.load %arg2[%c0_3, %c0_4, %c0_5] : memref<1x8x256xbf16, #tpu.memory_space<vmem>>, vector<1x8x256xbf16>
    %6 = vector.shape_cast %5 : vector<1x8x256xbf16> to vector<8x256xbf16>
    %c0_6 = arith.constant 0 : index
    %c0_7 = arith.constant 0 : index
    %7 = vector.load %arg4[%c0_6, %c0_7] : memref<256x256xbf16, #tpu.memory_space<vmem>>, vector<256x256xbf16>
    %cst = arith.constant dense<0.000000e+00> : vector<8x256xf32>
    %8 = tpu.matmul %6, %7, %cst {dimension_numbers = #tpu.dot_dimension_numbers<[1], [0], [0], [1], [0, 0, 1, 1], [], []>} : vector<8x256xbf16>, vector<256x256xbf16>, vector<8x256xf32> -> vector<8x256xf32>
    %c0_8 = arith.constant 0 : index
    %c0_9 = arith.constant 0 : index
    %9 = vector.load %arg5[%c0_8, %c0_9] : memref<3x256xf32, #tpu.memory_space<vmem>>, vector<3x256xf32>
    %10 = vector.extract_strided_slice %4 {offsets = [0, 0], sizes = [8, 1], strides = [1, 1]} : vector<8x3xf32> to vector<8x1xf32>
    %11 = vector.extract_strided_slice %9 {offsets = [0, 0], sizes = [1, 256], strides = [1, 1]} : vector<3x256xf32> to vector<1x256xf32>
    %12 = vector.broadcast %10 : vector<8x1xf32> to vector<8x256xf32>
    %13 = vector.broadcast %11 : vector<1x256xf32> to vector<8x256xf32>
    %14 = arith.mulf %12, %13 : vector<8x256xf32>
    %15 = vector.extract_strided_slice %4 {offsets = [0, 1], sizes = [8, 1], strides = [1, 1]} : vector<8x3xf32> to vector<8x1xf32>
    %16 = vector.extract_strided_slice %9 {offsets = [1, 0], sizes = [1, 256], strides = [1, 1]} : vector<3x256xf32> to vector<1x256xf32>
    %17 = vector.broadcast %15 : vector<8x1xf32> to vector<8x256xf32>
    %18 = vector.broadcast %16 : vector<1x256xf32> to vector<8x256xf32>
    %19 = arith.mulf %17, %18 : vector<8x256xf32>
    %20 = arith.addf %14, %19 : vector<8x256xf32>
    %21 = vector.extract_strided_slice %4 {offsets = [0, 2], sizes = [8, 1], strides = [1, 1]} : vector<8x3xf32> to vector<8x1xf32>
    %22 = vector.extract_strided_slice %9 {offsets = [2, 0], sizes = [1, 256], strides = [1, 1]} : vector<3x256xf32> to vector<1x256xf32>
    %23 = vector.broadcast %21 : vector<8x1xf32> to vector<8x256xf32>
    %24 = vector.broadcast %22 : vector<1x256xf32> to vector<8x256xf32>
    %25 = arith.mulf %23, %24 : vector<8x256xf32>
    %26 = arith.addf %20, %25 : vector<8x256xf32>
    %27 = arith.addf %8, %26 : vector<8x256xf32>
    %c0_10 = arith.constant 0 : index
    %c0_11 = arith.constant 0 : index
    %28 = vector.load %arg6[%c0_10, %c0_11] : memref<1x256xf32, #tpu.memory_space<vmem>>, vector<1x256xf32>
    %29 = vector.broadcast %28 : vector<1x256xf32> to vector<8x256xf32>
    %30 = arith.addf %27, %29 : vector<8x256xf32>
    %cst_12 = arith.constant 0.000000e+00 : f32
    %31 = vector.broadcast %cst_12 : f32 to vector<8x256xf32>
    %32 = arith.maximumf %30, %31 : vector<8x256xf32>
    %33 = arith.truncf %32 : vector<8x256xf32> to vector<8x256xbf16>
    %c0_13 = arith.constant 0 : index
    %c0_14 = arith.constant 0 : index
    %34 = vector.load %arg7[%c0_13, %c0_14] : memref<256x512xbf16, #tpu.memory_space<vmem>>, vector<256x512xbf16>
    %cst_15 = arith.constant dense<0.000000e+00> : vector<8x512xf32>
    %35 = tpu.matmul %33, %34, %cst_15 {dimension_numbers = #tpu.dot_dimension_numbers<[1], [0], [0], [1], [0, 0, 1, 1], [], []>} : vector<8x256xbf16>, vector<256x512xbf16>, vector<8x512xf32> -> vector<8x512xf32>
    %c0_16 = arith.constant 0 : index
    %c0_17 = arith.constant 0 : index
    %36 = vector.load %arg8[%c0_16, %c0_17] : memref<1x512xf32, #tpu.memory_space<vmem>>, vector<1x512xf32>
    %37 = vector.broadcast %36 : vector<1x512xf32> to vector<8x512xf32>
    %38 = arith.addf %35, %37 : vector<8x512xf32>
    %cst_18 = arith.constant 0.000000e+00 : f32
    %39 = vector.broadcast %cst_18 : f32 to vector<8x512xf32>
    %40 = arith.maximumf %38, %39 : vector<8x512xf32>
    %41 = arith.truncf %40 : vector<8x512xf32> to vector<8x512xbf16>
    %c0_19 = arith.constant 0 : index
    %c0_20 = arith.constant 0 : index
    %42 = vector.load %arg9[%c0_19, %c0_20] : memref<512x1024xbf16, #tpu.memory_space<vmem>>, vector<512x1024xbf16>
    %cst_21 = arith.constant dense<0.000000e+00> : vector<8x1024xf32>
    %43 = tpu.matmul %41, %42, %cst_21 {dimension_numbers = #tpu.dot_dimension_numbers<[1], [0], [0], [1], [0, 0, 1, 1], [], []>} : vector<8x512xbf16>, vector<512x1024xbf16>, vector<8x1024xf32> -> vector<8x1024xf32>
    %c0_22 = arith.constant 0 : index
    %c0_23 = arith.constant 0 : index
    %44 = vector.load %arg10[%c0_22, %c0_23] : memref<1x1024xf32, #tpu.memory_space<vmem>>, vector<1x1024xf32>
    %45 = vector.broadcast %44 : vector<1x1024xf32> to vector<8x1024xf32>
    %46 = arith.addf %43, %45 : vector<8x1024xf32>
    %cst_24 = arith.constant 0.000000e+00 : f32
    %47 = vector.broadcast %cst_24 : f32 to vector<8x1024xf32>
    %48 = arith.maximumf %46, %47 : vector<8x1024xf32>
    %c8_i32 = arith.constant 8 : i32
    %49 = arith.muli %arg1, %c8_i32 : i32
    %50 = tpu.iota {dimensions = array<i32: 0>} : vector<8x1xi32>
    %51 = vector.broadcast %49 : i32 to vector<8x1xi32>
    %52 = arith.addi %51, %50 : vector<8x1xi32>
    %c2_i32 = arith.constant 2 : i32
    %53 = vector.broadcast %c2_i32 : i32 to vector<8x1xi32>
    %54 = arith.cmpi slt, %52, %53 : vector<8x1xi32>
    %cst_25 = arith.constant 0xFF800000 : f32
    %55 = vector.shape_cast %54 : vector<8x1xi1> to vector<8x1xi1>
    %56 = vector.broadcast %55 : vector<8x1xi1> to vector<8x1024xi1>
    %57 = vector.broadcast %cst_25 : f32 to vector<8x1024xf32>
    %58 = arith.select %56, %48, %57 : vector<8x1024xi1>, vector<8x1024xf32>
    %c0_26 = arith.constant 0 : index
    %c0_27 = arith.constant 0 : index
    %59 = vector.load %arg12[%c0_26, %c0_27] : memref<1x1024xf32, #tpu.memory_space<vmem>>, vector<1x1024xf32>
    %cst_28 = arith.constant dense<0xFF800000> : vector<1024xf32>
    %60 = vector.multi_reduction <maximumf>, %58, %cst_28 [0] : vector<8x1024xf32> to vector<1024xf32>
    %61 = vector.shape_cast %60 : vector<1024xf32> to vector<1x1024xf32>
    %62 = arith.maximumf %59, %61 : vector<1x1024xf32>
    %c0_29 = arith.constant 0 : index
    %c0_30 = arith.constant 0 : index
    %63 = vector.load %arg12[%c0_29, %c0_30] : memref<1x1024xf32, #tpu.memory_space<vmem>>, vector<1x1024xf32>
    tpu.vector_store %arg12[%c0_29, %c0_30], %62 {strides = array<i32>} : memref<1x1024xf32, #tpu.memory_space<vmem>>, vector<1x1024xf32>,
    %c0_i32_31 = arith.constant 0 : i32
    %64 = arith.cmpi eq, %arg1, %c0_i32_31 : i32
    %65 = arith.extui %64 : i1 to i32
    %c0_i32_32 = arith.constant 0 : i32
    %66 = arith.cmpi ne, %65, %c0_i32_32 : i32
    scf.if %66 {
      %c0_33 = arith.constant 0 : index
      %c0_34 = arith.constant 0 : index
      %67 = vector.load %arg12[%c0_33, %c0_34] : memref<1x1024xf32, #tpu.memory_space<vmem>>, vector<1x1024xf32>
      %68 = arith.truncf %67 : vector<1x1024xf32> to vector<1x1024xbf16>
      %c0_35 = arith.constant 0 : index
      %c0_36 = arith.constant 0 : index
      %c0_37 = arith.constant 0 : index
      %69 = vector.load %arg11[%c0_35, %c0_36, %c0_37] : memref<1x1x1024xbf16, #tpu.memory_space<vmem>>, vector<1x1x1024xbf16>
      %70 = vector.shape_cast %69 : vector<1x1x1024xbf16> to vector<1x1024xbf16>
      %71 = vector.shape_cast %68 : vector<1x1024xbf16> to vector<1x1x1024xbf16>
      tpu.vector_store %arg11[%c0_35, %c0_36, %c0_37], %71 {strides = array<i32>} : memref<1x1x1024xbf16, #tpu.memory_space<vmem>>, vector<1x1x1024xbf16>,
    } else {
    }
    return
  }
  func.func @transform_0(%arg0: i32, %arg1: i32) -> (i32, i32, i32) {
    %c0_i32 = arith.constant 0 : i32
    %c0_i32_0 = arith.constant 0 : i32
    return %arg0, %arg1, %c0_i32 : i32, i32, i32
  }
  func.func @transform_1(%arg0: i32, %arg1: i32) -> (i32, i32, i32) {
    %c0_i32 = arith.constant 0 : i32
    %c0_i32_0 = arith.constant 0 : i32
    return %arg0, %arg1, %c0_i32 : i32, i32, i32
  }
  func.func @transform_2(%arg0: i32, %arg1: i32) -> (i32, i32) {
    %c0_i32 = arith.constant 0 : i32
    %c0_i32_0 = arith.constant 0 : i32
    %c0_i32_1 = arith.constant 0 : i32
    return %c0_i32, %c0_i32_0 : i32, i32
  }
  func.func @transform_3(%arg0: i32, %arg1: i32) -> (i32, i32) {
    %c0_i32 = arith.constant 0 : i32
    %c0_i32_0 = arith.constant 0 : i32
    %c0_i32_1 = arith.constant 0 : i32
    return %c0_i32, %c0_i32_0 : i32, i32
  }
  func.func @transform_4(%arg0: i32, %arg1: i32) -> (i32, i32) {
    %c0_i32 = arith.constant 0 : i32
    %c0_i32_0 = arith.constant 0 : i32
    %c0_i32_1 = arith.constant 0 : i32
    return %c0_i32, %c0_i32_0 : i32, i32
  }
  func.func @transform_5(%arg0: i32, %arg1: i32) -> (i32, i32) {
    %c0_i32 = arith.constant 0 : i32
    %c0_i32_0 = arith.constant 0 : i32
    %c0_i32_1 = arith.constant 0 : i32
    return %c0_i32, %c0_i32_0 : i32, i32
  }
  func.func @transform_6(%arg0: i32, %arg1: i32) -> (i32, i32) {
    %c0_i32 = arith.constant 0 : i32
    %c0_i32_0 = arith.constant 0 : i32
    %c0_i32_1 = arith.constant 0 : i32
    return %c0_i32, %c0_i32_0 : i32, i32
  }
  func.func @transform_7(%arg0: i32, %arg1: i32) -> (i32, i32) {
    %c0_i32 = arith.constant 0 : i32
    %c0_i32_0 = arith.constant 0 : i32
    %c0_i32_1 = arith.constant 0 : i32
    return %c0_i32, %c0_i32_0 : i32, i32
  }
  func.func @transform_8(%arg0: i32, %arg1: i32) -> (i32, i32) {
    %c0_i32 = arith.constant 0 : i32
    %c0_i32_0 = arith.constant 0 : i32
    %c0_i32_1 = arith.constant 0 : i32
    return %c0_i32, %c0_i32_0 : i32, i32
  }
  func.func @transform_9(%arg0: i32, %arg1: i32) -> (i32, i32, i32) {
    %c0_i32 = arith.constant 0 : i32
    %c0_i32_0 = arith.constant 0 : i32
    %c0_i32_1 = arith.constant 0 : i32
    return %arg0, %c0_i32, %c0_i32_0 : i32, i32, i32
  }
}

module attributes {stable_mosaic.version = 11 : i64} {
  func.func @_mlp_kernel(%arg0: i32, %arg1: memref<4x1280xbf16, #tpu.memory_space<vmem>>, %arg2: memref<1280x256xbf16, #tpu.memory_space<vmem>>, %arg3: memref<1x256xf32, #tpu.memory_space<vmem>>, %arg4: memref<256x256xbf16, #tpu.memory_space<vmem>>, %arg5: memref<1x256xf32, #tpu.memory_space<vmem>>, %arg6: memref<4x256xbf16, #tpu.memory_space<vmem>>) attributes {dimension_semantics = [#tpu.dimension_semantics<parallel>], iteration_bounds = array<i64: 1>, scalar_prefetch = 0 : i64, scratch_operands = 0 : i64, tpu.core_type = #tpu.core_type<tc>, window_params = [{transform_indices = @transform_0, window_bounds = array<i64: 4, 1280>}, {pipeline_mode = #tpu.pipeline_mode<synchronous>, transform_indices = @transform_1, window_bounds = array<i64: 1280, 256>}, {pipeline_mode = #tpu.pipeline_mode<synchronous>, transform_indices = @transform_2, window_bounds = array<i64: 1, 256>}, {pipeline_mode = #tpu.pipeline_mode<synchronous>, transform_indices = @transform_3, window_bounds = array<i64: 256, 256>}, {pipeline_mode = #tpu.pipeline_mode<synchronous>, transform_indices = @transform_4, window_bounds = array<i64: 1, 256>}, {transform_indices = @transform_5, window_bounds = array<i64: 4, 256>}]} {
    %c0 = arith.constant 0 : index
    %c0_0 = arith.constant 0 : index
    %0 = vector.load %arg1[%c0, %c0_0] : memref<4x1280xbf16, #tpu.memory_space<vmem>>, vector<4x1280xbf16>
    %c0_1 = arith.constant 0 : index
    %c0_2 = arith.constant 0 : index
    %1 = vector.load %arg2[%c0_1, %c0_2] : memref<1280x256xbf16, #tpu.memory_space<vmem>>, vector<1280x256xbf16>
    %c0_3 = arith.constant 0 : index
    %c0_4 = arith.constant 0 : index
    %2 = vector.load %arg3[%c0_3, %c0_4] : memref<1x256xf32, #tpu.memory_space<vmem>>, vector<1x256xf32>
    %cst = arith.constant dense<0.000000e+00> : vector<4x256xf32>
    %3 = tpu.matmul %0, %1, %cst {dimension_numbers = #tpu.dot_dimension_numbers<[1], [0], [0], [1], [0, 0, 1, 1], [], []>} : vector<4x1280xbf16>, vector<1280x256xbf16>, vector<4x256xf32> -> vector<4x256xf32>
    %4 = vector.broadcast %2 : vector<1x256xf32> to vector<4x256xf32>
    %5 = arith.addf %3, %4 : vector<4x256xf32>
    %cst_5 = arith.constant 0.000000e+00 : f32
    %6 = vector.broadcast %cst_5 : f32 to vector<4x256xf32>
    %7 = arith.maximumf %5, %6 : vector<4x256xf32>
    %8 = arith.truncf %7 : vector<4x256xf32> to vector<4x256xbf16>
    %c0_6 = arith.constant 0 : index
    %c0_7 = arith.constant 0 : index
    %9 = vector.load %arg4[%c0_6, %c0_7] : memref<256x256xbf16, #tpu.memory_space<vmem>>, vector<256x256xbf16>
    %c0_8 = arith.constant 0 : index
    %c0_9 = arith.constant 0 : index
    %10 = vector.load %arg5[%c0_8, %c0_9] : memref<1x256xf32, #tpu.memory_space<vmem>>, vector<1x256xf32>
    %cst_10 = arith.constant dense<0.000000e+00> : vector<4x256xf32>
    %11 = tpu.matmul %8, %9, %cst_10 {dimension_numbers = #tpu.dot_dimension_numbers<[1], [0], [0], [1], [0, 0, 1, 1], [], []>} : vector<4x256xbf16>, vector<256x256xbf16>, vector<4x256xf32> -> vector<4x256xf32>
    %12 = vector.broadcast %10 : vector<1x256xf32> to vector<4x256xf32>
    %13 = arith.addf %11, %12 : vector<4x256xf32>
    %cst_11 = arith.constant 0.000000e+00 : f32
    %14 = vector.broadcast %cst_11 : f32 to vector<4x256xf32>
    %15 = arith.maximumf %13, %14 : vector<4x256xf32>
    %16 = arith.truncf %15 : vector<4x256xf32> to vector<4x256xbf16>
    %c0_12 = arith.constant 0 : index
    %c0_13 = arith.constant 0 : index
    %17 = vector.load %arg6[%c0_12, %c0_13] : memref<4x256xbf16, #tpu.memory_space<vmem>>, vector<4x256xbf16>
    tpu.vector_store %arg6[%c0_12, %c0_13], %16 {strides = array<i32>} : memref<4x256xbf16, #tpu.memory_space<vmem>>, vector<4x256xbf16>,
    return
  }
  func.func @transform_0(%arg0: i32) -> (i32, i32) {
    %c0_i32 = arith.constant 0 : i32
    %c0_i32_0 = arith.constant 0 : i32
    return %arg0, %c0_i32 : i32, i32
  }
  func.func @transform_1(%arg0: i32) -> (i32, i32) {
    %c0_i32 = arith.constant 0 : i32
    %c0_i32_0 = arith.constant 0 : i32
    %c0_i32_1 = arith.constant 0 : i32
    return %c0_i32, %c0_i32_0 : i32, i32
  }
  func.func @transform_2(%arg0: i32) -> (i32, i32) {
    %c0_i32 = arith.constant 0 : i32
    %c0_i32_0 = arith.constant 0 : i32
    %c0_i32_1 = arith.constant 0 : i32
    return %c0_i32, %c0_i32_0 : i32, i32
  }
  func.func @transform_3(%arg0: i32) -> (i32, i32) {
    %c0_i32 = arith.constant 0 : i32
    %c0_i32_0 = arith.constant 0 : i32
    %c0_i32_1 = arith.constant 0 : i32
    return %c0_i32, %c0_i32_0 : i32, i32
  }
  func.func @transform_4(%arg0: i32) -> (i32, i32) {
    %c0_i32 = arith.constant 0 : i32
    %c0_i32_0 = arith.constant 0 : i32
    %c0_i32_1 = arith.constant 0 : i32
    return %c0_i32, %c0_i32_0 : i32, i32
  }
  func.func @transform_5(%arg0: i32) -> (i32, i32) {
    %c0_i32 = arith.constant 0 : i32
    %c0_i32_0 = arith.constant 0 : i32
    return %arg0, %c0_i32 : i32, i32
  }
}

module attributes {stable_mosaic.version = 11 : i64} {
  func.func @_mlp_kernel(%arg0: i32, %arg1: memref<8x384xbf16, #tpu.memory_space<vmem>>, %arg2: memref<384x256xbf16, #tpu.memory_space<vmem>>, %arg3: memref<1x256xf32, #tpu.memory_space<vmem>>, %arg4: memref<256x128xbf16, #tpu.memory_space<vmem>>, %arg5: memref<1x128xf32, #tpu.memory_space<vmem>>, %arg6: memref<8x128xbf16, #tpu.memory_space<vmem>>) attributes {dimension_semantics = [#tpu.dimension_semantics<parallel>], iteration_bounds = array<i64: 2>, scalar_prefetch = 0 : i64, scratch_operands = 0 : i64, tpu.core_type = #tpu.core_type<tc>, window_params = [{transform_indices = @transform_0, window_bounds = array<i64: 8, 384>}, {pipeline_mode = #tpu.pipeline_mode<synchronous>, transform_indices = @transform_1, window_bounds = array<i64: 384, 256>}, {pipeline_mode = #tpu.pipeline_mode<synchronous>, transform_indices = @transform_2, window_bounds = array<i64: 1, 256>}, {pipeline_mode = #tpu.pipeline_mode<synchronous>, transform_indices = @transform_3, window_bounds = array<i64: 256, 128>}, {pipeline_mode = #tpu.pipeline_mode<synchronous>, transform_indices = @transform_4, window_bounds = array<i64: 1, 128>}, {transform_indices = @transform_5, window_bounds = array<i64: 8, 128>}]} {
    %c0 = arith.constant 0 : index
    %c0_0 = arith.constant 0 : index
    %0 = vector.load %arg1[%c0, %c0_0] : memref<8x384xbf16, #tpu.memory_space<vmem>>, vector<8x384xbf16>
    %c0_1 = arith.constant 0 : index
    %c0_2 = arith.constant 0 : index
    %1 = vector.load %arg2[%c0_1, %c0_2] : memref<384x256xbf16, #tpu.memory_space<vmem>>, vector<384x256xbf16>
    %c0_3 = arith.constant 0 : index
    %c0_4 = arith.constant 0 : index
    %2 = vector.load %arg3[%c0_3, %c0_4] : memref<1x256xf32, #tpu.memory_space<vmem>>, vector<1x256xf32>
    %cst = arith.constant dense<0.000000e+00> : vector<8x256xf32>
    %3 = tpu.matmul %0, %1, %cst {dimension_numbers = #tpu.dot_dimension_numbers<[1], [0], [0], [1], [0, 0, 1, 1], [], []>} : vector<8x384xbf16>, vector<384x256xbf16>, vector<8x256xf32> -> vector<8x256xf32>
    %4 = vector.broadcast %2 : vector<1x256xf32> to vector<8x256xf32>
    %5 = arith.addf %3, %4 : vector<8x256xf32>
    %cst_5 = arith.constant 0.000000e+00 : f32
    %6 = vector.broadcast %cst_5 : f32 to vector<8x256xf32>
    %7 = arith.maximumf %5, %6 : vector<8x256xf32>
    %8 = arith.truncf %7 : vector<8x256xf32> to vector<8x256xbf16>
    %c0_6 = arith.constant 0 : index
    %c0_7 = arith.constant 0 : index
    %9 = vector.load %arg4[%c0_6, %c0_7] : memref<256x128xbf16, #tpu.memory_space<vmem>>, vector<256x128xbf16>
    %c0_8 = arith.constant 0 : index
    %c0_9 = arith.constant 0 : index
    %10 = vector.load %arg5[%c0_8, %c0_9] : memref<1x128xf32, #tpu.memory_space<vmem>>, vector<1x128xf32>
    %cst_10 = arith.constant dense<0.000000e+00> : vector<8x128xf32>
    %11 = tpu.matmul %8, %9, %cst_10 {dimension_numbers = #tpu.dot_dimension_numbers<[1], [0], [0], [1], [0, 0, 1, 1], [], []>} : vector<8x256xbf16>, vector<256x128xbf16>, vector<8x128xf32> -> vector<8x128xf32>
    %12 = vector.broadcast %10 : vector<1x128xf32> to vector<8x128xf32>
    %13 = arith.addf %11, %12 : vector<8x128xf32>
    %cst_11 = arith.constant 0.000000e+00 : f32
    %14 = vector.broadcast %cst_11 : f32 to vector<8x128xf32>
    %15 = arith.maximumf %13, %14 : vector<8x128xf32>
    %16 = arith.truncf %15 : vector<8x128xf32> to vector<8x128xbf16>
    %c0_12 = arith.constant 0 : index
    %c0_13 = arith.constant 0 : index
    %17 = vector.load %arg6[%c0_12, %c0_13] : memref<8x128xbf16, #tpu.memory_space<vmem>>, vector<8x128xbf16>
    tpu.vector_store %arg6[%c0_12, %c0_13], %16 {strides = array<i32>} : memref<8x128xbf16, #tpu.memory_space<vmem>>, vector<8x128xbf16>,
    return
  }
  func.func @transform_0(%arg0: i32) -> (i32, i32) {
    %c0_i32 = arith.constant 0 : i32
    %c0_i32_0 = arith.constant 0 : i32
    return %arg0, %c0_i32 : i32, i32
  }
  func.func @transform_1(%arg0: i32) -> (i32, i32) {
    %c0_i32 = arith.constant 0 : i32
    %c0_i32_0 = arith.constant 0 : i32
    %c0_i32_1 = arith.constant 0 : i32
    return %c0_i32, %c0_i32_0 : i32, i32
  }
  func.func @transform_2(%arg0: i32) -> (i32, i32) {
    %c0_i32 = arith.constant 0 : i32
    %c0_i32_0 = arith.constant 0 : i32
    %c0_i32_1 = arith.constant 0 : i32
    return %c0_i32, %c0_i32_0 : i32, i32
  }
  func.func @transform_3(%arg0: i32) -> (i32, i32) {
    %c0_i32 = arith.constant 0 : i32
    %c0_i32_0 = arith.constant 0 : i32
    %c0_i32_1 = arith.constant 0 : i32
    return %c0_i32, %c0_i32_0 : i32, i32
  }
  func.func @transform_4(%arg0: i32) -> (i32, i32) {
    %c0_i32 = arith.constant 0 : i32
    %c0_i32_0 = arith.constant 0 : i32
    %c0_i32_1 = arith.constant 0 : i32
    return %c0_i32, %c0_i32_0 : i32, i32
  }
  func.func @transform_5(%arg0: i32) -> (i32, i32) {
    %c0_i32 = arith.constant 0 : i32
    %c0_i32_0 = arith.constant 0 : i32
    return %arg0, %c0_i32 : i32, i32
  }
}

module attributes {stable_mosaic.version = 11 : i64} {
  func.func @_mlp_kernel(%arg0: i32, %arg1: memref<32x131xbf16, #tpu.memory_space<vmem>>, %arg2: memref<131x128xbf16, #tpu.memory_space<vmem>>, %arg3: memref<1x128xf32, #tpu.memory_space<vmem>>, %arg4: memref<128x128xbf16, #tpu.memory_space<vmem>>, %arg5: memref<1x128xf32, #tpu.memory_space<vmem>>, %arg6: memref<128x128xbf16, #tpu.memory_space<vmem>>, %arg7: memref<1x128xf32, #tpu.memory_space<vmem>>, %arg8: memref<32x128xbf16, #tpu.memory_space<vmem>>) attributes {dimension_semantics = [#tpu.dimension_semantics<parallel>], iteration_bounds = array<i64: 2>, scalar_prefetch = 0 : i64, scratch_operands = 0 : i64, tpu.core_type = #tpu.core_type<tc>, window_params = [{transform_indices = @transform_0, window_bounds = array<i64: 32, 131>}, {pipeline_mode = #tpu.pipeline_mode<synchronous>, transform_indices = @transform_1, window_bounds = array<i64: 131, 128>}, {pipeline_mode = #tpu.pipeline_mode<synchronous>, transform_indices = @transform_2, window_bounds = array<i64: 1, 128>}, {pipeline_mode = #tpu.pipeline_mode<synchronous>, transform_indices = @transform_3, window_bounds = array<i64: 128, 128>}, {pipeline_mode = #tpu.pipeline_mode<synchronous>, transform_indices = @transform_4, window_bounds = array<i64: 1, 128>}, {pipeline_mode = #tpu.pipeline_mode<synchronous>, transform_indices = @transform_5, window_bounds = array<i64: 128, 128>}, {pipeline_mode = #tpu.pipeline_mode<synchronous>, transform_indices = @transform_6, window_bounds = array<i64: 1, 128>}, {transform_indices = @transform_7, window_bounds = array<i64: 32, 128>}]} {
    %c0 = arith.constant 0 : index
    %c0_0 = arith.constant 0 : index
    %0 = vector.load %arg1[%c0, %c0_0] : memref<32x131xbf16, #tpu.memory_space<vmem>>, vector<32x131xbf16>
    %c0_1 = arith.constant 0 : index
    %c0_2 = arith.constant 0 : index
    %1 = vector.load %arg2[%c0_1, %c0_2] : memref<131x128xbf16, #tpu.memory_space<vmem>>, vector<131x128xbf16>
    %c0_3 = arith.constant 0 : index
    %c0_4 = arith.constant 0 : index
    %2 = vector.load %arg3[%c0_3, %c0_4] : memref<1x128xf32, #tpu.memory_space<vmem>>, vector<1x128xf32>
    %cst = arith.constant dense<0.000000e+00> : vector<32x128xf32>
    %3 = tpu.matmul %0, %1, %cst {dimension_numbers = #tpu.dot_dimension_numbers<[1], [0], [0], [1], [0, 0, 1, 1], [], []>} : vector<32x131xbf16>, vector<131x128xbf16>, vector<32x128xf32> -> vector<32x128xf32>
    %4 = vector.broadcast %2 : vector<1x128xf32> to vector<32x128xf32>
    %5 = arith.addf %3, %4 : vector<32x128xf32>
    %cst_5 = arith.constant 0.000000e+00 : f32
    %6 = vector.broadcast %cst_5 : f32 to vector<32x128xf32>
    %7 = arith.maximumf %5, %6 : vector<32x128xf32>
    %8 = arith.truncf %7 : vector<32x128xf32> to vector<32x128xbf16>
    %c0_6 = arith.constant 0 : index
    %c0_7 = arith.constant 0 : index
    %9 = vector.load %arg4[%c0_6, %c0_7] : memref<128x128xbf16, #tpu.memory_space<vmem>>, vector<128x128xbf16>
    %c0_8 = arith.constant 0 : index
    %c0_9 = arith.constant 0 : index
    %10 = vector.load %arg5[%c0_8, %c0_9] : memref<1x128xf32, #tpu.memory_space<vmem>>, vector<1x128xf32>
    %cst_10 = arith.constant dense<0.000000e+00> : vector<32x128xf32>
    %11 = tpu.matmul %8, %9, %cst_10 {dimension_numbers = #tpu.dot_dimension_numbers<[1], [0], [0], [1], [0, 0, 1, 1], [], []>} : vector<32x128xbf16>, vector<128x128xbf16>, vector<32x128xf32> -> vector<32x128xf32>
    %12 = vector.broadcast %10 : vector<1x128xf32> to vector<32x128xf32>
    %13 = arith.addf %11, %12 : vector<32x128xf32>
    %cst_11 = arith.constant 0.000000e+00 : f32
    %14 = vector.broadcast %cst_11 : f32 to vector<32x128xf32>
    %15 = arith.maximumf %13, %14 : vector<32x128xf32>
    %16 = arith.truncf %15 : vector<32x128xf32> to vector<32x128xbf16>
    %c0_12 = arith.constant 0 : index
    %c0_13 = arith.constant 0 : index
    %17 = vector.load %arg6[%c0_12, %c0_13] : memref<128x128xbf16, #tpu.memory_space<vmem>>, vector<128x128xbf16>
    %c0_14 = arith.constant 0 : index
    %c0_15 = arith.constant 0 : index
    %18 = vector.load %arg7[%c0_14, %c0_15] : memref<1x128xf32, #tpu.memory_space<vmem>>, vector<1x128xf32>
    %cst_16 = arith.constant dense<0.000000e+00> : vector<32x128xf32>
    %19 = tpu.matmul %16, %17, %cst_16 {dimension_numbers = #tpu.dot_dimension_numbers<[1], [0], [0], [1], [0, 0, 1, 1], [], []>} : vector<32x128xbf16>, vector<128x128xbf16>, vector<32x128xf32> -> vector<32x128xf32>
    %20 = vector.broadcast %18 : vector<1x128xf32> to vector<32x128xf32>
    %21 = arith.addf %19, %20 : vector<32x128xf32>
    %cst_17 = arith.constant 0.000000e+00 : f32
    %22 = vector.broadcast %cst_17 : f32 to vector<32x128xf32>
    %23 = arith.maximumf %21, %22 : vector<32x128xf32>
    %24 = arith.truncf %23 : vector<32x128xf32> to vector<32x128xbf16>
    %c0_18 = arith.constant 0 : index
    %c0_19 = arith.constant 0 : index
    %25 = vector.load %arg8[%c0_18, %c0_19] : memref<32x128xbf16, #tpu.memory_space<vmem>>, vector<32x128xbf16>
    tpu.vector_store %arg8[%c0_18, %c0_19], %24 {strides = array<i32>} : memref<32x128xbf16, #tpu.memory_space<vmem>>, vector<32x128xbf16>,
    return
  }
  func.func @transform_0(%arg0: i32) -> (i32, i32) {
    %c0_i32 = arith.constant 0 : i32
    %c0_i32_0 = arith.constant 0 : i32
    return %arg0, %c0_i32 : i32, i32
  }
  func.func @transform_1(%arg0: i32) -> (i32, i32) {
    %c0_i32 = arith.constant 0 : i32
    %c0_i32_0 = arith.constant 0 : i32
    %c0_i32_1 = arith.constant 0 : i32
    return %c0_i32, %c0_i32_0 : i32, i32
  }
  func.func @transform_2(%arg0: i32) -> (i32, i32) {
    %c0_i32 = arith.constant 0 : i32
    %c0_i32_0 = arith.constant 0 : i32
    %c0_i32_1 = arith.constant 0 : i32
    return %c0_i32, %c0_i32_0 : i32, i32
  }
  func.func @transform_3(%arg0: i32) -> (i32, i32) {
    %c0_i32 = arith.constant 0 : i32
    %c0_i32_0 = arith.constant 0 : i32
    %c0_i32_1 = arith.constant 0 : i32
    return %c0_i32, %c0_i32_0 : i32, i32
  }
  func.func @transform_4(%arg0: i32) -> (i32, i32) {
    %c0_i32 = arith.constant 0 : i32
    %c0_i32_0 = arith.constant 0 : i32
    %c0_i32_1 = arith.constant 0 : i32
    return %c0_i32, %c0_i32_0 : i32, i32
  }
  func.func @transform_5(%arg0: i32) -> (i32, i32) {
    %c0_i32 = arith.constant 0 : i32
    %c0_i32_0 = arith.constant 0 : i32
    %c0_i32_1 = arith.constant 0 : i32
    return %c0_i32, %c0_i32_0 : i32, i32
  }
  func.func @transform_6(%arg0: i32) -> (i32, i32) {
    %c0_i32 = arith.constant 0 : i32
    %c0_i32_0 = arith.constant 0 : i32
    %c0_i32_1 = arith.constant 0 : i32
    return %c0_i32, %c0_i32_0 : i32, i32
  }
  func.func @transform_7(%arg0: i32) -> (i32, i32) {
    %c0_i32 = arith.constant 0 : i32
    %c0_i32_0 = arith.constant 0 : i32
    return %arg0, %c0_i32 : i32, i32
  }
}

module attributes {stable_mosaic.version = 11 : i64} {
  func.func @_head_kernel(%arg0: i32, %arg1: memref<32x128xbf16, #tpu.memory_space<vmem>>, %arg2: memref<128x128xbf16, #tpu.memory_space<vmem>>, %arg3: memref<1x128xf32, #tpu.memory_space<vmem>>, %arg4: memref<128x128xbf16, #tpu.memory_space<vmem>>, %arg5: memref<1x128xf32, #tpu.memory_space<vmem>>, %arg6: memref<128x128xbf16, #tpu.memory_space<vmem>>, %arg7: memref<1x128xf32, #tpu.memory_space<vmem>>, %arg8: memref<32x128xf32, #tpu.memory_space<vmem>>) attributes {dimension_semantics = [#tpu.dimension_semantics<parallel>], iteration_bounds = array<i64: 2>, scalar_prefetch = 0 : i64, scratch_operands = 0 : i64, tpu.core_type = #tpu.core_type<tc>, window_params = [{transform_indices = @transform_0, window_bounds = array<i64: 32, 128>}, {pipeline_mode = #tpu.pipeline_mode<synchronous>, transform_indices = @transform_1, window_bounds = array<i64: 128, 128>}, {pipeline_mode = #tpu.pipeline_mode<synchronous>, transform_indices = @transform_2, window_bounds = array<i64: 1, 128>}, {pipeline_mode = #tpu.pipeline_mode<synchronous>, transform_indices = @transform_3, window_bounds = array<i64: 128, 128>}, {pipeline_mode = #tpu.pipeline_mode<synchronous>, transform_indices = @transform_4, window_bounds = array<i64: 1, 128>}, {pipeline_mode = #tpu.pipeline_mode<synchronous>, transform_indices = @transform_5, window_bounds = array<i64: 128, 128>}, {pipeline_mode = #tpu.pipeline_mode<synchronous>, transform_indices = @transform_6, window_bounds = array<i64: 1, 128>}, {transform_indices = @transform_7, window_bounds = array<i64: 32, 128>}]} {
    %c0 = arith.constant 0 : index
    %c0_0 = arith.constant 0 : index
    %0 = vector.load %arg1[%c0, %c0_0] : memref<32x128xbf16, #tpu.memory_space<vmem>>, vector<32x128xbf16>
    %c0_1 = arith.constant 0 : index
    %c0_2 = arith.constant 0 : index
    %1 = vector.load %arg2[%c0_1, %c0_2] : memref<128x128xbf16, #tpu.memory_space<vmem>>, vector<128x128xbf16>
    %cst = arith.constant dense<0.000000e+00> : vector<32x128xf32>
    %2 = tpu.matmul %0, %1, %cst {dimension_numbers = #tpu.dot_dimension_numbers<[1], [0], [0], [1], [0, 0, 1, 1], [], []>} : vector<32x128xbf16>, vector<128x128xbf16>, vector<32x128xf32> -> vector<32x128xf32>
    %c0_3 = arith.constant 0 : index
    %c0_4 = arith.constant 0 : index
    %3 = vector.load %arg3[%c0_3, %c0_4] : memref<1x128xf32, #tpu.memory_space<vmem>>, vector<1x128xf32>
    %4 = vector.broadcast %3 : vector<1x128xf32> to vector<32x128xf32>
    %5 = arith.addf %2, %4 : vector<32x128xf32>
    %cst_5 = arith.constant 0.000000e+00 : f32
    %6 = vector.broadcast %cst_5 : f32 to vector<32x128xf32>
    %7 = arith.maximumf %5, %6 : vector<32x128xf32>
    %8 = arith.truncf %7 : vector<32x128xf32> to vector<32x128xbf16>
    %c0_6 = arith.constant 0 : index
    %c0_7 = arith.constant 0 : index
    %9 = vector.load %arg4[%c0_6, %c0_7] : memref<128x128xbf16, #tpu.memory_space<vmem>>, vector<128x128xbf16>
    %cst_8 = arith.constant dense<0.000000e+00> : vector<32x128xf32>
    %10 = tpu.matmul %8, %9, %cst_8 {dimension_numbers = #tpu.dot_dimension_numbers<[1], [0], [0], [1], [0, 0, 1, 1], [], []>} : vector<32x128xbf16>, vector<128x128xbf16>, vector<32x128xf32> -> vector<32x128xf32>
    %c0_9 = arith.constant 0 : index
    %c0_10 = arith.constant 0 : index
    %11 = vector.load %arg5[%c0_9, %c0_10] : memref<1x128xf32, #tpu.memory_space<vmem>>, vector<1x128xf32>
    %12 = vector.broadcast %11 : vector<1x128xf32> to vector<32x128xf32>
    %13 = arith.addf %10, %12 : vector<32x128xf32>
    %14 = arith.truncf %13 : vector<32x128xf32> to vector<32x128xbf16>
    %c0_11 = arith.constant 0 : index
    %c0_12 = arith.constant 0 : index
    %15 = vector.load %arg6[%c0_11, %c0_12] : memref<128x128xbf16, #tpu.memory_space<vmem>>, vector<128x128xbf16>
    %cst_13 = arith.constant dense<0.000000e+00> : vector<32x128xf32>
    %16 = tpu.matmul %14, %15, %cst_13 {dimension_numbers = #tpu.dot_dimension_numbers<[1], [0], [0], [1], [0, 0, 1, 1], [], []>} : vector<32x128xbf16>, vector<128x128xbf16>, vector<32x128xf32> -> vector<32x128xf32>
    %c0_14 = arith.constant 0 : index
    %c0_15 = arith.constant 0 : index
    %17 = vector.load %arg7[%c0_14, %c0_15] : memref<1x128xf32, #tpu.memory_space<vmem>>, vector<1x128xf32>
    %18 = vector.broadcast %17 : vector<1x128xf32> to vector<32x128xf32>
    %19 = arith.addf %16, %18 : vector<32x128xf32>
    %20 = tpu.iota {dimensions = array<i32: 1>} : vector<32x128xi32>
    %c10_i32 = arith.constant 10 : i32
    %21 = vector.broadcast %c10_i32 : i32 to vector<32x128xi32>
    %22 = arith.cmpi slt, %20, %21 : vector<32x128xi32>
    %cst_16 = arith.constant 0xFF800000 : f32
    %23 = vector.broadcast %cst_16 : f32 to vector<32x128xf32>
    %24 = arith.select %22, %19, %23 : vector<32x128xi1>, vector<32x128xf32>
    %cst_17 = arith.constant dense<0xFF800000> : vector<32xf32>
    %25 = vector.multi_reduction <maximumf>, %24, %cst_17 [1] : vector<32x128xf32> to vector<32xf32>
    %26 = vector.shape_cast %25 : vector<32xf32> to vector<32x1xf32>
    %27 = vector.broadcast %26 : vector<32x1xf32> to vector<32x128xf32>
    %28 = arith.subf %24, %27 : vector<32x128xf32>
    %29 = math.exp %28 : vector<32x128xf32>
    %cst_18 = arith.constant dense<0.000000e+00> : vector<32xf32>
    %30 = vector.multi_reduction <add>, %29, %cst_18 [1] : vector<32x128xf32> to vector<32xf32>
    %31 = vector.shape_cast %30 : vector<32xf32> to vector<32x1xf32>
    %32 = math.log %31 : vector<32x1xf32>
    %33 = vector.broadcast %32 : vector<32x1xf32> to vector<32x128xf32>
    %34 = arith.subf %28, %33 : vector<32x128xf32>
    %c0_19 = arith.constant 0 : index
    %c0_20 = arith.constant 0 : index
    %35 = vector.load %arg8[%c0_19, %c0_20] : memref<32x128xf32, #tpu.memory_space<vmem>>, vector<32x128xf32>
    tpu.vector_store %arg8[%c0_19, %c0_20], %34 {strides = array<i32>} : memref<32x128xf32, #tpu.memory_space<vmem>>, vector<32x128xf32>,
    return
  }
  func.func @transform_0(%arg0: i32) -> (i32, i32) {
    %c0_i32 = arith.constant 0 : i32
    %c0_i32_0 = arith.constant 0 : i32
    return %arg0, %c0_i32 : i32, i32
  }
  func.func @transform_1(%arg0: i32) -> (i32, i32) {
    %c0_i32 = arith.constant 0 : i32
    %c0_i32_0 = arith.constant 0 : i32
    %c0_i32_1 = arith.constant 0 : i32
    return %c0_i32, %c0_i32_0 : i32, i32
  }
  func.func @transform_2(%arg0: i32) -> (i32, i32) {
    %c0_i32 = arith.constant 0 : i32
    %c0_i32_0 = arith.constant 0 : i32
    %c0_i32_1 = arith.constant 0 : i32
    return %c0_i32, %c0_i32_0 : i32, i32
  }
  func.func @transform_3(%arg0: i32) -> (i32, i32) {
    %c0_i32 = arith.constant 0 : i32
    %c0_i32_0 = arith.constant 0 : i32
    %c0_i32_1 = arith.constant 0 : i32
    return %c0_i32, %c0_i32_0 : i32, i32
  }
  func.func @transform_4(%arg0: i32) -> (i32, i32) {
    %c0_i32 = arith.constant 0 : i32
    %c0_i32_0 = arith.constant 0 : i32
    %c0_i32_1 = arith.constant 0 : i32
    return %c0_i32, %c0_i32_0 : i32, i32
  }
  func.func @transform_5(%arg0: i32) -> (i32, i32) {
    %c0_i32 = arith.constant 0 : i32
    %c0_i32_0 = arith.constant 0 : i32
    %c0_i32_1 = arith.constant 0 : i32
    return %c0_i32, %c0_i32_0 : i32, i32
  }
  func.func @transform_6(%arg0: i32) -> (i32, i32) {
    %c0_i32 = arith.constant 0 : i32
    %c0_i32_0 = arith.constant 0 : i32
    %c0_i32_1 = arith.constant 0 : i32
    return %c0_i32, %c0_i32_0 : i32, i32
  }
  func.func @transform_7(%arg0: i32) -> (i32, i32) {
    %c0_i32 = arith.constant 0 : i32
    %c0_i32_0 = arith.constant 0 : i32
    return %arg0, %c0_i32 : i32, i32
  }
}

</mosaic_0001>

<bundles_post_ra>
// kernel: custom-call.14
= control target key start
LH: loop header
LB: loop body
LE: loop exit
PB: predicated region body
PF: predicated region fallthrough
CT: control target
= control target key end

     0   :  { %s6_s0 = inlined_call_operand.vmem [shape: f32[2,32], index: 0, kind: output, shape index: {}]  }

// kernel: pointnet_forward.9
= control target key start
LH: loop header
LB: loop body
LE: loop exit
PB: predicated region body
PF: predicated region fallthrough
CT: control target
= control target key end

     0   :  { %s668_s18 = smov 0   ;;  %s705_s0 = inlined_call_operand.vmem [shape: bf16[64,3], index: 0, kind: input, shape index: {}]   ;;  %s706_s1 = inlined_call_operand.vmem [shape: f32[64,3], index: 1, kind: input, shape index: {}]   ;;  %s707_s2 = inlined_call_operand.vmem [shape: bf16[3,128], index: 2, kind: input, shape index: {}]   ;;  %s708_s3 = inlined_call_operand.vmem [shape: f32[3,128], index: 3, kind: input, shape index: {}]   ;;  %s709_s4 = inlined_call_operand.vmem [shape: f32[1,128], index: 4, kind: input, shape index: {}]   ;;  %s710_s5 = inlined_call_operand.vmem [shape: bf16[64,128], index: 5, kind: output, shape index: {}]  }
   0x1 LB: > { %s536_s19 = sadd.s32 4294967295, %s633_s18   ;;  %p540_p0 = scmp.ge.s32.totalorder %s633_s18, 1  ;;  %s633_s18 = sphi %s668_s18, %s15_s18  }
   0x2   : > { %p199_p1 = scmp.lt.s32.totalorder %s633_s18, 3 }
   0x4   : > { %p200_p2 = pnand %p540_p0, %p199_p1 }
   0x5   : > { %s541_s20 = sshll.u32 (!%p200_p2), %s536_s19, 2  ;;  %v635_v0 = vmov (!%p200_p2), 1   ;;  %v636_v1 = vmov (!%p200_p2), 0   ;;  %v637_v14 = vmov (!%p200_p2), 2   ;;  %v280_v21 = vlaneseq (!%p200_p2)  ;;  %v254_v28 = vld [vmem:[%s707_s2] sm:$0x3] (!%p200_p2) }
   0x6   : > { %203 = sbr.rel (%p200_p2) target bundleno = 196 (0xc4), region = 40  ;;  %591 = vset.pattern.permute.xlu0 (!%p200_p2), %v635_v0  ;;  %589 = vset.pattern.permute.xlu1 (!%p200_p2), %v636_v1  ;;  %p233_p3 = scmp.lt.s32.totalorder (!%p200_p2), %s541_s20, 7  ;;  %v348_v30 = vld [vmem:[%s708_s3] sm:$0x7] (!%p200_p2)  ;;  %v259_v31 = vunpack.c.l.bf16 (!%p200_p2), %v254_v28 }
   0x7   : > { %v281_v24 = vshrl.u32 (!%p200_p2), %v280_v21, 7 }
   0x9   : > { %v306_v27 = vsub.s32 (!%p200_p2), 1, %v281_v24  ;;  %v282_v29 = vsub.s32 (!%p200_p2), 0, %v281_v24  ;;  %v334_v35 = vsub.s32 (!%p200_p2), 2, %v281_v24 }
   0xb   : > { %v396_v33 = vrot.slane (!%p200_p2), %v348_v30, %v306_v27  ;;  %v372_v36 = vrot.slane (!%p200_p2), %v348_v30, %v282_v29  ;;  %v283_v37 = vrot.slane (!%p200_p2), %v259_v31, %v282_v29  ;;  %v307_v39 = vrot.slane (!%p200_p2), %v259_v31, %v306_v27 }
   0xc   : > { %v335_v46 = vrot.slane (!%p200_p2), %v259_v31, %v334_v35  ;;  %v424_v50 = vrot.slane (!%p200_p2), %v348_v30, %v334_v35 }
   0xd   : > { %s712_s20 = smov (!%p233_p3, %s541_s20), 7 }
   0xe   : > { %s544_s21 = sshll.u32 %s712_s20, 3  ;;  %s542_s22 = sshll.u32 %s712_s20, 2 }
   0xf   : > { %s242_s25 = scalar_lea.vmem %s706_s1, %s544_s21  ;;  %s236_s28 = scalar_lea.vmem %s705_s0, %s542_s22 }
  0x10   : > { %v345_v2 = vld [vmem:[%s242_s25 + $0x8] sm:$0xff]  ;;  %v344_v3 = vld [vmem:[%s242_s25] sm:$0xff]  ;;  %v347_v12 = vld [vmem:[%s242_s25 + $0x18] sm:$0xff]  ;;  %s248_s12 = scalar_lea.vmem %s710_s5, %s542_s22 }
  0x11   : > { %382 = vperm.xlu0 %591, %v345_v2   ;;  %351 = vperm.xlu1 %589, %v344_v3   ;;  %v559_v4 = vld [vmem:[%s236_s28] sm:$0xff]   ;;  %v576_v5 = vld [vmem:[%s236_s28 + $0x8] sm:$0xff]   ;;  %v346_v13 = vld [vmem:[%s242_s25 + $0x10] sm:$0xff] }
  0x12   : > { %v560_v6 = vunpack.c.l.bf16 %v559_v4  ;;  %v561_v7 = vunpack.c.h.bf16 %v559_v4  ;;  %v564_v8 = vunpack.c.l.bf16 %v576_v5  ;;  %v565_v9 = vunpack.c.h.bf16 %v576_v5 }
  0x14   : > { %v593_v10 = vpack.i.bf16 %v561_v7, %v560_v6  ;;  %v598_v11 = vpack.i.bf16 %v565_v9, %v564_v8 }
  0x15   : > { %592 = vset.pattern.permute.xlu0 %v636_v1  ;;  %590 = vset.pattern.permute.xlu1 %v635_v0 }
  0x16   : > { %378 = vperm.xlu1 %590, %v344_v3   ;;  %594 = vperm.xlu0 %592, %v593_v10  }
  0x1a   : > { %604 = vperm.xlu1 %590, %v593_v10   ;;  %599 = vperm.xlu0 %592, %v598_v11  }
  0x1e   : > { %609 = vperm.xlu1 %590, %v598_v11   ;;  %356 = vperm.xlu0 %592, %v345_v2  }
  0x22   : > { %613 = vset.pattern.permute.xlu1 %v636_v1  ;;  %366 = vperm.xlu0 %592, %v347_v12  }
  0x23   : > { %361 = vperm.xlu1 %613, %v346_v13  }
  0x26   : > { %615 = vset.pattern.permute.xlu0 %v637_v14 }
  0x27   : > { %614 = vset.pattern.permute.xlu1 %v635_v0  ;;  %617 = vperm.xlu0 %615, %v593_v10  }
  0x28   : > { %386 = vperm.xlu1 %614, %v346_v13  }
  0x2b   : > { %623 = vperm.xlu0 %615, %v598_v11  }
  0x2c   : > { %390 = vperm.xlu1 %614, %v347_v12  }
  0x2f   : > { %418 = vperm.xlu0 %615, %v347_v12  }
  0x30   : > { %621 = vset.pattern.permute.xlu1 %v637_v14 }
  0x31   : > { %406 = vperm.xlu1 %621, %v344_v3  }
  0x35   : > { %410 = vperm.xlu1 %621, %v345_v2  }
  0x39   : > { %414 = vperm.xlu1 %621, %v346_v13  }
  0x90   : > { %v352_v15 = vpop.permute.xlu1 %351  ;;  %v383_v16 = vpop.permute.xlu0 %382 }
  0x91   : > { %v373_v47 = vmul.f32 %v372_v36, %v352_v15  ;;  %v398_v48 = vmul.f32 %v396_v33, %v383_v16 }
  0x95   : > { %v379_v17 = vpop.permute.xlu1 %378  ;;  %v595_v18 = vpop.permute.xlu0 %594 }
  0x96   : > { %v596_v38 = vunpack.i.l.bf16 %v595_v18  ;;  %v397_v42 = vmul.f32 %v396_v33, %v379_v17  ;;  %v597_v43 = vunpack.i.h.bf16 %v595_v18 }
  0x98   : > { %v284_v51 = vmul.f32 %v596_v38, %v283_v37  ;;  %v401_v55 = vadd.f32 %v397_v42, %v373_v47  ;;  %v285_v56 = vmul.f32 %v597_v43, %v283_v37 }
  0x99   : > { %v605_v19 = vpop.permute.xlu1 %604  ;;  %v600_v20 = vpop.permute.xlu0 %599 }
  0x9a   : > { %v606_v40 = vunpack.i.l.bf16 %v605_v19  ;;  %v607_v45 = vunpack.i.h.bf16 %v605_v19  ;;  %v602_v53 = vunpack.i.h.bf16 %v600_v20  ;;  %v601_v60 = vunpack.i.l.bf16 %v600_v20 }
  0x9c   : > { %v308_v52 = vmul.f32 %v606_v40, %v307_v39  ;;  %v309_v59 = vmul.f32 %v607_v45, %v307_v39  ;;  %v287_v6 = vmul.f32 %v602_v53, %v283_v37  ;;  %v286_v14 = vmul.f32 %v601_v60, %v283_v37 }
  0x9d   : > { %v610_v22 = vpop.permute.xlu1 %609  ;;  %v357_v23 = vpop.permute.xlu0 %356 }
  0x9e   : > { %v612_v54 = vunpack.i.h.bf16 %v610_v22  ;;  %v611_v61 = vunpack.i.l.bf16 %v610_v22  ;;  %v374_v62 = vmul.f32 %v372_v36, %v357_v23  ;;  %v312_v5 = vadd.f32 %v308_v52, %v284_v51 }
  0x9f   : > { %v313_v13 = vadd.f32 %v309_v59, %v285_v56 }
  0xa0   : > { %v311_v7 = vmul.f32 %v612_v54, %v307_v39  ;;  %v310_v15 = vmul.f32 %v611_v61, %v307_v39  ;;  %v402_v16 = vadd.f32 %v398_v48, %v374_v62 }
  0xa1   : > { %v367_v25 = vpop.permute.xlu0 %366 }
  0xa2   : > { %v362_v26 = vpop.permute.xlu1 %361  ;;  %v376_v1 = vmul.f32 %v372_v36, %v367_v25  ;;  %v315_v22 = vadd.f32 %v311_v7, %v287_v6  ;;  %v314_v30 = vadd.f32 %v310_v15, %v286_v14 }
  0xa3   : > { %v375_v23 = vmul.f32 %v372_v36, %v362_v26 }
  0xa6   : > { %v618_v32 = vpop.permute.xlu0 %617 }
  0xa7   : > { %v387_v34 = vpop.permute.xlu1 %386  ;;  %v619_v49 = vunpack.i.l.bf16 %v618_v32  ;;  %v620_v57 = vunpack.i.h.bf16 %v618_v32 }
  0xa8   : > { %v399_v19 = vmul.f32 %v396_v33, %v387_v34 }
  0xa9   : > { %v336_v2 = vmul.f32 %v619_v49, %v335_v46  ;;  %v337_v9 = vmul.f32 %v620_v57, %v335_v46 }
  0xaa   : > { %v624_v41 = vpop.permute.xlu0 %623  ;;  %v403_v32 = vadd.f32 %v399_v19, %v375_v23 }
  0xab   : > { %v391_v44 = vpop.permute.xlu1 %390  ;;  %v626_v3 = vunpack.i.h.bf16 %v624_v41  ;;  %v625_v8 = vunpack.i.l.bf16 %v624_v41  ;;  %v340_v18 = vadd.f32 %v336_v2, %v312_v5  ;;  %v341_v25 = vadd.f32 %v337_v9, %v313_v13 }
  0xac   : > { %v400_v58 = vmul.f32 %v396_v33, %v391_v44  ;;  %v547_v33 = vld [vmem:[%s709_s4] ss:$0 sm:$0xff] }
  0xad   : > { %v339_v20 = vmul.f32 %v626_v3, %v335_v46  ;;  %v338_v24 = vmul.f32 %v625_v8, %v335_v46 }
  0xae   : > { %v419_v63 = vpop.permute.xlu0 %418  ;;  %v404_v10 = vadd.f32 %v400_v58, %v376_v1 }
  0xaf   : > { %v428_v11 = vmul.f32 %v424_v50, %v419_v63  ;;  %v343_v35 = vadd.f32 %v339_v20, %v315_v22  ;;  %v342_v39 = vadd.f32 %v338_v24, %v314_v30 }
  0xb0   : > { %v407_v0 = vpop.permute.xlu1 %406 }
  0xb1   : > { %v425_v4 = vmul.f32 %v424_v50, %v407_v0  ;;  %v432_v27 = vadd.f32 %v428_v11, %v404_v10 }
  0xb3   : > { %v429_v12 = vadd.f32 %v425_v4, %v401_v55  ;;  %v436_v34 = vadd.f32 %v432_v27, %v343_v35 }
  0xb4   : > { %v411_v17 = vpop.permute.xlu1 %410 }
  0xb5   : > { %v426_v21 = vmul.f32 %v424_v50, %v411_v17  ;;  %v433_v28 = vadd.f32 %v429_v12, %v340_v18  ;;  %v447_v43 = vadd.f32 %v547_v33, %v436_v34 }
  0xb7   : > { %v430_v29 = vadd.f32 %v426_v21, %v402_v16  ;;  %v444_v40 = vadd.f32 %v547_v33, %v433_v28 }
  0xb8   : > { %v415_v31 = vpop.permute.xlu1 %414 }
  0xb9   : > { %v434_v37 = vadd.f32 %v430_v29, %v341_v25  ;;  %v427_v38 = vmul.f32 %v424_v50, %v415_v31 }
  0xbb   : > { %v445_v26 = vadd.f32 %v547_v33, %v434_v37  ;;  %v431_v36 = vadd.f32 %v427_v38, %v403_v32 }
  0xbd   : > { %v569_v41 = vpack.c.bf16 %v445_v26, %v444_v40  ;;  %v435_v42 = vadd.f32 %v431_v36, %v342_v39 }
  0xbf   : > { %570 = vst [vmem:[%s248_s12] sm:$0xff] %v569_v41   ;;  %v446_v44 = vadd.f32 %v547_v33, %v435_v42 }
  0xc1   : > { %v574_v45 = vpack.c.bf16 %v447_v43, %v446_v44 }
  0xc3   : > { %577 = vst [vmem:[%s248_s12 + $0x8] sm:$0xff] %v574_v45  }
  0xc4 PF: > { %s15_s18 = sadd.s32 1, %s633_s18  }
  0xc5   : > { %p12_p4 = scmp.ge.s32.totalorder %s15_s18, 4  }
  0xc7   :  { %14 = sbr.rel (!%p12_p4) target bundleno = 1 (0x1), region = 73 }

// kernel: pointnet_forward.11
= control target key start
LH: loop header
LB: loop body
LE: loop exit
PB: predicated region body
PF: predicated region fallthrough
CT: control target
= control target key end

     0   :  { %s566_s18 = smov 0   ;;  %s624_s0 = inlined_call_operand.vmem [shape: bf16[16,128], index: 0, kind: input, shape index: {}]   ;;  %s625_s1 = inlined_call_operand.vmem [shape: f32[16,3], index: 1, kind: input, shape index: {}]   ;;  %s626_s2 = inlined_call_operand.vmem [shape: bf16[128,128], index: 2, kind: input, shape index: {}]   ;;  %s627_s3 = inlined_call_operand.vmem [shape: f32[3,128], index: 3, kind: input, shape index: {}]   ;;  %s628_s4 = inlined_call_operand.vmem [shape: f32[1,128], index: 4, kind: input, shape index: {}]   ;;  %s629_s5 = inlined_call_operand.vmem [shape: bf16[16,128], index: 5, kind: output, shape index: {}]  }
   0x1 LB: > { %s450_s19 = sadd.s32 4294967295, %s529_s18   ;;  %p454_p0 = scmp.ge.s32.totalorder %s529_s18, 1  ;;  %s529_s18 = sphi %s566_s18, %s15_s18  }
   0x2   : > { %p195_p1 = scmp.lt.s32.totalorder %s529_s18, 3 }
   0x4   : > { %p196_p2 = pnand %p454_p0, %p195_p1 }
   0x5   : > { %v515_v0 = vld [vmem:[%s626_s2] sm:$0xff] (!%p196_p2)   ;;  %v531_v1 = vmov (!%p196_p2), 0.0   ;;  %v516_v2 = vld [vmem:[%s626_s2 + $0x8] sm:$0xff] (!%p196_p2)   ;;  %vm532_vm0 = vmmov (!%p196_p2), 0   ;;  %p225_p3 = scmp.lt.s32.totalorder (!%p196_p2), %s450_s19, 1  ;;  %v533_v3 = vmov (!%p196_p2), 0   ;;  %v262_v14 = vlaneseq (!%p196_p2) }
   0x6   : > { %199 = sbr.rel (%p196_p2) target bundleno = 257 (0x101), region = 40  ;;  %478 = vmatprep.subr.bf16.mxu0 (!%p196_p2), %v531_v1  ;;  %494 = vmatprep.mubr.msk.bf16.mxu0 (!%p196_p2), %vm532_vm0, %v531_v1  ;;  %v517_v4 = vld [vmem:[%s626_s2 + $0x10] sm:$0xff] (!%p196_p2)   ;;  %v534_v5 = vmov (!%p196_p2), 2   ;;  %v518_v6 = vld [vmem:[%s626_s2 + $0x18] sm:$0xff] (!%p196_p2)   ;;  %v519_v8 = vld [vmem:[%s626_s2 + $0x20] sm:$0xff] (!%p196_p2)   ;;  %v535_v9 = vmov (!%p196_p2), 1  }
   0x7   : > { %479 = vmatpush3.bf16.msra.mxu0 (!%p196_p2), %v515_v0  ;;  %511 = vset.pattern.permute.xlu0 (!%p196_p2), %v533_v3  ;;  %v520_v10 = vld [vmem:[%s626_s2 + $0x28] sm:$0xff] (!%p196_p2)   ;;  %v521_v11 = vld [vmem:[%s626_s2 + $0x30] sm:$0xff] (!%p196_p2)   ;;  %v522_v12 = vld [vmem:[%s626_s2 + $0x38] sm:$0xff] (!%p196_p2)   ;;  %v263_v15 = vshrl.u32 (!%p196_p2), %v262_v14, 7 }
   0x8   : > { %480 = vmatprep.subr.bf16.mxu0 (!%p196_p2), %v531_v1  ;;  %513 = vset.pattern.permute.xlu1 (!%p196_p2), %v534_v5  ;;  %v256_v19 = vld [vmem:[%s627_s3] sm:$0x7] (!%p196_p2) }
   0x9   : > { %v264_v17 = vsub.s32 (!%p196_p2), 0, %v263_v15  ;;  %v273_v18 = vsub.s32 (!%p196_p2), 1, %v263_v15  ;;  %v283_v22 = vsub.s32 (!%p196_p2), 2, %v263_v15  ;;  %v466_v32 = vld [vmem:[%s628_s4] ss:$0 sm:$0xff] (!%p196_p2) }
   0xb   : > { %481 = vmatpush3.bf16.msra.mxu0 (!%p196_p2), %v516_v2  ;;  %v265_v20 = vrot.slane (!%p196_p2), %v256_v19, %v264_v17  ;;  %v274_v21 = vrot.slane (!%p196_p2), %v256_v19, %v273_v18  ;;  %v284_v26 = vrot.slane (!%p196_p2), %v256_v19, %v283_v22 }
   0xc   : > { %482 = vmatprep.subr.bf16.mxu0 (!%p196_p2), %v531_v1 }
   0xd   : > { %s631_s19 = smov (!%p225_p3, %s450_s19), 1 }
   0xe   : > { %s456_s26 = sshll.u32 %s631_s19, 3  ;;  %s455_s13 = sshll.u32 %s631_s19, 2 }
   0xf   : > { %s232_s29 = scalar_lea.vmem %s625_s1, %s456_s26  ;;  %483 = vmatpush3.bf16.msra.mxu0 %v517_v4  ;;  %s228_s20 = scalar_lea.vmem %s624_s0, %s455_s13 }
  0x10   : > { %v255_v7 = vld [vmem:[%s232_s29] sm:$0xff]  ;;  %484 = vmatprep.subr.bf16.mxu0 %v531_v1  ;;  %s236_s27 = scalar_lea.vmem %s629_s5, %s455_s13 }
  0x11   : > { %259 = vperm.xlu0 %511, %v255_v7   ;;  %278 = vperm.xlu1 %513, %v255_v7   ;;  %v238_v13 = vld [vmem:[%s228_s20] sm:$0xf] }
  0x13   : > { %485 = vmatpush3.bf16.msra.mxu0 %v518_v6 }
  0x14   : > { %486 = vmatprep.subr.bf16.mxu0 %v531_v1 }
  0x15   : > { %512 = vset.pattern.permute.xlu0 %v535_v9 }
  0x16   : > { %268 = vperm.xlu0 %512, %v255_v7  }
  0x17   : > { %487 = vmatpush3.bf16.msra.mxu0 %v519_v8 }
  0x18   : > { %488 = vmatprep.subr.bf16.mxu0 %v531_v1 }
  0x1a   : > { %514 = vset.pattern.permute.xlu0 %v534_v5 }
  0x1b   : > { %489 = vmatpush3.bf16.msra.mxu0 %v520_v10 }
  0x1c   : > { %490 = vmatprep.subr.bf16.mxu0 %v531_v1 }
  0x1f   : > { %491 = vmatpush3.bf16.msra.mxu0 %v521_v11 }
  0x20   : > { %492 = vmatprep.subr.bf16.mxu0 %v531_v1 }
  0x23   : > { %493 = vmatpush3.bf16.msra.mxu0 %v522_v12 }
  0x26   : > { %495 = vmatmul.mubr.bf16.vlgmr.msra.gmra.mrb[0].mxu0 %v238_v13 }
  0x90   : > { %v260_v16 = vpop.permute.xlu0 %259  ;;  %v279_v27 = vpop.permute.xlu1 %278 }
  0x91   : > { %v266_v24 = vmul.f32 %v265_v20, %v260_v16  ;;  %v285_v29 = vmul.f32 %v284_v26, %v279_v27 }
  0x95   : > { %v269_v23 = vpop.permute.xlu0 %268 }
  0x96   : > { %v275_v25 = vmul.f32 %v274_v21, %v269_v23 }
  0x98   : > { %v276_v28 = vadd.f32 %v275_v25, %v266_v24 }
  0x9a   : > { %v286_v30 = vadd.f32 %v285_v29, %v276_v28 }
  0xf9   : > { %v369_v31 = vpop.f32.mrb[0].mxu0 }
  0xfa   : > { %v370_v33 = vadd.f32 %v369_v31, %v286_v30  ;;  %v496_v34 = vpop.f32.mrb[1].mxu0 }
  0xfb   : > { %v372_v35 = vpop.f32.mrb[2].mxu0 }
  0xfc   : > { %v382_v36 = vadd.f32 %v466_v32, %v370_v33  ;;  %v497_v37 = vpop.f32.mrb[3].mxu0 }
  0xfe   : > { %v383_v38 = vpack.c.bf16 %v382_v36, %v382_v36 }
 0x100   : > { %384 = vst [vmem:[%s236_s27] sm:$0xf] %v383_v38 }
 0x101 PF: > { %s15_s18 = sadd.s32 1, %s529_s18  }
 0x102   : > { %p12_p4 = scmp.ge.s32.totalorder %s15_s18, 4  }
 0x104   :  { %14 = sbr.rel (!%p12_p4) target bundleno = 1 (0x1), region = 73 }

// kernel: pointnet_forward.12
= control target key start
LH: loop header
LB: loop body
LE: loop exit
PB: predicated region body
PF: predicated region fallthrough
CT: control target
= control target key end

     0   :  { %s1558_s27 = smov 0   ;;  %s1560_s28 = smov 0   ;;  %s1814_s0 = inlined_call_operand.vmem [shape: f32[2,8,3], index: 0, kind: input, shape index: {}]   ;;  %s1815_s1 = inlined_call_operand.vmem [shape: f32[2,8,3], index: 1, kind: input, shape index: {}]   ;;  %s1816_s2 = inlined_call_operand.vmem [shape: bf16[2,8,128], index: 2, kind: input, shape index: {}]   ;;  %s1817_s3 = inlined_call_operand.vmem [shape: f32[3,128], index: 3, kind: input, shape index: {}]   ;;  %s1818_s4 = inlined_call_operand.vmem [shape: bf16[128,128], index: 4, kind: input, shape index: {}]   ;;  %s1819_s5 = inlined_call_operand.vmem [shape: f32[1,128], index: 5, kind: input, shape index: {}]   ;;  %s1820_s6 = inlined_call_operand.vmem [shape: bf16[128,256], index: 6, kind: input, shape index: {}]   ;;  %s1821_s7 = inlined_call_operand.vmem [shape: f32[1,256], index: 7, kind: input, shape index: {}]   ;;  %s1822_s8 = inlined_call_operand.vmem [shape: bf16[2,8,256], index: 8, kind: output, shape index: {}]  }
   0x1   :  { %s1562_s29 = smov 0  }
   0x2 LB: > { %s37_s30 = sadd.s32 1, %s1503_s28  ;;  %p1348_p0 = scmp.ge.s32.totalorder %s1507_s29, 1  ;;  %s1507_s29 = sphi %s1562_s29, %s18_s29   ;;  %s1503_s28 = sphi %s1560_s28, %s1824_s28   ;;  %s1499_s27 = sphi %s1558_s27, %s1823_s27  }
   0x3   : > { %p39_p1 = scmp.ge.s32.totalorder %s37_s30, 2  ;;  %p315_p2 = scmp.lt.s32.totalorder %s1507_s29, 3 }
   0x5   : > { %s1826_s30 = smov (%p39_p1, %s37_s30), 0  ;;  %p316_p3 = pnand %p1348_p0, %p315_p2 }
   0x6   : > { %p369_p4 = scmp.lt.s32.totalorder (!%p316_p3), %s1499_s27, 1  ;;  %v1453_v0 = vld [vmem:[%s1818_s4] sm:$0xff] (!%p316_p3)   ;;  %v1509_v1 = vmov (!%p316_p3), 0   ;;  %v1454_v2 = vld [vmem:[%s1818_s4 + $0x8] sm:$0xff] (!%p316_p3)   ;;  %v1510_v3 = vmov (!%p316_p3), 2   ;;  %v1455_v5 = vld [vmem:[%s1818_s4 + $0x10] sm:$0xff] (!%p316_p3)   ;;  %v413_v24 = vlaneseq (!%p316_p3) }
   0x7   : > { %319 = sbr.rel (%p316_p3) target bundleno = 660 (0x294), region = 52  ;;  %1448 = vset.pattern.permute.xlu0 (!%p316_p3), %v1509_v1  ;;  %842 = vmatprep.mubr.bf16.mxu1 (!%p316_p3), %v1509_v1  ;;  %v1511_v6 = vmov (!%p316_p3), 1   ;;  %v1456_v7 = vld [vmem:[%s1818_s4 + $0x18] sm:$0xff] (!%p316_p3)   ;;  %v1457_v8 = vld [vmem:[%s1818_s4 + $0x20] sm:$0xff] (!%p316_p3)   ;;  %v1458_v9 = vld [vmem:[%s1818_s4 + $0x28] sm:$0xff] (!%p316_p3)   ;;  %vm1005_vm0 = vcmask (!%p316_p3), 23552  }
   0x8   : > { %1450 = vset.pattern.permute.xlu1 (!%p316_p3), %v1510_v3  ;;  %1396 = vmatprep.subr.bf16.mxu0 (!%p316_p3), %v1453_v0  ;;  %v1459_v10 = vld [vmem:[%s1818_s4 + $0x30] sm:$0xff] (!%p316_p3)   ;;  %v1460_v11 = vld [vmem:[%s1818_s4 + $0x38] sm:$0xff] (!%p316_p3)   ;;  %v1461_v12 = vld [vmem:[%s1820_s6 + $0x4] ss:$8 sps:$4 sm:$0xff] (!%p316_p3)   ;;  %v1652_v25 = vshrl.u32 (!%p316_p3), %v413_v24, 7  ;;  %vm1184_vm5 = vcmask (!%p316_p3), 1041409  }
   0x9   : > { %1397 = vmatpush3.bf16.msra.mxu0 (!%p316_p3), %v1453_v0  ;;  %v1463_v13 = vld [vmem:[%s1820_s6] ss:$8 sps:$4 sm:$0xff] (!%p316_p3)   ;;  %v1464_v14 = vld [vmem:[%s1820_s6 + $0x14] ss:$8 sps:$4 sm:$0xff] (!%p316_p3)   ;;  %810 = vmatprep.subr.bf16.mxu1 (!%p316_p3), %v1461_v12  ;;  %v1466_v15 = vld [vmem:[%s1820_s6 + $0x10] ss:$8 sps:$4 sm:$0xff] (!%p316_p3)  }
   0xa   : > { %1398 = vmatprep.subr.bf16.mxu0 (!%p316_p3), %v1454_v2  ;;  %811 = vmatpush1.bf16.msra.mxu1 (!%p316_p3), %v1463_v13  ;;  %v1467_v16 = vld [vmem:[%s1820_s6 + $0x24] ss:$8 sps:$4 sm:$0xff] (!%p316_p3)   ;;  %v1469_v17 = vld [vmem:[%s1820_s6 + $0x20] ss:$8 sps:$4 sm:$0xff] (!%p316_p3)   ;;  %v1470_v18 = vld [vmem:[%s1820_s6 + $0x34] ss:$8 sps:$4 sm:$0xff] (!%p316_p3)  }
   0xb   : > { %812 = vmatprep.subr.bf16.mxu1 (!%p316_p3), %v1464_v14  ;;  %v1472_v19 = vld [vmem:[%s1820_s6 + $0x30] ss:$8 sps:$4 sm:$0xff] (!%p316_p3)   ;;  %v1473_v20 = vld [vmem:[%s1820_s6 + $0x44] ss:$8 sps:$4 sm:$0xff] (!%p316_p3)   ;;  %v1475_v21 = vld [vmem:[%s1820_s6 + $0x40] ss:$8 sps:$4 sm:$0xff] (!%p316_p3)  }
   0xc   : > { %v1476_v22 = vld [vmem:[%s1820_s6 + $0x54] ss:$8 sps:$4 sm:$0xff] (!%p316_p3)   ;;  %v1478_v23 = vld [vmem:[%s1820_s6 + $0x50] ss:$8 sps:$4 sm:$0xff] (!%p316_p3)   ;;  %v1655_v26 = vsub.s32 (!%p316_p3), 0, %v1652_v25  ;;  %v424_v27 = vsub.s32 (!%p316_p3), 1, %v1652_v25 }
   0xd   : > { %1399 = vmatpush3.bf16.msra.mxu0 (!%p316_p3), %v1454_v2  ;;  %v434_v28 = vsub.s32 (!%p316_p3), 2, %v1652_v25  ;;  %v407_v29 = vld [vmem:[%s1817_s3] sm:$0x7] (!%p316_p3)  ;;  %v1512_v30 = vmov (!%p316_p3), 1966171168   ;;  %vm1186_vm7 = vcmask (!%p316_p3), 1042434  }
   0xe   : > { %s1828_s27 = smov (!%p369_p4, %s1499_s27), 1  ;;  %1400 = vmatprep.subr.bf16.mxu0 %v1455_v5  ;;  %813 = vmatpush1.bf16.msra.mxu1 %v1466_v15  ;;  %v447_v31 = vunpack.c.l.s4 %v1512_v30  ;;  %v416_v33 = vrot.slane %v407_v29, %v1655_v26  ;;  %v425_v34 = vrot.slane %v407_v29, %v424_v27  ;;  %v1481_v30 = vld [vmem:[%s1820_s6 + $0x60] ss:$8 sps:$4 sm:$0xff]   ;;  %vm1188_vm9 = vcmask 1043459  }
   0xf   : > { %s1587_s13 = sshll.u32 %s1828_s27, 3  ;;  %814 = vmatprep.subr.bf16.mxu1 %v1467_v16  ;;  %v435_v35 = vrot.slane %v407_v29, %v434_v28  ;;  %s1351_s21 = sshll.u32 %s1828_s27, 2  ;;  %v1479_v29 = vld [vmem:[%s1820_s6 + $0x64] ss:$8 sps:$4 sm:$0xff]   ;;  %vm1190_vm12 = vcmask 1044484   ;;  %vm1192_vm13 = vcmask 1045509  }
  0x10   : > { %s375_s16 = scalar_lea.vmem %s1814_s0, %s1587_s13  ;;  %v448_v37 = vunpack.c.0.s8 %v447_v31  ;;  %s389_s24 = scalar_lea.vmem %s1816_s2, %s1351_s21  ;;  %v1482_v31 = vld [vmem:[%s1820_s6 + $0x74] ss:$8 sps:$4 sm:$0xff]   ;;  %vm1194_vm14 = vcmask 1046534   ;;  %vm1196_vm15 = vcmask 1047559  }
  0x11   : > { %v1593_v4 = vld [vmem:[%s375_s16] sm:$0xff]  ;;  %1401 = vmatpush3.bf16.msra.mxu0 %v1455_v5  ;;  %s382_s17 = scalar_lea.vmem %s1815_s1, %s1587_s13 }
  0x12   : > { %410 = vperm.xlu0 %1448, %v1593_v4   ;;  %429 = vperm.xlu1 %1450, %v1593_v4   ;;  %v1667_v42 = vsub.s32 %v448_v37, %v1652_v25  ;;  %v441_v45 = vld [vmem:[%s389_s24] sm:$0xf]  ;;  %s398_s24 = scalar_lea.vmem %s1822_s8, %s1587_s13 }
  0x13   : > { %1402 = vmatprep.subr.bf16.mxu0 %v1456_v7  ;;  %815 = vmatpush1.bf16.msra.mxu1 %v1469_v17  ;;  %v442_v51 = vunpack.c.l.bf16 %v441_v45 }
  0x14   : > { %816 = vmatprep.subr.bf16.mxu1 %v1470_v18 }
  0x15   : > { %1403 = vmatpush3.bf16.msra.mxu0 %v1456_v7 }
  0x16   : > { %1449 = vset.pattern.permute.xlu0 %v1511_v6  ;;  %1404 = vmatprep.subr.bf16.mxu0 %v1457_v8 }
  0x17   : > { %419 = vperm.xlu0 %1449, %v1593_v4   ;;  %817 = vmatpush1.bf16.msra.mxu1 %v1472_v19 }
  0x18   : > { %818 = vmatprep.subr.bf16.mxu1 %v1473_v20 }
  0x19   : > { %1405 = vmatpush3.bf16.msra.mxu0 %v1457_v8 }
  0x1a   : > { %1406 = vmatprep.subr.bf16.mxu0 %v1458_v9 }
  0x1b   : > { %1451 = vset.pattern.permute.xlu0 %v1510_v3  ;;  %819 = vmatpush1.bf16.msra.mxu1 %v1475_v21 }
  0x1c   : > { %820 = vmatprep.subr.bf16.mxu1 %v1476_v22 }
  0x1d   : > { %1407 = vmatpush3.bf16.msra.mxu0 %v1458_v9 }
  0x1e   : > { %1408 = vmatprep.subr.bf16.mxu0 %v1459_v10 }
  0x1f   : > { %821 = vmatpush1.bf16.msra.mxu1 %v1478_v23 }
  0x20   : > { %822 = vmatprep.subr.bf16.mxu1 %v1479_v29 }
  0x21   : > { %1409 = vmatpush3.bf16.msra.mxu0 %v1459_v10 }
  0x22   : > { %1410 = vmatprep.subr.bf16.mxu0 %v1460_v11 }
  0x23   : > { %823 = vmatpush1.bf16.msra.mxu1 %v1481_v30 }
  0x24   : > { %824 = vmatprep.subr.bf16.mxu1 %v1482_v31 }
  0x25   : > { %1411 = vmatpush3.bf16.msra.mxu0 %v1460_v11 }
  0x91   : > { %v411_v32 = vpop.permute.xlu0 %410  ;;  %v430_v36 = vpop.permute.xlu1 %429 }
  0x92   : > { %v417_v39 = vmul.f32 %v416_v33, %v411_v32  ;;  %v436_v41 = vmul.f32 %v435_v35, %v430_v36  ;;  %v1484_v32 = vld [vmem:[%s1820_s6 + $0x70] ss:$8 sps:$4 sm:$0xff]   ;;  %v900_v33 = vcombine.high %v1593_v4, %v1593_v4 }
  0x93   : > { %825 = vmatpush1.bf16.msra.mxu1 %v1484_v32 }
  0x94   : > { %v914_v35 = vrot.slane %v900_v33, %v1667_v42 }
  0x96   : > { %v420_v38 = vpop.permute.xlu0 %419 }
  0x97   : > { %v426_v40 = vmul.f32 %v425_v34, %v420_v38  ;;  %v907_v34 = vrot.slane %v1593_v4, %v1667_v42  ;;  %v916_v38 = vcombine.high %v914_v35, %v914_v35 }
  0x99   : > { %v427_v43 = vadd.f32 %v426_v40, %v417_v39  ;;  %v915_v36 = vcombine.high %v907_v34, %v907_v34  ;;  %v923_v37 = vrot.slane %v907_v34, %v1667_v42  ;;  %v440_v39 = vld [vmem:[%s382_s17] sm:$0xff]  ;;  %v944_v4 = vrot.slane %v916_v38, %v1667_v42 }
  0x9b   : > { %v437_v44 = vadd.f32 %v436_v41, %v427_v43  ;;  %v952_v40 = vrot.slane %v923_v37, %v1655_v26  ;;  %v937_v41 = vrot.slane %v915_v36, %v1667_v42  ;;  %v945_v43 = vcombine.high %v923_v37, %v923_v37 }
  0x9d   : > { %v445_v46 = vcombine.high %v437_v44, %v437_v44  ;;  %v452_v47 = vrot.slane %v437_v44, %v1667_v42  ;;  %v930_v44 = vrot.slane %v914_v35, %v1667_v42  ;;  %v989_v45 = vsub.f32 %v440_v39, %v952_v40 }
  0x9f   : > { %v459_v48 = vrot.slane %v445_v46, %v1667_v42  ;;  %v460_v49 = vcombine.high %v452_v47, %v452_v47  ;;  %v468_v50 = vrot.slane %v452_v47, %v1667_v42  ;;  %v956_v46 = vrot.slane %v937_v41, %v1655_v26 }
  0xa0   : > { %v960_v47 = vrot.slane %v945_v43, %v1655_v26 }
  0xa1   : > { %v461_v52 = vcombine.high %v459_v48, %v459_v48  ;;  %v475_v53 = vrot.slane %v459_v48, %v1667_v42  ;;  %v482_v54 = vrot.slane %v460_v49, %v1667_v42  ;;  %v490_v55 = vcombine.high %v468_v50, %v468_v50 }
  0xa2   : > { %v497_v56 = vrot.slane %v468_v50, %v1655_v26  ;;  %v947_v48 = vcombine.high %v937_v41, %v937_v41  ;;  %v968_v49 = vrot.slane %v930_v44, %v1655_v26  ;;  %v972_v50 = vrot.slane %v944_v4, %v1655_v26 }
  0xa3   : > { %v492_v57 = vcombine.high %v482_v54, %v482_v54  ;;  %v501_v58 = vrot.slane %v482_v54, %v1655_v26  ;;  %v505_v59 = vrot.slane %v490_v55, %v1655_v26  ;;  %v489_v60 = vrot.slane %v461_v52, %v1667_v42 }
  0xa4   : > { %v534_v61 = vsub.f32 %v442_v51, %v497_v56  ;;  %v513_v62 = vrot.slane %v475_v53, %v1655_v26  ;;  %v491_v63 = vcombine.high %v475_v53, %v475_v53  ;;  %v948_v52 = vcombine.high %v944_v4, %v944_v4 }
  0xa5   : > { %v535_v0 = vsub.f32 %v442_v51, %v501_v58  ;;  %v509_v2 = vrot.slane %v492_v57, %v1655_v26  ;;  %v536_v3 = vsub.f32 %v442_v51, %v505_v59  ;;  %v517_v5 = vrot.slane %v489_v60, %v1655_v26 }
  0xa6   : > { %v538_v6 = vsub.f32 %v442_v51, %v513_v62  ;;  %v493_v7 = vcombine.high %v489_v60, %v489_v60  ;;  %v542_v8 = vmax.f32 %v534_v61, 0.0  ;;  %v521_v13 = vrot.slane %v491_v63, %v1655_v26 }
  0xa7   : > { %v543_v9 = vmax.f32 %v535_v0, 0.0  ;;  %v537_v10 = vsub.f32 %v442_v51, %v509_v2  ;;  %v539_v11 = vsub.f32 %v442_v51, %v517_v5  ;;  %v544_v12 = vmax.f32 %v536_v3, 0.0 }
  0xa8   : > { %v525_v14 = vrot.slane %v493_v7, %v1655_v26  ;;  %v546_v17 = vmax.f32 %v538_v6, 0.0  ;;  %v540_v22 = vsub.f32 %v442_v51, %v521_v13  ;;  %v997_v53 = vmul.f32 %v989_v45, %v989_v45 }
  0xa9   : > { %v550_v15 = vpack.c.bf16 %v543_v9, %v542_v8  ;;  %v545_v16 = vmax.f32 %v537_v10, 0.0  ;;  %v547_v18 = vmax.f32 %v539_v11, 0.0  ;;  %v990_v54 = vsub.f32 %v440_v39, %v956_v46 }
  0xaa   : > { %v541_v21 = vsub.f32 %v442_v51, %v525_v14  ;;  %v548_v24 = vmax.f32 %v540_v22, 0.0  ;;  %v946_v51 = vcombine.high %v930_v44, %v930_v44  ;;  %v991_v55 = vsub.f32 %v440_v39, %v960_v47 }
  0xab   : > { %1412 = vmatprep.mubr.bf16.mxu0 %v550_v15  ;;  %v551_v19 = vpack.c.bf16 %v545_v16, %v544_v12  ;;  %v552_v20 = vpack.c.bf16 %v547_v18, %v546_v17  ;;  %v964_v56 = vrot.slane %v947_v48, %v1655_v26  ;;  %v993_v57 = vsub.f32 %v440_v39, %v968_v49  ;;  %v1354_v16 = vld [vmem:[%s1819_s5] ss:$0 sm:$0xff] }
  0xac   : > { %v549_v23 = vmax.f32 %v541_v21, 0.0  ;;  %v994_v58 = vsub.f32 %v440_v39, %v972_v50  ;;  %v976_v42 = vrot.slane %v946_v51, %v1655_v26  ;;  %v980_v59 = vrot.slane %v948_v52, %v1655_v26  ;;  %v718_v48 = vld [vmem:[%s1821_s7] sm:$0x3] }
  0xad   : > { %1413 = vmatmul.mubr.bf16.vlgmr.msra.gmra.mrb[0].mxu0 %v551_v19  ;;  %v1006_v60 = vsel %vm1005_vm0, %v997_v53, 0.0  ;;  %v998_v61 = vmul.f32 %v990_v54, %v990_v54  ;;  %v999_v62 = vmul.f32 %v991_v55, %v991_v55  ;;  %v992_v63 = vsub.f32 %v440_v39, %v964_v56 }
  0xae   : > { %1416 = vmatprep.mubr.bf16.mxu0 %v552_v20  ;;  %v553_v28 = vpack.c.bf16 %v549_v23, %v548_v24  ;;  %1007 = vadd.xlane.f32.xlu1 %v1006_v60  ;;  %v995_v0 = vsub.f32 %v440_v39, %v976_v42  ;;  %v996_v2 = vsub.f32 %v440_v39, %v980_v59 }
  0xaf   : > { %v1009_v3 = vsel %vm1005_vm0, %v998_v61, 0.0  ;;  %v1012_v5 = vsel %vm1005_vm0, %v999_v62, 0.0  ;;  %v1000_v6 = vmul.f32 %v992_v63, %v992_v63  ;;  %v1001_v7 = vmul.f32 %v993_v57, %v993_v57 }
  0xb0   : > { %1010 = vadd.xlane.f32.xlu0 %v1009_v3  ;;  %v1002_v9 = vmul.f32 %v994_v58, %v994_v58  ;;  %v1003_v11 = vmul.f32 %v995_v0, %v995_v0  ;;  %v1004_v13 = vmul.f32 %v996_v2, %v996_v2  ;;  %v1737_v49 = vrot.slane %v718_v48, %v1655_v26 }
  0xb1   : > { %v1015_v8 = vsel %vm1005_vm0, %v1000_v6, 0.0  ;;  %v1018_v10 = vsel %vm1005_vm0, %v1001_v7, 0.0  ;;  %v1741_v50 = vrot.slane %v718_v48, %v424_v27 }
  0xb2   : > { %1013 = vadd.xlane.f32.xlu1 %v1012_v5  ;;  %v1021_v12 = vsel %vm1005_vm0, %v1002_v9, 0.0  ;;  %v1024_v14 = vsel %vm1005_vm0, %v1003_v11, 0.0  ;;  %v1027_v15 = vsel %vm1005_vm0, %v1004_v13, 0.0 }
  0xb4   : > { %1016 = vadd.xlane.f32.xlu0 %v1015_v8 }
  0xb5   : > { %1417 = vmatmul.mubr.bf16.gmra.mrb[4].mxu0 %v553_v28 }
  0xb6   : > { %1019 = vadd.xlane.f32.xlu1 %v1018_v10 }
  0xb8   : > { %1022 = vadd.xlane.f32.xlu0 %v1021_v12 }
  0xba   : > { %1025 = vadd.xlane.f32.xlu1 %v1024_v14 }
  0xbc   : > { %1028 = vadd.xlane.f32.xlu0 %v1027_v15 }
 0x13b   : > { %v1008_v51 = vpop.xlane.xlu1 %1007 }
 0x13c   : > { %vm1030_vm1 = vcmp.le.f32.partialorder %v1008_v51, 0.16 }
 0x13d   : > { %v1011_v55 = vpop.xlane.xlu0 %1010 }
 0x13e   : > { %vm1031_vm2 = vcmp.le.f32.partialorder %v1011_v55, 0.16 }
 0x13f   : > { %v1014_v60 = vpop.xlane.xlu1 %1013 }
 0x140   : > { %vm1032_vm3 = vcmp.le.f32.partialorder %v1014_v60, 0.16 }
 0x141   : > { %v1017_v0 = vpop.xlane.xlu0 %1016 }
 0x142   : > { %vm1033_vm4 = vcmp.le.f32.partialorder %v1017_v0, 0.16 }
 0x143   : > { %v1748_v13 = vpop.xlane.xlu1 %1019 }
 0x144   : > { %vm1034_vm6 = vcmp.le.f32.partialorder %v1748_v13, 0.16 }
 0x147   : > { %v1763_v60 = vpop.xlane.xlu1 %1025 }
 0x148   : > { %vm1036_vm10 = vcmp.le.f32.partialorder %v1763_v60, 0.16 }
 0x180   : > { %v1414_v17 = vpop.f32.mrb[0].mxu0 }
 0x181   : > { %v668_v18 = vadd.f32 %v1414_v17, %v1354_v16  ;;  %v659_v19 = vpop.f32.mrb[1].mxu0 }
 0x182   : > { %v660_v20 = vadd.f32 %v1354_v16, %v659_v19  ;;  %v1415_v21 = vpop.f32.mrb[2].mxu0 }
 0x183   : > { %v671_v22 = vadd.f32 %v1415_v21, %v1354_v16  ;;  %v662_v23 = vpop.f32.mrb[3].mxu0  ;;  %v692_v28 = vmax.f32 %v668_v18, 0.0 }
 0x184   : > { %v663_v24 = vadd.f32 %v1354_v16, %v662_v23  ;;  %v690_v30 = vmax.f32 %v660_v20, 0.0 }
 0x185   : > { %v693_v29 = vmax.f32 %v671_v22, 0.0 }
 0x186   : > { %v691_v31 = vmax.f32 %v663_v24, 0.0 }
 0x187   : > { %v699_v32 = vpack.c.bf16 %v693_v29, %v692_v28 }
 0x188   : > { %v698_v33 = vpack.c.bf16 %v691_v31, %v690_v30  ;;  %v1418_v34 = vpop.f32.mrb[4].mxu0  ;;  %v1754_v30 = vpop.xlane.xlu0 %1022 }
 0x189   : > { %v684_v35 = vadd.f32 %v1418_v34, %v1354_v16  ;;  %v675_v36 = vpop.f32.mrb[5].mxu0  ;;  %vm1035_vm8 = vcmp.le.f32.partialorder %v1754_v30, 0.16 }
 0x18a   : > { %v676_v37 = vadd.f32 %v1354_v16, %v675_v36  ;;  %v1419_v38 = vpop.f32.mrb[6].mxu0  ;;  %843 = vmatmul.mubr.bf16.vlgmr.msra.gmra.mrb[0].mxu1 %v698_v33 }
 0x18b   : > { %v687_v39 = vadd.f32 %v1419_v38, %v1354_v16  ;;  %v678_v40 = vpop.f32.mrb[7].mxu0  ;;  %852 = vmatprep.mubr.bf16.mxu1 %v1509_v1  ;;  %v696_v43 = vmax.f32 %v684_v35, 0.0 }
 0x18c   : > { %v679_v41 = vadd.f32 %v1354_v16, %v678_v40  ;;  %v694_v4 = vmax.f32 %v676_v37, 0.0 }
 0x18d   : > { %v697_v44 = vmax.f32 %v687_v39, 0.0 }
 0x18e   : > { %v695_v45 = vmax.f32 %v679_v41, 0.0 }
 0x18f   : > { %v701_v46 = vpack.c.bf16 %v697_v44, %v696_v43 }
 0x190   : > { %v700_v47 = vpack.c.bf16 %v695_v45, %v694_v4 }
 0x192   : > { %853 = vmatmul.mubr.bf16.gmra.mrb[4].mxu1 %v699_v32 }
 0x193   : > { %862 = vmatprep.mubr.bf16.mxu1 %v1509_v1 }
 0x19a   : > { %863 = vmatmul.mubr.bf16.gmra.mrb[8].mxu1 %v700_v47 }
 0x19b   : > { %872 = vmatprep.mubr.bf16.mxu1 %v1509_v1 }
 0x1a2   : > { %873 = vmatmul.mubr.bf16.gmra.mrb[12].mxu1 %v701_v46 }
 0x25d   : > { %v844_v52 = vpop.f32.mrb[0].mxu1 }
 0x25e   : > { %v845_v53 = vadd.f32 %v844_v52, %v1737_v49  ;;  %v846_v54 = vpop.f32.mrb[1].mxu1 }
 0x25f   : > { %v847_v1 = vadd.f32 %v846_v54, %v1741_v50  ;;  %v848_v56 = vpop.f32.mrb[2].mxu1 }
 0x260   : > { %v883_v57 = vmax.f32 %v845_v53, 0.0  ;;  %v849_v58 = vadd.f32 %v848_v56, %v1737_v49  ;;  %v850_v42 = vpop.f32.mrb[3].mxu1 }
 0x261   : > { %v884_v26 = vmax.f32 %v847_v1, 0.0  ;;  %v851_v59 = vadd.f32 %v850_v42, %v1741_v50 }
 0x262   : > { %v885_v25 = vmax.f32 %v849_v58, 0.0  ;;  %v1054_v27 = vsel %vm1030_vm1, %v883_v57, -inf }
 0x263   : > { %v1055_v61 = vsel %vm1030_vm1, %v884_v26, -inf  ;;  %v1072_v62 = vrot.slane %v1054_v27, 4  ;;  %v886_v63 = vmax.f32 %v851_v59, 0.0 }
 0x264   : > { %v1078_v2 = vrot.slane %v1055_v61, 4  ;;  %v1056_v3 = vsel %vm1031_vm2, %v885_v25, -inf }
 0x265   : > { %v1073_v5 = vmax.f32 %v1054_v27, %v1072_v62  ;;  %v1057_v6 = vsel %vm1031_vm2, %v886_v63, -inf  ;;  %v1084_v7 = vrot.slane %v1056_v3, 4  ;;  %v854_v8 = vpop.f32.mrb[4].mxu1 }
 0x266   : > { %v1079_v9 = vmax.f32 %v1055_v61, %v1078_v2  ;;  %v1090_v10 = vrot.slane %v1057_v6, 4  ;;  %v855_v11 = vadd.f32 %v854_v8, %v1737_v49  ;;  %v856_v12 = vpop.f32.mrb[5].mxu1 }
 0x267   : > { %v1074_v14 = vrot.slane %v1073_v5, 2  ;;  %v1085_v15 = vmax.f32 %v1056_v3, %v1084_v7  ;;  %v857_v16 = vadd.f32 %v856_v12, %v1741_v50  ;;  %v858_v17 = vpop.f32.mrb[6].mxu1 }
 0x268   : > { %v1080_v18 = vrot.slane %v1079_v9, 2  ;;  %v1091_v19 = vmax.f32 %v1057_v6, %v1090_v10  ;;  %v887_v20 = vmax.f32 %v855_v11, 0.0  ;;  %v859_v21 = vadd.f32 %v858_v17, %v1737_v49  ;;  %v860_v22 = vpop.f32.mrb[7].mxu1  ;;  %v1769_v11 = vpop.xlane.xlu0 %1028 }
 0x269   : > { %v1075_v23 = vmax.f32 %v1073_v5, %v1074_v14  ;;  %v1086_v24 = vrot.slane %v1085_v15, 2  ;;  %v888_v28 = vmax.f32 %v857_v16, 0.0  ;;  %v861_v29 = vadd.f32 %v860_v22, %v1741_v50 }
 0x26a   : > { %v1081_v31 = vmax.f32 %v1079_v9, %v1080_v18  ;;  %v1092_v32 = vrot.slane %v1091_v19, 2  ;;  %v889_v33 = vmax.f32 %v859_v21, 0.0  ;;  %v1058_v34 = vsel %vm1032_vm3, %v887_v20, -inf }
 0x26b   : > { %v1076_v35 = vrot.slane %v1075_v23, 1  ;;  %v1087_v36 = vmax.f32 %v1085_v15, %v1086_v24  ;;  %v1059_v37 = vsel %vm1032_vm3, %v888_v28, -inf  ;;  %v1096_v38 = vrot.slane %v1058_v34, 4 }
 0x26c   : > { %v1082_v39 = vrot.slane %v1081_v31, 1  ;;  %v1093_v40 = vmax.f32 %v1091_v19, %v1092_v32  ;;  %v1102_v41 = vrot.slane %v1059_v37, 4  ;;  %v890_v43 = vmax.f32 %v861_v29, 0.0 }
 0x26d   : > { %v1077_v44 = vmax.f32 %v1075_v23, %v1076_v35  ;;  %v1088_v4 = vrot.slane %v1087_v36, 1  ;;  %v1097_v45 = vmax.f32 %v1058_v34, %v1096_v38  ;;  %v1060_v46 = vsel %vm1033_vm4, %v889_v33, -inf  ;;  %v864_v47 = vpop.f32.mrb[8].mxu1 }
 0x26e   : > { %v1083_v48 = vmax.f32 %v1081_v31, %v1082_v39  ;;  %v1094_v51 = vrot.slane %v1093_v40, 1  ;;  %v1103_v52 = vmax.f32 %v1059_v37, %v1102_v41  ;;  %v1061_v53 = vsel %vm1033_vm4, %v890_v43, -inf  ;;  %v866_v54 = vpop.f32.mrb[9].mxu1 }
 0x26f   : > { %v1089_v55 = vmax.f32 %v1087_v36, %v1088_v4  ;;  %v1098_v1 = vrot.slane %v1097_v45, 2  ;;  %v1108_v56 = vrot.slane %v1060_v46, 4  ;;  %v1114_v57 = vrot.slane %v1061_v53, 4  ;;  %v868_v58 = vpop.f32.mrb[10].mxu1 }
 0x270   : > { %v1095_v42 = vmax.f32 %v1093_v40, %v1094_v51  ;;  %v1104_v26 = vrot.slane %v1103_v52, 2  ;;  %v865_v59 = vadd.f32 %v864_v47, %v1737_v49  ;;  %v867_v25 = vadd.f32 %v866_v54, %v1741_v50  ;;  %v870_v27 = vpop.f32.mrb[11].mxu1 }
 0x271   : > { %v1185_v61 = vsel %vm1184_vm5, %v1089_v55, %v1077_v44  ;;  %v1099_v62 = vmax.f32 %v1097_v45, %v1098_v1  ;;  %v1109_v63 = vmax.f32 %v1060_v46, %v1108_v56  ;;  %v1115_v0 = vmax.f32 %v1061_v53, %v1114_v57 }
 0x272   : > { %v1198_v2 = vsel %vm1184_vm5, %v1095_v42, %v1083_v48  ;;  %v1105_v3 = vmax.f32 %v1103_v52, %v1104_v26  ;;  %v891_v5 = vmax.f32 %v865_v59, 0.0  ;;  %v892_v6 = vmax.f32 %v867_v25, 0.0 }
 0x273   : > { %v1100_v7 = vrot.slane %v1099_v62, 1  ;;  %v1110_v8 = vrot.slane %v1109_v63, 2  ;;  %v1116_v9 = vrot.slane %v1115_v0, 2  ;;  %v869_v10 = vadd.f32 %v868_v58, %v1737_v49 }
 0x274   : > { %v1106_v12 = vrot.slane %v1105_v3, 1  ;;  %v1062_v14 = vsel %vm1034_vm6, %v891_v5, -inf  ;;  %v1063_v15 = vsel %vm1034_vm6, %v892_v6, -inf  ;;  %v871_v16 = vadd.f32 %v870_v27, %v1741_v50 }
 0x275   : > { %v1101_v17 = vmax.f32 %v1099_v62, %v1100_v7  ;;  %v1111_v18 = vmax.f32 %v1109_v63, %v1110_v8  ;;  %v1117_v19 = vmax.f32 %v1115_v0, %v1116_v9  ;;  %v893_v20 = vmax.f32 %v869_v10, 0.0  ;;  %v874_v21 = vpop.f32.mrb[12].mxu1 }
 0x276   : > { %v1107_v22 = vmax.f32 %v1105_v3, %v1106_v12  ;;  %v1120_v23 = vrot.slane %v1062_v14, 4  ;;  %v1126_v24 = vrot.slane %v1063_v15, 4  ;;  %v894_v28 = vmax.f32 %v871_v16, 0.0  ;;  %v876_v29 = vpop.f32.mrb[13].mxu1 }
 0x277   : > { %vm1037_vm11 = vcmp.le.f32.partialorder %v1769_v11, 0.16  ;;  %v1187_v31 = vsel %vm1186_vm7, %v1101_v17, %v1185_v61  ;;  %v1112_v32 = vrot.slane %v1111_v18, 1  ;;  %v1118_v33 = vrot.slane %v1117_v19, 1  ;;  %v878_v34 = vpop.f32.mrb[14].mxu1 }
 0x278   : > { %v1064_v13 = vsel %vm1035_vm8, %v893_v20, -inf  ;;  %v1199_v35 = vsel %vm1186_vm7, %v1107_v22, %v1198_v2  ;;  %v1121_v36 = vmax.f32 %v1062_v14, %v1120_v23  ;;  %v1127_v37 = vmax.f32 %v1063_v15, %v1126_v24  ;;  %v880_v39 = vpop.f32.mrb[15].mxu1 }
 0x279   : > { %v1065_v38 = vsel %vm1035_vm8, %v894_v28, -inf  ;;  %v1113_v40 = vmax.f32 %v1111_v18, %v1112_v32  ;;  %v1119_v41 = vmax.f32 %v1117_v19, %v1118_v33  ;;  %v1132_v43 = vrot.slane %v1064_v13, 4 }
 0x27a   : > { %v1138_v44 = vrot.slane %v1065_v38, 4  ;;  %v1122_v4 = vrot.slane %v1121_v36, 2  ;;  %v1128_v45 = vrot.slane %v1127_v37, 2  ;;  %v875_v46 = vadd.f32 %v874_v21, %v1737_v49 }
 0x27b   : > { %v877_v47 = vadd.f32 %v876_v29, %v1741_v50  ;;  %v1189_v48 = vsel %vm1188_vm9, %v1113_v40, %v1187_v31  ;;  %v1200_v51 = vsel %vm1188_vm9, %v1119_v41, %v1199_v35  ;;  %v1133_v52 = vmax.f32 %v1064_v13, %v1132_v43 }
 0x27c   : > { %v1139_v53 = vmax.f32 %v1065_v38, %v1138_v44  ;;  %v1123_v30 = vmax.f32 %v1121_v36, %v1122_v4  ;;  %v1129_v54 = vmax.f32 %v1127_v37, %v1128_v45  ;;  %v895_v55 = vmax.f32 %v875_v46, 0.0 }
 0x27d   : > { %v896_v1 = vmax.f32 %v877_v47, 0.0  ;;  %v1134_v56 = vrot.slane %v1133_v52, 2  ;;  %v879_v58 = vadd.f32 %v878_v34, %v1737_v49  ;;  %v881_v42 = vadd.f32 %v880_v39, %v1741_v50 }
 0x27e   : > { %v1140_v57 = vrot.slane %v1139_v53, 2  ;;  %v1124_v26 = vrot.slane %v1123_v30, 1  ;;  %v1130_v59 = vrot.slane %v1129_v54, 1  ;;  %v1066_v25 = vsel %vm1036_vm10, %v895_v55, -inf }
 0x27f   : > { %v1067_v27 = vsel %vm1036_vm10, %v896_v1, -inf  ;;  %v1135_v61 = vmax.f32 %v1133_v52, %v1134_v56  ;;  %v897_v63 = vmax.f32 %v879_v58, 0.0  ;;  %v1144_v0 = vrot.slane %v1066_v25, 4 }
 0x280   : > { %v1141_v62 = vmax.f32 %v1139_v53, %v1140_v57  ;;  %v1125_v2 = vmax.f32 %v1123_v30, %v1124_v26  ;;  %v1131_v3 = vmax.f32 %v1129_v54, %v1130_v59  ;;  %v1150_v5 = vrot.slane %v1067_v27, 4 }
 0x281   : > { %v898_v6 = vmax.f32 %v881_v42, 0.0  ;;  %v1136_v7 = vrot.slane %v1135_v61, 1  ;;  %v1145_v8 = vmax.f32 %v1066_v25, %v1144_v0  ;;  %v1068_v50 = vsel %vm1037_vm11, %v897_v63, -inf }
 0x282   : > { %v1142_v49 = vrot.slane %v1141_v62, 1  ;;  %v1191_v9 = vsel %vm1190_vm12, %v1125_v2, %v1189_v48  ;;  %v1201_v10 = vsel %vm1190_vm12, %v1131_v3, %v1200_v51  ;;  %v1151_v60 = vmax.f32 %v1067_v27, %v1150_v5 }
 0x283   : > { %v1069_v12 = vsel %vm1037_vm11, %v898_v6, -inf  ;;  %v1137_v14 = vmax.f32 %v1135_v61, %v1136_v7  ;;  %v1146_v16 = vrot.slane %v1145_v8, 2  ;;  %v1156_v17 = vrot.slane %v1068_v50, 4 }
 0x284   : > { %v1143_v15 = vmax.f32 %v1141_v62, %v1142_v49  ;;  %v1152_v18 = vrot.slane %v1151_v60, 2  ;;  %v1162_v19 = vrot.slane %v1069_v12, 4 }
 0x285   : > { %v1193_v20 = vsel %vm1192_vm13, %v1137_v14, %v1191_v9  ;;  %v1147_v22 = vmax.f32 %v1145_v8, %v1146_v16  ;;  %v1157_v23 = vmax.f32 %v1068_v50, %v1156_v17 }
 0x286   : > { %v1202_v21 = vsel %vm1192_vm13, %v1143_v15, %v1201_v10  ;;  %v1153_v24 = vmax.f32 %v1151_v60, %v1152_v18  ;;  %v1163_v28 = vmax.f32 %v1069_v12, %v1162_v19 }
 0x287   : > { %v1148_v29 = vrot.slane %v1147_v22, 1  ;;  %v1158_v31 = vrot.slane %v1157_v23, 2 }
 0x288   : > { %v1154_v11 = vrot.slane %v1153_v24, 1  ;;  %v1164_v32 = vrot.slane %v1163_v28, 2 }
 0x289   : > { %v1149_v33 = vmax.f32 %v1147_v22, %v1148_v29  ;;  %v1159_v13 = vmax.f32 %v1157_v23, %v1158_v31 }
 0x28a   : > { %v1155_v34 = vmax.f32 %v1153_v24, %v1154_v11  ;;  %v1165_v35 = vmax.f32 %v1163_v28, %v1164_v32 }
 0x28b   : > { %v1195_v36 = vsel %vm1194_vm14, %v1149_v33, %v1193_v20  ;;  %v1160_v37 = vrot.slane %v1159_v13, 1 }
 0x28c   : > { %v1203_v38 = vsel %vm1194_vm14, %v1155_v34, %v1202_v21  ;;  %v1166_v39 = vrot.slane %v1165_v35, 1 }
 0x28d   : > { %v1161_v40 = vmax.f32 %v1159_v13, %v1160_v37 }
 0x28e   : > { %v1167_v41 = vmax.f32 %v1165_v35, %v1166_v39 }
 0x28f   : > { %v1197_v43 = vsel %vm1196_vm15, %v1161_v40, %v1195_v36 }
 0x290   : > { %v1204_v44 = vsel %vm1196_vm15, %v1167_v41, %v1203_v38 }
 0x291   : > { %v1383_v4 = vpack.c.bf16 %v1204_v44, %v1197_v43 }
 0x293   : > { %1224 = vst [vmem:[%s398_s24] sm:$0xff] %v1383_v4 }
 0x294 PF: > { %s18_s29 = sadd.s32 1, %s1507_s29   ;;  %s1823_s27 = smov %s1503_s28 }
 0x295   : > { %p15_p5 = scmp.ge.s32.totalorder %s18_s29, 4   ;;  %s1824_s28 = smov %s1826_s30 }
 0x297   :  { %17 = sbr.rel (!%p15_p5) target bundleno = 2 (0x2), region = 96 }

// kernel: pointnet_forward.10
= control target key start
LH: loop header
LB: loop body
LE: loop exit
PB: predicated region body
PF: predicated region fallthrough
CT: control target
= control target key end

     0   :  { %s2082_s27 = smov 0   ;;  %s2084_s28 = smov 0   ;;  %s2479_s0 = inlined_call_operand.vmem [shape: f32[2,8,3], index: 0, kind: input, shape index: {}]   ;;  %s2480_s1 = inlined_call_operand.vmem [shape: f32[2,32,3], index: 1, kind: input, shape index: {}]   ;;  %s2481_s2 = inlined_call_operand.vmem [shape: bf16[2,32,128], index: 2, kind: input, shape index: {}]   ;;  %s2482_s3 = inlined_call_operand.vmem [shape: f32[3,128], index: 3, kind: input, shape index: {}]   ;;  %s2483_s4 = inlined_call_operand.vmem [shape: bf16[128,128], index: 4, kind: input, shape index: {}]   ;;  %s2484_s5 = inlined_call_operand.vmem [shape: f32[1,128], index: 5, kind: input, shape index: {}]   ;;  %s2485_s6 = inlined_call_operand.vmem [shape: bf16[128,128], index: 6, kind: input, shape index: {}]   ;;  %s2486_s7 = inlined_call_operand.vmem [shape: f32[1,128], index: 7, kind: input, shape index: {}]   ;;  %s2487_s8 = inlined_call_operand.vmem [shape: bf16[2,8,128], index: 8, kind: output, shape index: {}]  }
   0x1   :  { %s2086_s29 = smov 0  }
   0x2 LB: > { %s37_s30 = sadd.s32 1, %s2027_s28  ;;  %p1778_p0 = scmp.ge.s32.totalorder %s2031_s29, 1  ;;  %s2031_s29 = sphi %s2086_s29, %s18_s29   ;;  %s2027_s28 = sphi %s2084_s28, %s2489_s28   ;;  %s2023_s27 = sphi %s2082_s27, %s2488_s27  }
   0x3   : > { %p39_p1 = scmp.ge.s32.totalorder %s37_s30, 2  ;;  %p321_p2 = scmp.lt.s32.totalorder %s2031_s29, 3 }
   0x5   : > { %s2491_s30 = smov (%p39_p1, %s37_s30), 0  ;;  %p322_p3 = pnand %p1778_p0, %p321_p2 }
   0x6   : > { %p377_p4 = scmp.lt.s32.totalorder (!%p322_p3), %s2023_s27, 1  ;;  %v1993_v0 = vld [vmem:[%s2483_s4] sm:$0xff] (!%p322_p3)   ;;  %v2033_v1 = vmov (!%p322_p3), 0   ;;  %v1994_v2 = vld [vmem:[%s2483_s4 + $0x8] sm:$0xff] (!%p322_p3)   ;;  %v2034_v3 = vmov (!%p322_p3), 2   ;;  %v1995_v4 = vld [vmem:[%s2483_s4 + $0x10] sm:$0xff] (!%p322_p3)   ;;  %v424_v18 = vlaneseq (!%p322_p3) }
   0x7   : > { %325 = sbr.rel (%p322_p3) target bundleno = 690 (0x2b2), region = 52  ;;  %1988 = vset.pattern.permute.xlu0 (!%p322_p3), %v2033_v1  ;;  %1990 = vset.pattern.permute.xlu1 (!%p322_p3), %v2034_v3  ;;  %v1996_v6 = vld [vmem:[%s2483_s4 + $0x18] sm:$0xff] (!%p322_p3)   ;;  %v2035_v7 = vmov (!%p322_p3), 1   ;;  %v1997_v8 = vld [vmem:[%s2483_s4 + $0x20] sm:$0xff] (!%p322_p3)   ;;  %v1998_v9 = vld [vmem:[%s2483_s4 + $0x28] sm:$0xff] (!%p322_p3)   ;;  %vm1332_vm0 = vcmask (!%p322_p3), 23552  }
   0x8   : > { %1864 = vmatprep.subr.bf16.mxu0 (!%p322_p3), %v1993_v0  ;;  %v1999_v10 = vld [vmem:[%s2483_s4 + $0x30] sm:$0xff] (!%p322_p3)   ;;  %v2000_v11 = vld [vmem:[%s2483_s4 + $0x38] sm:$0xff] (!%p322_p3)   ;;  %v2001_v12 = vld [vmem:[%s2485_s6] sm:$0xff] (!%p322_p3)   ;;  %v425_v19 = vshrl.u32 (!%p322_p3), %v424_v18, 7  ;;  %v2036_v24 = vmov (!%p322_p3), 1966171168  }
   0x9   : > { %1865 = vmatpush3.bf16.msra.mxu0 (!%p322_p3), %v1993_v0  ;;  %v2002_v13 = vld [vmem:[%s2485_s6 + $0x8] sm:$0xff] (!%p322_p3)   ;;  %1912 = vmatprep.subr.bf16.mxu1 (!%p322_p3), %v2001_v12  ;;  %v2003_v14 = vld [vmem:[%s2485_s6 + $0x10] sm:$0xff] (!%p322_p3)   ;;  %v2004_v15 = vld [vmem:[%s2485_s6 + $0x18] sm:$0xff] (!%p322_p3)   ;;  %v467_v25 = vunpack.c.l.s4 (!%p322_p3), %v2036_v24  ;;  %vm1638_vm15 = vcmask (!%p322_p3), 1041409  }
   0xa   : > { %1866 = vmatprep.subr.bf16.mxu0 (!%p322_p3), %v1994_v2  ;;  %1913 = vmatpush3.bf16.msra.mxu1 (!%p322_p3), %v2001_v12  ;;  %v2005_v16 = vld [vmem:[%s2485_s6 + $0x20] sm:$0xff] (!%p322_p3)   ;;  %v2006_v17 = vld [vmem:[%s2485_s6 + $0x28] sm:$0xff] (!%p322_p3)   ;;  %v2153_v20 = vsub.s32 (!%p322_p3), 0, %v425_v19  ;;  %v435_v21 = vsub.s32 (!%p322_p3), 1, %v425_v19  ;;  %v445_v22 = vsub.s32 (!%p322_p3), 2, %v425_v19 }
   0xb   : > { %1914 = vmatprep.subr.bf16.mxu1 (!%p322_p3), %v2002_v13  ;;  %v418_v23 = vld [vmem:[%s2482_s3] sm:$0x7] (!%p322_p3)  ;;  %v468_v31 = vunpack.c.0.s8 (!%p322_p3), %v467_v25 }
   0xc   : > { %v427_v27 = vrot.slane (!%p322_p3), %v418_v23, %v2153_v20  ;;  %v436_v28 = vrot.slane (!%p322_p3), %v418_v23, %v435_v21  ;;  %v446_v29 = vrot.slane (!%p322_p3), %v418_v23, %v445_v22 }
   0xd   : > { %1867 = vmatpush3.bf16.msra.mxu0 (!%p322_p3), %v1994_v2  ;;  %v2160_v36 = vsub.s32 (!%p322_p3), %v468_v31, %v425_v19 }
   0xe   : > { %s2493_s27 = smov (!%p377_p4, %s2023_s27), 1  ;;  %1868 = vmatprep.subr.bf16.mxu0 %v1995_v4  ;;  %1915 = vmatpush3.bf16.msra.mxu1 %v2002_v13 }
   0xf   : > { %s1779_s13 = sshll.u32 %s2493_s27, 3  ;;  %1916 = vmatprep.subr.bf16.mxu1 %v2003_v14  ;;  %s1806_s25 = sshll.u32 %s2493_s27, 4 }
  0x10   : > { %s383_s16 = scalar_lea.vmem %s2479_s0, %s1779_s13  ;;  %s402_s10 = scalar_lea.vmem %s2481_s2, %s1806_s25 }
  0x11   : > { %v2115_v5 = vld [vmem:[%s383_s16] sm:$0xff]  ;;  %1869 = vmatpush3.bf16.msra.mxu0 %v1995_v4  ;;  %v1815_v41 = vld [vmem:[%s402_s10 + $0x8] sm:$0xff]   ;;  %s1805_s15 = sshll.u32 %s2493_s27, 5  ;;  %s1784_s23 = sshll.u32 %s2493_s27, 2 }
  0x12   : > { %421 = vperm.xlu0 %1988, %v2115_v5   ;;  %440 = vperm.xlu1 %1990, %v2115_v5   ;;  %v1808_v39 = vld [vmem:[%s402_s10] sm:$0xff]   ;;  %v2172_v47 = vunpack.c.l.bf16 %v1815_v41  ;;  %v2174_v48 = vunpack.c.h.bf16 %v1815_v41  ;;  %s2233_s18 = scalar_lea.vmem %s2480_s1, %s1805_s15  ;;  %s410_s26 = scalar_lea.vmem %s2487_s8, %s1784_s23 }
  0x13   : > { %1870 = vmatprep.subr.bf16.mxu0 %v1996_v6  ;;  %1917 = vmatpush3.bf16.msra.mxu1 %v2003_v14  ;;  %v2167_v44 = vunpack.c.l.bf16 %v1808_v39  ;;  %v2169_v45 = vunpack.c.h.bf16 %v1808_v39 }
  0x14   : > { %1918 = vmatprep.subr.bf16.mxu1 %v2004_v15 }
  0x15   : > { %1871 = vmatpush3.bf16.msra.mxu0 %v1996_v6 }
  0x16   : > { %1989 = vset.pattern.permute.xlu0 %v2035_v7  ;;  %1872 = vmatprep.subr.bf16.mxu0 %v1997_v8 }
  0x17   : > { %430 = vperm.xlu0 %1989, %v2115_v5   ;;  %1919 = vmatpush3.bf16.msra.mxu1 %v2004_v15 }
  0x18   : > { %1920 = vmatprep.subr.bf16.mxu1 %v2005_v16 }
  0x19   : > { %1873 = vmatpush3.bf16.msra.mxu0 %v1997_v8 }
  0x1a   : > { %1874 = vmatprep.subr.bf16.mxu0 %v1998_v9 }
  0x1b   : > { %1991 = vset.pattern.permute.xlu0 %v2034_v3  ;;  %1921 = vmatpush3.bf16.msra.mxu1 %v2005_v16 }
  0x1c   : > { %1922 = vmatprep.subr.bf16.mxu1 %v2006_v17 }
  0x1d   : > { %1875 = vmatpush3.bf16.msra.mxu0 %v1998_v9 }
  0x1e   : > { %1876 = vmatprep.subr.bf16.mxu0 %v1999_v10 }
  0x1f   : > { %1923 = vmatpush3.bf16.msra.mxu1 %v2006_v17 }
  0x21   : > { %1877 = vmatpush3.bf16.msra.mxu0 %v1999_v10 }
  0x22   : > { %1878 = vmatprep.subr.bf16.mxu0 %v2000_v11 }
  0x25   : > { %1879 = vmatpush3.bf16.msra.mxu0 %v2000_v11 }
  0x91   : > { %v422_v26 = vpop.permute.xlu0 %421  ;;  %v441_v30 = vpop.permute.xlu1 %440 }
  0x92   : > { %v428_v33 = vmul.f32 %v427_v27, %v422_v26  ;;  %v447_v35 = vmul.f32 %v446_v29, %v441_v30 }
  0x96   : > { %v431_v32 = vpop.permute.xlu0 %430 }
  0x97   : > { %v437_v34 = vmul.f32 %v436_v28, %v431_v32 }
  0x99   : > { %v438_v37 = vadd.f32 %v437_v34, %v428_v33 }
  0x9b   : > { %v448_v38 = vadd.f32 %v447_v35, %v438_v37 }
  0x9d   : > { %v472_v40 = vrot.slane %v448_v38, %v2160_v36  ;;  %v465_v2 = vcombine.high %v448_v38, %v448_v38 }
  0x9f   : > { %v480_v42 = vcombine.high %v472_v40, %v472_v40  ;;  %v488_v43 = vrot.slane %v472_v40, %v2160_v36  ;;  %v479_v13 = vrot.slane %v465_v2, %v2160_v36 }
  0xa1   : > { %v502_v46 = vrot.slane %v480_v42, %v2160_v36  ;;  %v517_v49 = vrot.slane %v488_v43, %v2153_v20  ;;  %v510_v50 = vcombine.high %v488_v43, %v488_v43  ;;  %v495_v21 = vrot.slane %v479_v13, %v2160_v36 }
  0xa2   : > { %v481_v27 = vcombine.high %v479_v13, %v479_v13 }
  0xa3   : > { %v521_v51 = vrot.slane %v502_v46, %v2153_v20  ;;  %v554_v52 = vsub.f32 %v2167_v44, %v517_v49  ;;  %v555_v53 = vsub.f32 %v2169_v45, %v517_v49  ;;  %v556_v56 = vsub.f32 %v2172_v47, %v517_v49 }
  0xa4   : > { %v557_v57 = vsub.f32 %v2174_v48, %v517_v49  ;;  %v525_v58 = vrot.slane %v510_v50, %v2153_v20  ;;  %v512_v7 = vcombine.high %v502_v46, %v502_v46  ;;  %v533_v28 = vrot.slane %v495_v21, %v2153_v20 }
  0xa5   : > { %v586_v54 = vmax.f32 %v554_v52, 0.0  ;;  %v587_v55 = vmax.f32 %v555_v53, 0.0  ;;  %v558_v59 = vsub.f32 %v2167_v44, %v521_v51  ;;  %v559_v60 = vsub.f32 %v2169_v45, %v521_v51 }
  0xa6   : > { %v588_v62 = vmax.f32 %v556_v56, 0.0  ;;  %v589_v63 = vmax.f32 %v557_v57, 0.0  ;;  %v560_v4 = vsub.f32 %v2172_v47, %v521_v51  ;;  %v561_v6 = vsub.f32 %v2174_v48, %v521_v51 }
  0xa7   : > { %v618_v61 = vpack.c.bf16 %v587_v55, %v586_v54  ;;  %v590_v0 = vmax.f32 %v558_v59, 0.0  ;;  %v591_v1 = vmax.f32 %v559_v60, 0.0  ;;  %v562_v9 = vsub.f32 %v2167_v44, %v525_v58 }
  0xa8   : > { %v619_v3 = vpack.c.bf16 %v589_v63, %v588_v62  ;;  %v563_v10 = vsub.f32 %v2169_v45, %v525_v58  ;;  %v592_v11 = vmax.f32 %v560_v4, 0.0  ;;  %v593_v12 = vmax.f32 %v561_v6, 0.0 }
  0xa9   : > { %1880 = vmatprep.mubr.bf16.mxu0 %v618_v61  ;;  %v620_v8 = vpack.c.bf16 %v591_v1, %v590_v0  ;;  %v529_v14 = vrot.slane %v512_v7, %v2153_v20  ;;  %v594_v15 = vmax.f32 %v562_v9, 0.0  ;;  %v564_v18 = vsub.f32 %v2172_v47, %v525_v58 }
  0xaa   : > { %1881 = vmatmul.mubr.bf16.vlgmr.msra.gmra.mrb[0].mxu0 %v619_v3  ;;  %v595_v16 = vmax.f32 %v563_v10, 0.0  ;;  %v621_v17 = vpack.c.bf16 %v593_v12, %v592_v11  ;;  %v565_v19 = vsub.f32 %v2174_v48, %v525_v58  ;;  %v509_v34 = vrot.slane %v481_v27, %v2160_v36 }
  0xab   : > { %1884 = vmatprep.mubr.bf16.mxu0 %v620_v8  ;;  %v566_v23 = vsub.f32 %v2167_v44, %v529_v14  ;;  %v567_v24 = vsub.f32 %v2169_v45, %v529_v14  ;;  %v596_v25 = vmax.f32 %v564_v18, 0.0  ;;  %v568_v32 = vsub.f32 %v2172_v47, %v529_v14 }
  0xac   : > { %v622_v22 = vpack.c.bf16 %v595_v16, %v594_v15  ;;  %v597_v26 = vmax.f32 %v565_v19, 0.0  ;;  %v569_v33 = vsub.f32 %v2174_v48, %v529_v14  ;;  %v570_v37 = vsub.f32 %v2167_v44, %v533_v28 }
  0xad   : > { %v598_v29 = vmax.f32 %v566_v23, 0.0  ;;  %v599_v30 = vmax.f32 %v567_v24, 0.0  ;;  %v571_v38 = vsub.f32 %v2169_v45, %v533_v28  ;;  %v600_v39 = vmax.f32 %v568_v32, 0.0 }
  0xae   : > { %v623_v31 = vpack.c.bf16 %v597_v26, %v596_v25  ;;  %v601_v40 = vmax.f32 %v569_v33, 0.0  ;;  %v537_v41 = vrot.slane %v509_v34, %v2153_v20  ;;  %v602_v42 = vmax.f32 %v570_v37, 0.0  ;;  %v2008_v26 = vld [vmem:[%s2485_s6 + $0x38] sm:$0xff]  }
  0xaf   : > { %v624_v35 = vpack.c.bf16 %v599_v30, %v598_v29  ;;  %v603_v43 = vmax.f32 %v571_v38, 0.0  ;;  %v572_v49 = vsub.f32 %v2172_v47, %v533_v28  ;;  %v573_v50 = vsub.f32 %v2174_v48, %v533_v28 }
  0xb0   : > { %v625_v46 = vpack.c.bf16 %v601_v40, %v600_v39  ;;  %v511_v51 = vcombine.high %v495_v21, %v495_v21  ;;  %v574_v53 = vsub.f32 %v2167_v44, %v537_v41  ;;  %v575_v54 = vsub.f32 %v2169_v45, %v537_v41 }
  0xb1   : > { %v626_v52 = vpack.c.bf16 %v603_v43, %v602_v42  ;;  %v604_v55 = vmax.f32 %v572_v49, 0.0  ;;  %v605_v56 = vmax.f32 %v573_v50, 0.0  ;;  %v576_v61 = vsub.f32 %v2172_v47, %v537_v41  ;;  %v2258_v49 = vld [vmem:[%s2233_s18 + $0x10] sm:$0xff] }
  0xb2   : > { %1885 = vmatmul.mubr.bf16.gmra.mrb[4].mxu0 %v621_v17  ;;  %v541_v57 = vrot.slane %v511_v51, %v2153_v20  ;;  %v606_v58 = vmax.f32 %v574_v53, 0.0  ;;  %v607_v59 = vmax.f32 %v575_v54, 0.0  ;;  %v577_v62 = vsub.f32 %v2174_v48, %v537_v41 }
  0xb3   : > { %1888 = vmatprep.mubr.bf16.mxu0 %v622_v22  ;;  %v627_v60 = vpack.c.bf16 %v605_v56, %v604_v55  ;;  %v513_v63 = vcombine.high %v509_v34, %v509_v34  ;;  %v608_v3 = vmax.f32 %v576_v61, 0.0  ;;  %v1179_v32 = vcombine.high %v2115_v5, %v2115_v5  ;;  %v2245_v34 = vld [vmem:[%s2233_s18 + $0x8] sm:$0xff] }
  0xb4   : > { %v628_v0 = vpack.c.bf16 %v607_v59, %v606_v58  ;;  %v578_v1 = vsub.f32 %v2167_v44, %v541_v57  ;;  %v579_v2 = vsub.f32 %v2169_v45, %v541_v57  ;;  %v609_v4 = vmax.f32 %v577_v62, 0.0 }
  0xb5   : > { %v545_v8 = vrot.slane %v513_v63, %v2153_v20  ;;  %v580_v10 = vsub.f32 %v2172_v47, %v541_v57  ;;  %v581_v11 = vsub.f32 %v2174_v48, %v541_v57  ;;  %v1193_v40 = vrot.slane %v1179_v32, %v2160_v36 }
  0xb6   : > { %v610_v6 = vmax.f32 %v578_v1, 0.0  ;;  %v611_v7 = vmax.f32 %v579_v2, 0.0  ;;  %v629_v9 = vpack.c.bf16 %v609_v4, %v608_v3 }
  0xb7   : > { %v582_v13 = vsub.f32 %v2167_v44, %v545_v8  ;;  %v583_v14 = vsub.f32 %v2169_v45, %v545_v8  ;;  %v612_v15 = vmax.f32 %v580_v10, 0.0  ;;  %v613_v16 = vmax.f32 %v581_v11, 0.0  ;;  %v2007_v45 = vld [vmem:[%s2485_s6 + $0x30] sm:$0xff]  }
  0xb8   : > { %v630_v12 = vpack.c.bf16 %v611_v7, %v610_v6  ;;  %v584_v21 = vsub.f32 %v2172_v47, %v545_v8  ;;  %v585_v22 = vsub.f32 %v2174_v48, %v545_v8  ;;  %1924 = vmatprep.subr.bf16.mxu1 %v2007_v45  ;;  %v1186_v47 = vrot.slane %v2115_v5, %v2160_v36 }
  0xb9   : > { %v614_v17 = vmax.f32 %v582_v13, 0.0  ;;  %v615_v18 = vmax.f32 %v583_v14, 0.0  ;;  %v631_v19 = vpack.c.bf16 %v613_v16, %v612_v15  ;;  %1925 = vmatpush3.bf16.msra.mxu1 %v2007_v45  ;;  %v1209_v55 = vrot.slane %v1193_v40, %v2160_v36  ;;  %v2291_v14 = vld [vmem:[%s2233_s18 + $0x18] sm:$0xff] }
  0xba   : > { %1889 = vmatmul.mubr.bf16.gmra.mrb[8].mxu0 %v623_v31  ;;  %v616_v24 = vmax.f32 %v584_v21, 0.0  ;;  %v617_v25 = vmax.f32 %v585_v22, 0.0  ;;  %1926 = vmatprep.subr.bf16.mxu1 %v2008_v26  ;;  %v1194_v48 = vcombine.high %v1186_v47, %v1186_v47  ;;  %v1202_v27 = vrot.slane %v1186_v47, %v2160_v36 }
  0xbb   : > { %1892 = vmatprep.mubr.bf16.mxu0 %v624_v35  ;;  %v632_v23 = vpack.c.bf16 %v615_v18, %v614_v17  ;;  %v2248_v35 = vld [vmem:[%s2233_s18] sm:$0xff]  ;;  %v2276_v63 = vrot.slane %v1209_v55, %v2153_v20  ;;  %v1195_v7 = vcombine.high %v1193_v40, %v1193_v40  ;;  %v1225_v47 = vcombine.high %v1209_v55, %v1209_v55 }
  0xbc   : > { %v633_v44 = vpack.c.bf16 %v617_v25, %v616_v24  ;;  %v1216_v28 = vrot.slane %v1194_v48, %v2160_v36  ;;  %v1224_v29 = vcombine.high %v1202_v27, %v1202_v27  ;;  %v1231_v30 = vrot.slane %v1202_v27, %v2153_v20 }
  0xbd   : > { %1927 = vmatpush3.bf16.msra.mxu1 %v2008_v26  ;;  %v1223_v15 = vrot.slane %v1195_v7, %v2160_v36  ;;  %v1285_v22 = vsub.f32 %v2245_v34, %v2276_v63 }
  0xbe   : > { %v2237_v31 = vrot.slane %v1216_v28, %v2153_v20  ;;  %v2242_v33 = vrot.slane %v1224_v29, %v2153_v20  ;;  %v1269_v37 = vsub.f32 %v2245_v34, %v1231_v30  ;;  %v1268_v38 = vsub.f32 %v2248_v35, %v1231_v30 }
  0xbf   : > { %v1226_v41 = vcombine.high %v1216_v28, %v1216_v28  ;;  %v1270_v58 = vsub.f32 %v2258_v49, %v1231_v30  ;;  %v1271_v17 = vsub.f32 %v2291_v14, %v1231_v30  ;;  %v1251_v45 = vrot.slane %v1223_v15, %v2153_v20 }
  0xc0   : > { %v1273_v39 = vsub.f32 %v2245_v34, %v2237_v31  ;;  %v1301_v42 = vmul.f32 %v1269_v37, %v1269_v37  ;;  %v1300_v5 = vmul.f32 %v1268_v38, %v1268_v38  ;;  %v1277_v50 = vsub.f32 %v2245_v34, %v2242_v33 }
  0xc1   : > { %v1276_v51 = vsub.f32 %v2248_v35, %v2242_v33  ;;  %v1274_v57 = vsub.f32 %v2258_v49, %v2237_v31  ;;  %v2273_v62 = vrot.slane %v1226_v41, %v2153_v20  ;;  %v1302_v1 = vmul.f32 %v1270_v58, %v1270_v58 }
  0xc2   : > { %1893 = vmatmul.mubr.bf16.gmra.mrb[12].mxu0 %v625_v46  ;;  %v1305_v43 = vmul.f32 %v1273_v39, %v1273_v39  ;;  %v1272_v46 = vsub.f32 %v2248_v35, %v2237_v31  ;;  %v1333_v53 = vsel %vm1332_vm0, %v1300_v5, 0.0  ;;  %v1278_v13 = vsub.f32 %v2258_v49, %v2242_v33 }
  0xc3   : > { %1896 = vmatprep.mubr.bf16.mxu0 %v626_v52  ;;  %v1336_v52 = vsel %vm1332_vm0, %v1301_v42, 0.0  ;;  %1334 = vadd.xlane.f32.xlu1 %v1333_v53  ;;  %v1308_v61 = vmul.f32 %v1276_v51, %v1276_v51  ;;  %v1281_v4 = vsub.f32 %v2245_v34, %v2273_v62  ;;  %v1280_v6 = vsub.f32 %v2248_v35, %v2273_v62 }
  0xc4   : > { %v1304_v54 = vmul.f32 %v1272_v46, %v1272_v46  ;;  %1337 = vadd.xlane.f32.xlu0 %v1336_v52  ;;  %v1348_v56 = vsel %vm1332_vm0, %v1305_v43, 0.0  ;;  %v1339_v10 = vsel %vm1332_vm0, %v1302_v1, 0.0  ;;  %v1310_v21 = vmul.f32 %v1278_v13, %v1278_v13 }
  0xc5   : > { %v1357_v3 = vsel %vm1332_vm0, %v1308_v61, 0.0  ;;  %v1313_v11 = vmul.f32 %v1281_v4, %v1281_v4  ;;  %v1303_v24 = vmul.f32 %v1271_v17, %v1271_v17  ;;  %v1275_v36 = vsub.f32 %v2291_v14, %v2237_v31 }
  0xc6   : > { %v1345_v59 = vsel %vm1332_vm0, %v1304_v54, 0.0  ;;  %v1363_v25 = vsel %vm1332_vm0, %v1310_v21, 0.0  ;;  %v1282_v26 = vsub.f32 %v2258_v49, %v2273_v62  ;;  %v1288_v29 = vsub.f32 %v2248_v35, %v1251_v45 }
  0xc7   : > { %1346 = vadd.xlane.f32.xlu1 %v1345_v59  ;;  %v1372_v18 = vsel %vm1332_vm0, %v1313_v11, 0.0  ;;  %v1342_v48 = vsel %vm1332_vm0, %v1303_v24, 0.0  ;;  %v1307_v27 = vmul.f32 %v1275_v36, %v1275_v36  ;;  %v1289_v31 = vsub.f32 %v2245_v34, %v1251_v45 }
  0xc8   : > { %1349 = vadd.xlane.f32.xlu0 %v1348_v56  ;;  %v1314_v30 = vmul.f32 %v1282_v26, %v1282_v26  ;;  %v1279_v37 = vsub.f32 %v2291_v14, %v2242_v33  ;;  %v1255_v38 = vrot.slane %v1225_v47, %v2153_v20  ;;  %v1320_v39 = vmul.f32 %v1288_v29, %v1288_v29 }
  0xc9   : > { %v1354_v32 = vsel %vm1332_vm0, %v1307_v27, 0.0  ;;  %v1321_v41 = vmul.f32 %v1289_v31, %v1289_v31  ;;  %v1286_v42 = vsub.f32 %v2258_v49, %v2276_v63  ;;  %v1227_v5 = vcombine.high %v1223_v15, %v1223_v15 }
  0xca   : > { %1897 = vmatmul.mubr.bf16.gmra.mrb[16].mxu0 %v627_v60  ;;  %v1309_v60 = vmul.f32 %v1277_v50, %v1277_v50  ;;  %v1375_v40 = vsel %vm1332_vm0, %v1314_v30, 0.0  ;;  %v1311_v43 = vmul.f32 %v1279_v37, %v1279_v37  ;;  %v1292_v46 = vsub.f32 %v2248_v35, %v1255_v38 }
  0xcb   : > { %1900 = vmatprep.mubr.bf16.mxu0 %v628_v0  ;;  %v1306_v0 = vmul.f32 %v1274_v57, %v1274_v57  ;;  %1358 = vadd.xlane.f32.xlu1 %v1357_v3  ;;  %v1393_v50 = vsel %vm1332_vm0, %v1320_v39, 0.0  ;;  %v1396_v51 = vsel %vm1332_vm0, %v1321_v41, 0.0  ;;  %v1318_v33 = vmul.f32 %v1286_v42, %v1286_v42 }
  0xcc   : > { %v1360_v2 = vsel %vm1332_vm0, %v1309_v60, 0.0  ;;  %v1293_v52 = vsub.f32 %v2245_v34, %v1255_v38  ;;  %v1366_v53 = vsel %vm1332_vm0, %v1311_v43, 0.0  ;;  %v1283_v54 = vsub.f32 %v2291_v14, %v2273_v62 }
  0xcd   : > { %1361 = vadd.xlane.f32.xlu0 %v1360_v2  ;;  %v1351_v8 = vsel %vm1332_vm0, %v1306_v0, 0.0  ;;  %v1259_v55 = vrot.slane %v1227_v5, %v2153_v20  ;;  %v1324_v56 = vmul.f32 %v1292_v46, %v1292_v46  ;;  %v1387_v57 = vsel %vm1332_vm0, %v1318_v33, 0.0 }
  0xce   : > { %v1325_v58 = vmul.f32 %v1293_v52, %v1293_v52  ;;  %v1290_v59 = vsub.f32 %v2258_v49, %v1251_v45  ;;  %v1315_v60 = vmul.f32 %v1283_v54, %v1283_v54  ;;  %v1287_v3 = vsub.f32 %v2291_v14, %v2276_v63 }
  0xcf   : > { %1340 = vadd.xlane.f32.xlu1 %v1339_v10  ;;  %v1296_v61 = vsub.f32 %v2248_v35, %v1259_v55  ;;  %v1405_v0 = vsel %vm1332_vm0, %v1324_v56, 0.0  ;;  %v1297_v62 = vsub.f32 %v2245_v34, %v1259_v55 }
  0xd0   : > { %v1408_v1 = vsel %vm1332_vm0, %v1325_v58, 0.0  ;;  %v1322_v2 = vmul.f32 %v1290_v59, %v1290_v59  ;;  %v1378_v20 = vsel %vm1332_vm0, %v1315_v60, 0.0 }
  0xd1   : > { %1352 = vadd.xlane.f32.xlu0 %v1351_v8  ;;  %v1328_v4 = vmul.f32 %v1296_v61, %v1296_v61  ;;  %v1329_v7 = vmul.f32 %v1297_v62, %v1297_v62  ;;  %v1319_v8 = vmul.f32 %v1287_v3, %v1287_v3 }
  0xd2   : > { %1901 = vmatmul.mubr.bf16.gmra.mrb[20].mxu0 %v629_v9  ;;  %v1284_v9 = vsub.f32 %v2248_v35, %v2276_v63  ;;  %v1294_v35 = vsub.f32 %v2258_v49, %v1255_v38 }
  0xd3   : > { %1904 = vmatprep.mubr.bf16.mxu0 %v630_v12  ;;  %v1312_v12 = vmul.f32 %v1280_v6, %v1280_v6  ;;  %v1399_v6 = vsel %vm1332_vm0, %v1322_v2, 0.0  ;;  %v1417_v34 = vsel %vm1332_vm0, %v1328_v4, 0.0  ;;  %v1420_v10 = vsel %vm1332_vm0, %v1329_v7, 0.0 }
  0xd4   : > { %v1316_v16 = vmul.f32 %v1284_v9, %v1284_v9  ;;  %v1291_v9 = vsub.f32 %v2291_v14, %v1251_v45  ;;  %v1326_v11 = vmul.f32 %v1294_v35, %v1294_v35  ;;  %v1390_v63 = vsel %vm1332_vm0, %v1319_v8, 0.0 }
  0xd5   : > { %1373 = vadd.xlane.f32.xlu0 %v1372_v18  ;;  %v1299_v18 = vsub.f32 %v2291_v14, %v1259_v55 }
  0xd6   : > { %v1323_v13 = vmul.f32 %v1291_v9, %v1291_v9  ;;  %v1411_v15 = vsel %vm1332_vm0, %v1326_v11, 0.0 }
  0xda   : > { %1905 = vmatmul.mubr.bf16.gmra.mrb[24].mxu0 %v631_v19  ;;  %v1369_v19 = vsel %vm1332_vm0, %v1312_v12, 0.0  ;;  %v1298_v12 = vsub.f32 %v2258_v49, %v1259_v55  ;;  %v1331_v49 = vmul.f32 %v1299_v18, %v1299_v18 }
  0xdb   : > { %1908 = vmatprep.mubr.bf16.mxu0 %v632_v23  ;;  %1370 = vadd.xlane.f32.xlu1 %v1369_v19  ;;  %v1381_v23 = vsel %vm1332_vm0, %v1316_v16, 0.0  ;;  %v1295_v16 = vsub.f32 %v2291_v14, %v1255_v38  ;;  %v1402_v19 = vsel %vm1332_vm0, %v1323_v13, 0.0 }
  0xdc   : > { %1382 = vadd.xlane.f32.xlu0 %v1381_v23  ;;  %v1330_v17 = vmul.f32 %v1298_v12, %v1298_v12  ;;  %v2349_v23 = vld [vmem:[%s2484_s5] ss:$0 sm:$0xff]  ;;  %v1426_v36 = vsel %vm1332_vm0, %v1331_v49, 0.0 }
  0xdd   : > { %v1327_v21 = vmul.f32 %v1295_v16, %v1295_v16 }
  0xdf   : > { %1364 = vadd.xlane.f32.xlu1 %v1363_v25  ;;  %v1414_v24 = vsel %vm1332_vm0, %v1327_v21, 0.0 }
  0xe0   : > { %1343 = vadd.xlane.f32.xlu0 %v1342_v48 }
  0xe2   : > { %1909 = vmatmul.mubr.bf16.gmra.mrb[28].mxu0 %v633_v44  ;;  %v1317_v44 = vmul.f32 %v1285_v22, %v1285_v22  ;;  %v1423_v22 = vsel %vm1332_vm0, %v1330_v17, 0.0 }
  0xe4   : > { %v1384_v28 = vsel %vm1332_vm0, %v1317_v44, 0.0  ;;  %1376 = vadd.xlane.f32.xlu0 %v1375_v40 }
  0xe5   : > { %1385 = vadd.xlane.f32.xlu1 %v1384_v28 }
  0xe8   : > { %1397 = vadd.xlane.f32.xlu0 %v1396_v51 }
  0xe9   : > { %1355 = vadd.xlane.f32.xlu1 %v1354_v32 }
  0xec   : > { %1388 = vadd.xlane.f32.xlu0 %v1387_v57 }
  0xed   : > { %1394 = vadd.xlane.f32.xlu1 %v1393_v50 }
  0xf0   : > { %1409 = vadd.xlane.f32.xlu0 %v1408_v1 }
  0xf1   : > { %1367 = vadd.xlane.f32.xlu1 %v1366_v53 }
  0xf4   : > { %1400 = vadd.xlane.f32.xlu0 %v1399_v6 }
  0xf5   : > { %1406 = vadd.xlane.f32.xlu1 %v1405_v0 }
  0xf8   : > { %1421 = vadd.xlane.f32.xlu0 %v1420_v10 }
  0xf9   : > { %1379 = vadd.xlane.f32.xlu1 %v1378_v20 }
  0xfc   : > { %1412 = vadd.xlane.f32.xlu0 %v1411_v15 }
  0xfd   : > { %1418 = vadd.xlane.f32.xlu1 %v1417_v34 }
 0x100   : > { %1424 = vadd.xlane.f32.xlu0 %v1423_v22 }
 0x101   : > { %1391 = vadd.xlane.f32.xlu1 %v1390_v63 }
 0x104   : > { %1427 = vadd.xlane.f32.xlu0 %v1426_v36 }
 0x105   : > { %1403 = vadd.xlane.f32.xlu1 %v1402_v19 }
 0x109   : > { %1415 = vadd.xlane.f32.xlu1 %v1414_v24 }
 0x17d   : > { %v1882_v14 = vpop.f32.mrb[0].mxu0 }
 0x17e   : > { %v748_v25 = vadd.f32 %v1882_v14, %v2349_v23  ;;  %v739_v44 = vpop.f32.mrb[1].mxu0 }
 0x17f   : > { %v740_v45 = vadd.f32 %v2349_v23, %v739_v44  ;;  %v1883_v26 = vpop.f32.mrb[2].mxu0 }
 0x180   : > { %v751_v47 = vadd.f32 %v1883_v26, %v2349_v23  ;;  %v742_v48 = vpop.f32.mrb[3].mxu0  ;;  %v868_v28 = vmax.f32 %v748_v25, 0.0 }
 0x181   : > { %v743_v27 = vadd.f32 %v2349_v23, %v742_v48  ;;  %v866_v30 = vmax.f32 %v740_v45, 0.0 }
 0x182   : > { %v869_v29 = vmax.f32 %v751_v47, 0.0 }
 0x183   : > { %v867_v31 = vmax.f32 %v743_v27, 0.0 }
 0x184   : > { %v899_v32 = vpack.c.bf16 %v869_v29, %v868_v28 }
 0x185   : > { %v1886_v37 = vpop.f32.mrb[4].mxu0  ;;  %v898_v38 = vpack.c.bf16 %v867_v31, %v866_v30 }
 0x186   : > { %v764_v39 = vadd.f32 %v1886_v37, %v2349_v23  ;;  %v755_v40 = vpop.f32.mrb[5].mxu0 }
 0x187   : > { %v756_v41 = vadd.f32 %v2349_v23, %v755_v40  ;;  %v1887_v42 = vpop.f32.mrb[6].mxu0  ;;  %1928 = vmatprep.mubr.bf16.mxu1 %v898_v38 }
 0x188   : > { %v767_v5 = vadd.f32 %v1887_v42, %v2349_v23  ;;  %v758_v43 = vpop.f32.mrb[7].mxu0  ;;  %1929 = vmatmul.mubr.bf16.vlgmr.msra.gmra.mrb[0].mxu1 %v899_v32  ;;  %v872_v50 = vmax.f32 %v764_v39, 0.0 }
 0x189   : > { %v759_v46 = vadd.f32 %v2349_v23, %v758_v43  ;;  %v870_v33 = vmax.f32 %v756_v41, 0.0 }
 0x18a   : > { %v873_v51 = vmax.f32 %v767_v5, 0.0 }
 0x18b   : > { %v871_v52 = vmax.f32 %v759_v46, 0.0 }
 0x18c   : > { %v901_v53 = vpack.c.bf16 %v873_v51, %v872_v50 }
 0x18d   : > { %v900_v54 = vpack.c.bf16 %v871_v52, %v870_v33  ;;  %v1890_v55 = vpop.f32.mrb[8].mxu0 }
 0x18e   : > { %v780_v56 = vadd.f32 %v1890_v55, %v2349_v23  ;;  %v771_v57 = vpop.f32.mrb[9].mxu0 }
 0x18f   : > { %v772_v58 = vadd.f32 %v2349_v23, %v771_v57  ;;  %v1891_v59 = vpop.f32.mrb[10].mxu0  ;;  %1932 = vmatprep.mubr.bf16.mxu1 %v900_v54 }
 0x190   : > { %v783_v60 = vadd.f32 %v1891_v59, %v2349_v23  ;;  %v774_v61 = vpop.f32.mrb[11].mxu0  ;;  %1933 = vmatmul.mubr.bf16.gmra.mrb[4].mxu1 %v901_v53  ;;  %v876_v1 = vmax.f32 %v780_v56, 0.0 }
 0x191   : > { %v775_v0 = vadd.f32 %v2349_v23, %v774_v61  ;;  %v874_v62 = vmax.f32 %v772_v58, 0.0 }
 0x192   : > { %v877_v2 = vmax.f32 %v783_v60, 0.0 }
 0x193   : > { %v875_v20 = vmax.f32 %v775_v0, 0.0 }
 0x194   : > { %v903_v3 = vpack.c.bf16 %v877_v2, %v876_v1 }
 0x195   : > { %v902_v4 = vpack.c.bf16 %v875_v20, %v874_v62  ;;  %v1894_v6 = vpop.f32.mrb[12].mxu0 }
 0x196   : > { %v796_v7 = vadd.f32 %v1894_v6, %v2349_v23  ;;  %v787_v35 = vpop.f32.mrb[13].mxu0 }
 0x197   : > { %v788_v8 = vadd.f32 %v2349_v23, %v787_v35  ;;  %v1895_v9 = vpop.f32.mrb[14].mxu0  ;;  %1936 = vmatprep.mubr.bf16.mxu1 %v902_v4 }
 0x198   : > { %v799_v34 = vadd.f32 %v1895_v9, %v2349_v23  ;;  %v790_v10 = vpop.f32.mrb[15].mxu0  ;;  %1937 = vmatmul.mubr.bf16.gmra.mrb[8].mxu1 %v903_v3  ;;  %v880_v12 = vmax.f32 %v796_v7, 0.0 }
 0x199   : > { %v791_v11 = vadd.f32 %v2349_v23, %v790_v10  ;;  %v878_v13 = vmax.f32 %v788_v8, 0.0 }
 0x19a   : > { %v881_v63 = vmax.f32 %v799_v34, 0.0 }
 0x19b   : > { %v879_v15 = vmax.f32 %v791_v11, 0.0  ;;  %v1335_v11 = vpop.xlane.xlu1 %1334 }
 0x19c   : > { %v905_v16 = vpack.c.bf16 %v881_v63, %v880_v12  ;;  %v1338_v63 = vpop.xlane.xlu0 %1337  ;;  %vm1429_vm2 = vcmp.le.f32.partialorder %v1335_v11, 0.04 }
 0x19d   : > { %v904_v17 = vpack.c.bf16 %v879_v15, %v878_v13  ;;  %v1898_v18 = vpop.f32.mrb[16].mxu0  ;;  %vm1430_vm1 = vcmp.le.f32.partialorder %v1338_v63, 0.04 }
 0x19e   : > { %v812_v19 = vadd.f32 %v1898_v18, %v2349_v23  ;;  %v803_v21 = vpop.f32.mrb[17].mxu0 }
 0x19f   : > { %v804_v22 = vadd.f32 %v2349_v23, %v803_v21  ;;  %v1899_v49 = vpop.f32.mrb[18].mxu0  ;;  %1940 = vmatprep.mubr.bf16.mxu1 %v904_v17  ;;  %v1347_v12 = vpop.xlane.xlu1 %1346 }
 0x1a0   : > { %v815_v24 = vadd.f32 %v1899_v49, %v2349_v23  ;;  %v806_v36 = vpop.f32.mrb[19].mxu0  ;;  %1941 = vmatmul.mubr.bf16.gmra.mrb[12].mxu1 %v905_v16  ;;  %v884_v25 = vmax.f32 %v812_v19, 0.0  ;;  %v1350_v15 = vpop.xlane.xlu0 %1349  ;;  %v2400_v49 = vld [vmem:[%s2486_s7] ss:$0 sm:$0xff]  ;;  %vm1433_vm6 = vcmp.le.f32.partialorder %v1347_v12, 0.04 }
 0x1a1   : > { %v807_v14 = vadd.f32 %v2349_v23, %v806_v36  ;;  %v882_v45 = vmax.f32 %v804_v22, 0.0  ;;  %vm1434_vm5 = vcmp.le.f32.partialorder %v1350_v15, 0.04 }
 0x1a2   : > { %v885_v44 = vmax.f32 %v815_v24, 0.0 }
 0x1a3   : > { %v883_v26 = vmax.f32 %v807_v14, 0.0  ;;  %v2385_v13 = vpop.xlane.xlu1 %1358 }
 0x1a4   : > { %v907_v47 = vpack.c.bf16 %v885_v44, %v884_v25  ;;  %v2387_v17 = vpop.xlane.xlu0 %1361  ;;  %vm1437_vm10 = vcmp.le.f32.partialorder %v2385_v13, 0.04 }
 0x1a5   : > { %v906_v48 = vpack.c.bf16 %v883_v26, %v882_v45  ;;  %v1902_v27 = vpop.f32.mrb[20].mxu0  ;;  %vm1438_vm9 = vcmp.le.f32.partialorder %v2387_v17, 0.04 }
 0x1a6   : > { %v828_v28 = vadd.f32 %v1902_v27, %v2349_v23  ;;  %v819_v29 = vpop.f32.mrb[21].mxu0 }
 0x1a7   : > { %v820_v30 = vadd.f32 %v2349_v23, %v819_v29  ;;  %v1903_v31 = vpop.f32.mrb[22].mxu0  ;;  %1944 = vmatprep.mubr.bf16.mxu1 %v906_v48  ;;  %v1341_v16 = vpop.xlane.xlu1 %1340 }
 0x1a8   : > { %v831_v32 = vadd.f32 %v1903_v31, %v2349_v23  ;;  %v822_v37 = vpop.f32.mrb[23].mxu0  ;;  %1945 = vmatmul.mubr.bf16.gmra.mrb[16].mxu1 %v907_v47  ;;  %v888_v39 = vmax.f32 %v828_v28, 0.0  ;;  %vm1431_vm3 = vcmp.le.f32.partialorder %v1341_v16, 0.04 }
 0x1a9   : > { %v823_v38 = vadd.f32 %v2349_v23, %v822_v37  ;;  %v886_v41 = vmax.f32 %v820_v30, 0.0 }
 0x1aa   : > { %v889_v40 = vmax.f32 %v831_v32, 0.0 }
 0x1ab   : > { %v887_v42 = vmax.f32 %v823_v38, 0.0  ;;  %v2389_v18 = vpop.xlane.xlu1 %1370 }
 0x1ac   : > { %v909_v5 = vpack.c.bf16 %v889_v40, %v888_v39  ;;  %vm1441_vm14 = vcmp.le.f32.partialorder %v2389_v18, 0.04 }
 0x1ad   : > { %v908_v43 = vpack.c.bf16 %v887_v42, %v886_v41  ;;  %v1906_v46 = vpop.f32.mrb[24].mxu0 }
 0x1ae   : > { %v844_v50 = vadd.f32 %v1906_v46, %v2349_v23  ;;  %v835_v51 = vpop.f32.mrb[25].mxu0 }
 0x1af   : > { %v836_v33 = vadd.f32 %v2349_v23, %v835_v51  ;;  %v1907_v52 = vpop.f32.mrb[26].mxu0  ;;  %1948 = vmatprep.mubr.bf16.mxu1 %v908_v43  ;;  %v2391_v19 = vpop.xlane.xlu1 %1364 }
 0x1b0   : > { %v847_v53 = vadd.f32 %v1907_v52, %v2349_v23  ;;  %v838_v54 = vpop.f32.mrb[27].mxu0  ;;  %1949 = vmatmul.mubr.bf16.gmra.mrb[20].mxu1 %v909_v5  ;;  %v892_v56 = vmax.f32 %v844_v50, 0.0  ;;  %vm1439_vm11 = vcmp.le.f32.partialorder %v2391_v19, 0.04 }
 0x1b1   : > { %v839_v55 = vadd.f32 %v2349_v23, %v838_v54  ;;  %v890_v58 = vmax.f32 %v836_v33, 0.0 }
 0x1b2   : > { %v893_v57 = vmax.f32 %v847_v53, 0.0 }
 0x1b3   : > { %v891_v59 = vmax.f32 %v839_v55, 0.0  ;;  %v2395_v22 = vpop.xlane.xlu1 %1385 }
 0x1b4   : > { %v911_v60 = vpack.c.bf16 %v893_v57, %v892_v56 }
 0x1b5   : > { %v910_v61 = vpack.c.bf16 %v891_v59, %v890_v58  ;;  %v1910_v0 = vpop.f32.mrb[28].mxu0 }
 0x1b6   : > { %v860_v1 = vadd.f32 %v1910_v0, %v2349_v23  ;;  %v851_v2 = vpop.f32.mrb[29].mxu0 }
 0x1b7   : > { %v852_v62 = vadd.f32 %v2349_v23, %v851_v2  ;;  %v1911_v20 = vpop.f32.mrb[30].mxu0  ;;  %1952 = vmatprep.mubr.bf16.mxu1 %v910_v61  ;;  %v1356_v26 = vpop.xlane.xlu1 %1355 }
 0x1b8   : > { %v863_v3 = vadd.f32 %v1911_v20, %v2349_v23  ;;  %v854_v4 = vpop.f32.mrb[31].mxu0  ;;  %1953 = vmatmul.mubr.bf16.gmra.mrb[24].mxu1 %v911_v60  ;;  %v896_v7 = vmax.f32 %v860_v1, 0.0  ;;  %vm1436_vm8 = vcmp.le.f32.partialorder %v1356_v26, 0.04 }
 0x1b9   : > { %v855_v6 = vadd.f32 %v2349_v23, %v854_v4  ;;  %v894_v8 = vmax.f32 %v852_v62, 0.0  ;;  %v1353_v23 = vpop.xlane.xlu0 %1352 }
 0x1ba   : > { %v897_v35 = vmax.f32 %v863_v3, 0.0  ;;  %vm1435_vm7 = vcmp.le.f32.partialorder %v1353_v23, 0.04 }
 0x1bb   : > { %v895_v9 = vmax.f32 %v855_v6, 0.0  ;;  %v2408_v40 = vpop.xlane.xlu1 %1394 }
 0x1bc   : > { %v913_v34 = vpack.c.bf16 %v897_v35, %v896_v7 }
 0x1bd   : > { %v912_v10 = vpack.c.bf16 %v895_v9, %v894_v8  ;;  %v2393_v21 = vpop.xlane.xlu0 %1373 }
 0x1be   : > { %vm1442_vm13 = vcmp.le.f32.partialorder %v2393_v21, 0.04 }
 0x1bf   : > { %1956 = vmatprep.mubr.bf16.mxu1 %v912_v10  ;;  %v1368_v59 = vpop.xlane.xlu1 %1367 }
 0x1c0   : > { %1957 = vmatmul.mubr.bf16.gmra.mrb[28].mxu1 %v913_v34  ;;  %vm1440_vm12 = vcmp.le.f32.partialorder %v1368_v59, 0.04 }
 0x1c1   : > { %v2402_v36 = vpop.xlane.xlu0 %1382 }
 0x1c3   : > { %v2420_v15 = vpop.xlane.xlu1 %1406 }
 0x1c5   : > { %v1344_v31 = vpop.xlane.xlu0 %1343 }
 0x1c6   : > { %vm1432_vm4 = vcmp.le.f32.partialorder %v1344_v31, 0.04 }
 0x1c9   : > { %v2414_v62 = vpop.xlane.xlu0 %1376 }
 0x1ca   : > { %vm1443_vm0 = vcmp.le.f32.partialorder %v2414_v62, 0.04 }
 0x25b   : > { %v1930_v24 = vpop.f32.mrb[0].mxu1 }
 0x25c   : > { %v1019_v14 = vpop.f32.mrb[1].mxu1  ;;  %v1028_v25 = vadd.f32 %v1930_v24, %v2400_v49 }
 0x25d   : > { %v1020_v44 = vadd.f32 %v2400_v49, %v1019_v14  ;;  %v1931_v45 = vpop.f32.mrb[2].mxu1 }
 0x25e   : > { %v1022_v47 = vpop.f32.mrb[3].mxu1  ;;  %v1031_v27 = vadd.f32 %v1931_v45, %v2400_v49  ;;  %v1148_v29 = vmax.f32 %v1028_v25, 0.0  ;;  %v2423_v25 = vpop.xlane.xlu0 %1397 }
 0x25f   : > { %v1146_v48 = vmax.f32 %v1020_v44, 0.0  ;;  %v1023_v28 = vadd.f32 %v2400_v49, %v1022_v47 }
 0x260   : > { %v1149_v37 = vmax.f32 %v1031_v27, 0.0  ;;  %v1527_v5 = vsel %vm1431_vm3, %v1148_v29, -inf  ;;  %vm1446_vm3 = vcmp.le.f32.partialorder %v2395_v22, 0.04 }
 0x261   : > { %v1147_v30 = vmax.f32 %v1023_v28, 0.0  ;;  %v1525_v32 = vsel %vm1429_vm2, %v1146_v48, -inf  ;;  %vm1445_vm2 = vcmp.le.f32.partialorder %v2402_v36, 0.04 }
 0x262   : > { %v1528_v52 = vsel %vm1432_vm4, %v1149_v37, -inf }
 0x263   : > { %v1526_v38 = vsel %vm1430_vm1, %v1147_v30, -inf  ;;  %v1934_v39 = vpop.f32.mrb[4].mxu1 }
 0x264   : > { %v1558_v41 = vmax.f32 %v1525_v32, %v1526_v38  ;;  %v1035_v42 = vpop.f32.mrb[5].mxu1  ;;  %v1044_v43 = vadd.f32 %v1934_v39, %v2400_v49  ;;  %v1380_v38 = vpop.xlane.xlu1 %1379 }
 0x265   : > { %v1036_v46 = vadd.f32 %v2400_v49, %v1035_v42  ;;  %v1935_v50 = vpop.f32.mrb[6].mxu1  ;;  %vm1444_vm1 = vcmp.le.f32.partialorder %v1380_v38, 0.04 }
 0x266   : > { %v1559_v51 = vmax.f32 %v1558_v41, %v1527_v5  ;;  %v1038_v33 = vpop.f32.mrb[7].mxu1  ;;  %v1047_v54 = vadd.f32 %v1935_v50, %v2400_v49  ;;  %v1152_v57 = vmax.f32 %v1044_v43, 0.0 }
 0x267   : > { %v1150_v53 = vmax.f32 %v1036_v46, 0.0  ;;  %v1039_v55 = vadd.f32 %v2400_v49, %v1038_v33  ;;  %v1389_v46 = vpop.xlane.xlu0 %1388 }
 0x268   : > { %v1560_v56 = vmax.f32 %v1559_v51, %v1528_v52  ;;  %v1153_v0 = vmax.f32 %v1047_v54, 0.0  ;;  %v1531_v6 = vsel %vm1435_vm7, %v1152_v57, -inf  ;;  %vm1447_vm4 = vcmp.le.f32.partialorder %v1389_v46, 0.04 }
 0x269   : > { %v1151_v58 = vmax.f32 %v1039_v55, 0.0  ;;  %v1529_v61 = vsel %vm1433_vm6, %v1150_v53, -inf  ;;  %vm1449_vm7 = vcmp.le.f32.partialorder %v2408_v40, 0.04 }
 0x26a   : > { %v1561_v60 = vrot.slane %v1560_v56, 4  ;;  %v1532_v10 = vsel %vm1436_vm8, %v1153_v0, -inf  ;;  %vm1450_vm8 = vcmp.le.f32.partialorder %v2423_v25, 0.04 }
 0x26b   : > { %v1530_v1 = vsel %vm1434_vm5, %v1151_v58, -inf  ;;  %v1938_v2 = vpop.f32.mrb[8].mxu1  ;;  %vm1640_vm5 = vcmask 1042434  }
 0x26c   : > { %v1562_v20 = vmax.f32 %v1560_v56, %v1561_v60  ;;  %v1567_v3 = vmax.f32 %v1529_v61, %v1530_v1  ;;  %v1051_v4 = vpop.f32.mrb[9].mxu1  ;;  %v1060_v7 = vadd.f32 %v1938_v2, %v2400_v49  ;;  %v2434_v60 = vpop.xlane.xlu1 %1418 }
 0x26d   : > { %v1052_v35 = vadd.f32 %v2400_v49, %v1051_v4  ;;  %v1939_v8 = vpop.f32.mrb[10].mxu1 }
 0x26e   : > { %v1568_v9 = vmax.f32 %v1567_v3, %v1531_v6  ;;  %v1054_v34 = vpop.f32.mrb[11].mxu1  ;;  %v1063_v12 = vadd.f32 %v1939_v8, %v2400_v49  ;;  %v1563_v16 = vrot.slane %v1562_v20, 2  ;;  %v1156_v24 = vmax.f32 %v1060_v7, 0.0  ;;  %v2438_v6 = vpop.xlane.xlu0 %1409 }
 0x26f   : > { %v1154_v11 = vmax.f32 %v1052_v35, 0.0  ;;  %v1055_v63 = vadd.f32 %v2400_v49, %v1054_v34 }
 0x270   : > { %v1569_v23 = vmax.f32 %v1568_v9, %v1532_v10  ;;  %v1157_v26 = vmax.f32 %v1063_v12, 0.0  ;;  %v1564_v27 = vmax.f32 %v1562_v20, %v1563_v16  ;;  %v1535_v31 = vsel %vm1439_vm11, %v1156_v24, -inf  ;;  %v1392_v24 = vpop.xlane.xlu1 %1391 }
 0x271   : > { %v1155_v14 = vmax.f32 %v1055_v63, 0.0  ;;  %v1533_v45 = vsel %vm1437_vm10, %v1154_v11, -inf  ;;  %vm1448_vm6 = vcmp.le.f32.partialorder %v1392_v24, 0.04  ;;  %vm1642_vm10 = vcmask 1043459  }
 0x272   : > { %v1570_v44 = vrot.slane %v1569_v23, 4  ;;  %v1536_v41 = vsel %vm1440_vm12, %v1157_v26, -inf  ;;  %v1565_v50 = vrot.slane %v1564_v27, 1  ;;  %vm1453_vm12 = vcmp.le.f32.partialorder %v2420_v15, 0.04 }
 0x273   : > { %v1534_v47 = vsel %vm1438_vm9, %v1155_v14, -inf  ;;  %v1942_v48 = vpop.f32.mrb[12].mxu1 }
 0x274   : > { %v1571_v28 = vmax.f32 %v1569_v23, %v1570_v44  ;;  %v1576_v29 = vmax.f32 %v1533_v45, %v1534_v47  ;;  %v1067_v30 = vpop.f32.mrb[13].mxu1  ;;  %v1076_v17 = vadd.f32 %v1942_v48, %v2400_v49  ;;  %v1566_v61 = vmax.f32 %v1564_v27, %v1565_v50  ;;  %v1401_v27 = vpop.xlane.xlu0 %1400 }
 0x275   : > { %v1068_v32 = vadd.f32 %v2400_v49, %v1067_v30  ;;  %v1943_v37 = vpop.f32.mrb[14].mxu1  ;;  %vm1451_vm9 = vcmp.le.f32.partialorder %v1401_v27, 0.04 }
 0x276   : > { %v1572_v13 = vrot.slane %v1571_v28, 2  ;;  %v1577_v39 = vmax.f32 %v1576_v29, %v1535_v31  ;;  %v1070_v19 = vpop.f32.mrb[15].mxu1  ;;  %v1079_v5 = vadd.f32 %v1943_v37, %v2400_v49  ;;  %v1160_v52 = vmax.f32 %v1076_v17, 0.0 }
 0x277   : > { %v1158_v42 = vmax.f32 %v1068_v32, 0.0  ;;  %v1071_v43 = vadd.f32 %v2400_v49, %v1070_v19 }
 0x278   : > { %v1573_v51 = vmax.f32 %v1571_v28, %v1572_v13  ;;  %v1578_v33 = vmax.f32 %v1577_v39, %v1536_v41  ;;  %v1161_v57 = vmax.f32 %v1079_v5, 0.0  ;;  %v1539_v18 = vsel %vm1443_vm0, %v1160_v52, -inf  ;;  %v2451_v52 = vpop.xlane.xlu0 %1421 }
 0x279   : > { %v1159_v53 = vmax.f32 %v1071_v43, 0.0  ;;  %v1537_v56 = vsel %vm1441_vm14, %v1158_v42, -inf }
 0x27a   : > { %v1574_v54 = vrot.slane %v1573_v51, 1  ;;  %v1579_v55 = vrot.slane %v1578_v33, 4  ;;  %v1540_v9 = vsel %vm1444_vm1, %v1161_v57, -inf  ;;  %vm1457_vm1 = vcmp.le.f32.partialorder %v2434_v60, 0.04 }
 0x27b   : > { %v1538_v58 = vsel %vm1442_vm13, %v1159_v53, -inf  ;;  %v1946_v59 = vpop.f32.mrb[16].mxu1  ;;  %vm1454_vm13 = vcmp.le.f32.partialorder %v2438_v6, 0.04 }
 0x27c   : > { %v1575_v0 = vmax.f32 %v1573_v51, %v1574_v54  ;;  %v1580_v1 = vmax.f32 %v1578_v33, %v1579_v55  ;;  %v1585_v21 = vmax.f32 %v1537_v56, %v1538_v58  ;;  %v1083_v2 = vpop.f32.mrb[17].mxu1  ;;  %v1092_v20 = vadd.f32 %v1946_v59, %v2400_v49  ;;  %v1404_v33 = vpop.xlane.xlu1 %1403 }
 0x27d   : > { %v1084_v3 = vadd.f32 %v2400_v49, %v1083_v2  ;;  %v1947_v4 = vpop.f32.mrb[18].mxu1  ;;  %vm1452_vm11 = vcmp.le.f32.partialorder %v1404_v33, 0.04 }
 0x27e   : > { %v1639_v62 = vsel %vm1638_vm15, %v1575_v0, %v1566_v61  ;;  %v1581_v7 = vrot.slane %v1580_v1, 2  ;;  %v1586_v35 = vmax.f32 %v1585_v21, %v1539_v18  ;;  %v1086_v8 = vpop.f32.mrb[19].mxu1  ;;  %v1095_v10 = vadd.f32 %v1947_v4, %v2400_v49 }
 0x27f   : > { %v1162_v34 = vmax.f32 %v1084_v3, 0.0  ;;  %v1087_v11 = vadd.f32 %v2400_v49, %v1086_v8  ;;  %v1164_v16 = vmax.f32 %v1092_v20, 0.0  ;;  %vm1644_vm15 = vcmask 1044484  }
 0x280   : > { %v1582_v12 = vmax.f32 %v1580_v1, %v1581_v7  ;;  %v1587_v63 = vmax.f32 %v1586_v35, %v1540_v9  ;;  %v1165_v26 = vmax.f32 %v1095_v10, 0.0  ;;  %v1413_v9 = vpop.xlane.xlu0 %1412 }
 0x281   : > { %v1163_v23 = vmax.f32 %v1087_v11, 0.0  ;;  %v1541_v45 = vsel %vm1445_vm2, %v1162_v34, -inf  ;;  %v1543_v36 = vsel %vm1447_vm4, %v1164_v16, -inf  ;;  %vm1455_vm14 = vcmp.le.f32.partialorder %v1413_v9, 0.04 }
 0x282   : > { %v1583_v14 = vrot.slane %v1582_v12, 1  ;;  %v1588_v44 = vrot.slane %v1587_v63, 4  ;;  %v1544_v19 = vsel %vm1448_vm6, %v1165_v26, -inf  ;;  %vm1458_vm2 = vcmp.le.f32.partialorder %v2451_v52, 0.04 }
 0x283   : > { %v1542_v47 = vsel %vm1446_vm3, %v1163_v23, -inf  ;;  %v1950_v48 = vpop.f32.mrb[20].mxu1  ;;  %vm1646_vm4 = vcmask 1045509   ;;  %vm1648_vm6 = vcmask 1046534  }
 0x284   : > { %v1584_v28 = vmax.f32 %v1582_v12, %v1583_v14  ;;  %v1589_v29 = vmax.f32 %v1587_v63, %v1588_v44  ;;  %v1594_v30 = vmax.f32 %v1541_v45, %v1542_v47  ;;  %v1099_v31 = vpop.f32.mrb[21].mxu1  ;;  %v1108_v17 = vadd.f32 %v1950_v48, %v2400_v49  ;;  %v1416_v63 = vpop.xlane.xlu1 %1415 }
 0x285   : > { %v1100_v32 = vadd.f32 %v2400_v49, %v1099_v31  ;;  %v1951_v22 = vpop.f32.mrb[22].mxu1  ;;  %v1425_v26 = vpop.xlane.xlu0 %1424  ;;  %vm1456_vm0 = vcmp.le.f32.partialorder %v1416_v63, 0.04 }
 0x286   : > { %v1641_v37 = vsel %vm1640_vm5, %v1584_v28, %v1639_v62  ;;  %v1590_v38 = vrot.slane %v1589_v29, 2  ;;  %v1595_v13 = vmax.f32 %v1594_v30, %v1543_v36  ;;  %v1102_v39 = vpop.f32.mrb[23].mxu1  ;;  %v1111_v42 = vadd.f32 %v1951_v22, %v2400_v49 }
 0x287   : > { %v1166_v41 = vmax.f32 %v1100_v32, 0.0  ;;  %v1103_v5 = vadd.f32 %v2400_v49, %v1102_v39  ;;  %v1168_v50 = vmax.f32 %v1108_v17, 0.0  ;;  %vm1459_vm3 = vcmp.le.f32.partialorder %v1425_v26, 0.04 }
 0x288   : > { %v1591_v43 = vmax.f32 %v1589_v29, %v1590_v38  ;;  %v1596_v46 = vmax.f32 %v1595_v13, %v1544_v19  ;;  %v1169_v56 = vmax.f32 %v1111_v42, 0.0 }
 0x289   : > { %v1167_v51 = vmax.f32 %v1103_v5, 0.0  ;;  %v1545_v55 = vsel %vm1449_vm7, %v1166_v41, -inf  ;;  %v1547_v1 = vsel %vm1451_vm9, %v1168_v50, -inf  ;;  %v1428_v5 = vpop.xlane.xlu0 %1427  ;;  %vm1650_vm7 = vcmask 1047559  }
 0x28a   : > { %v1592_v53 = vrot.slane %v1591_v43, 1  ;;  %v1597_v54 = vrot.slane %v1596_v46, 4  ;;  %v1548_v62 = vsel %vm1452_vm11, %v1169_v56, -inf  ;;  %vm1460_vm5 = vcmp.le.f32.partialorder %v1428_v5, 0.04 }
 0x28b   : > { %v1546_v57 = vsel %vm1450_vm8, %v1167_v51, -inf  ;;  %v1954_v58 = vpop.f32.mrb[24].mxu1 }
 0x28c   : > { %v1593_v59 = vmax.f32 %v1591_v43, %v1592_v53  ;;  %v1598_v61 = vmax.f32 %v1596_v46, %v1597_v54  ;;  %v1603_v0 = vmax.f32 %v1545_v55, %v1546_v57  ;;  %v1115_v40 = vpop.f32.mrb[25].mxu1  ;;  %v1124_v21 = vadd.f32 %v1954_v58, %v2400_v49 }
 0x28d   : > { %v1116_v2 = vadd.f32 %v2400_v49, %v1115_v40  ;;  %v1955_v18 = vpop.f32.mrb[26].mxu1 }
 0x28e   : > { %v1643_v20 = vsel %vm1642_vm10, %v1593_v59, %v1641_v37  ;;  %v1599_v25 = vrot.slane %v1598_v61, 2  ;;  %v1604_v3 = vmax.f32 %v1603_v0, %v1547_v1  ;;  %v1118_v4 = vpop.f32.mrb[27].mxu1  ;;  %v1127_v35 = vadd.f32 %v1955_v18, %v2400_v49 }
 0x28f   : > { %v1170_v7 = vmax.f32 %v1116_v2, 0.0  ;;  %v1119_v8 = vadd.f32 %v2400_v49, %v1118_v4  ;;  %v1172_v11 = vmax.f32 %v1124_v21, 0.0 }
 0x290   : > { %v1600_v34 = vmax.f32 %v1598_v61, %v1599_v25  ;;  %v1605_v10 = vmax.f32 %v1604_v3, %v1548_v62  ;;  %v1173_v14 = vmax.f32 %v1127_v35, 0.0 }
 0x291   : > { %v1171_v12 = vmax.f32 %v1119_v8, 0.0  ;;  %v1549_v24 = vsel %vm1453_vm12, %v1170_v7, -inf  ;;  %v1551_v15 = vsel %vm1455_vm14, %v1172_v11, -inf }
 0x292   : > { %v1601_v16 = vrot.slane %v1600_v34, 1  ;;  %v1606_v23 = vrot.slane %v1605_v10, 4  ;;  %v1552_v22 = vsel %vm1456_vm0, %v1173_v14, -inf }
 0x293   : > { %v1550_v44 = vsel %vm1454_vm13, %v1171_v12, -inf  ;;  %v1958_v45 = vpop.f32.mrb[28].mxu1 }
 0x294   : > { %v1602_v47 = vmax.f32 %v1600_v34, %v1601_v16  ;;  %v1607_v48 = vmax.f32 %v1605_v10, %v1606_v23  ;;  %v1612_v27 = vmax.f32 %v1549_v24, %v1550_v44  ;;  %v1131_v28 = vpop.f32.mrb[29].mxu1  ;;  %v1140_v29 = vadd.f32 %v1958_v45, %v2400_v49 }
 0x295   : > { %v1132_v30 = vadd.f32 %v2400_v49, %v1131_v28  ;;  %v1959_v31 = vpop.f32.mrb[30].mxu1 }
 0x296   : > { %v1645_v6 = vsel %vm1644_vm15, %v1602_v47, %v1643_v20  ;;  %v1608_v36 = vrot.slane %v1607_v48, 2  ;;  %v1613_v17 = vmax.f32 %v1612_v27, %v1551_v15  ;;  %v1134_v32 = vpop.f32.mrb[31].mxu1  ;;  %v1143_v38 = vadd.f32 %v1959_v31, %v2400_v49 }
 0x297   : > { %v1174_v37 = vmax.f32 %v1132_v30, 0.0  ;;  %v1135_v13 = vadd.f32 %v2400_v49, %v1134_v32  ;;  %v1176_v41 = vmax.f32 %v1140_v29, 0.0 }
 0x298   : > { %v1609_v39 = vmax.f32 %v1607_v48, %v1608_v36  ;;  %v1614_v19 = vmax.f32 %v1613_v17, %v1552_v22  ;;  %v1177_v51 = vmax.f32 %v1143_v38, 0.0 }
 0x299   : > { %v1175_v42 = vmax.f32 %v1135_v13, 0.0  ;;  %v1553_v50 = vsel %vm1457_vm1, %v1174_v37, -inf  ;;  %v1555_v49 = vsel %vm1459_vm3, %v1176_v41, -inf }
 0x29a   : > { %v1610_v43 = vrot.slane %v1609_v39, 1  ;;  %v1615_v46 = vrot.slane %v1614_v19, 4  ;;  %v1556_v58 = vsel %vm1460_vm5, %v1177_v51, -inf }
 0x29b   : > { %v1554_v33 = vsel %vm1458_vm2, %v1175_v42, -inf }
 0x29c   : > { %v1611_v53 = vmax.f32 %v1609_v39, %v1610_v43  ;;  %v1616_v54 = vmax.f32 %v1614_v19, %v1615_v46  ;;  %v1621_v55 = vmax.f32 %v1553_v50, %v1554_v33 }
 0x29e   : > { %v1647_v56 = vsel %vm1646_vm4, %v1611_v53, %v1645_v6  ;;  %v1617_v60 = vrot.slane %v1616_v54, 2  ;;  %v1622_v57 = vmax.f32 %v1621_v55, %v1555_v49 }
 0x2a0   : > { %v1618_v59 = vmax.f32 %v1616_v54, %v1617_v60  ;;  %v1623_v61 = vmax.f32 %v1622_v57, %v1556_v58 }
 0x2a2   : > { %v1619_v0 = vrot.slane %v1618_v59, 1  ;;  %v1624_v52 = vrot.slane %v1623_v61, 4 }
 0x2a4   : > { %v1620_v40 = vmax.f32 %v1618_v59, %v1619_v0  ;;  %v1625_v1 = vmax.f32 %v1623_v61, %v1624_v52 }
 0x2a6   : > { %v1649_v21 = vsel %vm1648_vm6, %v1620_v40, %v1647_v56  ;;  %v1626_v2 = vrot.slane %v1625_v1, 2 }
 0x2a8   : > { %v1627_v18 = vmax.f32 %v1625_v1, %v1626_v2 }
 0x2aa   : > { %v1628_v20 = vrot.slane %v1627_v18, 1 }
 0x2ac   : > { %v1629_v25 = vmax.f32 %v1627_v18, %v1628_v20 }
 0x2ae   : > { %v1651_v3 = vsel %vm1650_vm7, %v1629_v25, %v1649_v21 }
 0x2af   : > { %v1659_v4 = vpack.c.bf16 %v1651_v3, %v1651_v3 }
 0x2b1   : > { %1660 = vst [vmem:[%s410_s26] sm:$0xf] %v1659_v4 }
 0x2b2 PF: > { %s18_s29 = sadd.s32 1, %s2031_s29   ;;  %s2488_s27 = smov %s2027_s28 }
 0x2b3   : > { %p15_p5 = scmp.ge.s32.totalorder %s18_s29, 4   ;;  %s2489_s28 = smov %s2491_s30 }
 0x2b5   :  { %17 = sbr.rel (!%p15_p5) target bundleno = 2 (0x2), region = 96 }

// kernel: neg.8
= control target key start
LH: loop header
LB: loop body
LE: loop exit
PB: predicated region body
PF: predicated region fallthrough
CT: control target
= control target key end

     0   :  { %s40_s0 = inlined_call_operand.vmem [shape: f32[2,7,2], index: 0, kind: input, shape index: {}]   ;;  %s41_s1 = inlined_call_operand.vmem [shape: f32[2,7,2], index: 1, kind: output, shape index: {}]  }
   0x1   :  { %v2_v0 = vld [vmem:[%s40_s0] sm:$0x3]  ;;  %v16_v1 = vld [vmem:[%s40_s0 + $0x2] sm:$0x3] }
   0x2   :  { %v5_v2 = vxor.u32 2147483648, %v2_v0  ;;  %v12_v3 = vxor.u32 2147483648, %v16_v1 }
   0x4   :  { %7 = vst [vmem:[%s41_s1] sm:$0x3] %v5_v2  ;;  %17 = vst [vmem:[%s41_s1 + $0x2] sm:$0x3] %v12_v3 }

// kernel: pointnet_forward.14
= control target key start
LH: loop header
LB: loop body
LE: loop exit
PB: predicated region body
PF: predicated region fallthrough
CT: control target
= control target key end

     0   :  { %v185_v36 = vlaneseq  ;;  %v2026_v37 = vmov 1983009808   ;;  %s2671_s1 = inlined_call_operand.vmem [shape: bf16[1280,256], index: 1, kind: input, shape index: {}]   ;;  %s2672_s0 = inlined_call_operand.vmem [shape: bf16[4,1280], index: 0, kind: input, shape index: {}]   ;;  %s2673_s3 = inlined_call_operand.vmem [shape: bf16[256,256], index: 3, kind: input, shape index: {}]   ;;  %s2674_s2 = inlined_call_operand.vmem [shape: f32[1,256], index: 2, kind: input, shape index: {}]   ;;  %s2675_s4 = inlined_call_operand.vmem [shape: f32[1,256], index: 4, kind: input, shape index: {}]   ;;  %s2676_s5 = inlined_call_operand.vmem [shape: bf16[4,256], index: 5, kind: output, shape index: {}]  }
   0x1   :  { %v1736_v0 = vld [vmem:[%s2671_s1 + $0x4] ss:$8 sps:$4 sm:$0xff]   ;;  %v1740_v2 = vld [vmem:[%s2671_s1] ss:$8 sps:$4 sm:$0xff]   ;;  %v1742_v4 = vld [vmem:[%s2671_s1 + $0x14] ss:$8 sps:$4 sm:$0xff]   ;;  %v200_v38 = vunpack.c.l.s4 %v2026_v37 }
   0x2   :  { %v1738_v1 = vld [vmem:[%s2671_s1 + $0x204] ss:$8 sps:$4 sm:$0xff]   ;;  %1050 = vmatprep.subr.bf16.mxu1 %v1736_v0  ;;  %v1741_v3 = vld [vmem:[%s2671_s1 + $0x200] ss:$8 sps:$4 sm:$0xff]   ;;  %v1744_v5 = vld [vmem:[%s2671_s1 + $0x214] ss:$8 sps:$4 sm:$0xff]  }
   0x3   :  { %1132 = vmatprep.subr.bf16.mxu0 %v1738_v1  ;;  %1051 = vmatpush1.bf16.msra.mxu1 %v1740_v2  ;;  %v1746_v6 = vld [vmem:[%s2671_s1 + $0x10] ss:$8 sps:$4 sm:$0xff]   ;;  %v1748_v8 = vld [vmem:[%s2671_s1 + $0x24] ss:$8 sps:$4 sm:$0xff]   ;;  %v1752_v10 = vld [vmem:[%s2671_s1 + $0x20] ss:$8 sps:$4 sm:$0xff]   ;;  %v201_v43 = vunpack.c.0.s8 %v200_v38 }
   0x4   :  { %1133 = vmatpush1.bf16.msra.mxu0 %v1741_v3  ;;  %1052 = vmatprep.subr.bf16.mxu1 %v1742_v4  ;;  %v1747_v7 = vld [vmem:[%s2671_s1 + $0x210] ss:$8 sps:$4 sm:$0xff]   ;;  %v1750_v9 = vld [vmem:[%s2671_s1 + $0x224] ss:$8 sps:$4 sm:$0xff]   ;;  %v1753_v11 = vld [vmem:[%s2671_s1 + $0x220] ss:$8 sps:$4 sm:$0xff]  }
   0x5   :  { %1134 = vmatprep.subr.bf16.mxu0 %v1744_v5  ;;  %v1754_v12 = vld [vmem:[%s2671_s1 + $0x34] ss:$8 sps:$4 sm:$0xff]   ;;  %v1758_v14 = vld [vmem:[%s2671_s1 + $0x30] ss:$8 sps:$4 sm:$0xff]   ;;  %v1760_v16 = vld [vmem:[%s2671_s1 + $0x44] ss:$8 sps:$4 sm:$0xff]  }
   0x6   :  { %v1756_v13 = vld [vmem:[%s2671_s1 + $0x234] ss:$8 sps:$4 sm:$0xff]   ;;  %v1759_v15 = vld [vmem:[%s2671_s1 + $0x230] ss:$8 sps:$4 sm:$0xff]   ;;  %v1762_v17 = vld [vmem:[%s2671_s1 + $0x244] ss:$8 sps:$4 sm:$0xff]  }
   0x7   :  { %1053 = vmatpush1.bf16.msra.mxu1 %v1746_v6  ;;  %v1764_v18 = vld [vmem:[%s2671_s1 + $0x40] ss:$8 sps:$4 sm:$0xff]   ;;  %v1766_v20 = vld [vmem:[%s2671_s1 + $0x54] ss:$8 sps:$4 sm:$0xff]   ;;  %v1770_v22 = vld [vmem:[%s2671_s1 + $0x50] ss:$8 sps:$4 sm:$0xff]  }
   0x8   :  { %1135 = vmatpush1.bf16.msra.mxu0 %v1747_v7  ;;  %1054 = vmatprep.subr.bf16.mxu1 %v1748_v8  ;;  %v1765_v19 = vld [vmem:[%s2671_s1 + $0x240] ss:$8 sps:$4 sm:$0xff]   ;;  %v1768_v21 = vld [vmem:[%s2671_s1 + $0x254] ss:$8 sps:$4 sm:$0xff]   ;;  %v1771_v23 = vld [vmem:[%s2671_s1 + $0x250] ss:$8 sps:$4 sm:$0xff]  }
   0x9   :  { %1136 = vmatprep.subr.bf16.mxu0 %v1750_v9  ;;  %v1772_v24 = vld [vmem:[%s2671_s1 + $0x64] ss:$8 sps:$4 sm:$0xff]   ;;  %v1776_v26 = vld [vmem:[%s2671_s1 + $0x60] ss:$8 sps:$4 sm:$0xff]   ;;  %v1778_v28 = vld [vmem:[%s2671_s1 + $0x74] ss:$8 sps:$4 sm:$0xff]  }
   0xa   :  { %v1774_v25 = vld [vmem:[%s2671_s1 + $0x264] ss:$8 sps:$4 sm:$0xff]   ;;  %v1777_v27 = vld [vmem:[%s2671_s1 + $0x260] ss:$8 sps:$4 sm:$0xff]   ;;  %v1780_v29 = vld [vmem:[%s2671_s1 + $0x274] ss:$8 sps:$4 sm:$0xff]  }
   0xb   :  { %1055 = vmatpush1.bf16.msra.mxu1 %v1752_v10  ;;  %v1782_v30 = vld [vmem:[%s2671_s1 + $0x70] ss:$8 sps:$4 sm:$0xff]   ;;  %v1784_v32 = vld [vmem:[%s2671_s1 + $0x84] ss:$8 sps:$4 sm:$0xff]   ;;  %v1788_v34 = vld [vmem:[%s2671_s1 + $0x80] ss:$8 sps:$4 sm:$0xff]  }
   0xc   :  { %1137 = vmatpush1.bf16.msra.mxu0 %v1753_v11  ;;  %1056 = vmatprep.subr.bf16.mxu1 %v1754_v12  ;;  %v1783_v31 = vld [vmem:[%s2671_s1 + $0x270] ss:$8 sps:$4 sm:$0xff]   ;;  %v1786_v33 = vld [vmem:[%s2671_s1 + $0x284] ss:$8 sps:$4 sm:$0xff]   ;;  %v1789_v35 = vld [vmem:[%s2671_s1 + $0x280] ss:$8 sps:$4 sm:$0xff]  }
   0xd   :  { %1138 = vmatprep.subr.bf16.mxu0 %v1756_v13  ;;  %v1790_v39 = vld [vmem:[%s2671_s1 + $0x94] ss:$8 sps:$4 sm:$0xff]   ;;  %v1794_v41 = vld [vmem:[%s2671_s1 + $0x90] ss:$8 sps:$4 sm:$0xff]   ;;  %v2174_v42 = vshrl.u32 %v185_v36, 7  ;;  %v20_v52 = vld [vmem:[%s2672_s0] sm:$0xff] }
   0xe   :  { %v1792_v40 = vld [vmem:[%s2671_s1 + $0x294] ss:$8 sps:$4 sm:$0xff]   ;;  %v1795_v44 = vld [vmem:[%s2671_s1 + $0x290] ss:$8 sps:$4 sm:$0xff]   ;;  %v1796_v45 = vld [vmem:[%s2671_s1 + $0xa4] ss:$8 sps:$4 sm:$0xff]   ;;  %v198_v10 = vcombine.high %v20_v52, %v20_v52 }
   0xf   :  { %1057 = vmatpush1.bf16.msra.mxu1 %v1758_v14  ;;  %v1798_v46 = vld [vmem:[%s2671_s1 + $0x2a4] ss:$8 sps:$4 sm:$0xff]   ;;  %v1800_v47 = vld [vmem:[%s2671_s1 + $0xa0] ss:$8 sps:$4 sm:$0xff]   ;;  %v204_v49 = vsub.s32 %v201_v43, %v2174_v42  ;;  %v1802_v50 = vld [vmem:[%s2671_s1 + $0xb4] ss:$8 sps:$4 sm:$0xff]  }
  0x10   :  { %1139 = vmatpush1.bf16.msra.mxu0 %v1759_v15  ;;  %1058 = vmatprep.subr.bf16.mxu1 %v1760_v16  ;;  %v1801_v48 = vld [vmem:[%s2671_s1 + $0x2a0] ss:$8 sps:$4 sm:$0xff]   ;;  %v1804_v51 = vld [vmem:[%s2671_s1 + $0x2b4] ss:$8 sps:$4 sm:$0xff]   ;;  %v1806_v53 = vld [vmem:[%s2671_s1 + $0xb0] ss:$8 sps:$4 sm:$0xff]  }
  0x11   :  { %1140 = vmatprep.subr.bf16.mxu0 %v1762_v17  ;;  %v205_v54 = vrot.slane %v20_v52, %v204_v49  ;;  %v1807_v55 = vld [vmem:[%s2671_s1 + $0x2b0] ss:$8 sps:$4 sm:$0xff]   ;;  %v21_v56 = vld [vmem:[%s2672_s0 + $0x8] sm:$0xff]  ;;  %v1814_v0 = vld [vmem:[%s2671_s1 + $0xd4] ss:$8 sps:$4 sm:$0xff]   ;;  %v2264_v16 = vrot.slane %v198_v10, %v204_v49 }
  0x12   :  { %v1808_v57 = vld [vmem:[%s2671_s1 + $0xc4] ss:$8 sps:$4 sm:$0xff]   ;;  %v222_v60 = vrot.slane %v21_v56, %v204_v49  ;;  %v1812_v62 = vld [vmem:[%s2671_s1 + $0xc0] ss:$8 sps:$4 sm:$0xff]   ;;  %v1816_v1 = vld [vmem:[%s2671_s1 + $0x2d4] ss:$8 sps:$4 sm:$0xff]   ;;  %v215_v11 = vcombine.high %v21_v56, %v21_v56 }
  0x13   :  { %1059 = vmatpush1.bf16.msra.mxu1 %v1764_v18  ;;  %v1810_v58 = vld [vmem:[%s2671_s1 + $0x2c4] ss:$8 sps:$4 sm:$0xff]   ;;  %v213_v59 = vcombine.high %v205_v54, %v205_v54  ;;  %v1813_v63 = vld [vmem:[%s2671_s1 + $0x2c0] ss:$8 sps:$4 sm:$0xff]   ;;  %v1818_v2 = vld [vmem:[%s2671_s1 + $0xd0] ss:$8 sps:$4 sm:$0xff]  }
  0x14   :  { %1141 = vmatpush1.bf16.msra.mxu0 %v1765_v19  ;;  %1060 = vmatprep.subr.bf16.mxu1 %v1766_v20  ;;  %v230_v61 = vcombine.high %v222_v60, %v222_v60  ;;  %v1819_v3 = vld [vmem:[%s2671_s1 + $0x2d0] ss:$8 sps:$4 sm:$0xff]   ;;  %v1820_v4 = vld [vmem:[%s2671_s1 + $0xe4] ss:$8 sps:$4 sm:$0xff]   ;;  %v1824_v6 = vld [vmem:[%s2671_s1 + $0xe0] ss:$8 sps:$4 sm:$0xff]   ;;  %v2266_v17 = vrot.slane %v215_v11, %v204_v49 }
  0x15   :  { %1142 = vmatprep.subr.bf16.mxu0 %v1768_v21  ;;  %1082 = vmatprep.mubr.bf16.mxu1 %v213_v59  ;;  %v1822_v5 = vld [vmem:[%s2671_s1 + $0x2e4] ss:$8 sps:$4 sm:$0xff]   ;;  %v1825_v7 = vld [vmem:[%s2671_s1 + $0x2e0] ss:$8 sps:$4 sm:$0xff]   ;;  %v1826_v8 = vld [vmem:[%s2671_s1 + $0xf4] ss:$8 sps:$4 sm:$0xff]  }
  0x16   :  { %1164 = vmatprep.mubr.bf16.mxu0 %v230_v61  ;;  %v1828_v9 = vld [vmem:[%s2671_s1 + $0x2f4] ss:$8 sps:$4 sm:$0xff]   ;;  %v1830_v12 = vld [vmem:[%s2671_s1 + $0xf0] ss:$8 sps:$4 sm:$0xff]   ;;  %v1835_v14 = vld [vmem:[%s2671_s1 + $0x104] ss:$8 sps:$4 sm:$0xff]  }
  0x17   :  { %1061 = vmatpush1.bf16.msra.mxu1 %v1770_v22  ;;  %v1831_v13 = vld [vmem:[%s2671_s1 + $0x2f0] ss:$8 sps:$4 sm:$0xff]   ;;  %v1839_v15 = vld [vmem:[%s2671_s1 + $0x304] ss:$8 sps:$4 sm:$0xff]   ;;  %v1833_v18 = vld [vmem:[%s2671_s1 + $0x100] ss:$8 sps:$4 sm:$0xff]   ;;  %v214_v22 = vcombine.high %v2264_v16, %v2264_v16 }
  0x18   :  { %1143 = vmatpush1.bf16.msra.mxu0 %v1771_v23  ;;  %1062 = vmatprep.subr.bf16.mxu1 %v1772_v24  ;;  %v1837_v19 = vld [vmem:[%s2671_s1 + $0x300] ss:$8 sps:$4 sm:$0xff]   ;;  %v1842_v20 = vld [vmem:[%s2671_s1 + $0x114] ss:$8 sps:$4 sm:$0xff]   ;;  %v231_v23 = vcombine.high %v2266_v17, %v2266_v17  ;;  %v1840_v24 = vld [vmem:[%s2671_s1 + $0x110] ss:$8 sps:$4 sm:$0xff]  }
  0x19   :  { %1144 = vmatprep.subr.bf16.mxu0 %v1774_v25  ;;  %v1845_v21 = vld [vmem:[%s2671_s1 + $0x314] ss:$8 sps:$4 sm:$0xff]   ;;  %v1843_v25 = vld [vmem:[%s2671_s1 + $0x310] ss:$8 sps:$4 sm:$0xff]   ;;  %v1858_v36 = vld [vmem:[%s2671_s1 + $0x140] ss:$8 sps:$4 sm:$0xff]  }
  0x1a   :  { %v1861_v37 = vld [vmem:[%s2671_s1 + $0x340] ss:$8 sps:$4 sm:$0xff]   ;;  %v1866_v38 = vld [vmem:[%s2671_s1 + $0x154] ss:$8 sps:$4 sm:$0xff]   ;;  %v1872_v43 = vld [vmem:[%s2671_s1 + $0x164] ss:$8 sps:$4 sm:$0xff]  }
  0x1b   :  { %1063 = vmatpush1.bf16.msra.mxu1 %v1776_v26  ;;  %v1848_v26 = vld [vmem:[%s2671_s1 + $0x124] ss:$8 sps:$4 sm:$0xff]   ;;  %v1876_v49 = vld [vmem:[%s2671_s1 + $0x170] ss:$8 sps:$4 sm:$0xff]   ;;  %v1893_v56 = vld [vmem:[%s2671_s1 + $0x394] ss:$8 sps:$4 sm:$0xff]  }
  0x1c   :  { %1145 = vmatpush1.bf16.msra.mxu0 %v1777_v27  ;;  %1064 = vmatprep.subr.bf16.mxu1 %v1778_v28  ;;  %v1851_v27 = vld [vmem:[%s2671_s1 + $0x324] ss:$8 sps:$4 sm:$0xff]   ;;  %v1846_v28 = vld [vmem:[%s2671_s1 + $0x120] ss:$8 sps:$4 sm:$0xff]   ;;  %v1915_v10 = vld [vmem:[%s2671_s1 + $0x3d0] ss:$8 sps:$4 sm:$0xff]  }
  0x1d   :  { %1146 = vmatprep.subr.bf16.mxu0 %v1780_v29  ;;  %v1849_v29 = vld [vmem:[%s2671_s1 + $0x320] ss:$8 sps:$4 sm:$0xff]   ;;  %v1887_v52 = vld [vmem:[%s2671_s1 + $0x384] ss:$8 sps:$4 sm:$0xff]  }
  0x1e   :  { %v1896_v59 = vld [vmem:[%s2671_s1 + $0x1a4] ss:$8 sps:$4 sm:$0xff]   ;;  %v1894_v61 = vld [vmem:[%s2671_s1 + $0x1a0] ss:$8 sps:$4 sm:$0xff]  }
  0x1f   :  { %1065 = vmatpush1.bf16.msra.mxu1 %v1782_v30  ;;  %v1854_v30 = vld [vmem:[%s2671_s1 + $0x134] ss:$8 sps:$4 sm:$0xff]   ;;  %v1920_v11 = vld [vmem:[%s2671_s1 + $0x1e4] ss:$8 sps:$4 sm:$0xff]  }
  0x20   :  { %1147 = vmatpush1.bf16.msra.mxu0 %v1783_v31  ;;  %1066 = vmatprep.subr.bf16.mxu1 %v1784_v32  ;;  %v1857_v31 = vld [vmem:[%s2671_s1 + $0x334] ss:$8 sps:$4 sm:$0xff]   ;;  %v1852_v32 = vld [vmem:[%s2671_s1 + $0x130] ss:$8 sps:$4 sm:$0xff]  }
  0x21   :  { %1148 = vmatprep.subr.bf16.mxu0 %v1786_v33  ;;  %v1855_v33 = vld [vmem:[%s2671_s1 + $0x330] ss:$8 sps:$4 sm:$0xff]  }
  0x23   :  { %1067 = vmatpush1.bf16.msra.mxu1 %v1788_v34  ;;  %v1860_v34 = vld [vmem:[%s2671_s1 + $0x144] ss:$8 sps:$4 sm:$0xff]  }
  0x24   :  { %1149 = vmatpush1.bf16.msra.mxu0 %v1789_v35  ;;  %1068 = vmatprep.subr.bf16.mxu1 %v1790_v39  ;;  %v1863_v35 = vld [vmem:[%s2671_s1 + $0x344] ss:$8 sps:$4 sm:$0xff]   ;;  %v1869_v39 = vld [vmem:[%s2671_s1 + $0x354] ss:$8 sps:$4 sm:$0xff]  }
  0x25   :  { %1150 = vmatprep.subr.bf16.mxu0 %v1792_v40  ;;  %v1864_v40 = vld [vmem:[%s2671_s1 + $0x150] ss:$8 sps:$4 sm:$0xff]  }
  0x27   :  { %1069 = vmatpush1.bf16.msra.mxu1 %v1794_v41  ;;  %v1867_v41 = vld [vmem:[%s2671_s1 + $0x350] ss:$8 sps:$4 sm:$0xff]  }
  0x28   :  { %1151 = vmatpush1.bf16.msra.mxu0 %v1795_v44  ;;  %1070 = vmatprep.subr.bf16.mxu1 %v1796_v45  ;;  %v1875_v44 = vld [vmem:[%s2671_s1 + $0x364] ss:$8 sps:$4 sm:$0xff]   ;;  %v1870_v45 = vld [vmem:[%s2671_s1 + $0x160] ss:$8 sps:$4 sm:$0xff]  }
  0x29   :  { %1152 = vmatprep.subr.bf16.mxu0 %v1798_v46  ;;  %v1873_v46 = vld [vmem:[%s2671_s1 + $0x360] ss:$8 sps:$4 sm:$0xff]  }
  0x2b   :  { %1071 = vmatpush1.bf16.msra.mxu1 %v1800_v47  ;;  %v1878_v47 = vld [vmem:[%s2671_s1 + $0x174] ss:$8 sps:$4 sm:$0xff]  }
  0x2c   :  { %1153 = vmatpush1.bf16.msra.mxu0 %v1801_v48  ;;  %1072 = vmatprep.subr.bf16.mxu1 %v1802_v50  ;;  %v1881_v48 = vld [vmem:[%s2671_s1 + $0x374] ss:$8 sps:$4 sm:$0xff]   ;;  %v1879_v50 = vld [vmem:[%s2671_s1 + $0x370] ss:$8 sps:$4 sm:$0xff]  }
  0x2d   :  { %1154 = vmatprep.subr.bf16.mxu0 %v1804_v51  ;;  %v1884_v51 = vld [vmem:[%s2671_s1 + $0x184] ss:$8 sps:$4 sm:$0xff]  }
  0x2f   :  { %1073 = vmatpush1.bf16.msra.mxu1 %v1806_v53  ;;  %v1882_v53 = vld [vmem:[%s2671_s1 + $0x180] ss:$8 sps:$4 sm:$0xff]  }
  0x30   :  { %1155 = vmatpush1.bf16.msra.mxu0 %v1807_v55  ;;  %1074 = vmatprep.subr.bf16.mxu1 %v1808_v57  ;;  %v1890_v55 = vld [vmem:[%s2671_s1 + $0x194] ss:$8 sps:$4 sm:$0xff]   ;;  %v1888_v57 = vld [vmem:[%s2671_s1 + $0x190] ss:$8 sps:$4 sm:$0xff]  }
  0x31   :  { %1156 = vmatprep.subr.bf16.mxu0 %v1810_v58  ;;  %v1891_v58 = vld [vmem:[%s2671_s1 + $0x390] ss:$8 sps:$4 sm:$0xff]  }
  0x33   :  { %1075 = vmatpush1.bf16.msra.mxu1 %v1812_v62  ;;  %v1897_v62 = vld [vmem:[%s2671_s1 + $0x3a0] ss:$8 sps:$4 sm:$0xff]  }
  0x34   :  { %1157 = vmatpush1.bf16.msra.mxu0 %v1813_v63  ;;  %1076 = vmatprep.subr.bf16.mxu1 %v1814_v0  ;;  %v1902_v63 = vld [vmem:[%s2671_s1 + $0x1b4] ss:$8 sps:$4 sm:$0xff]  }
  0x35   :  { %1158 = vmatprep.subr.bf16.mxu0 %v1816_v1  ;;  %v1905_v0 = vld [vmem:[%s2671_s1 + $0x3b4] ss:$8 sps:$4 sm:$0xff]   ;;  %v1900_v1 = vld [vmem:[%s2671_s1 + $0x1b0] ss:$8 sps:$4 sm:$0xff]  }
  0x37   :  { %1077 = vmatpush1.bf16.msra.mxu1 %v1818_v2  ;;  %v1903_v2 = vld [vmem:[%s2671_s1 + $0x3b0] ss:$8 sps:$4 sm:$0xff]  }
  0x38   :  { %1159 = vmatpush1.bf16.msra.mxu0 %v1819_v3  ;;  %1078 = vmatprep.subr.bf16.mxu1 %v1820_v4  ;;  %v1908_v3 = vld [vmem:[%s2671_s1 + $0x1c4] ss:$8 sps:$4 sm:$0xff]  }
  0x39   :  { %1160 = vmatprep.subr.bf16.mxu0 %v1822_v5  ;;  %v1911_v4 = vld [vmem:[%s2671_s1 + $0x3c4] ss:$8 sps:$4 sm:$0xff]   ;;  %v1906_v5 = vld [vmem:[%s2671_s1 + $0x1c0] ss:$8 sps:$4 sm:$0xff]  }
  0x3b   :  { %1079 = vmatpush1.bf16.msra.mxu1 %v1824_v6  ;;  %v1909_v6 = vld [vmem:[%s2671_s1 + $0x3c0] ss:$8 sps:$4 sm:$0xff]  }
  0x3c   :  { %1161 = vmatpush1.bf16.msra.mxu0 %v1825_v7  ;;  %1080 = vmatprep.subr.bf16.mxu1 %v1826_v8  ;;  %v1914_v7 = vld [vmem:[%s2671_s1 + $0x1d4] ss:$8 sps:$4 sm:$0xff]  }
  0x3d   :  { %1162 = vmatprep.subr.bf16.mxu0 %v1828_v9  ;;  %v1917_v8 = vld [vmem:[%s2671_s1 + $0x3d4] ss:$8 sps:$4 sm:$0xff]   ;;  %v1912_v9 = vld [vmem:[%s2671_s1 + $0x1d0] ss:$8 sps:$4 sm:$0xff]  }
  0x3f   :  { %1081 = vmatpush1.bf16.msra.mxu1 %v1830_v12  ;;  %v1923_v12 = vld [vmem:[%s2671_s1 + $0x3e4] ss:$8 sps:$4 sm:$0xff]  }
  0x40   :  { %1163 = vmatpush1.bf16.msra.mxu0 %v1831_v13  ;;  %1091 = vmatprep.subr.bf16.mxu1 %v1835_v14  ;;  %v1918_v13 = vld [vmem:[%s2671_s1 + $0x1e0] ss:$8 sps:$4 sm:$0xff]  }
  0x41   :  { %1173 = vmatprep.subr.bf16.mxu0 %v1839_v15  ;;  %v1921_v14 = vld [vmem:[%s2671_s1 + $0x3e0] ss:$8 sps:$4 sm:$0xff]   ;;  %v1926_v15 = vld [vmem:[%s2671_s1 + $0x1f4] ss:$8 sps:$4 sm:$0xff]  }
  0x42   :  { %1083 = vmatmul.mubr.bf16.vlgmr.msra.gmra.mrb[0].mxu1 %v205_v54  ;;  %v1885_v54 = vld [vmem:[%s2671_s1 + $0x380] ss:$8 sps:$4 sm:$0xff]  }
  0x43   :  { %1165 = vmatmul.mubr.bf16.vlgmr.msra.gmra.mrb[0].mxu0 %v222_v60  ;;  %1092 = vmatpush1.bf16.msra.mxu1 %v1833_v18  ;;  %v1899_v60 = vld [vmem:[%s2671_s1 + $0x3a4] ss:$8 sps:$4 sm:$0xff]   ;;  %v1929_v18 = vld [vmem:[%s2671_s1 + $0x3f4] ss:$8 sps:$4 sm:$0xff]  }
  0x44   :  { %1174 = vmatpush1.bf16.msra.mxu0 %v1837_v19  ;;  %1093 = vmatprep.subr.bf16.mxu1 %v1842_v20  ;;  %v1924_v19 = vld [vmem:[%s2671_s1 + $0x1f0] ss:$8 sps:$4 sm:$0xff]  }
  0x45   :  { %1175 = vmatprep.subr.bf16.mxu0 %v1845_v21  ;;  %1123 = vmatprep.mubr.bf16.mxu1 %v214_v22  ;;  %v1927_v20 = vld [vmem:[%s2671_s1 + $0x3f0] ss:$8 sps:$4 sm:$0xff]   ;;  %v1932_v21 = vld [vmem:[%s2671_s1 + $0x404] ss:$8 sps:$4 sm:$0xff]  }
  0x46   :  { %1205 = vmatprep.mubr.bf16.mxu0 %v231_v23  ;;  %v2464_v22 = vld.sshfl [vmem:[%s2672_s0 + $0x10] sm:$0x33 pattern:$0x76325410]  ;;  %v1930_v23 = vld [vmem:[%s2671_s1 + $0x400] ss:$8 sps:$4 sm:$0xff]  }
  0x47   :  { %1094 = vmatpush1.bf16.msra.mxu1 %v1840_v24  ;;  %v239_v24 = vcombine.high %v2464_v22, %v2464_v22 }
  0x48   :  { %1176 = vmatpush1.bf16.msra.mxu0 %v1843_v25  ;;  %1095 = vmatprep.subr.bf16.mxu1 %v1848_v26  ;;  %v1935_v25 = vld [vmem:[%s2671_s1 + $0x414] ss:$8 sps:$4 sm:$0xff]   ;;  %v1933_v26 = vld [vmem:[%s2671_s1 + $0x410] ss:$8 sps:$4 sm:$0xff]  }
  0x49   :  { %1177 = vmatprep.subr.bf16.mxu0 %v1851_v27  ;;  %v1938_v27 = vld [vmem:[%s2671_s1 + $0x424] ss:$8 sps:$4 sm:$0xff]  }
  0x4b   :  { %1096 = vmatpush1.bf16.msra.mxu1 %v1846_v28  ;;  %v1936_v28 = vld [vmem:[%s2671_s1 + $0x420] ss:$8 sps:$4 sm:$0xff]  }
  0x4c   :  { %1178 = vmatpush1.bf16.msra.mxu0 %v1849_v29  ;;  %1097 = vmatprep.subr.bf16.mxu1 %v1854_v30  ;;  %v1944_v29 = vld [vmem:[%s2671_s1 + $0x444] ss:$8 sps:$4 sm:$0xff]   ;;  %v1942_v30 = vld [vmem:[%s2671_s1 + $0x440] ss:$8 sps:$4 sm:$0xff]  }
  0x4d   :  { %1179 = vmatprep.subr.bf16.mxu0 %v1857_v31  ;;  %v1947_v31 = vld [vmem:[%s2671_s1 + $0x454] ss:$8 sps:$4 sm:$0xff]  }
  0x4f   :  { %1098 = vmatpush1.bf16.msra.mxu1 %v1852_v32  ;;  %v1945_v32 = vld [vmem:[%s2671_s1 + $0x450] ss:$8 sps:$4 sm:$0xff]  }
  0x50   :  { %1180 = vmatpush1.bf16.msra.mxu0 %v1855_v33  ;;  %1099 = vmatprep.subr.bf16.mxu1 %v1860_v34  ;;  %v1950_v33 = vld [vmem:[%s2671_s1 + $0x464] ss:$8 sps:$4 sm:$0xff]   ;;  %v1948_v34 = vld [vmem:[%s2671_s1 + $0x460] ss:$8 sps:$4 sm:$0xff]  }
  0x51   :  { %1181 = vmatprep.subr.bf16.mxu0 %v1863_v35  ;;  %v1953_v35 = vld [vmem:[%s2671_s1 + $0x474] ss:$8 sps:$4 sm:$0xff]  }
  0x53   :  { %1100 = vmatpush1.bf16.msra.mxu1 %v1858_v36  ;;  %v1951_v36 = vld [vmem:[%s2671_s1 + $0x470] ss:$8 sps:$4 sm:$0xff]  }
  0x54   :  { %1182 = vmatpush1.bf16.msra.mxu0 %v1861_v37  ;;  %1101 = vmatprep.subr.bf16.mxu1 %v1866_v38  ;;  %v1956_v37 = vld [vmem:[%s2671_s1 + $0x484] ss:$8 sps:$4 sm:$0xff]   ;;  %v1954_v38 = vld [vmem:[%s2671_s1 + $0x480] ss:$8 sps:$4 sm:$0xff]  }
  0x55   :  { %1183 = vmatprep.subr.bf16.mxu0 %v1869_v39  ;;  %v1959_v39 = vld [vmem:[%s2671_s1 + $0x494] ss:$8 sps:$4 sm:$0xff]  }
  0x57   :  { %1102 = vmatpush1.bf16.msra.mxu1 %v1864_v40  ;;  %v1957_v40 = vld [vmem:[%s2671_s1 + $0x490] ss:$8 sps:$4 sm:$0xff]  }
  0x58   :  { %1184 = vmatpush1.bf16.msra.mxu0 %v1867_v41  ;;  %1103 = vmatprep.subr.bf16.mxu1 %v1872_v43  ;;  %v1962_v41 = vld [vmem:[%s2671_s1 + $0x4a4] ss:$8 sps:$4 sm:$0xff]   ;;  %v1960_v43 = vld [vmem:[%s2671_s1 + $0x4a0] ss:$8 sps:$4 sm:$0xff]  }
  0x59   :  { %1185 = vmatprep.subr.bf16.mxu0 %v1875_v44  ;;  %v1965_v44 = vld [vmem:[%s2671_s1 + $0x4b4] ss:$8 sps:$4 sm:$0xff]  }
  0x5b   :  { %1104 = vmatpush1.bf16.msra.mxu1 %v1870_v45  ;;  %v1963_v45 = vld [vmem:[%s2671_s1 + $0x4b0] ss:$8 sps:$4 sm:$0xff]  }
  0x5c   :  { %1186 = vmatpush1.bf16.msra.mxu0 %v1873_v46  ;;  %1105 = vmatprep.subr.bf16.mxu1 %v1878_v47  ;;  %v1968_v46 = vld [vmem:[%s2671_s1 + $0x4c4] ss:$8 sps:$4 sm:$0xff]   ;;  %v1966_v47 = vld [vmem:[%s2671_s1 + $0x4c0] ss:$8 sps:$4 sm:$0xff]  }
  0x5d   :  { %1187 = vmatprep.subr.bf16.mxu0 %v1881_v48  ;;  %v1971_v48 = vld [vmem:[%s2671_s1 + $0x4d4] ss:$8 sps:$4 sm:$0xff]  }
  0x5f   :  { %1106 = vmatpush1.bf16.msra.mxu1 %v1876_v49  ;;  %v1969_v49 = vld [vmem:[%s2671_s1 + $0x4d0] ss:$8 sps:$4 sm:$0xff]  }
  0x60   :  { %1188 = vmatpush1.bf16.msra.mxu0 %v1879_v50  ;;  %1107 = vmatprep.subr.bf16.mxu1 %v1884_v51  ;;  %v1974_v50 = vld [vmem:[%s2671_s1 + $0x4e4] ss:$8 sps:$4 sm:$0xff]   ;;  %v1972_v51 = vld [vmem:[%s2671_s1 + $0x4e0] ss:$8 sps:$4 sm:$0xff]  }
  0x61   :  { %1189 = vmatprep.subr.bf16.mxu0 %v1887_v52  ;;  %v1977_v52 = vld [vmem:[%s2671_s1 + $0x4f4] ss:$8 sps:$4 sm:$0xff]  }
  0x63   :  { %1108 = vmatpush1.bf16.msra.mxu1 %v1882_v53  ;;  %v1975_v53 = vld [vmem:[%s2671_s1 + $0x4f0] ss:$8 sps:$4 sm:$0xff]  }
  0x64   :  { %1190 = vmatpush1.bf16.msra.mxu0 %v1885_v54  ;;  %1109 = vmatprep.subr.bf16.mxu1 %v1890_v55  ;;  %v1978_v54 = vld [vmem:[%s2673_s3] ss:$8 sps:$4 sm:$0xff]   ;;  %v1980_v55 = vld [vmem:[%s2673_s3 + $0x4] ss:$8 sps:$4 sm:$0xff]  }
  0x65   :  { %1191 = vmatprep.subr.bf16.mxu0 %v1893_v56  ;;  %v1983_v56 = vld [vmem:[%s2673_s3 + $0x14] ss:$8 sps:$4 sm:$0xff]  }
  0x67   :  { %1110 = vmatpush1.bf16.msra.mxu1 %v1888_v57  ;;  %v1981_v57 = vld [vmem:[%s2673_s3 + $0x10] ss:$8 sps:$4 sm:$0xff]  }
  0x68   :  { %1192 = vmatpush1.bf16.msra.mxu0 %v1891_v58  ;;  %1111 = vmatprep.subr.bf16.mxu1 %v1896_v59  ;;  %v1986_v58 = vld [vmem:[%s2673_s3 + $0x24] ss:$8 sps:$4 sm:$0xff]   ;;  %v1984_v59 = vld [vmem:[%s2673_s3 + $0x20] ss:$8 sps:$4 sm:$0xff]  }
  0x69   :  { %1193 = vmatprep.subr.bf16.mxu0 %v1899_v60  ;;  %v1989_v60 = vld [vmem:[%s2673_s3 + $0x34] ss:$8 sps:$4 sm:$0xff]  }
  0x6b   :  { %1112 = vmatpush1.bf16.msra.mxu1 %v1894_v61  ;;  %v1987_v61 = vld [vmem:[%s2673_s3 + $0x30] ss:$8 sps:$4 sm:$0xff]  }
  0x6c   :  { %1194 = vmatpush1.bf16.msra.mxu0 %v1897_v62  ;;  %1113 = vmatprep.subr.bf16.mxu1 %v1902_v63  ;;  %v1992_v62 = vld [vmem:[%s2673_s3 + $0x44] ss:$8 sps:$4 sm:$0xff]   ;;  %v1990_v63 = vld [vmem:[%s2673_s3 + $0x40] ss:$8 sps:$4 sm:$0xff]  }
  0x6d   :  { %1195 = vmatprep.subr.bf16.mxu0 %v1905_v0  ;;  %v1995_v0 = vld [vmem:[%s2673_s3 + $0x54] ss:$8 sps:$4 sm:$0xff]  }
  0x6f   :  { %1114 = vmatpush1.bf16.msra.mxu1 %v1900_v1  ;;  %v1993_v1 = vld [vmem:[%s2673_s3 + $0x50] ss:$8 sps:$4 sm:$0xff]  }
  0x70   :  { %1196 = vmatpush1.bf16.msra.mxu0 %v1903_v2  ;;  %1115 = vmatprep.subr.bf16.mxu1 %v1908_v3  ;;  %v1998_v2 = vld [vmem:[%s2673_s3 + $0x64] ss:$8 sps:$4 sm:$0xff]   ;;  %v1996_v3 = vld [vmem:[%s2673_s3 + $0x60] ss:$8 sps:$4 sm:$0xff]  }
  0x71   :  { %1197 = vmatprep.subr.bf16.mxu0 %v1911_v4  ;;  %v2001_v4 = vld [vmem:[%s2673_s3 + $0x74] ss:$8 sps:$4 sm:$0xff]  }
  0x73   :  { %1116 = vmatpush1.bf16.msra.mxu1 %v1906_v5  ;;  %v1999_v5 = vld [vmem:[%s2673_s3 + $0x70] ss:$8 sps:$4 sm:$0xff]  }
  0x74   :  { %1198 = vmatpush1.bf16.msra.mxu0 %v1909_v6  ;;  %1117 = vmatprep.subr.bf16.mxu1 %v1914_v7  ;;  %v2004_v6 = vld [vmem:[%s2673_s3 + $0x84] ss:$8 sps:$4 sm:$0xff]   ;;  %v2002_v7 = vld [vmem:[%s2673_s3 + $0x80] ss:$8 sps:$4 sm:$0xff]  }
  0x75   :  { %1199 = vmatprep.subr.bf16.mxu0 %v1917_v8  ;;  %v2007_v8 = vld [vmem:[%s2673_s3 + $0x94] ss:$8 sps:$4 sm:$0xff]  }
  0x77   :  { %1118 = vmatpush1.bf16.msra.mxu1 %v1912_v9  ;;  %v2005_v9 = vld [vmem:[%s2673_s3 + $0x90] ss:$8 sps:$4 sm:$0xff]  }
  0x78   :  { %1200 = vmatpush1.bf16.msra.mxu0 %v1915_v10  ;;  %1119 = vmatprep.subr.bf16.mxu1 %v1920_v11  ;;  %v2010_v10 = vld [vmem:[%s2673_s3 + $0xa4] ss:$8 sps:$4 sm:$0xff]   ;;  %v2008_v11 = vld [vmem:[%s2673_s3 + $0xa0] ss:$8 sps:$4 sm:$0xff]  }
  0x79   :  { %1201 = vmatprep.subr.bf16.mxu0 %v1923_v12  ;;  %v2013_v12 = vld [vmem:[%s2673_s3 + $0xb4] ss:$8 sps:$4 sm:$0xff]  }
  0x7b   :  { %1120 = vmatpush1.bf16.msra.mxu1 %v1918_v13  ;;  %v2011_v13 = vld [vmem:[%s2673_s3 + $0xb0] ss:$8 sps:$4 sm:$0xff]  }
  0x7c   :  { %1202 = vmatpush1.bf16.msra.mxu0 %v1921_v14  ;;  %1121 = vmatprep.subr.bf16.mxu1 %v1926_v15  ;;  %v2016_v14 = vld [vmem:[%s2673_s3 + $0xc4] ss:$8 sps:$4 sm:$0xff]   ;;  %v2014_v15 = vld [vmem:[%s2673_s3 + $0xc0] ss:$8 sps:$4 sm:$0xff]  }
  0x7d   :  { %1203 = vmatprep.subr.bf16.mxu0 %v1929_v18  ;;  %v2019_v18 = vld [vmem:[%s2673_s3 + $0xd4] ss:$8 sps:$4 sm:$0xff]  }
  0x7f   :  { %1122 = vmatpush1.bf16.msra.mxu1 %v1924_v19  ;;  %v2017_v19 = vld [vmem:[%s2673_s3 + $0xd0] ss:$8 sps:$4 sm:$0xff]  }
  0x80   :  { %1204 = vmatpush1.bf16.msra.mxu0 %v1927_v20  ;;  %1463 = vmatprep.subr.bf16.mxu1 %v1980_v55  ;;  %v2022_v20 = vld [vmem:[%s2673_s3 + $0xe4] ss:$8 sps:$4 sm:$0xff]  }
  0x81   :  { %1214 = vmatprep.subr.bf16.mxu0 %v1932_v21  ;;  %v2020_v21 = vld [vmem:[%s2673_s3 + $0xe0] ss:$8 sps:$4 sm:$0xff]  }
  0x82   :  { %1124 = vmatmul.mubr.bf16.vlgmr.msra.gmra.mrb[0].mxu1 %v2264_v16  ;;  %v1941_v16 = vld [vmem:[%s2671_s1 + $0x434] ss:$8 sps:$4 sm:$0xff]  }
  0x83   :  { %1206 = vmatmul.mubr.bf16.vlgmr.msra.gmra.mrb[0].mxu0 %v2266_v17  ;;  %v1939_v17 = vld [vmem:[%s2671_s1 + $0x430] ss:$8 sps:$4 sm:$0xff]   ;;  %1464 = vmatpush1.bf16.msra.mxu1 %v1978_v54 }
  0x84   :  { %1215 = vmatpush1.bf16.msra.mxu0 %v1930_v23  ;;  %1246 = vmatprep.mubr.bf16.mxu0 %v239_v24  ;;  %v2023_v23 = vld [vmem:[%s2673_s3 + $0xf0] ss:$8 sps:$4 sm:$0xff]  }
  0x85   :  { %1216 = vmatprep.subr.bf16.mxu0 %v1935_v25  ;;  %1465 = vmatprep.subr.bf16.mxu1 %v1983_v56 }
  0x87   :  { %1466 = vmatpush1.bf16.msra.mxu1 %v1981_v57 }
  0x88   :  { %1217 = vmatpush1.bf16.msra.mxu0 %v1933_v26  ;;  %1467 = vmatprep.subr.bf16.mxu1 %v1986_v58 }
  0x89   :  { %1218 = vmatprep.subr.bf16.mxu0 %v1938_v27 }
  0x8b   :  { %1468 = vmatpush1.bf16.msra.mxu1 %v1984_v59 }
  0x8c   :  { %1219 = vmatpush1.bf16.msra.mxu0 %v1936_v28  ;;  %1469 = vmatprep.subr.bf16.mxu1 %v1989_v60  ;;  %v187_v28 = vsub.s32 0, %v2174_v42 }
  0x8d   :  { %1220 = vmatprep.subr.bf16.mxu0 %v1941_v16  ;;  %v183_v16 = vld [vmem:[%s2674_s2] sm:$0x3] }
  0x8f   :  { %1470 = vmatpush1.bf16.msra.mxu1 %v1987_v61 }
  0x90   :  { %1221 = vmatpush1.bf16.msra.mxu0 %v1939_v17  ;;  %1471 = vmatprep.subr.bf16.mxu1 %v1992_v62  ;;  %v191_v17 = vsub.s32 1, %v2174_v42  ;;  %v1291_v42 = vld [vmem:[%s2675_s4] sm:$0x3] }
  0x91   :  { %1222 = vmatprep.subr.bf16.mxu0 %v1944_v29  ;;  %v188_v29 = vrot.slane %v183_v16, %v187_v28 }
  0x93   :  { %1472 = vmatpush1.bf16.msra.mxu1 %v1990_v63 }
  0x94   :  { %1223 = vmatpush1.bf16.msra.mxu0 %v1942_v30  ;;  %1473 = vmatprep.subr.bf16.mxu1 %v1995_v0  ;;  %v192_v30 = vrot.slane %v183_v16, %v191_v17 }
  0x95   :  { %1224 = vmatprep.subr.bf16.mxu0 %v1947_v31 }
  0x97   :  { %1474 = vmatpush1.bf16.msra.mxu1 %v1993_v1 }
  0x98   :  { %1225 = vmatpush1.bf16.msra.mxu0 %v1945_v32  ;;  %1475 = vmatprep.subr.bf16.mxu1 %v1998_v2 }
  0x99   :  { %1226 = vmatprep.subr.bf16.mxu0 %v1950_v33 }
  0x9b   :  { %1476 = vmatpush1.bf16.msra.mxu1 %v1996_v3 }
  0x9c   :  { %1227 = vmatpush1.bf16.msra.mxu0 %v1948_v34  ;;  %1477 = vmatprep.subr.bf16.mxu1 %v2001_v4 }
  0x9d   :  { %1228 = vmatprep.subr.bf16.mxu0 %v1953_v35 }
  0x9f   :  { %1478 = vmatpush1.bf16.msra.mxu1 %v1999_v5 }
  0xa0   :  { %1229 = vmatpush1.bf16.msra.mxu0 %v1951_v36  ;;  %1479 = vmatprep.subr.bf16.mxu1 %v2004_v6 }
  0xa1   :  { %1230 = vmatprep.subr.bf16.mxu0 %v1956_v37 }
  0xa3   :  { %1480 = vmatpush1.bf16.msra.mxu1 %v2002_v7 }
  0xa4   :  { %1231 = vmatpush1.bf16.msra.mxu0 %v1954_v38  ;;  %1481 = vmatprep.subr.bf16.mxu1 %v2007_v8 }
  0xa5   :  { %1232 = vmatprep.subr.bf16.mxu0 %v1959_v39 }
  0xa7   :  { %1482 = vmatpush1.bf16.msra.mxu1 %v2005_v9 }
  0xa8   :  { %1233 = vmatpush1.bf16.msra.mxu0 %v1957_v40  ;;  %1483 = vmatprep.subr.bf16.mxu1 %v2010_v10 }
  0xa9   :  { %1234 = vmatprep.subr.bf16.mxu0 %v1962_v41 }
  0xab   :  { %1484 = vmatpush1.bf16.msra.mxu1 %v2008_v11 }
  0xac   :  { %1235 = vmatpush1.bf16.msra.mxu0 %v1960_v43  ;;  %1485 = vmatprep.subr.bf16.mxu1 %v2013_v12 }
  0xad   :  { %1236 = vmatprep.subr.bf16.mxu0 %v1965_v44  ;;  %v1296_v44 = vrot.slane %v1291_v42, %v187_v28 }
  0xaf   :  { %1486 = vmatpush1.bf16.msra.mxu1 %v2011_v13 }
  0xb0   :  { %1237 = vmatpush1.bf16.msra.mxu0 %v1963_v45  ;;  %1487 = vmatprep.subr.bf16.mxu1 %v2016_v14  ;;  %v1300_v45 = vrot.slane %v1291_v42, %v191_v17 }
  0xb1   :  { %1238 = vmatprep.subr.bf16.mxu0 %v1968_v46 }
  0xb3   :  { %1488 = vmatpush1.bf16.msra.mxu1 %v2014_v15 }
  0xb4   :  { %1239 = vmatpush1.bf16.msra.mxu0 %v1966_v47  ;;  %1489 = vmatprep.subr.bf16.mxu1 %v2019_v18 }
  0xb5   :  { %1240 = vmatprep.subr.bf16.mxu0 %v1971_v48 }
  0xb7   :  { %1490 = vmatpush1.bf16.msra.mxu1 %v2017_v19 }
  0xb8   :  { %1241 = vmatpush1.bf16.msra.mxu0 %v1969_v49  ;;  %1491 = vmatprep.subr.bf16.mxu1 %v2022_v20 }
  0xb9   :  { %1242 = vmatprep.subr.bf16.mxu0 %v1974_v50 }
  0xbb   :  { %1492 = vmatpush1.bf16.msra.mxu1 %v2020_v21 }
  0xbc   :  { %1243 = vmatpush1.bf16.msra.mxu0 %v1972_v51 }
  0xbd   :  { %1244 = vmatprep.subr.bf16.mxu0 %v1977_v52 }
  0xc0   :  { %1245 = vmatpush1.bf16.msra.mxu0 %v1975_v53 }
  0xc3   :  { %1247 = vmatmul.mubr.bf16.vlgmr.msra.gmra.mrb[0].mxu0 %v2464_v22  ;;  %v2025_v22 = vld [vmem:[%s2673_s3 + $0xf4] ss:$8 sps:$4 sm:$0xff]  }
  0xc4   :  { %1493 = vmatprep.subr.bf16.mxu1 %v2025_v22 }
  0xc5   :  { %1494 = vmatpush1.bf16.msra.mxu1 %v2023_v23 }
 0x155   :  { %v1125_v24 = vpop.f32.mrb[0].mxu1 }
 0x156   :  { %v1127_v25 = vpop.f32.mrb[1].mxu1  ;;  %v1719_v31 = vadd.f32 %v1125_v24, %v188_v29 }
 0x157   :  { %v1129_v26 = vpop.f32.mrb[2].mxu1  ;;  %v1721_v32 = vadd.f32 %v1127_v25, %v192_v30 }
 0x158   :  { %v1130_v27 = vpop.f32.mrb[3].mxu1 }
 0x196   :  { %v1248_v33 = vpop.f32.mrb[0].mxu0 }
 0x197   :  { %v1720_v34 = vadd.f32 %v1719_v31, %v1248_v33  ;;  %v1250_v35 = vpop.f32.mrb[1].mxu0 }
 0x198   :  { %v1722_v36 = vadd.f32 %v1721_v32, %v1250_v35  ;;  %v1252_v37 = vpop.f32.mrb[2].mxu0 }
 0x199   :  { %v1255_v38 = vmax.f32 %v1720_v34, 0.0  ;;  %v1253_v39 = vpop.f32.mrb[3].mxu0 }
 0x19a   :  { %v1256_v40 = vmax.f32 %v1722_v36, 0.0 }
 0x19b   :  { %v1257_v43 = vpack.c.bf16 %v1255_v38, %v1255_v38 }
 0x19c   :  { %v1258_v41 = vpack.c.bf16 %v1256_v40, %v1256_v40 }
 0x19e   :  { %1495 = vmatprep.mubr.bf16.mxu1 %v1258_v41 }
 0x19f   :  { %1496 = vmatmul.mubr.bf16.vlgmr.msra.gmra.mrb[4].mxu1 %v1257_v43 }
 0x272   :  { %v1497_v46 = vpop.f32.mrb[4].mxu1 }
 0x273   :  { %v1498_v47 = vadd.f32 %v1497_v46, %v1296_v44  ;;  %v1499_v48 = vpop.f32.mrb[5].mxu1 }
 0x274   :  { %v1500_v49 = vadd.f32 %v1499_v48, %v1300_v45  ;;  %v1501_v50 = vpop.f32.mrb[6].mxu1 }
 0x275   :  { %v1504_v51 = vmax.f32 %v1498_v47, 0.0  ;;  %v1502_v52 = vpop.f32.mrb[7].mxu1 }
 0x276   :  { %v1505_v53 = vmax.f32 %v1500_v49, 0.0 }
 0x278   :  { %v1717_v54 = vpack.c.bf16 %v1505_v53, %v1504_v51 }
 0x27a   :  { %1718 = vst.sshfl [vmem:[%s2676_s5] sm:$0x33 pattern:$0x76325410] %v1717_v54 }

// kernel: neg.10
= control target key start
LH: loop header
LB: loop body
LE: loop exit
PB: predicated region body
PF: predicated region fallthrough
CT: control target
= control target key end

     0   :  { %s120_s0 = inlined_call_operand.vmem [shape: f32[2,32,7], index: 0, kind: input, shape index: {}]   ;;  %s121_s1 = inlined_call_operand.vmem [shape: f32[2,32,7], index: 1, kind: output, shape index: {}]  }
   0x1   :  { %v2_v0 = vld [vmem:[%s120_s0] sm:$0x3]  ;;  %v56_v1 = vld [vmem:[%s120_s0 + $0x2] sm:$0x3]  ;;  %v58_v2 = vld [vmem:[%s120_s0 + $0x4] sm:$0x3] }
   0x2   :  { %v5_v3 = vxor.u32 2147483648, %v2_v0  ;;  %v12_v4 = vxor.u32 2147483648, %v56_v1  ;;  %v20_v5 = vxor.u32 2147483648, %v58_v2  ;;  %v60_v6 = vld [vmem:[%s120_s0 + $0x6] sm:$0x3] }
   0x3   :  { %v28_v7 = vxor.u32 2147483648, %v60_v6  ;;  %v62_v8 = vld [vmem:[%s120_s0 + $0x8] sm:$0x3]  ;;  %v64_v9 = vld [vmem:[%s120_s0 + $0xa] sm:$0x3] }
   0x4   :  { %7 = vst [vmem:[%s121_s1] sm:$0x3] %v5_v3  ;;  %57 = vst [vmem:[%s121_s1 + $0x2] sm:$0x3] %v12_v4  ;;  %v36_v10 = vxor.u32 2147483648, %v62_v8  ;;  %v44_v11 = vxor.u32 2147483648, %v64_v9 }
   0x5   :  { %59 = vst [vmem:[%s121_s1 + $0x4] sm:$0x3] %v20_v5  ;;  %v66_v12 = vld [vmem:[%s120_s0 + $0xc] sm:$0x3]  ;;  %61 = vst [vmem:[%s121_s1 + $0x6] sm:$0x3] %v28_v7 }
   0x6   :  { %v52_v13 = vxor.u32 2147483648, %v66_v12  ;;  %63 = vst [vmem:[%s121_s1 + $0x8] sm:$0x3] %v36_v10  ;;  %65 = vst [vmem:[%s121_s1 + $0xa] sm:$0x3] %v44_v11 }
   0x8   :  { %67 = vst [vmem:[%s121_s1 + $0xc] sm:$0x3] %v52_v13 }

// kernel: pointnet_forward.15
= control target key start
LH: loop header
LB: loop body
LE: loop exit
PB: predicated region body
PF: predicated region fallthrough
CT: control target
= control target key end

     0   :  { %s1097_s18 = smov 0   ;;  %s1320_s0 = inlined_call_operand.vmem [shape: bf16[14,384], index: 0, kind: input, shape index: {}]   ;;  %s1321_s1 = inlined_call_operand.vmem [shape: bf16[384,256], index: 1, kind: input, shape index: {}]   ;;  %s1322_s2 = inlined_call_operand.vmem [shape: f32[1,256], index: 2, kind: input, shape index: {}]   ;;  %s1323_s3 = inlined_call_operand.vmem [shape: bf16[256,128], index: 3, kind: input, shape index: {}]   ;;  %s1324_s4 = inlined_call_operand.vmem [shape: f32[1,128], index: 4, kind: input, shape index: {}]   ;;  %s1325_s5 = inlined_call_operand.vmem [shape: bf16[14,128], index: 5, kind: output, shape index: {}]  }
   0x1 LB: > { %s854_s19 = sadd.s32 4294967295, %s1064_s18   ;;  %p858_p0 = scmp.ge.s32.totalorder %s1064_s18, 1  ;;  %s1064_s18 = sphi %s1097_s18, %s15_s18  }
   0x2   : > { %p187_p1 = scmp.lt.s32.totalorder %s1064_s18, 3 }
   0x4   : > { %p188_p2 = pnand %p858_p0, %p187_p1 }
   0x5   : > { %v967_v0 = vld [vmem:[%s1321_s1 + $0x4] ss:$8 sps:$4 sm:$0xff] (!%p188_p2)   ;;  %v969_v1 = vld [vmem:[%s1321_s1] ss:$8 sps:$4 sm:$0xff] (!%p188_p2)   ;;  %v1066_v2 = vmov (!%p188_p2), 0   ;;  %p214_p3 = scmp.lt.s32.totalorder (!%p188_p2), %s854_s19, 1 }
   0x6   : > { %191 = sbr.rel (%p188_p2) target bundleno = 514 (0x202), region = 40  ;;  %610 = vmatprep.mubr.bf16.mxu1 (!%p188_p2), %v1066_v2  ;;  %537 = vmatprep.subr.bf16.mxu0 (!%p188_p2), %v967_v0  ;;  %v970_v3 = vld [vmem:[%s1321_s1 + $0x14] ss:$8 sps:$4 sm:$0xff] (!%p188_p2)   ;;  %v972_v4 = vld [vmem:[%s1321_s1 + $0x10] ss:$8 sps:$4 sm:$0xff] (!%p188_p2)   ;;  %v1042_v42 = vld [vmem:[%s1323_s3 + $0x40] sm:$0xff] (!%p188_p2)  }
   0x7   : > { %538 = vmatpush1.bf16.msra.mxu0 (!%p188_p2), %v969_v1  ;;  %v973_v5 = vld [vmem:[%s1321_s1 + $0x24] ss:$8 sps:$4 sm:$0xff] (!%p188_p2)   ;;  %v975_v6 = vld [vmem:[%s1321_s1 + $0x20] ss:$8 sps:$4 sm:$0xff] (!%p188_p2)   ;;  %v976_v7 = vld [vmem:[%s1321_s1 + $0x34] ss:$8 sps:$4 sm:$0xff] (!%p188_p2)  }
   0x8   : > { %539 = vmatprep.subr.bf16.mxu0 (!%p188_p2), %v970_v3  ;;  %v978_v8 = vld [vmem:[%s1321_s1 + $0x30] ss:$8 sps:$4 sm:$0xff] (!%p188_p2)   ;;  %v991_v9 = vld [vmem:[%s1321_s1 + $0x104] ss:$8 sps:$4 sm:$0xff] (!%p188_p2)   ;;  %v995_v11 = vld [vmem:[%s1321_s1 + $0x100] ss:$8 sps:$4 sm:$0xff] (!%p188_p2)  }
   0x9   : > { %v979_v10 = vld [vmem:[%s1321_s1 + $0x44] ss:$8 sps:$4 sm:$0xff] (!%p188_p2)   ;;  %578 = vmatprep.subr.bf16.mxu1 (!%p188_p2), %v991_v9  ;;  %v997_v12 = vld [vmem:[%s1321_s1 + $0x114] ss:$8 sps:$4 sm:$0xff] (!%p188_p2)   ;;  %v981_v13 = vld [vmem:[%s1321_s1 + $0x40] ss:$8 sps:$4 sm:$0xff] (!%p188_p2)   ;;  %v276_v9 = vlaneseq (!%p188_p2) }
   0xa   : > { %579 = vmatpush1.bf16.msra.mxu1 (!%p188_p2), %v995_v11  ;;  %v982_v14 = vld [vmem:[%s1321_s1 + $0x54] ss:$8 sps:$4 sm:$0xff] (!%p188_p2)   ;;  %v1001_v15 = vld [vmem:[%s1321_s1 + $0x110] ss:$8 sps:$4 sm:$0xff] (!%p188_p2)   ;;  %v1003_v16 = vld [vmem:[%s1321_s1 + $0x124] ss:$8 sps:$4 sm:$0xff] (!%p188_p2)  }
   0xb   : > { %540 = vmatpush1.bf16.msra.mxu0 (!%p188_p2), %v972_v4  ;;  %580 = vmatprep.subr.bf16.mxu1 (!%p188_p2), %v997_v12  ;;  %v984_v17 = vld [vmem:[%s1321_s1 + $0x50] ss:$8 sps:$4 sm:$0xff] (!%p188_p2)   ;;  %v1007_v18 = vld [vmem:[%s1321_s1 + $0x120] ss:$8 sps:$4 sm:$0xff] (!%p188_p2)   ;;  %v1009_v19 = vld [vmem:[%s1321_s1 + $0x134] ss:$8 sps:$4 sm:$0xff] (!%p188_p2)  }
   0xc   : > { %541 = vmatprep.subr.bf16.mxu0 (!%p188_p2), %v973_v5  ;;  %v985_v20 = vld [vmem:[%s1321_s1 + $0x64] ss:$8 sps:$4 sm:$0xff] (!%p188_p2)   ;;  %v1013_v21 = vld [vmem:[%s1321_s1 + $0x130] ss:$8 sps:$4 sm:$0xff] (!%p188_p2)   ;;  %v987_v22 = vld [vmem:[%s1321_s1 + $0x60] ss:$8 sps:$4 sm:$0xff] (!%p188_p2)  }
   0xd   : > { %s1327_s19 = smov (!%p214_p3, %s854_s19), 1  ;;  %v1015_v23 = vld [vmem:[%s1321_s1 + $0x144] ss:$8 sps:$4 sm:$0xff]   ;;  %v988_v24 = vld [vmem:[%s1321_s1 + $0x74] ss:$8 sps:$4 sm:$0xff]  }
   0xe   : > { %581 = vmatpush1.bf16.msra.mxu1 %v1001_v15  ;;  %s957_s22 = smul.u32 12, %s1327_s19  ;;  %v990_v25 = vld [vmem:[%s1321_s1 + $0x70] ss:$8 sps:$4 sm:$0xff]   ;;  %v1019_v26 = vld [vmem:[%s1321_s1 + $0x140] ss:$8 sps:$4 sm:$0xff]   ;;  %s860_s17 = sshll.u32 %s1327_s19, 2 }
   0xf   : > { %542 = vmatpush1.bf16.msra.mxu0 %v975_v6  ;;  %582 = vmatprep.subr.bf16.mxu1 %v1003_v16  ;;  %v1021_v27 = vld [vmem:[%s1321_s1 + $0x154] ss:$8 sps:$4 sm:$0xff]   ;;  %v993_v28 = vld [vmem:[%s1321_s1 + $0x84] ss:$8 sps:$4 sm:$0xff]   ;;  %v1025_v29 = vld [vmem:[%s1321_s1 + $0x150] ss:$8 sps:$4 sm:$0xff]   ;;  %s222_s21 = scalar_lea.vmem %s1325_s5, %s860_s17 }
  0x10   : > { %543 = vmatprep.subr.bf16.mxu0 %v976_v7  ;;  %s218_s8 = scalar_lea.vmem %s1320_s0, %s957_s22  ;;  %v996_v30 = vld [vmem:[%s1321_s1 + $0x80] ss:$8 sps:$4 sm:$0xff]   ;;  %v1027_v31 = vld [vmem:[%s1321_s1 + $0x164] ss:$8 sps:$4 sm:$0xff]   ;;  %v999_v32 = vld [vmem:[%s1321_s1 + $0x94] ss:$8 sps:$4 sm:$0xff]  }
  0x11   : > { %v224_v33 = vld [vmem:[%s218_s8] sm:$0xff]  ;;  %v1002_v34 = vld [vmem:[%s1321_s1 + $0x90] ss:$8 sps:$4 sm:$0xff]   ;;  %v1033_v37 = vld [vmem:[%s1321_s1 + $0x174] ss:$8 sps:$4 sm:$0xff]  }
  0x12   : > { %583 = vmatpush1.bf16.msra.mxu1 %v1007_v18  ;;  %v862_v35 = vcombine.high %v224_v33, %v224_v33  ;;  %v1031_v36 = vld [vmem:[%s1321_s1 + $0x160] ss:$8 sps:$4 sm:$0xff]   ;;  %v1005_v38 = vld [vmem:[%s1321_s1 + $0xa4] ss:$8 sps:$4 sm:$0xff]   ;;  %v1011_v40 = vld [vmem:[%s1321_s1 + $0xb4] ss:$8 sps:$4 sm:$0xff]   ;;  %v861_v62 = vcombine.low %v224_v33, %v224_v33 }
  0x13   : > { %544 = vmatpush1.bf16.msra.mxu0 %v978_v8  ;;  %584 = vmatprep.subr.bf16.mxu1 %v1009_v19  ;;  %v1008_v39 = vld [vmem:[%s1321_s1 + $0xa0] ss:$8 sps:$4 sm:$0xff]   ;;  %v1037_v41 = vld [vmem:[%s1321_s1 + $0x170] ss:$8 sps:$4 sm:$0xff]   ;;  %v1017_v46 = vld [vmem:[%s1321_s1 + $0xc4] ss:$8 sps:$4 sm:$0xff]  }
  0x14   : > { %545 = vmatprep.subr.bf16.mxu0 %v979_v10  ;;  %569 = vmatprep.mubr.bf16.mxu0 %v862_v35  ;;  %v1041_v43 = vld [vmem:[%s218_s8 + $0x8] ss:$0 sps:$4 sm:$0xff]   ;;  %v1014_v44 = vld [vmem:[%s1321_s1 + $0xb0] ss:$8 sps:$4 sm:$0xff]   ;;  %v1043_v45 = vld [vmem:[%s1323_s3] sm:$0xff]   ;;  %v277_v10 = vshrl.u32 %v276_v9, 7 }
  0x15   : > { %v1044_v47 = vld [vmem:[%s1323_s3 + $0x48] sm:$0xff]   ;;  %v1046_v50 = vld [vmem:[%s1323_s3 + $0x50] sm:$0xff]   ;;  %v1048_v54 = vld [vmem:[%s1323_s3 + $0x58] sm:$0xff]  }
  0x16   : > { %585 = vmatpush1.bf16.msra.mxu1 %v1013_v21  ;;  %v1045_v48 = vld [vmem:[%s1323_s3 + $0x8] sm:$0xff]   ;;  %v1023_v51 = vld [vmem:[%s1321_s1 + $0xd4] ss:$8 sps:$4 sm:$0xff]   ;;  %v1026_v53 = vld [vmem:[%s1321_s1 + $0xd0] ss:$8 sps:$4 sm:$0xff]   ;;  %v278_v11 = vsub.s32 0, %v277_v10 }
  0x17   : > { %546 = vmatpush1.bf16.msra.mxu0 %v981_v13  ;;  %586 = vmatprep.subr.bf16.mxu1 %v1015_v23  ;;  %v1020_v49 = vld [vmem:[%s1321_s1 + $0xc0] ss:$8 sps:$4 sm:$0xff]   ;;  %v1047_v52 = vld [vmem:[%s1323_s3 + $0x10] sm:$0xff]   ;;  %v1029_v55 = vld [vmem:[%s1321_s1 + $0xe4] ss:$8 sps:$4 sm:$0xff]   ;;  %v282_v13 = vsub.s32 1, %v277_v10 }
  0x18   : > { %547 = vmatprep.subr.bf16.mxu0 %v982_v14  ;;  %v1049_v56 = vld [vmem:[%s1323_s3 + $0x18] sm:$0xff]   ;;  %v1032_v57 = vld [vmem:[%s1321_s1 + $0xe0] ss:$8 sps:$4 sm:$0xff]   ;;  %v1054_v1 = vld [vmem:[%s1323_s3 + $0x70] sm:$0xff]  }
  0x19   : > { %v1050_v58 = vld [vmem:[%s1323_s3 + $0x60] sm:$0xff]   ;;  %v1035_v59 = vld [vmem:[%s1321_s1 + $0xf4] ss:$8 sps:$4 sm:$0xff]   ;;  %v1038_v61 = vld [vmem:[%s1321_s1 + $0xf0] ss:$8 sps:$4 sm:$0xff]  }
  0x1a   : > { %587 = vmatpush1.bf16.msra.mxu1 %v1019_v26  ;;  %v1051_v60 = vld [vmem:[%s1323_s3 + $0x20] sm:$0xff]   ;;  %v1052_v63 = vld [vmem:[%s1323_s3 + $0x68] sm:$0xff]   ;;  %v1055_v2 = vld [vmem:[%s1323_s3 + $0x30] sm:$0xff]  }
  0x1b   : > { %548 = vmatpush1.bf16.msra.mxu0 %v984_v17  ;;  %588 = vmatprep.subr.bf16.mxu1 %v1021_v27  ;;  %v1053_v0 = vld [vmem:[%s1323_s3 + $0x28] sm:$0xff]   ;;  %v1056_v3 = vld [vmem:[%s1323_s3 + $0x78] sm:$0xff]   ;;  %v274_v12 = vld [vmem:[%s1322_s2] sm:$0x3] }
  0x1c   : > { %549 = vmatprep.subr.bf16.mxu0 %v985_v20  ;;  %v1057_v4 = vld [vmem:[%s1323_s3 + $0x38] sm:$0xff]   ;;  %v279_v14 = vrot.slane %v274_v12, %v278_v11  ;;  %v283_v15 = vrot.slane %v274_v12, %v282_v13 }
  0x1e   : > { %589 = vmatpush1.bf16.msra.mxu1 %v1025_v29  ;;  %v912_v29 = vld [vmem:[%s1324_s4] ss:$0 sm:$0xff] }
  0x1f   : > { %550 = vmatpush1.bf16.msra.mxu0 %v987_v22  ;;  %590 = vmatprep.subr.bf16.mxu1 %v1027_v31 }
  0x20   : > { %551 = vmatprep.subr.bf16.mxu0 %v988_v24 }
  0x22   : > { %591 = vmatpush1.bf16.msra.mxu1 %v1031_v36 }
  0x23   : > { %552 = vmatpush1.bf16.msra.mxu0 %v990_v25  ;;  %592 = vmatprep.subr.bf16.mxu1 %v1033_v37 }
  0x24   : > { %553 = vmatprep.subr.bf16.mxu0 %v993_v28 }
  0x26   : > { %593 = vmatpush1.bf16.msra.mxu1 %v1037_v41 }
  0x27   : > { %554 = vmatpush1.bf16.msra.mxu0 %v996_v30  ;;  %931 = vmatprep.subr.bf16.mxu1 %v1042_v42 }
  0x28   : > { %555 = vmatprep.subr.bf16.mxu0 %v999_v32 }
  0x29   : > { %611 = vmatmul.mubr.bf16.vlgmr.msra.gmra.mrb[0].mxu1 %v1041_v43 }
  0x2a   : > { %932 = vmatpush3.bf16.msra.mxu1 %v1043_v45 }
  0x2b   : > { %556 = vmatpush1.bf16.msra.mxu0 %v1002_v34  ;;  %933 = vmatprep.subr.bf16.mxu1 %v1044_v47 }
  0x2c   : > { %557 = vmatprep.subr.bf16.mxu0 %v1005_v38 }
  0x2e   : > { %934 = vmatpush3.bf16.msra.mxu1 %v1045_v48 }
  0x2f   : > { %558 = vmatpush1.bf16.msra.mxu0 %v1008_v39  ;;  %935 = vmatprep.subr.bf16.mxu1 %v1046_v50 }
  0x30   : > { %559 = vmatprep.subr.bf16.mxu0 %v1011_v40 }
  0x32   : > { %936 = vmatpush3.bf16.msra.mxu1 %v1047_v52 }
  0x33   : > { %560 = vmatpush1.bf16.msra.mxu0 %v1014_v44  ;;  %937 = vmatprep.subr.bf16.mxu1 %v1048_v54 }
  0x34   : > { %561 = vmatprep.subr.bf16.mxu0 %v1017_v46 }
  0x36   : > { %938 = vmatpush3.bf16.msra.mxu1 %v1049_v56 }
  0x37   : > { %562 = vmatpush1.bf16.msra.mxu0 %v1020_v49  ;;  %939 = vmatprep.subr.bf16.mxu1 %v1050_v58 }
  0x38   : > { %563 = vmatprep.subr.bf16.mxu0 %v1023_v51 }
  0x3a   : > { %940 = vmatpush3.bf16.msra.mxu1 %v1051_v60 }
  0x3b   : > { %564 = vmatpush1.bf16.msra.mxu0 %v1026_v53  ;;  %941 = vmatprep.subr.bf16.mxu1 %v1052_v63 }
  0x3c   : > { %565 = vmatprep.subr.bf16.mxu0 %v1029_v55 }
  0x3e   : > { %942 = vmatpush3.bf16.msra.mxu1 %v1053_v0 }
  0x3f   : > { %566 = vmatpush1.bf16.msra.mxu0 %v1032_v57  ;;  %943 = vmatprep.subr.bf16.mxu1 %v1054_v1 }
  0x40   : > { %567 = vmatprep.subr.bf16.mxu0 %v1035_v59 }
  0x42   : > { %944 = vmatpush3.bf16.msra.mxu1 %v1055_v2 }
  0x43   : > { %568 = vmatpush1.bf16.msra.mxu0 %v1038_v61  ;;  %945 = vmatprep.subr.bf16.mxu1 %v1056_v3 }
  0x46   : > { %570 = vmatmul.mubr.bf16.vlgmr.msra.gmra.mrb[0].mxu0 %v861_v62  ;;  %946 = vmatpush3.bf16.msra.mxu1 %v1057_v4 }
  0xfc   : > { %v612_v5 = vpop.f32.mrb[0].mxu1 }
  0xfd   : > { %v614_v6 = vpop.f32.mrb[1].mxu1 }
  0xfe   : > { %v616_v7 = vpop.f32.mrb[2].mxu1 }
  0xff   : > { %v617_v8 = vpop.f32.mrb[3].mxu1 }
 0x119   : > { %v571_v16 = vpop.f32.mrb[0].mxu0 }
 0x11a   : > { %v572_v17 = vadd.f32 %v571_v16, %v279_v14  ;;  %v573_v18 = vpop.f32.mrb[1].mxu0 }
 0x11b   : > { %v574_v19 = vadd.f32 %v573_v18, %v283_v15  ;;  %v575_v20 = vpop.f32.mrb[2].mxu0 }
 0x11c   : > { %v613_v21 = vadd.f32 %v612_v5, %v572_v17  ;;  %v576_v22 = vpop.f32.mrb[3].mxu0 }
 0x11d   : > { %v615_v23 = vadd.f32 %v614_v6, %v574_v19 }
 0x11e   : > { %v619_v24 = vmax.f32 %v613_v21, 0.0 }
 0x11f   : > { %v620_v25 = vmax.f32 %v615_v23, 0.0 }
 0x120   : > { %v621_v27 = vpack.c.bf16 %v619_v24, %v619_v24 }
 0x121   : > { %v622_v26 = vpack.c.bf16 %v620_v25, %v620_v25 }
 0x123   : > { %790 = vmatprep.mubr.bf16.mxu1 %v622_v26 }
 0x124   : > { %791 = vmatmul.mubr.bf16.vlgmr.msra.gmra.mrb[4].mxu1 %v621_v27 }
 0x1f7   : > { %v947_v28 = vpop.f32.mrb[4].mxu1 }
 0x1f8   : > { %v948_v30 = vpop.f32.mrb[5].mxu1 }
 0x1f9   : > { %v949_v31 = vadd.f32 %v948_v30, %v947_v28  ;;  %v950_v32 = vpop.f32.mrb[6].mxu1 }
 0x1fa   : > { %v951_v33 = vpop.f32.mrb[7].mxu1 }
 0x1fb   : > { %v793_v34 = vadd.f32 %v949_v31, %v912_v29 }
 0x1fd   : > { %v798_v35 = vmax.f32 %v793_v34, 0.0 }
 0x1ff   : > { %v799_v36 = vpack.c.bf16 %v798_v35, %v798_v35 }
 0x201   : > { %800 = vst [vmem:[%s222_s21] sm:$0xf] %v799_v36 }
 0x202 PF: > { %s15_s18 = sadd.s32 1, %s1064_s18  }
 0x203   : > { %p12_p4 = scmp.ge.s32.totalorder %s15_s18, 4  }
 0x205   :  { %14 = sbr.rel (!%p12_p4) target bundleno = 1 (0x1), region = 70 }

// kernel: pointnet_forward.13
= control target key start
LH: loop header
LB: loop body
LE: loop exit
PB: predicated region body
PF: predicated region fallthrough
CT: control target
= control target key end

     0   :  { %14 = vsyncpa [#allocation4], 0  ;;  %s4222_s30 = smov 0   ;;  %s4224_s10 = smov 0   ;;  %s4811_s0 = inlined_call_operand.vmem [shape: bf16[2,8,256], index: 0, kind: input, shape index: {}]   ;;  %s4812_s1 = inlined_call_operand.vmem [shape: f32[2,8,3], index: 1, kind: input, shape index: {}]   ;;  %s4813_s2 = inlined_call_operand.vmem [shape: bf16[256,256], index: 2, kind: input, shape index: {}]   ;;  %s4814_s3 = inlined_call_operand.vmem [shape: f32[3,256], index: 3, kind: input, shape index: {}]   ;;  %s4815_s4 = inlined_call_operand.vmem [shape: f32[1,256], index: 4, kind: input, shape index: {}]   ;;  %s4816_s5 = inlined_call_operand.vmem [shape: bf16[256,512], index: 5, kind: input, shape index: {}]   ;;  %s4817_s6 = inlined_call_operand.vmem [shape: f32[1,512], index: 6, kind: input, shape index: {}]   ;;  %s4818_s7 = inlined_call_operand.hbm [shape: bf16[512,1024], index: 7, kind: input, shape index: {}]   ;;  %s4819_s8 = inlined_call_operand.vmem [shape: f32[1,1024], index: 8, kind: input, shape index: {}]   ;;  %s4820_s9 = inlined_call_operand.vmem [shape: bf16[2,1,1024], index: 9, kind: output, shape index: {}]  }
   0x1   :  { %s4226_s11 = smov 0  }
   0x2 LB: > { %s3522_s12 = sadd.s32 4294967295, %s4163_s11   ;;  %s32_s13 = sadd.s32 1, %s4159_s10  ;;  %s4163_s11 = sphi %s4226_s11, %s20_s11   ;;  %s4159_s10 = sphi %s4224_s10, %s4840_s10   ;;  %s4155_s30 = sphi %s4222_s30, %s4839_s30  }
   0x3   : > { %p34_p0 = scmp.ge.s32.totalorder %s32_s13, 2  ;;  %p3524_p1 = scmp.ge.s32.totalorder %s4163_s11, 1 }
   0x4   : > { %p266_p2 = scmp.lt.s32.totalorder %s4163_s11, 3  ;;  %p4247_p4 = scmp.eq.s32.totalorder %s3522_s12, 0 }
   0x5   : > { %s4842_s13 = smov (%p34_p0, %s32_s13), 0  ;;  %s4165_s16 = smov [#allocation3]  }
   0x6   : > { %p4243_p3 = pnand %p3524_p1, %p266_p2  ;;  %s293_s17 = sshll.u32 %s4165_s16, 4  ;;  %s294_s17 = int_to_ptr.vmem [resolvable:$true] %s293_s17 }
   0x7   : > { %s4825_s15 = scalar_select %p4247_p4, 1, 0 }
   0x8   : > { %s4824_s14 = scalar_select %p4243_p3, 1, 0 }
   0x9   : > { %p3922_p5 = pneg %p4243_p3  ;;  %s4109_s21 = scalar_lea.hbm %s4818_s7, 32768 }
   0xa   : > { %p4110_p7 = scmp.ne.s32.totalorder %s4818_s7, %s4109_s21  ;;  %p4116_p11 = scmp.lt.u32.totalorder %s4109_s21, %s4818_s7 }
   0xb   : > { %p4255_p6 = pnand %p4247_p4, %p3922_p5 }
   0xd   : > { %p4111_p8 = pneg %p4255_p6 }
   0xf   : > { %p4112_p9 = pnand %p4111_p8, %p4110_p7 }
  0x11   : > { %p4113_p10 = pneg %p4112_p9 }
  0x13   : > { %p4118_p12 = pnand %p4116_p11, %p4113_p10 }
  0x15   : > { %4121 = shalt.err (!%p4118_p12)
}
  0x16   : > { %s4122_s26 = scalar_lea.vmem %s294_s17, 32768  ;;  %p4130_p2 = scmp.lt.s32.totalorder %s294_s17, %s294_s17 }
  0x17   : > { %p4123_p13 = scmp.ne.s32.totalorder %s294_s17, %s4122_s26  ;;  %p4131_p5 = scmp.lt.s32.totalorder %s4122_s26, %s4122_s26 }
  0x19   : > { %p4125_p0 = pnand %p4123_p13, %p4111_p8  ;;  %p4132_p4 = por %p4131_p5, %p4130_p2 }
  0x1b   : > { %p4126_p1 = pneg %p4125_p0 }
  0x1d   : > { %p4133_p3 = pnand %p4132_p4, %p4126_p1 }
  0x1f   : > { %4136 = shalt.err (!%p4133_p3)
}
  0x20   : > { %s4166_s27 = smov 512   ;;  %s4167_s28 = smov 32  }
  0x21   : > { %3925 = dma.hbm_to_vmem [thread:$0]  (!%p4255_p6), %s4818_s7, 32768, %s294_s17, [#allocation4], %s4166_s27, %s4166_s27, %s4167_s28  }
  0x22   : > { %p4827_p7 = scmp.ne.s32.totalorder %s4824_s14, 0 }
  0x23   : > { %p4828_p9 = scmp.ne.s32.totalorder (!%p4827_p7), %s4825_s15, 0 }
  0x24   : > { %334 = sbr.rel (%p4827_p7) target bundleno = 1000 (0x3e8), region = 56 }
  0x2b   : > { %4150 = dma.done.wait (%p4828_p9), [#allocation4], 32768  }
  0x2c   : > { %4152 = vsyncadd (%p4828_p9), [#allocation4], 4294934528  ;;  %v4168_v0 = vmov 0   ;;  %v4169_v1 = vmov 2   ;;  %v3963_v2 = vld [vmem:[%s4813_s2 + $0x4] ss:$8 sps:$4 sm:$0xff]  }
  0x2d   : > { %3959 = vset.pattern.permute.xlu0 %v4168_v0  ;;  %3961 = vset.pattern.permute.xlu1 %v4169_v1  ;;  %v3965_v3 = vld [vmem:[%s4813_s2] ss:$8 sps:$4 sm:$0xff]   ;;  %v3966_v4 = vld [vmem:[%s4813_s2 + $0x14] ss:$8 sps:$4 sm:$0xff]   ;;  %v3968_v5 = vld [vmem:[%s4813_s2 + $0x10] ss:$8 sps:$4 sm:$0xff]  }
  0x2e   : > { %685 = vmatprep.subr.bf16.mxu0 %v3963_v2  ;;  %v3969_v6 = vld [vmem:[%s4813_s2 + $0x24] ss:$8 sps:$4 sm:$0xff]   ;;  %v3971_v7 = vld [vmem:[%s4813_s2 + $0x20] ss:$8 sps:$4 sm:$0xff]   ;;  %p380_p3 = scmp.lt.s32.totalorder %s4155_s30, 1  ;;  %v4170_v25 = vmov 1  }
  0x2f   : > { %686 = vmatpush1.bf16.msra.mxu0 %v3965_v3  ;;  %v3972_v8 = vld [vmem:[%s4813_s2 + $0x34] ss:$8 sps:$4 sm:$0xff]   ;;  %v3974_v9 = vld [vmem:[%s4813_s2 + $0x30] ss:$8 sps:$4 sm:$0xff]   ;;  %v3975_v10 = vld [vmem:[%s4813_s2 + $0x44] ss:$8 sps:$4 sm:$0xff]  }
  0x30   : > { %687 = vmatprep.subr.bf16.mxu0 %v3966_v4  ;;  %s4844_s30 = smov (!%p380_p3, %s4155_s30), 1  ;;  %v3977_v11 = vld [vmem:[%s4813_s2 + $0x40] ss:$8 sps:$4 sm:$0xff]   ;;  %v3978_v12 = vld [vmem:[%s4813_s2 + $0x54] ss:$8 sps:$4 sm:$0xff]   ;;  %vm3390_vm1 = vcmask 1040384  }
  0x31   : > { %s4314_s14 = sshll.u32 %s4844_s30, 3  ;;  %v3980_v13 = vld [vmem:[%s4813_s2 + $0x50] ss:$8 sps:$4 sm:$0xff]   ;;  %v3981_v14 = vld [vmem:[%s4813_s2 + $0x64] ss:$8 sps:$4 sm:$0xff]   ;;  %vm3393_vm3 = vcmask 1041409  }
  0x32   : > { %s388_s22 = scalar_lea.vmem %s4811_s0, %s4314_s14  ;;  %s395_s30 = scalar_lea.vmem %s4812_s1, %s4314_s14  ;;  %v3983_v15 = vld [vmem:[%s4813_s2 + $0x60] ss:$8 sps:$4 sm:$0xff]   ;;  %v4013_v19 = vld [vmem:[%s4816_s5 + $0x4] ss:$16 sps:$4 sm:$0xff]   ;;  %v3986_v23 = vld [vmem:[%s4813_s2 + $0x70] ss:$8 sps:$4 sm:$0xff]  }
  0x33   : > { %688 = vmatpush1.bf16.msra.mxu0 %v3968_v5  ;;  %v4336_v16 = vld [vmem:[%s388_s22] sm:$0xff]  ;;  %v3984_v20 = vld [vmem:[%s4813_s2 + $0x74] ss:$8 sps:$4 sm:$0xff]   ;;  %1150 = vmatprep.subr.bf16.mxu1 %v4013_v19  ;;  %v3992_v33 = vld [vmem:[%s4813_s2 + $0x90] ss:$8 sps:$4 sm:$0xff]   ;;  %vm3397_vm7 = vcmask 1042434   ;;  %s399_s20 = scalar_lea.vmem %s4820_s9, %s4314_s14 }
  0x34   : > { %689 = vmatprep.subr.bf16.mxu0 %v3969_v6  ;;  %v3534_v17 = vcombine.high %v4336_v16, %v4336_v16  ;;  %v405_v18 = vld [vmem:[%s395_s30] sm:$0xff]  ;;  %v3990_v31 = vld [vmem:[%s4813_s2 + $0x94] ss:$8 sps:$4 sm:$0xff]   ;;  %v3998_v41 = vld [vmem:[%s4813_s2 + $0xb0] ss:$8 sps:$4 sm:$0xff]   ;;  %v3533_v60 = vcombine.low %v4336_v16, %v4336_v16  ;;  %vm3401_vm11 = vcmask 1043459  }
  0x35   : > { %442 = vperm.xlu0 %3959, %v405_v18   ;;  %v4018_v21 = vld [vmem:[%s4816_s5] ss:$16 sps:$4 sm:$0xff]   ;;  %493 = vperm.xlu1 %3961, %v405_v18   ;;  %v4019_v22 = vld [vmem:[%s4816_s5 + $0x24] ss:$16 sps:$4 sm:$0xff]   ;;  %v4017_v58 = vld [vmem:[%s4816_s5 + $0xc] ss:$16 sps:$4 sm:$0xff]  }
  0x36   : > { %717 = vmatprep.mubr.bf16.mxu0 %v3534_v17  ;;  %1151 = vmatpush1.bf16.msra.mxu1 %v4018_v21  ;;  %v3987_v24 = vld [vmem:[%s4813_s2 + $0x84] ss:$8 sps:$4 sm:$0xff]   ;;  %v4024_v26 = vld [vmem:[%s4816_s5 + $0x20] ss:$16 sps:$4 sm:$0xff]   ;;  %v3996_v39 = vld [vmem:[%s4813_s2 + $0xb4] ss:$8 sps:$4 sm:$0xff]  }
  0x37   : > { %690 = vmatpush1.bf16.msra.mxu0 %v3971_v7  ;;  %v4025_v27 = vld [vmem:[%s4816_s5 + $0x44] ss:$16 sps:$4 sm:$0xff]   ;;  %v3989_v28 = vld [vmem:[%s4813_s2 + $0x80] ss:$8 sps:$4 sm:$0xff]   ;;  %1152 = vmatprep.subr.bf16.mxu1 %v4019_v22  ;;  %v4004_v49 = vld [vmem:[%s4813_s2 + $0xd0] ss:$8 sps:$4 sm:$0xff]  }
  0x38   : > { %691 = vmatprep.subr.bf16.mxu0 %v3972_v8  ;;  %v4030_v29 = vld [vmem:[%s4816_s5 + $0x40] ss:$16 sps:$4 sm:$0xff]   ;;  %v4031_v30 = vld [vmem:[%s4816_s5 + $0x64] ss:$16 sps:$4 sm:$0xff]   ;;  %v4015_v62 = vld [vmem:[%s4816_s5 + $0x8] ss:$16 sps:$4 sm:$0xff]  }
  0x39   : > { %3960 = vset.pattern.permute.xlu0 %v4170_v25  ;;  %v4036_v32 = vld [vmem:[%s4816_s5 + $0x60] ss:$16 sps:$4 sm:$0xff]   ;;  %v4037_v34 = vld [vmem:[%s4816_s5 + $0x84] ss:$16 sps:$4 sm:$0xff]   ;;  %v4023_v0 = vld [vmem:[%s4816_s5 + $0x2c] ss:$16 sps:$4 sm:$0xff]  }
  0x3a   : > { %467 = vperm.xlu0 %3960, %v405_v18   ;;  %1153 = vmatpush1.bf16.msra.mxu1 %v4024_v26  ;;  %v3993_v35 = vld [vmem:[%s4813_s2 + $0xa4] ss:$8 sps:$4 sm:$0xff]   ;;  %v3995_v36 = vld [vmem:[%s4813_s2 + $0xa0] ss:$8 sps:$4 sm:$0xff]   ;;  %v4002_v47 = vld [vmem:[%s4813_s2 + $0xd4] ss:$8 sps:$4 sm:$0xff]  }
  0x3b   : > { %692 = vmatpush1.bf16.msra.mxu0 %v3974_v9  ;;  %1154 = vmatprep.subr.bf16.mxu1 %v4025_v27  ;;  %v4042_v37 = vld [vmem:[%s4816_s5 + $0x80] ss:$16 sps:$4 sm:$0xff]   ;;  %v4043_v38 = vld [vmem:[%s4816_s5 + $0xa4] ss:$16 sps:$4 sm:$0xff]   ;;  %v4021_v2 = vld [vmem:[%s4816_s5 + $0x28] ss:$16 sps:$4 sm:$0xff]  }
  0x3c   : > { %693 = vmatprep.subr.bf16.mxu0 %v3975_v10  ;;  %v4048_v40 = vld [vmem:[%s4816_s5 + $0xa0] ss:$16 sps:$4 sm:$0xff]   ;;  %v4049_v42 = vld [vmem:[%s4816_s5 + $0xc4] ss:$16 sps:$4 sm:$0xff]   ;;  %v4029_v4 = vld [vmem:[%s4816_s5 + $0x4c] ss:$16 sps:$4 sm:$0xff]  }
  0x3d   : > { %v3999_v43 = vld [vmem:[%s4813_s2 + $0xc4] ss:$8 sps:$4 sm:$0xff]   ;;  %v4001_v44 = vld [vmem:[%s4813_s2 + $0xc0] ss:$8 sps:$4 sm:$0xff]   ;;  %v4008_v55 = vld [vmem:[%s4813_s2 + $0xf4] ss:$8 sps:$4 sm:$0xff]  }
  0x3e   : > { %3962 = vset.pattern.permute.xlu0 %v4169_v1  ;;  %1155 = vmatpush1.bf16.msra.mxu1 %v4030_v29  ;;  %v4054_v45 = vld [vmem:[%s4816_s5 + $0xc0] ss:$16 sps:$4 sm:$0xff]   ;;  %v4055_v46 = vld [vmem:[%s4816_s5 + $0xe4] ss:$16 sps:$4 sm:$0xff]   ;;  %v4027_v6 = vld [vmem:[%s4816_s5 + $0x48] ss:$16 sps:$4 sm:$0xff]  }
  0x3f   : > { %694 = vmatpush1.bf16.msra.mxu0 %v3977_v11  ;;  %1156 = vmatprep.subr.bf16.mxu1 %v4031_v30  ;;  %v4060_v48 = vld [vmem:[%s4816_s5 + $0xe0] ss:$16 sps:$4 sm:$0xff]   ;;  %v4061_v50 = vld [vmem:[%s4816_s5 + $0x104] ss:$16 sps:$4 sm:$0xff]   ;;  %v4035_v8 = vld [vmem:[%s4816_s5 + $0x6c] ss:$16 sps:$4 sm:$0xff]  }
  0x40   : > { %695 = vmatprep.subr.bf16.mxu0 %v3978_v12  ;;  %v4005_v51 = vld [vmem:[%s4813_s2 + $0xe4] ss:$8 sps:$4 sm:$0xff]   ;;  %v4007_v52 = vld [vmem:[%s4813_s2 + $0xe0] ss:$8 sps:$4 sm:$0xff]   ;;  %v4010_v56 = vld [vmem:[%s4813_s2 + $0xf0] ss:$8 sps:$4 sm:$0xff]  }
  0x41   : > { %v4066_v53 = vld [vmem:[%s4816_s5 + $0x100] ss:$16 sps:$4 sm:$0xff]   ;;  %v4067_v54 = vld [vmem:[%s4816_s5 + $0x124] ss:$16 sps:$4 sm:$0xff]   ;;  %v4033_v9 = vld [vmem:[%s4816_s5 + $0x68] ss:$16 sps:$4 sm:$0xff]  }
  0x42   : > { %1157 = vmatpush1.bf16.msra.mxu1 %v4036_v32  ;;  %v4072_v57 = vld [vmem:[%s4816_s5 + $0x120] ss:$16 sps:$4 sm:$0xff]   ;;  %v4073_v59 = vld [vmem:[%s4816_s5 + $0x144] ss:$16 sps:$4 sm:$0xff]   ;;  %v4041_v10 = vld [vmem:[%s4816_s5 + $0x8c] ss:$16 sps:$4 sm:$0xff]  }
  0x43   : > { %696 = vmatpush1.bf16.msra.mxu0 %v3980_v13  ;;  %1158 = vmatprep.subr.bf16.mxu1 %v4037_v34  ;;  %v4078_v61 = vld [vmem:[%s4816_s5 + $0x140] ss:$16 sps:$4 sm:$0xff]   ;;  %v4079_v63 = vld [vmem:[%s4816_s5 + $0x164] ss:$16 sps:$4 sm:$0xff]   ;;  %v4039_v11 = vld [vmem:[%s4816_s5 + $0x88] ss:$16 sps:$4 sm:$0xff]  }
  0x44   : > { %697 = vmatprep.subr.bf16.mxu0 %v3981_v14  ;;  %v4084_v1 = vld [vmem:[%s4816_s5 + $0x160] ss:$16 sps:$4 sm:$0xff]   ;;  %v4085_v3 = vld [vmem:[%s4816_s5 + $0x184] ss:$16 sps:$4 sm:$0xff]   ;;  %v4047_v12 = vld [vmem:[%s4816_s5 + $0xac] ss:$16 sps:$4 sm:$0xff]  }
  0x45   : > { %v4090_v5 = vld [vmem:[%s4816_s5 + $0x180] ss:$16 sps:$4 sm:$0xff]   ;;  %v4091_v7 = vld [vmem:[%s4816_s5 + $0x1a4] ss:$16 sps:$4 sm:$0xff]   ;;  %v4045_v13 = vld [vmem:[%s4816_s5 + $0xa8] ss:$16 sps:$4 sm:$0xff]  }
  0x46   : > { %1159 = vmatpush1.bf16.msra.mxu1 %v4042_v37  ;;  %v4053_v14 = vld [vmem:[%s4816_s5 + $0xcc] ss:$16 sps:$4 sm:$0xff]   ;;  %v4057_v17 = vld [vmem:[%s4816_s5 + $0xe8] ss:$16 sps:$4 sm:$0xff]   ;;  %v4096_v30 = vld [vmem:[%s4816_s5 + $0x1a0] ss:$16 sps:$4 sm:$0xff]  }
  0x47   : > { %698 = vmatpush1.bf16.msra.mxu0 %v3983_v15  ;;  %1160 = vmatprep.subr.bf16.mxu1 %v4043_v38  ;;  %v4051_v15 = vld [vmem:[%s4816_s5 + $0xc8] ss:$16 sps:$4 sm:$0xff]   ;;  %v4059_v16 = vld [vmem:[%s4816_s5 + $0xec] ss:$16 sps:$4 sm:$0xff]   ;;  %v4102_v34 = vld [vmem:[%s4816_s5 + $0x1c0] ss:$16 sps:$4 sm:$0xff]  }
  0x48   : > { %699 = vmatprep.subr.bf16.mxu0 %v3984_v20  ;;  %v4065_v18 = vld [vmem:[%s4816_s5 + $0x10c] ss:$16 sps:$4 sm:$0xff]   ;;  %v4063_v19 = vld [vmem:[%s4816_s5 + $0x108] ss:$16 sps:$4 sm:$0xff]   ;;  %v4108_v38 = vld [vmem:[%s4816_s5 + $0x1e0] ss:$16 sps:$4 sm:$0xff]  }
  0x49   : > { %v4071_v20 = vld [vmem:[%s4816_s5 + $0x12c] ss:$16 sps:$4 sm:$0xff]   ;;  %v4069_v21 = vld [vmem:[%s4816_s5 + $0x128] ss:$16 sps:$4 sm:$0xff]   ;;  %vm3391_vm2 = vsmask.f32 256 }
  0x4a   : > { %1161 = vmatpush1.bf16.msra.mxu1 %v4048_v40  ;;  %v4077_v22 = vld [vmem:[%s4816_s5 + $0x14c] ss:$16 sps:$4 sm:$0xff]   ;;  %v4081_v25 = vld [vmem:[%s4816_s5 + $0x168] ss:$16 sps:$4 sm:$0xff]   ;;  %v4591_v40 = vld [vmem:[#allocation3 + $0x20] sm:$0xff]  ;;  %vm3405_vm15 = vcmask 1044484  }
  0x4b   : > { %700 = vmatpush1.bf16.msra.mxu0 %v3986_v23  ;;  %1162 = vmatprep.subr.bf16.mxu1 %v4049_v42  ;;  %v4075_v23 = vld [vmem:[%s4816_s5 + $0x148] ss:$16 sps:$4 sm:$0xff]   ;;  %v4089_v26 = vld [vmem:[%s4816_s5 + $0x18c] ss:$16 sps:$4 sm:$0xff]   ;;  %vm3394_vm4 = vsmask.f32 1280  ;;  %vm4745_vm5 = vmand %vm3390_vm1, %vm3391_vm2 }
  0x4c   : > { %701 = vmatprep.subr.bf16.mxu0 %v3987_v24  ;;  %v4083_v24 = vld [vmem:[%s4816_s5 + $0x16c] ss:$16 sps:$4 sm:$0xff]   ;;  %v4087_v27 = vld [vmem:[%s4816_s5 + $0x188] ss:$16 sps:$4 sm:$0xff]   ;;  %vm4749_vm6 = vmand %vm3393_vm3, %vm3394_vm4  ;;  %vm3398_vm8 = vsmask.f32 2304 }
  0x4d   : > { %v4093_v29 = vld [vmem:[%s4816_s5 + $0x1a8] ss:$16 sps:$4 sm:$0xff]   ;;  %v4101_v32 = vld [vmem:[%s4816_s5 + $0x1cc] ss:$16 sps:$4 sm:$0xff]   ;;  %vm3396_vm9 = vmor %vm4749_vm6, %vm4745_vm5  ;;  %vm3402_vm12 = vsmask.f32 3328 }
  0x4e   : > { %1163 = vmatpush1.bf16.msra.mxu1 %v4054_v45  ;;  %v4105_v37 = vld [vmem:[%s4816_s5 + $0x1e8] ss:$16 sps:$4 sm:$0xff]   ;;  %vm3399_vm10 = vmand %vm3397_vm7, %vm3398_vm8  ;;  %vm3409_vm3 = vcmask 1045509   ;;  %vm3410_vm4 = vsmask.f32 5376  ;;  %vm3413_vm7 = vcmask 1046534  }
  0x4f   : > { %702 = vmatpush1.bf16.msra.mxu0 %v3989_v28  ;;  %1164 = vmatprep.subr.bf16.mxu1 %v4055_v46  ;;  %v4095_v28 = vld [vmem:[%s4816_s5 + $0x1ac] ss:$16 sps:$4 sm:$0xff]   ;;  %vm4757_vm13 = vmor %vm3399_vm10, %vm3396_vm9  ;;  %vm3414_vm8 = vsmask.f32 6400 }
  0x50   : > { %703 = vmatprep.subr.bf16.mxu0 %v3990_v31  ;;  %v4097_v31 = vld [vmem:[%s4816_s5 + $0x1c4] ss:$16 sps:$4 sm:$0xff]   ;;  %vm3403_vm14 = vmand %vm3401_vm11, %vm3402_vm12  ;;  %vm3417_vm11 = vcmask 1047559   ;;  %vm3418_vm12 = vsmask.f32 7424 }
  0x51   : > { %vm3404_vm1 = vmor %vm3403_vm14, %vm4757_vm13 }
  0x52   : > { %1165 = vmatpush1.bf16.msra.mxu1 %v4060_v48  ;;  %vm4774_vm6 = vmand %vm3409_vm3, %vm3410_vm4 }
  0x53   : > { %704 = vmatpush1.bf16.msra.mxu0 %v3992_v33  ;;  %1166 = vmatprep.subr.bf16.mxu1 %v4061_v50  ;;  %v4099_v33 = vld [vmem:[%s4816_s5 + $0x1c8] ss:$16 sps:$4 sm:$0xff]   ;;  %vm3415_vm10 = vmand %vm3413_vm7, %vm3414_vm8 }
  0x54   : > { %705 = vmatprep.subr.bf16.mxu0 %v3993_v35  ;;  %v4103_v35 = vld [vmem:[%s4816_s5 + $0x1e4] ss:$16 sps:$4 sm:$0xff]   ;;  %vm3419_vm14 = vmand %vm3417_vm11, %vm3418_vm12 }
  0x56   : > { %1167 = vmatpush1.bf16.msra.mxu1 %v4066_v53 }
  0x57   : > { %706 = vmatpush1.bf16.msra.mxu0 %v3995_v36  ;;  %1168 = vmatprep.subr.bf16.mxu1 %v4067_v54  ;;  %v4107_v36 = vld [vmem:[%s4816_s5 + $0x1ec] ss:$16 sps:$4 sm:$0xff]  }
  0x58   : > { %707 = vmatprep.subr.bf16.mxu0 %v3996_v39  ;;  %v4589_v39 = vld [vmem:[#allocation3] sm:$0xff] }
  0x59   : > { %v3631_v42 = vcombine.low %v4589_v39, %v4591_v40 }
  0x5a   : > { %1169 = vmatpush1.bf16.msra.mxu1 %v4072_v57 }
  0x5b   : > { %708 = vmatpush1.bf16.msra.mxu0 %v3998_v41  ;;  %1170 = vmatprep.subr.bf16.mxu1 %v4073_v59  ;;  %v4593_v41 = vld [vmem:[#allocation3 + $0x8] sm:$0xff] }
  0x5c   : > { %709 = vmatprep.subr.bf16.mxu0 %v3999_v43  ;;  %v3632_v43 = vcombine.high %v4589_v39, %v4591_v40 }
  0x5e   : > { %1171 = vmatpush1.bf16.msra.mxu1 %v4078_v61 }
  0x5f   : > { %710 = vmatpush1.bf16.msra.mxu0 %v4001_v44  ;;  %1172 = vmatprep.subr.bf16.mxu1 %v4079_v63  ;;  %v4599_v44 = vld [vmem:[#allocation3 + $0x28] sm:$0xff] }
  0x60   : > { %711 = vmatprep.subr.bf16.mxu0 %v4002_v47  ;;  %v3633_v45 = vcombine.low %v4593_v41, %v4599_v44  ;;  %v3634_v46 = vcombine.high %v4593_v41, %v4599_v44  ;;  %v446_v47 = vlaneseq  ;;  %v1272_v41 = vld [vmem:[#allocation3 + $0x100] sm:$0xff]  ;;  %v1273_v44 = vld [vmem:[#allocation3 + $0x108] sm:$0xff] }
  0x62   : > { %1173 = vmatpush1.bf16.msra.mxu1 %v4084_v1  ;;  %v4605_v48 = vshrl.u32 %v446_v47, 7  ;;  %v1261_v47 = vld [vmem:[#allocation3 + $0xa8] sm:$0xff] }
  0x63   : > { %712 = vmatpush1.bf16.msra.mxu0 %v4004_v49  ;;  %1174 = vmatprep.subr.bf16.mxu1 %v4085_v3 }
  0x64   : > { %713 = vmatprep.subr.bf16.mxu0 %v4005_v51  ;;  %v4608_v49 = vsub.s32 0, %v4605_v48  ;;  %v4611_v50 = vsub.s32 1, %v4605_v48  ;;  %v439_v51 = vld [vmem:[%s4814_s3] sm:$0x77]  ;;  %v4620_v53 = vsub.s32 5, %v4605_v48  ;;  %v4625_v57 = vsub.s32 2, %v4605_v48 }
  0x65   : > { %vm3159_vm0 = vcmp.lt.s32.totalorder %v4605_v48, 2 }
  0x66   : > { %1175 = vmatpush1.bf16.msra.mxu1 %v4090_v5  ;;  %v477_v59 = vrot.slane %v439_v51, %v4620_v53  ;;  %v499_v63 = vrot.slane %v439_v51, %v4625_v57 }
  0x67   : > { %714 = vmatpush1.bf16.msra.mxu0 %v4007_v52  ;;  %1176 = vmatprep.subr.bf16.mxu1 %v4091_v7  ;;  %v4617_v52 = vsub.s32 4, %v4605_v48 }
  0x68   : > { %715 = vmatprep.subr.bf16.mxu0 %v4008_v55  ;;  %v449_v55 = vrot.slane %v439_v51, %v4608_v49  ;;  %v487_v1 = vrot.slane %v477_v59, %v4611_v50  ;;  %v1268_v59 = vld [vmem:[#allocation3 + $0xe0] sm:$0xff] }
  0x6a   : > { %1177 = vmatpush1.bf16.msra.mxu1 %v4096_v30  ;;  %v459_v61 = vrot.slane %v449_v55, %v4608_v49 }
  0x6b   : > { %716 = vmatpush1.bf16.msra.mxu0 %v4010_v56  ;;  %1178 = vmatprep.subr.bf16.mxu1 %v4097_v31  ;;  %v473_v56 = vrot.slane %v439_v51, %v4611_v50  ;;  %v1252_v31 = vld [vmem:[#allocation3 + $0x60] sm:$0xff] }
  0x6c   : > { %1191 = vmatprep.subr.bf16.mxu0 %v4017_v58  ;;  %v453_v58 = vrot.slane %v439_v51, %v4617_v52 }
  0x6e   : > { %718 = vmatmul.mubr.bf16.vlgmr.msra.gmra.mrb[0].mxu0 %v3533_v60  ;;  %1179 = vmatpush1.bf16.msra.mxu1 %v4102_v34  ;;  %v4630_v60 = vsub.s32 6, %v4605_v48 }
  0x6f   : > { %1192 = vmatpush1.bf16.msra.mxu0 %v4015_v62  ;;  %1180 = vmatprep.subr.bf16.mxu1 %v4103_v35  ;;  %v483_v62 = vrot.slane %v473_v56, %v4611_v50 }
  0x70   : > { %1193 = vmatprep.subr.bf16.mxu0 %v4023_v0  ;;  %v463_v0 = vrot.slane %v453_v58, %v4608_v49  ;;  %v503_v3 = vrot.slane %v439_v51, %v4630_v60  ;;  %v1264_v58 = vld [vmem:[#allocation3 + $0xc0] sm:$0xff] }
  0x71   : > { %v3656_v39 = vcombine.high %v1264_v58, %v1268_v59 }
  0x72   : > { %1181 = vmatpush1.bf16.msra.mxu1 %v4108_v38  ;;  %v1256_v38 = vld [vmem:[#allocation3 + $0x80] sm:$0xff] }
  0x73   : > { %1194 = vmatpush1.bf16.msra.mxu0 %v4021_v2  ;;  %2818 = vmatprep.subr.bf16.mxu1 %v3632_v43  ;;  %v1260_v43 = vld [vmem:[#allocation3 + $0xa0] sm:$0xff] }
  0x74   : > { %1195 = vmatprep.subr.bf16.mxu0 %v4029_v4  ;;  %v3648_v55 = vcombine.high %v1256_v38, %v1260_v43 }
  0x77   : > { %1196 = vmatpush1.bf16.msra.mxu0 %v4027_v6  ;;  %v509_v6 = vrot.slane %v499_v63, %v4625_v57  ;;  %v3647_v63 = vcombine.low %v1256_v38, %v1260_v43  ;;  %v1316_v38 = vld [vmem:[#allocation3 + $0x260] sm:$0xff]  ;;  %v1313_v43 = vld [vmem:[#allocation3 + $0x248] sm:$0xff] }
  0x78   : > { %1197 = vmatprep.subr.bf16.mxu0 %v4035_v8 }
  0x7b   : > { %1198 = vmatpush1.bf16.msra.mxu0 %v4033_v9  ;;  %v513_v9 = vrot.slane %v503_v3, %v4625_v57 }
  0x7c   : > { %1199 = vmatprep.subr.bf16.mxu0 %v4041_v10 }
  0x7f   : > { %1200 = vmatpush1.bf16.msra.mxu0 %v4039_v11 }
  0x80   : > { %1201 = vmatprep.subr.bf16.mxu0 %v4047_v12 }
  0x83   : > { %1202 = vmatpush1.bf16.msra.mxu0 %v4045_v13 }
  0x84   : > { %1203 = vmatprep.subr.bf16.mxu0 %v4053_v14 }
  0x87   : > { %1204 = vmatpush1.bf16.msra.mxu0 %v4051_v15  ;;  %v726_v15 = vld [vmem:[%s4815_s4] sm:$0x3] }
  0x88   : > { %1205 = vmatprep.subr.bf16.mxu0 %v4059_v16 }
  0x8b   : > { %1206 = vmatpush1.bf16.msra.mxu0 %v4057_v17  ;;  %v731_v17 = vrot.slane %v726_v15, %v4608_v49 }
  0x8c   : > { %1207 = vmatprep.subr.bf16.mxu0 %v4065_v18 }
  0x8f   : > { %1208 = vmatpush1.bf16.msra.mxu0 %v4063_v19 }
  0x90   : > { %1209 = vmatprep.subr.bf16.mxu0 %v4071_v20  ;;  %v735_v20 = vrot.slane %v726_v15, %v4611_v50  ;;  %v1289_v15 = vld [vmem:[#allocation3 + $0x188] sm:$0xff] }
  0x93   : > { %1210 = vmatpush1.bf16.msra.mxu0 %v4069_v21 }
  0x94   : > { %1211 = vmatprep.subr.bf16.mxu0 %v4077_v22 }
  0x97   : > { %1212 = vmatpush1.bf16.msra.mxu0 %v4075_v23 }
  0x98   : > { %1213 = vmatprep.subr.bf16.mxu0 %v4083_v24 }
  0x9b   : > { %1214 = vmatpush1.bf16.msra.mxu0 %v4081_v25 }
  0x9c   : > { %1215 = vmatprep.subr.bf16.mxu0 %v4089_v26 }
  0x9f   : > { %1216 = vmatpush1.bf16.msra.mxu0 %v4087_v27 }
  0xa0   : > { %1217 = vmatprep.subr.bf16.mxu0 %v4095_v28 }
  0xa3   : > { %1218 = vmatpush1.bf16.msra.mxu0 %v4093_v29  ;;  %v1248_v29 = vld [vmem:[#allocation3 + $0x40] sm:$0xff] }
  0xa4   : > { %1219 = vmatprep.subr.bf16.mxu0 %v4101_v32  ;;  %v1249_v32 = vld [vmem:[#allocation3 + $0x48] sm:$0xff]  ;;  %v3639_v51 = vcombine.low %v1248_v29, %v1252_v31 }
  0xa7   : > { %1220 = vmatpush1.bf16.msra.mxu0 %v4099_v33  ;;  %v1253_v33 = vld [vmem:[#allocation3 + $0x68] sm:$0xff] }
  0xa8   : > { %1221 = vmatprep.subr.bf16.mxu0 %v4107_v36  ;;  %v3640_v36 = vcombine.high %v1248_v29, %v1252_v31  ;;  %v1304_v29 = vld [vmem:[#allocation3 + $0x200] sm:$0xff]  ;;  %v1305_v31 = vld [vmem:[#allocation3 + $0x208] sm:$0xff] }
  0xab   : > { %1222 = vmatpush1.bf16.msra.mxu0 %v4105_v37  ;;  %v3642_v37 = vcombine.high %v1249_v32, %v1253_v33 }
  0xac   : > { %2900 = vmatprep.subr.bf16.mxu0 %v3634_v46  ;;  %v1257_v46 = vld [vmem:[#allocation3 + $0x88] sm:$0xff] }
  0xad   : > { %v3650_v56 = vcombine.high %v1257_v46, %v1261_v47 }
  0xb4   : > { %v443_v54 = vpop.permute.xlu0 %442  ;;  %v494_v10 = vpop.permute.xlu1 %493 }
  0xb5   : > { %v464_v4 = vmul.f32 %v459_v61, %v443_v54  ;;  %v465_v7 = vmul.f32 %v463_v0, %v443_v54  ;;  %v514_v12 = vmul.f32 %v509_v6, %v494_v10  ;;  %v515_v14 = vmul.f32 %v513_v9, %v494_v10  ;;  %v1265_v61 = vld [vmem:[#allocation3 + $0xc8] sm:$0xff]  ;;  %v1284_v6 = vld [vmem:[#allocation3 + $0x160] sm:$0xff] }
  0xb6   : > { %v3641_v54 = vcombine.low %v1249_v32, %v1253_v33  ;;  %v3649_v0 = vcombine.low %v1257_v46, %v1261_v47  ;;  %v1309_v32 = vld [vmem:[#allocation3 + $0x228] sm:$0xff] }
  0xb7   : > { %v1317_v46 = vld [vmem:[#allocation3 + $0x268] sm:$0xff] }
  0xb9   : > { %v468_v2 = vpop.permute.xlu0 %467 }
  0xba   : > { %v488_v5 = vmul.f32 %v483_v62, %v468_v2  ;;  %v489_v8 = vmul.f32 %v487_v1, %v468_v2  ;;  %v1269_v62 = vld [vmem:[#allocation3 + $0xe8] sm:$0xff]  ;;  %v3655_v1 = vcombine.low %v1264_v58, %v1268_v59  ;;  %v1324_v58 = vld [vmem:[#allocation3 + $0x2a0] sm:$0xff] }
  0xbb   : > { %v3658_v40 = vcombine.high %v1265_v61, %v1269_v62  ;;  %v3657_v2 = vcombine.low %v1265_v61, %v1269_v62  ;;  %v1321_v59 = vld [vmem:[#allocation3 + $0x288] sm:$0xff] }
  0xbc   : > { %v490_v11 = vadd.f32 %v488_v5, %v464_v4  ;;  %v491_v13 = vadd.f32 %v489_v8, %v465_v7  ;;  %v1280_v5 = vld [vmem:[#allocation3 + $0x140] sm:$0xff]  ;;  %v1281_v7 = vld [vmem:[#allocation3 + $0x148] sm:$0xff] }
  0xbd   : > { %v1285_v8 = vld [vmem:[#allocation3 + $0x168] sm:$0xff] }
  0xbe   : > { %v516_v16 = vadd.f32 %v514_v12, %v490_v11  ;;  %v517_v19 = vadd.f32 %v515_v14, %v491_v13  ;;  %v3672_v11 = vcombine.high %v1280_v5, %v1284_v6  ;;  %v3674_v12 = vcombine.high %v1281_v7, %v1285_v8  ;;  %v1288_v13 = vld [vmem:[#allocation3 + $0x180] sm:$0xff]  ;;  %v1325_v61 = vld [vmem:[#allocation3 + $0x2a8] sm:$0xff] }
  0xbf   : > { %v1292_v14 = vld [vmem:[#allocation3 + $0x1a0] sm:$0xff] }
 0x141   : > { %v719_v18 = vpop.f32.mrb[0].mxu0 }
 0x142   : > { %v720_v21 = vadd.f32 %v719_v18, %v516_v16  ;;  %v721_v22 = vpop.f32.mrb[1].mxu0  ;;  %v1293_v16 = vld [vmem:[#allocation3 + $0x1a8] sm:$0xff]  ;;  %v3673_v18 = vcombine.low %v1281_v7, %v1285_v8 }
 0x143   : > { %v722_v23 = vadd.f32 %v721_v22, %v517_v19  ;;  %v723_v24 = vpop.f32.mrb[2].mxu0  ;;  %v3680_v19 = vcombine.high %v1288_v13, %v1292_v14  ;;  %v1300_v22 = vld [vmem:[#allocation3 + $0x1e0] sm:$0xff]  ;;  %v1341_v7 = vld [vmem:[#allocation3 + $0x328] sm:$0xff] }
 0x144   : > { %v738_v25 = vadd.f32 %v731_v17, %v720_v21  ;;  %v724_v26 = vpop.f32.mrb[3].mxu0  ;;  %v3671_v17 = vcombine.low %v1280_v5, %v1284_v6  ;;  %v1296_v21 = vld [vmem:[#allocation3 + $0x1c0] sm:$0xff]  ;;  %v1301_v24 = vld [vmem:[#allocation3 + $0x1e8] sm:$0xff] }
 0x145   : > { %v739_v27 = vadd.f32 %v735_v20, %v722_v23  ;;  %v3682_v20 = vcombine.high %v1289_v15, %v1293_v16  ;;  %v1297_v23 = vld [vmem:[#allocation3 + $0x1c8] sm:$0xff]  ;;  %v3681_v26 = vcombine.low %v1289_v15, %v1293_v16  ;;  %v3687_v33 = vcombine.low %v1296_v21, %v1300_v22  ;;  %v1340_v5 = vld [vmem:[#allocation3 + $0x320] sm:$0xff] }
 0x146   : > { %v740_v28 = vmax.f32 %v738_v25, 0.0  ;;  %v3679_v25 = vcombine.low %v1288_v13, %v1292_v14  ;;  %v1337_v6 = vld [vmem:[#allocation3 + $0x308] sm:$0xff]  ;;  %v1348_v13 = vld [vmem:[#allocation3 + $0x360] sm:$0xff] }
 0x147   : > { %v741_v30 = vmax.f32 %v739_v27, 0.0  ;;  %v3688_v27 = vcombine.high %v1296_v21, %v1300_v22  ;;  %v1345_v14 = vld [vmem:[#allocation3 + $0x348] sm:$0xff]  ;;  %v1352_v22 = vld [vmem:[#allocation3 + $0x380] sm:$0xff] }
 0x148   : > { %v742_v35 = vpack.c.bf16 %v740_v28, %v740_v28  ;;  %v3690_v28 = vcombine.high %v1297_v23, %v1301_v24  ;;  %v1349_v15 = vld [vmem:[#allocation3 + $0x368] sm:$0xff] }
 0x149   : > { %v743_v34 = vpack.c.bf16 %v741_v30, %v741_v30  ;;  %v1308_v30 = vld [vmem:[#allocation3 + $0x220] sm:$0xff]  ;;  %v3737_v21 = vcombine.low %v1345_v14, %v1349_v15 }
 0x14a   : > { %v3695_v47 = vcombine.low %v1304_v29, %v1308_v30 }
 0x14b   : > { %1182 = vmatprep.mubr.bf16.mxu1 %v743_v34  ;;  %1223 = vmatprep.mubr.bf16.mxu0 %v743_v34  ;;  %v3689_v34 = vcombine.low %v1297_v23, %v1301_v24  ;;  %v1356_v23 = vld [vmem:[#allocation3 + $0x3a0] sm:$0xff]  ;;  %v1353_v24 = vld [vmem:[#allocation3 + $0x388] sm:$0xff] }
 0x14c   : > { %1183 = vmatmul.mubr.bf16.vlgmr.msra.gmra.mrb[0].mxu1 %v742_v35  ;;  %1224 = vmatmul.mubr.bf16.vlgmr.msra.gmra.mrb[4].mxu0 %v742_v35  ;;  %v3696_v35 = vcombine.high %v1304_v29, %v1308_v30  ;;  %v1360_v30 = vld [vmem:[#allocation3 + $0x3c0] sm:$0xff] }
 0x14d   : > { %2819 = vmatpush1.bf16.msra.mxu1 %v3631_v42  ;;  %2901 = vmatpush1.bf16.msra.mxu0 %v3633_v45  ;;  %v1276_v42 = vld [vmem:[#allocation3 + $0x120] sm:$0xff]  ;;  %v1277_v45 = vld [vmem:[#allocation3 + $0x128] sm:$0xff] }
 0x14e   : > { %2820 = vmatprep.subr.bf16.mxu1 %v3640_v36  ;;  %2902 = vmatprep.subr.bf16.mxu0 %v3642_v37  ;;  %v3664_v3 = vcombine.high %v1272_v41, %v1276_v42  ;;  %v3666_v4 = vcombine.high %v1273_v44, %v1277_v45  ;;  %v3663_v9 = vcombine.low %v1272_v41, %v1276_v42  ;;  %v1312_v37 = vld [vmem:[#allocation3 + $0x240] sm:$0xff]  ;;  %v1329_v42 = vld [vmem:[#allocation3 + $0x2c8] sm:$0xff] }
 0x14f   : > { %v3665_v10 = vcombine.low %v1273_v44, %v1277_v45  ;;  %v3698_v36 = vcombine.high %v1305_v31, %v1309_v32  ;;  %v3703_v62 = vcombine.low %v1312_v37, %v1316_v38  ;;  %v1332_v41 = vld [vmem:[#allocation3 + $0x2e0] sm:$0xff]  ;;  %v1333_v44 = vld [vmem:[#allocation3 + $0x2e8] sm:$0xff] }
 0x151   : > { %2821 = vmatpush1.bf16.msra.mxu1 %v3639_v51  ;;  %2903 = vmatpush1.bf16.msra.mxu0 %v3641_v54  ;;  %v3697_v51 = vcombine.low %v1305_v31, %v1309_v32  ;;  %v3704_v54 = vcombine.high %v1312_v37, %v1316_v38  ;;  %v1364_v31 = vld [vmem:[#allocation3 + $0x3e0] sm:$0xff]  ;;  %v1361_v32 = vld [vmem:[#allocation3 + $0x3c8] sm:$0xff] }
 0x152   : > { %2822 = vmatprep.subr.bf16.mxu1 %v3648_v55  ;;  %2904 = vmatprep.subr.bf16.mxu0 %v3650_v56  ;;  %v3706_v55 = vcombine.high %v1313_v43, %v1317_v46  ;;  %v1320_v56 = vld [vmem:[#allocation3 + $0x280] sm:$0xff] }
 0x153   : > { %v3711_v45 = vcombine.low %v1320_v56, %v1324_v58  ;;  %v1368_v38 = vld [vmem:[#allocation3 + $0x400] sm:$0xff] }
 0x155   : > { %2823 = vmatpush1.bf16.msra.mxu1 %v3647_v63  ;;  %2905 = vmatpush1.bf16.msra.mxu0 %v3649_v0  ;;  %v3705_v63 = vcombine.low %v1313_v43, %v1317_v46  ;;  %v3712_v0 = vcombine.high %v1320_v56, %v1324_v58  ;;  %v1372_v43 = vld [vmem:[#allocation3 + $0x420] sm:$0xff]  ;;  %v1369_v46 = vld [vmem:[#allocation3 + $0x408] sm:$0xff] }
 0x156   : > { %2824 = vmatprep.subr.bf16.mxu1 %v3656_v39  ;;  %2906 = vmatprep.subr.bf16.mxu0 %v3658_v40  ;;  %v3714_v39 = vcombine.high %v1321_v59, %v1325_v61  ;;  %v1328_v40 = vld [vmem:[#allocation3 + $0x2c0] sm:$0xff] }
 0x157   : > { %v3719_v8 = vcombine.low %v1328_v40, %v1332_v41  ;;  %v4654_v58 = vld [vmem:[%s4817_s6] sm:$0xf] }
 0x159   : > { %2825 = vmatpush1.bf16.msra.mxu1 %v3655_v1  ;;  %2907 = vmatpush1.bf16.msra.mxu0 %v3657_v2  ;;  %v3713_v1 = vcombine.low %v1321_v59, %v1325_v61  ;;  %v3720_v2 = vcombine.high %v1328_v40, %v1332_v41  ;;  %v4657_v59 = vsub.s32 3, %v4605_v48  ;;  %v813_v61 = vrot.slane %v4654_v58, %v4608_v49 }
 0x15a   : > { %2826 = vmatprep.subr.bf16.mxu1 %v3664_v3  ;;  %2908 = vmatprep.subr.bf16.mxu0 %v3666_v4  ;;  %v3722_v3 = vcombine.high %v1329_v42, %v1333_v44  ;;  %v1336_v4 = vld [vmem:[#allocation3 + $0x300] sm:$0xff] }
 0x15b   : > { %v3727_v16 = vcombine.low %v1336_v4, %v1340_v5 }
 0x15d   : > { %2827 = vmatpush1.bf16.msra.mxu1 %v3663_v9  ;;  %2909 = vmatpush1.bf16.msra.mxu0 %v3665_v10  ;;  %v3721_v9 = vcombine.low %v1329_v42, %v1333_v44  ;;  %v3728_v10 = vcombine.high %v1336_v4, %v1340_v5 }
 0x15e   : > { %2828 = vmatprep.subr.bf16.mxu1 %v3672_v11  ;;  %2910 = vmatprep.subr.bf16.mxu0 %v3674_v12  ;;  %v3730_v11 = vcombine.high %v1337_v6, %v1341_v7  ;;  %v1344_v12 = vld [vmem:[#allocation3 + $0x340] sm:$0xff] }
 0x161   : > { %2829 = vmatpush1.bf16.msra.mxu1 %v3671_v17  ;;  %2911 = vmatpush1.bf16.msra.mxu0 %v3673_v18  ;;  %v3729_v17 = vcombine.low %v1337_v6, %v1341_v7  ;;  %v3736_v18 = vcombine.high %v1344_v12, %v1348_v13  ;;  %v1376_v7 = vld [vmem:[#allocation3 + $0x440] sm:$0xff] }
 0x162   : > { %2830 = vmatprep.subr.bf16.mxu1 %v3680_v19  ;;  %2912 = vmatprep.subr.bf16.mxu0 %v3682_v20  ;;  %v3738_v19 = vcombine.high %v1345_v14, %v1349_v15  ;;  %v3735_v20 = vcombine.low %v1344_v12, %v1348_v13  ;;  %v1384_v14 = vld [vmem:[#allocation3 + $0x480] sm:$0xff] }
 0x165   : > { %2831 = vmatpush1.bf16.msra.mxu1 %v3679_v25  ;;  %2913 = vmatpush1.bf16.msra.mxu0 %v3681_v26  ;;  %v3744_v25 = vcombine.high %v1352_v22, %v1356_v23  ;;  %v1357_v26 = vld [vmem:[#allocation3 + $0x3a8] sm:$0xff] }
 0x166   : > { %2832 = vmatprep.subr.bf16.mxu1 %v3688_v27  ;;  %2914 = vmatprep.subr.bf16.mxu0 %v3690_v28  ;;  %v3743_v27 = vcombine.low %v1352_v22, %v1356_v23  ;;  %v3745_v28 = vcombine.low %v1353_v24, %v1357_v26  ;;  %v3746_v29 = vcombine.high %v1353_v24, %v1357_v26  ;;  %v1396_v26 = vld [vmem:[#allocation3 + $0x4e0] sm:$0xff] }
 0x169   : > { %2833 = vmatpush1.bf16.msra.mxu1 %v3687_v33  ;;  %2915 = vmatpush1.bf16.msra.mxu0 %v3689_v34  ;;  %v3752_v33 = vcombine.high %v1360_v30, %v1364_v31  ;;  %v1365_v34 = vld [vmem:[#allocation3 + $0x3e8] sm:$0xff] }
 0x16a   : > { %2834 = vmatprep.subr.bf16.mxu1 %v3696_v35  ;;  %2916 = vmatprep.subr.bf16.mxu0 %v3698_v36  ;;  %v3751_v35 = vcombine.low %v1360_v30, %v1364_v31  ;;  %v3753_v36 = vcombine.low %v1361_v32, %v1365_v34  ;;  %v3754_v37 = vcombine.high %v1361_v32, %v1365_v34  ;;  %v1404_v34 = vld [vmem:[#allocation3 + $0x520] sm:$0xff] }
 0x16d   : > { %2835 = vmatpush1.bf16.msra.mxu1 %v3695_v47  ;;  %2917 = vmatpush1.bf16.msra.mxu0 %v3697_v51  ;;  %v3760_v47 = vcombine.high %v1368_v38, %v1372_v43  ;;  %v1373_v51 = vld [vmem:[#allocation3 + $0x428] sm:$0xff] }
 0x16e   : > { %2836 = vmatprep.subr.bf16.mxu1 %v3704_v54  ;;  %2918 = vmatprep.subr.bf16.mxu0 %v3706_v55  ;;  %v3759_v54 = vcombine.low %v1368_v38, %v1372_v43  ;;  %v3761_v55 = vcombine.low %v1369_v46, %v1373_v51  ;;  %v3762_v56 = vcombine.high %v1369_v46, %v1373_v51  ;;  %v1412_v51 = vld [vmem:[#allocation3 + $0x560] sm:$0xff] }
 0x171   : > { %2837 = vmatpush1.bf16.msra.mxu1 %v3703_v62  ;;  %2919 = vmatpush1.bf16.msra.mxu0 %v3705_v63  ;;  %v817_v62 = vrot.slane %v4654_v58, %v4611_v50  ;;  %v825_v63 = vrot.slane %v4654_v58, %v4657_v59 }
 0x172   : > { %2838 = vmatprep.subr.bf16.mxu1 %v3712_v0  ;;  %2920 = vmatprep.subr.bf16.mxu0 %v3714_v39 }
 0x175   : > { %2839 = vmatpush1.bf16.msra.mxu1 %v3711_v45  ;;  %2921 = vmatpush1.bf16.msra.mxu0 %v3713_v1 }
 0x176   : > { %2840 = vmatprep.subr.bf16.mxu1 %v3720_v2  ;;  %2922 = vmatprep.subr.bf16.mxu0 %v3722_v3 }
 0x179   : > { %2841 = vmatpush1.bf16.msra.mxu1 %v3719_v8  ;;  %2923 = vmatpush1.bf16.msra.mxu0 %v3721_v9  ;;  %v1380_v9 = vld [vmem:[#allocation3 + $0x460] sm:$0xff] }
 0x17a   : > { %2842 = vmatprep.subr.bf16.mxu1 %v3728_v10  ;;  %2924 = vmatprep.subr.bf16.mxu0 %v3730_v11  ;;  %v1377_v10 = vld [vmem:[#allocation3 + $0x448] sm:$0xff]  ;;  %v3768_v15 = vcombine.high %v1376_v7, %v1380_v9 }
 0x17b   : > { %v1381_v11 = vld [vmem:[#allocation3 + $0x468] sm:$0xff] }
 0x17c   : > { %v3769_v22 = vcombine.low %v1377_v10, %v1381_v11 }
 0x17d   : > { %2843 = vmatpush1.bf16.msra.mxu1 %v3727_v16  ;;  %2925 = vmatpush1.bf16.msra.mxu0 %v3729_v17  ;;  %v3770_v16 = vcombine.high %v1377_v10, %v1381_v11  ;;  %v1388_v17 = vld [vmem:[#allocation3 + $0x4a0] sm:$0xff] }
 0x17e   : > { %2844 = vmatprep.subr.bf16.mxu1 %v3736_v18  ;;  %2926 = vmatprep.subr.bf16.mxu0 %v3738_v19  ;;  %v1385_v18 = vld [vmem:[#allocation3 + $0x488] sm:$0xff]  ;;  %v3776_v23 = vcombine.high %v1384_v14, %v1388_v17  ;;  %v1432_v11 = vld [vmem:[#allocation3 + $0x600] sm:$0xff] }
 0x17f   : > { %v1389_v19 = vld [vmem:[#allocation3 + $0x4a8] sm:$0xff] }
 0x180   : > { %v3778_v24 = vcombine.high %v1385_v18, %v1389_v19  ;;  %v3777_v30 = vcombine.low %v1385_v18, %v1389_v19 }
 0x181   : > { %2845 = vmatpush1.bf16.msra.mxu1 %v3735_v20  ;;  %2927 = vmatpush1.bf16.msra.mxu0 %v3737_v21  ;;  %v3767_v21 = vcombine.low %v1376_v7, %v1380_v9 }
 0x182   : > { %2846 = vmatprep.subr.bf16.mxu1 %v3744_v25  ;;  %2928 = vmatprep.subr.bf16.mxu0 %v3746_v29  ;;  %v1392_v25 = vld [vmem:[#allocation3 + $0x4c0] sm:$0xff]  ;;  %v3775_v29 = vcombine.low %v1384_v14, %v1388_v17 }
 0x183   : > { %v3784_v31 = vcombine.high %v1392_v25, %v1396_v26  ;;  %v1436_v14 = vld [vmem:[#allocation3 + $0x620] sm:$0xff] }
 0x184   : > { %v3824_v19 = vcombine.high %v1432_v11, %v1436_v14 }
 0x185   : > { %2847 = vmatpush1.bf16.msra.mxu1 %v3743_v27  ;;  %2929 = vmatpush1.bf16.msra.mxu0 %v3745_v28  ;;  %v1393_v27 = vld [vmem:[#allocation3 + $0x4c8] sm:$0xff] }
 0x186   : > { %2848 = vmatprep.subr.bf16.mxu1 %v3752_v33  ;;  %2930 = vmatprep.subr.bf16.mxu0 %v3754_v37  ;;  %v1397_v28 = vld [vmem:[#allocation3 + $0x4e8] sm:$0xff]  ;;  %v1400_v33 = vld [vmem:[#allocation3 + $0x500] sm:$0xff]  ;;  %v3783_v37 = vcombine.low %v1392_v25, %v1396_v26  ;;  %v3823_v26 = vcombine.low %v1432_v11, %v1436_v14 }
 0x187   : > { %v3786_v32 = vcombine.high %v1393_v27, %v1397_v28  ;;  %v3785_v38 = vcombine.low %v1393_v27, %v1397_v28  ;;  %v3792_v43 = vcombine.high %v1400_v33, %v1404_v34  ;;  %v1445_v25 = vld [vmem:[#allocation3 + $0x668] sm:$0xff] }
 0x188   : > { %v1485_v11 = vld [vmem:[#allocation3 + $0x7a8] sm:$0xff] }
 0x189   : > { %2849 = vmatpush1.bf16.msra.mxu1 %v3751_v35  ;;  %2931 = vmatpush1.bf16.msra.mxu0 %v3753_v36  ;;  %v1401_v35 = vld [vmem:[#allocation3 + $0x508] sm:$0xff] }
 0x18a   : > { %2859 = vmatprep.subr.bf16.mxu1 %v3760_v47  ;;  %2941 = vmatprep.subr.bf16.mxu0 %v3762_v56  ;;  %v1405_v36 = vld [vmem:[#allocation3 + $0x528] sm:$0xff]  ;;  %v1408_v47 = vld [vmem:[#allocation3 + $0x540] sm:$0xff]  ;;  %v3791_v56 = vcombine.low %v1400_v33, %v1404_v34 }
 0x18b   : > { %v3794_v46 = vcombine.high %v1401_v35, %v1405_v36  ;;  %v1453_v33 = vld [vmem:[#allocation3 + $0x6a8] sm:$0xff] }
 0x21f   : > { %v1184_v0 = vpop.f32.mrb[0].mxu1  ;;  %v4665_v39 = vpop.f32.mrb[4].mxu0 }
 0x220   : > { %v1185_v40 = vadd.f32 %v1184_v0, %v813_v61  ;;  %v1186_v41 = vpop.f32.mrb[1].mxu1  ;;  %v1227_v42 = vpop.f32.mrb[5].mxu0  ;;  %v3793_v61 = vcombine.low %v1401_v35, %v1405_v36  ;;  %v1416_v0 = vld [vmem:[#allocation3 + $0x580] sm:$0xff] }
 0x221   : > { %v1187_v44 = vadd.f32 %v1186_v41, %v817_v62  ;;  %v1228_v45 = vadd.f32 %v1227_v42, %v825_v63  ;;  %v1188_v1 = vpop.f32.mrb[2].mxu1  ;;  %v1229_v2 = vpop.f32.mrb[6].mxu0  ;;  %v3800_v62 = vcombine.high %v1408_v47, %v1412_v51  ;;  %v1417_v41 = vld [vmem:[#allocation3 + $0x588] sm:$0xff] }
 0x222   : > { %v1232_v3 = vmax.f32 %v1185_v40, 0.0  ;;  %v1189_v4 = vpop.f32.mrb[3].mxu1  ;;  %v1230_v5 = vpop.f32.mrb[7].mxu0  ;;  %v1420_v40 = vld [vmem:[#allocation3 + $0x5a0] sm:$0xff]  ;;  %v1421_v42 = vld [vmem:[#allocation3 + $0x5a8] sm:$0xff] }
 0x223   : > { %v1233_v6 = vmax.f32 %v1187_v44, 0.0  ;;  %v1235_v8 = vmax.f32 %v1228_v45, 0.0  ;;  %v3799_v44 = vcombine.low %v1408_v47, %v1412_v51  ;;  %v3808_v1 = vcombine.high %v1416_v0, %v1420_v40  ;;  %v1428_v4 = vld [vmem:[#allocation3 + $0x5e0] sm:$0xff]  ;;  %v1425_v5 = vld [vmem:[#allocation3 + $0x5c8] sm:$0xff] }
 0x224   : > { %v4669_v13 = vpack.c.bf16 %v1232_v3, %v1232_v3  ;;  %v3810_v2 = vcombine.high %v1417_v41, %v1421_v42  ;;  %v1424_v3 = vld [vmem:[#allocation3 + $0x5c0] sm:$0xff]  ;;  %v3807_v7 = vcombine.low %v1416_v0, %v1420_v40  ;;  %v1461_v47 = vld [vmem:[#allocation3 + $0x6e8] sm:$0xff] }
 0x225   : > { %v4667_v12 = vpack.c.bf16 %v1233_v6, %v1233_v6  ;;  %v4673_v20 = vpack.c.bf16 %v1235_v8, %v1235_v8  ;;  %v1429_v6 = vld [vmem:[#allocation3 + $0x5e8] sm:$0xff]  ;;  %v3809_v8 = vcombine.low %v1417_v41, %v1421_v42  ;;  %v3816_v9 = vcombine.high %v1424_v3, %v1428_v4 }
 0x226   : > { %v3818_v10 = vcombine.high %v1425_v5, %v1429_v6  ;;  %v3815_v17 = vcombine.low %v1424_v3, %v1428_v4  ;;  %v3817_v18 = vcombine.low %v1425_v5, %v1429_v6  ;;  %v1469_v0 = vld [vmem:[#allocation3 + $0x728] sm:$0xff] }
 0x227   : > { %2850 = vmatprep.mubr.bf16.mxu1 %v4667_v12  ;;  %2932 = vmatprep.mubr.bf16.mxu0 %v4667_v12  ;;  %v1477_v3 = vld [vmem:[#allocation3 + $0x768] sm:$0xff] }
 0x228   : > { %2851 = vmatmul.mubr.bf16.vlgmr.msra.gmra.mrb[4].mxu1 %v4669_v13  ;;  %2933 = vmatmul.mubr.bf16.vlgmr.msra.gmra.mrb[8].mxu0 %v4669_v13 }
 0x229   : > { %2860 = vmatpush1.bf16.msra.mxu1 %v3759_v54  ;;  %2942 = vmatpush1.bf16.msra.mxu0 %v3761_v55  ;;  %v1409_v54 = vld [vmem:[#allocation3 + $0x548] sm:$0xff] }
 0x22a   : > { %2891 = vmatprep.mubr.bf16.mxu1 %v4673_v20  ;;  %2973 = vmatprep.mubr.bf16.mxu0 %v4673_v20  ;;  %v1413_v55 = vld [vmem:[#allocation3 + $0x568] sm:$0xff] }
 0x22b   : > { %2861 = vmatprep.subr.bf16.mxu1 %v3768_v15  ;;  %2943 = vmatprep.subr.bf16.mxu0 %v3770_v16  ;;  %v3802_v63 = vcombine.high %v1409_v54, %v1413_v55  ;;  %v3801_v45 = vcombine.low %v1409_v54, %v1413_v55  ;;  %v1433_v15 = vld [vmem:[#allocation3 + $0x608] sm:$0xff] }
 0x22c   : > { %v1437_v16 = vld [vmem:[#allocation3 + $0x628] sm:$0xff] }
 0x22d   : > { %2862 = vmatpush1.bf16.msra.mxu1 %v3767_v21  ;;  %2944 = vmatpush1.bf16.msra.mxu0 %v3769_v22  ;;  %v3826_v21 = vcombine.high %v1433_v15, %v1437_v16  ;;  %v1440_v22 = vld [vmem:[#allocation3 + $0x640] sm:$0xff]  ;;  %v3825_v27 = vcombine.low %v1433_v15, %v1437_v16  ;;  %v821_v16 = vrot.slane %v4654_v58, %v4625_v57  ;;  %v1246_v58 = vld [vmem:[#allocation3 + $0x30] sm:$0xff] }
 0x22e   : > { %2863 = vmatprep.subr.bf16.mxu1 %v3776_v23  ;;  %2945 = vmatprep.subr.bf16.mxu0 %v3778_v24  ;;  %v1444_v23 = vld [vmem:[#allocation3 + $0x660] sm:$0xff]  ;;  %v1441_v24 = vld [vmem:[#allocation3 + $0x648] sm:$0xff] }
 0x22f   : > { %v3832_v28 = vcombine.high %v1440_v22, %v1444_v23  ;;  %v3831_v34 = vcombine.low %v1440_v22, %v1444_v23  ;;  %v3833_v35 = vcombine.low %v1441_v24, %v1445_v25  ;;  %v1489_v22 = vld [vmem:[#allocation3 + $0x7c8] sm:$0xff] }
 0x230   : > { %v1493_v23 = vld [vmem:[#allocation3 + $0x7e8] sm:$0xff] }
 0x231   : > { %2864 = vmatpush1.bf16.msra.mxu1 %v3775_v29  ;;  %2946 = vmatpush1.bf16.msra.mxu0 %v3777_v30  ;;  %v3834_v29 = vcombine.high %v1441_v24, %v1445_v25  ;;  %v1448_v30 = vld [vmem:[#allocation3 + $0x680] sm:$0xff] }
 0x232   : > { %2865 = vmatprep.subr.bf16.mxu1 %v3784_v31  ;;  %2947 = vmatprep.subr.bf16.mxu0 %v3786_v32  ;;  %v1452_v31 = vld [vmem:[#allocation3 + $0x6a0] sm:$0xff]  ;;  %v1449_v32 = vld [vmem:[#allocation3 + $0x688] sm:$0xff] }
 0x233   : > { %v3840_v36 = vcombine.high %v1448_v30, %v1452_v31  ;;  %v3839_v51 = vcombine.low %v1448_v30, %v1452_v31  ;;  %v3841_v54 = vcombine.low %v1449_v32, %v1453_v33  ;;  %v1243_v30 = vld [vmem:[#allocation3 + $0x18] sm:$0xff] }
 0x234   : > { %v1247_v31 = vld [vmem:[#allocation3 + $0x38] sm:$0xff] }
 0x235   : > { %2866 = vmatpush1.bf16.msra.mxu1 %v3783_v37  ;;  %2948 = vmatpush1.bf16.msra.mxu0 %v3785_v38  ;;  %v3842_v37 = vcombine.high %v1449_v32, %v1453_v33  ;;  %v1456_v38 = vld [vmem:[#allocation3 + $0x6c0] sm:$0xff]  ;;  %v3881_v33 = vcombine.low %v1489_v22, %v1493_v23 }
 0x236   : > { %2867 = vmatprep.subr.bf16.mxu1 %v3792_v43  ;;  %2949 = vmatprep.subr.bf16.mxu0 %v3794_v46  ;;  %v1460_v43 = vld [vmem:[#allocation3 + $0x6e0] sm:$0xff]  ;;  %v1457_v46 = vld [vmem:[#allocation3 + $0x6c8] sm:$0xff] }
 0x237   : > { %v3848_v55 = vcombine.high %v1456_v38, %v1460_v43  ;;  %v3847_v40 = vcombine.low %v1456_v38, %v1460_v43  ;;  %v3849_v41 = vcombine.low %v1457_v46, %v1461_v47  ;;  %v1254_v38 = vld [vmem:[#allocation3 + $0x70] sm:$0xff]  ;;  %v1255_v43 = vld [vmem:[#allocation3 + $0x78] sm:$0xff] }
 0x239   : > { %2868 = vmatpush1.bf16.msra.mxu1 %v3791_v56  ;;  %2950 = vmatpush1.bf16.msra.mxu0 %v3793_v61  ;;  %v3850_v56 = vcombine.high %v1457_v46, %v1461_v47  ;;  %v1464_v61 = vld [vmem:[#allocation3 + $0x700] sm:$0xff] }
 0x23a   : > { %2869 = vmatprep.subr.bf16.mxu1 %v3800_v62  ;;  %2951 = vmatprep.subr.bf16.mxu0 %v3802_v63  ;;  %v1468_v62 = vld [vmem:[#allocation3 + $0x720] sm:$0xff]  ;;  %v1465_v63 = vld [vmem:[#allocation3 + $0x708] sm:$0xff] }
 0x23b   : > { %v3856_v42 = vcombine.high %v1464_v61, %v1468_v62  ;;  %v3855_v4 = vcombine.low %v1464_v61, %v1468_v62  ;;  %v3857_v5 = vcombine.low %v1465_v63, %v1469_v0  ;;  %v1262_v61 = vld [vmem:[#allocation3 + $0xb0] sm:$0xff]  ;;  %v1259_v62 = vld [vmem:[#allocation3 + $0x98] sm:$0xff] }
 0x23d   : > { %2870 = vmatpush1.bf16.msra.mxu1 %v3799_v44  ;;  %2952 = vmatpush1.bf16.msra.mxu0 %v3801_v45  ;;  %v3858_v44 = vcombine.high %v1465_v63, %v1469_v0  ;;  %v1472_v45 = vld [vmem:[#allocation3 + $0x740] sm:$0xff]  ;;  %v1263_v63 = vld [vmem:[#allocation3 + $0xb8] sm:$0xff] }
 0x23e   : > { %2871 = vmatprep.subr.bf16.mxu1 %v3808_v1  ;;  %2953 = vmatprep.subr.bf16.mxu0 %v3810_v2  ;;  %v1476_v1 = vld [vmem:[#allocation3 + $0x760] sm:$0xff]  ;;  %v1473_v2 = vld [vmem:[#allocation3 + $0x748] sm:$0xff] }
 0x23f   : > { %v3864_v6 = vcombine.high %v1472_v45, %v1476_v1  ;;  %v3863_v14 = vcombine.low %v1472_v45, %v1476_v1  ;;  %v3865_v15 = vcombine.low %v1473_v2, %v1477_v3  ;;  %v1270_v45 = vld [vmem:[#allocation3 + $0xf0] sm:$0xff]  ;;  %v1267_v1 = vld [vmem:[#allocation3 + $0xd8] sm:$0xff] }
 0x241   : > { %2872 = vmatpush1.bf16.msra.mxu1 %v3807_v7  ;;  %2954 = vmatpush1.bf16.msra.mxu0 %v3809_v8  ;;  %v3866_v7 = vcombine.high %v1473_v2, %v1477_v3  ;;  %v1480_v8 = vld [vmem:[#allocation3 + $0x780] sm:$0xff]  ;;  %v1271_v2 = vld [vmem:[#allocation3 + $0xf8] sm:$0xff] }
 0x242   : > { %2873 = vmatprep.subr.bf16.mxu1 %v3816_v9  ;;  %2955 = vmatprep.subr.bf16.mxu0 %v3818_v10  ;;  %v1484_v9 = vld [vmem:[#allocation3 + $0x7a0] sm:$0xff]  ;;  %v1481_v10 = vld [vmem:[#allocation3 + $0x788] sm:$0xff] }
 0x243   : > { %v3871_v24 = vcombine.low %v1480_v8, %v1484_v9  ;;  %v3873_v25 = vcombine.low %v1481_v10, %v1485_v11 }
 0x245   : > { %2874 = vmatpush1.bf16.msra.mxu1 %v3815_v17  ;;  %2956 = vmatpush1.bf16.msra.mxu0 %v3817_v18  ;;  %v3872_v17 = vcombine.high %v1480_v8, %v1484_v9  ;;  %v3874_v18 = vcombine.high %v1481_v10, %v1485_v11  ;;  %v1278_v8 = vld [vmem:[#allocation3 + $0x130] sm:$0xff]  ;;  %v1279_v9 = vld [vmem:[#allocation3 + $0x138] sm:$0xff]  ;;  %v3661_v11 = vcombine.low %v1267_v1, %v1271_v2 }
 0x246   : > { %2875 = vmatprep.subr.bf16.mxu1 %v3824_v19  ;;  %2957 = vmatprep.subr.bf16.mxu0 %v3826_v21  ;;  %v1488_v19 = vld [vmem:[#allocation3 + $0x7c0] sm:$0xff] }
 0x247   : > { %v1492_v21 = vld [vmem:[#allocation3 + $0x7e0] sm:$0xff] }
 0x248   : > { %v3879_v32 = vcombine.low %v1488_v19, %v1492_v21 }
 0x249   : > { %2876 = vmatpush1.bf16.msra.mxu1 %v3823_v26  ;;  %2958 = vmatpush1.bf16.msra.mxu0 %v3825_v27  ;;  %v1226_v26 = vadd.f32 %v4665_v39, %v821_v16  ;;  %v3880_v27 = vcombine.high %v1488_v19, %v1492_v21  ;;  %v1251_v39 = vld [vmem:[#allocation3 + $0x58] sm:$0xff]  ;;  %v1282_v16 = vld [vmem:[#allocation3 + $0x150] sm:$0xff] }
 0x24a   : > { %2877 = vmatprep.subr.bf16.mxu1 %v3832_v28  ;;  %2959 = vmatprep.subr.bf16.mxu0 %v3834_v29  ;;  %v3882_v28 = vcombine.high %v1489_v22, %v1493_v23  ;;  %v1242_v29 = vld [vmem:[#allocation3 + $0x10] sm:$0xff]  ;;  %v1287_v19 = vld [vmem:[#allocation3 + $0x178] sm:$0xff] }
 0x24b   : > { %v3635_v46 = vcombine.low %v1242_v29, %v1246_v58 }
 0x24d   : > { %2878 = vmatpush1.bf16.msra.mxu1 %v3831_v34  ;;  %2960 = vmatpush1.bf16.msra.mxu0 %v3833_v35  ;;  %v1234_v34 = vmax.f32 %v1226_v26, 0.0  ;;  %v3636_v35 = vcombine.high %v1242_v29, %v1246_v58  ;;  %v1294_v26 = vld [vmem:[#allocation3 + $0x1b0] sm:$0xff] }
 0x24e   : > { %2879 = vmatprep.subr.bf16.mxu1 %v3840_v36  ;;  %2961 = vmatprep.subr.bf16.mxu0 %v3842_v37  ;;  %v3638_v36 = vcombine.high %v1243_v30, %v1247_v31  ;;  %v1250_v37 = vld [vmem:[#allocation3 + $0x50] sm:$0xff] }
 0x24f   : > { %v4682_v47 = vpack.c.bf16 %v1234_v34, %v1234_v34  ;;  %v3643_v0 = vcombine.low %v1250_v37, %v1254_v38  ;;  %v1299_v34 = vld [vmem:[#allocation3 + $0x1d8] sm:$0xff] }
 0x251   : > { %2880 = vmatpush1.bf16.msra.mxu1 %v3839_v51  ;;  %2962 = vmatpush1.bf16.msra.mxu0 %v3841_v54  ;;  %v3637_v51 = vcombine.low %v1243_v30, %v1247_v31  ;;  %v3644_v54 = vcombine.high %v1250_v37, %v1254_v38 }
 0x252   : > { %2881 = vmatprep.subr.bf16.mxu1 %v3848_v55  ;;  %2963 = vmatprep.subr.bf16.mxu0 %v3850_v56  ;;  %v3646_v55 = vcombine.high %v1251_v39, %v1255_v43  ;;  %v1258_v56 = vld [vmem:[#allocation3 + $0x90] sm:$0xff] }
 0x253   : > { %v3651_v3 = vcombine.low %v1258_v56, %v1262_v61 }
 0x255   : > { %2882 = vmatpush1.bf16.msra.mxu1 %v3847_v40  ;;  %2964 = vmatpush1.bf16.msra.mxu0 %v3849_v41  ;;  %v3645_v40 = vcombine.low %v1251_v39, %v1255_v43  ;;  %v3652_v41 = vcombine.high %v1258_v56, %v1262_v61  ;;  %v1306_v43 = vld [vmem:[#allocation3 + $0x210] sm:$0xff] }
 0x256   : > { %2883 = vmatprep.subr.bf16.mxu1 %v3856_v42  ;;  %2965 = vmatprep.subr.bf16.mxu0 %v3858_v44  ;;  %v3654_v42 = vcombine.high %v1259_v62, %v1263_v63  ;;  %v1266_v44 = vld [vmem:[#allocation3 + $0xd0] sm:$0xff] }
 0x257   : > { %v3659_v10 = vcombine.low %v1266_v44, %v1270_v45 }
 0x259   : > { %2884 = vmatpush1.bf16.msra.mxu1 %v3855_v4  ;;  %2966 = vmatpush1.bf16.msra.mxu0 %v3857_v5  ;;  %v3653_v4 = vcombine.low %v1259_v62, %v1263_v63  ;;  %v3660_v5 = vcombine.high %v1266_v44, %v1270_v45  ;;  %v1314_v63 = vld [vmem:[#allocation3 + $0x250] sm:$0xff] }
 0x25a   : > { %2885 = vmatprep.subr.bf16.mxu1 %v3864_v6  ;;  %2967 = vmatprep.subr.bf16.mxu0 %v3866_v7  ;;  %v3662_v6 = vcombine.high %v1267_v1, %v1271_v2  ;;  %v1274_v7 = vld [vmem:[#allocation3 + $0x110] sm:$0xff] }
 0x25b   : > { %v3667_v21 = vcombine.low %v1274_v7, %v1278_v8  ;;  %v1322_v2 = vld [vmem:[#allocation3 + $0x290] sm:$0xff] }
 0x25d   : > { %2886 = vmatpush1.bf16.msra.mxu1 %v3863_v14  ;;  %2968 = vmatpush1.bf16.msra.mxu0 %v3865_v15  ;;  %v3668_v14 = vcombine.high %v1274_v7, %v1278_v8 }
 0x25e   : > { %2887 = vmatprep.subr.bf16.mxu1 %v3872_v17  ;;  %2969 = vmatprep.subr.bf16.mxu0 %v3874_v18  ;;  %v1286_v17 = vld [vmem:[#allocation3 + $0x170] sm:$0xff]  ;;  %v1283_v18 = vld [vmem:[#allocation3 + $0x158] sm:$0xff] }
 0x25f   : > { %v3676_v23 = vcombine.high %v1282_v16, %v1286_v17  ;;  %v3675_v29 = vcombine.low %v1282_v16, %v1286_v17  ;;  %v3677_v58 = vcombine.low %v1283_v18, %v1287_v19 }
 0x261   : > { %2888 = vmatpush1.bf16.msra.mxu1 %v3871_v24  ;;  %2970 = vmatpush1.bf16.msra.mxu0 %v3873_v25  ;;  %v3678_v24 = vcombine.high %v1283_v18, %v1287_v19  ;;  %v1290_v25 = vld [vmem:[#allocation3 + $0x190] sm:$0xff] }
 0x262   : > { %2889 = vmatprep.subr.bf16.mxu1 %v3880_v27  ;;  %2971 = vmatprep.subr.bf16.mxu0 %v3882_v28  ;;  %v1291_v27 = vld [vmem:[#allocation3 + $0x198] sm:$0xff]  ;;  %v3684_v30 = vcombine.high %v1290_v25, %v1294_v26  ;;  %v1338_v19 = vld [vmem:[#allocation3 + $0x310] sm:$0xff] }
 0x263   : > { %v1295_v28 = vld [vmem:[#allocation3 + $0x1b8] sm:$0xff] }
 0x264   : > { %v3686_v31 = vcombine.high %v1291_v27, %v1295_v28  ;;  %v3685_v37 = vcombine.low %v1291_v27, %v1295_v28  ;;  %v1346_v28 = vld [vmem:[#allocation3 + $0x350] sm:$0xff] }
 0x265   : > { %2890 = vmatpush1.bf16.msra.mxu1 %v3879_v32  ;;  %2972 = vmatpush1.bf16.msra.mxu0 %v3881_v33  ;;  %v1298_v32 = vld [vmem:[#allocation3 + $0x1d0] sm:$0xff] }
 0x266   : > { %2982 = vmatprep.subr.bf16.mxu1 %v3636_v35  ;;  %3064 = vmatprep.subr.bf16.mxu0 %v3638_v36  ;;  %v1302_v33 = vld [vmem:[#allocation3 + $0x1f0] sm:$0xff]  ;;  %v1303_v35 = vld [vmem:[#allocation3 + $0x1f8] sm:$0xff]  ;;  %v3683_v36 = vcombine.low %v1290_v25, %v1294_v26 }
 0x267   : > { %v3692_v38 = vcombine.high %v1298_v32, %v1302_v33  ;;  %v3694_v39 = vcombine.high %v1299_v34, %v1303_v35  ;;  %v3693_v56 = vcombine.low %v1299_v34, %v1303_v35  ;;  %v1354_v35 = vld [vmem:[#allocation3 + $0x390] sm:$0xff] }
 0x268   : > { %2892 = vmatmul.mubr.bf16.vlgmr.msra.gmra.mrb[4].mxu1 %v4682_v47  ;;  %2974 = vmatmul.mubr.bf16.vlgmr.msra.gmra.mrb[8].mxu0 %v4682_v47 }
 0x269   : > { %2983 = vmatpush1.bf16.msra.mxu1 %v3635_v46  ;;  %3014 = vmatprep.mubr.bf16.mxu1 %v4667_v12  ;;  %v1310_v46 = vld [vmem:[#allocation3 + $0x230] sm:$0xff] }
 0x26a   : > { %3065 = vmatpush1.bf16.msra.mxu0 %v3637_v51  ;;  %3096 = vmatprep.mubr.bf16.mxu0 %v4667_v12  ;;  %v1275_v12 = vld [vmem:[#allocation3 + $0x118] sm:$0xff]  ;;  %v3700_v61 = vcombine.high %v1306_v43, %v1310_v46 }
 0x26b   : > { %2984 = vmatprep.subr.bf16.mxu1 %v3644_v54  ;;  %3066 = vmatprep.subr.bf16.mxu0 %v3646_v55  ;;  %v3670_v15 = vcombine.high %v1275_v12, %v1279_v9  ;;  %v3669_v22 = vcombine.low %v1275_v12, %v1279_v9  ;;  %v1307_v51 = vld [vmem:[#allocation3 + $0x218] sm:$0xff]  ;;  %v3691_v55 = vcombine.low %v1298_v32, %v1302_v33  ;;  %v1330_v9 = vld [vmem:[#allocation3 + $0x2d0] sm:$0xff] }
 0x26c   : > { %v1311_v54 = vld [vmem:[#allocation3 + $0x238] sm:$0xff] }
 0x26d   : > { %2985 = vmatpush1.bf16.msra.mxu1 %v3643_v0  ;;  %v3702_v62 = vcombine.high %v1307_v51, %v1311_v54  ;;  %v1318_v0 = vld [vmem:[#allocation3 + $0x270] sm:$0xff]  ;;  %v3701_v44 = vcombine.low %v1307_v51, %v1311_v54 }
 0x26e   : > { %3067 = vmatpush1.bf16.msra.mxu0 %v3645_v40  ;;  %2986 = vmatprep.subr.bf16.mxu1 %v3652_v41  ;;  %v1315_v40 = vld [vmem:[#allocation3 + $0x258] sm:$0xff]  ;;  %v3708_v45 = vcombine.high %v1314_v63, %v1318_v0  ;;  %v1362_v54 = vld [vmem:[#allocation3 + $0x3d0] sm:$0xff] }
 0x26f   : > { %3068 = vmatprep.subr.bf16.mxu0 %v3654_v42  ;;  %v1319_v41 = vld [vmem:[#allocation3 + $0x278] sm:$0xff]  ;;  %v3699_v42 = vcombine.low %v1306_v43, %v1310_v46 }
 0x270   : > { %v3710_v1 = vcombine.high %v1315_v40, %v1319_v41  ;;  %v3709_v7 = vcombine.low %v1315_v40, %v1319_v41  ;;  %v1370_v41 = vld [vmem:[#allocation3 + $0x410] sm:$0xff] }
 0x271   : > { %2987 = vmatpush1.bf16.msra.mxu1 %v3651_v3  ;;  %v1326_v3 = vld [vmem:[#allocation3 + $0x2b0] sm:$0xff] }
 0x272   : > { %3069 = vmatpush1.bf16.msra.mxu0 %v3653_v4  ;;  %2988 = vmatprep.subr.bf16.mxu1 %v3660_v5  ;;  %v1323_v4 = vld [vmem:[#allocation3 + $0x298] sm:$0xff]  ;;  %v3716_v8 = vcombine.high %v1322_v2, %v1326_v3 }
 0x273   : > { %3070 = vmatprep.subr.bf16.mxu0 %v3662_v6  ;;  %v1327_v5 = vld [vmem:[#allocation3 + $0x2b8] sm:$0xff]  ;;  %v3707_v6 = vcombine.low %v1314_v63, %v1318_v0 }
 0x274   : > { %v3718_v12 = vcombine.high %v1323_v4, %v1327_v5  ;;  %v3717_v16 = vcombine.low %v1323_v4, %v1327_v5  ;;  %v1378_v5 = vld [vmem:[#allocation3 + $0x450] sm:$0xff] }
 0x275   : > { %2989 = vmatpush1.bf16.msra.mxu1 %v3659_v10  ;;  %v1334_v10 = vld [vmem:[#allocation3 + $0x2f0] sm:$0xff] }
 0x276   : > { %3071 = vmatpush1.bf16.msra.mxu0 %v3661_v11  ;;  %2990 = vmatprep.subr.bf16.mxu1 %v3668_v14  ;;  %v1331_v11 = vld [vmem:[#allocation3 + $0x2d8] sm:$0xff]  ;;  %v3724_v17 = vcombine.high %v1330_v9, %v1334_v10 }
 0x277   : > { %3072 = vmatprep.subr.bf16.mxu0 %v3670_v15  ;;  %v1335_v14 = vld [vmem:[#allocation3 + $0x2f8] sm:$0xff]  ;;  %v3715_v15 = vcombine.low %v1322_v2, %v1326_v3 }
 0x278   : > { %v3726_v18 = vcombine.high %v1331_v11, %v1335_v14  ;;  %v3725_v25 = vcombine.low %v1331_v11, %v1335_v14  ;;  %v1386_v11 = vld [vmem:[#allocation3 + $0x490] sm:$0xff] }
 0x279   : > { %2991 = vmatpush1.bf16.msra.mxu1 %v3667_v21  ;;  %v1342_v21 = vld [vmem:[#allocation3 + $0x330] sm:$0xff] }
 0x27a   : > { %3073 = vmatpush1.bf16.msra.mxu0 %v3669_v22  ;;  %2992 = vmatprep.subr.bf16.mxu1 %v3676_v23  ;;  %v1339_v22 = vld [vmem:[#allocation3 + $0x318] sm:$0xff]  ;;  %v3732_v26 = vcombine.high %v1338_v19, %v1342_v21  ;;  %v1390_v14 = vld [vmem:[#allocation3 + $0x4b0] sm:$0xff] }
 0x27b   : > { %3074 = vmatprep.subr.bf16.mxu0 %v3678_v24  ;;  %v1343_v23 = vld [vmem:[#allocation3 + $0x338] sm:$0xff]  ;;  %v3723_v24 = vcombine.low %v1330_v9, %v1334_v10 }
 0x27c   : > { %v3734_v27 = vcombine.high %v1339_v22, %v1343_v23  ;;  %v3733_v32 = vcombine.low %v1339_v22, %v1343_v23  ;;  %v1394_v23 = vld [vmem:[#allocation3 + $0x4d0] sm:$0xff] }
 0x27d   : > { %2993 = vmatpush1.bf16.msra.mxu1 %v3675_v29  ;;  %v1350_v29 = vld [vmem:[#allocation3 + $0x370] sm:$0xff] }
 0x27e   : > { %3075 = vmatpush1.bf16.msra.mxu0 %v3677_v58  ;;  %2994 = vmatprep.subr.bf16.mxu1 %v3684_v30  ;;  %v1347_v58 = vld [vmem:[#allocation3 + $0x358] sm:$0xff]  ;;  %v3740_v33 = vcombine.high %v1346_v28, %v1350_v29 }
 0x27f   : > { %3076 = vmatprep.subr.bf16.mxu0 %v3686_v31  ;;  %v1351_v30 = vld [vmem:[#allocation3 + $0x378] sm:$0xff]  ;;  %v3731_v31 = vcombine.low %v1338_v19, %v1342_v21  ;;  %v3780_v21 = vcombine.high %v1386_v11, %v1390_v14 }
 0x280   : > { %v3742_v34 = vcombine.high %v1347_v58, %v1351_v30  ;;  %v3741_v43 = vcombine.low %v1347_v58, %v1351_v30  ;;  %v1402_v58 = vld [vmem:[#allocation3 + $0x510] sm:$0xff] }
 0x281   : > { %2995 = vmatpush1.bf16.msra.mxu1 %v3683_v36  ;;  %v1358_v36 = vld [vmem:[#allocation3 + $0x3b0] sm:$0xff] }
 0x282   : > { %3077 = vmatpush1.bf16.msra.mxu0 %v3685_v37  ;;  %2996 = vmatprep.subr.bf16.mxu1 %v3692_v38  ;;  %v1355_v37 = vld [vmem:[#allocation3 + $0x398] sm:$0xff]  ;;  %v3748_v46 = vcombine.high %v1354_v35, %v1358_v36  ;;  %v1406_v30 = vld [vmem:[#allocation3 + $0x530] sm:$0xff] }
 0x283   : > { %3078 = vmatprep.subr.bf16.mxu0 %v3694_v39  ;;  %v1359_v38 = vld [vmem:[#allocation3 + $0x3b8] sm:$0xff]  ;;  %v3739_v39 = vcombine.low %v1346_v28, %v1350_v29 }
 0x284   : > { %v3750_v51 = vcombine.high %v1355_v37, %v1359_v38  ;;  %v3749_v63 = vcombine.low %v1355_v37, %v1359_v38  ;;  %v1414_v37 = vld [vmem:[#allocation3 + $0x570] sm:$0xff]  ;;  %v1411_v38 = vld [vmem:[#allocation3 + $0x558] sm:$0xff] }
 0x285   : > { %2997 = vmatpush1.bf16.msra.mxu1 %v3691_v55  ;;  %v1366_v55 = vld [vmem:[#allocation3 + $0x3f0] sm:$0xff] }
 0x286   : > { %3079 = vmatpush1.bf16.msra.mxu0 %v3693_v56  ;;  %2998 = vmatprep.subr.bf16.mxu1 %v3700_v61  ;;  %v1363_v56 = vld [vmem:[#allocation3 + $0x3d8] sm:$0xff]  ;;  %v3756_v0 = vcombine.high %v1362_v54, %v1366_v55 }
 0x287   : > { %3080 = vmatprep.subr.bf16.mxu0 %v3702_v62  ;;  %v1367_v61 = vld [vmem:[#allocation3 + $0x3f8] sm:$0xff]  ;;  %v3747_v62 = vcombine.low %v1354_v35, %v1358_v36  ;;  %v1410_v36 = vld [vmem:[#allocation3 + $0x550] sm:$0xff] }
 0x288   : > { %v3758_v40 = vcombine.high %v1363_v56, %v1367_v61  ;;  %v3757_v2 = vcombine.low %v1363_v56, %v1367_v61  ;;  %v1422_v56 = vld [vmem:[#allocation3 + $0x5b0] sm:$0xff]  ;;  %v1419_v61 = vld [vmem:[#allocation3 + $0x598] sm:$0xff] }
 0x289   : > { %2999 = vmatpush1.bf16.msra.mxu1 %v3699_v42  ;;  %v1374_v42 = vld [vmem:[#allocation3 + $0x430] sm:$0xff] }
 0x28a   : > { %3081 = vmatpush1.bf16.msra.mxu0 %v3701_v44  ;;  %3000 = vmatprep.subr.bf16.mxu1 %v3708_v45  ;;  %v1371_v44 = vld [vmem:[#allocation3 + $0x418] sm:$0xff]  ;;  %v3764_v3 = vcombine.high %v1370_v41, %v1374_v42 }
 0x28b   : > { %3082 = vmatprep.subr.bf16.mxu0 %v3710_v1  ;;  %v1375_v45 = vld [vmem:[#allocation3 + $0x438] sm:$0xff]  ;;  %v3755_v1 = vcombine.low %v1362_v54, %v1366_v55  ;;  %v1418_v55 = vld [vmem:[#allocation3 + $0x590] sm:$0xff] }
 0x28c   : > { %v3766_v4 = vcombine.high %v1371_v44, %v1375_v45  ;;  %v3765_v9 = vcombine.low %v1371_v44, %v1375_v45  ;;  %v1430_v44 = vld [vmem:[#allocation3 + $0x5f0] sm:$0xff]  ;;  %v1427_v45 = vld [vmem:[#allocation3 + $0x5d8] sm:$0xff] }
 0x28d   : > { %3001 = vmatpush1.bf16.msra.mxu1 %v3707_v6  ;;  %v1382_v6 = vld [vmem:[#allocation3 + $0x470] sm:$0xff] }
 0x28e   : > { %3083 = vmatpush1.bf16.msra.mxu0 %v3709_v7  ;;  %3002 = vmatprep.subr.bf16.mxu1 %v3716_v8  ;;  %v3763_v7 = vcombine.low %v1370_v41, %v1374_v42  ;;  %v1379_v8 = vld [vmem:[#allocation3 + $0x458] sm:$0xff]  ;;  %v3772_v10 = vcombine.high %v1378_v5, %v1382_v6  ;;  %v1426_v42 = vld [vmem:[#allocation3 + $0x5d0] sm:$0xff] }
 0x28f   : > { %3084 = vmatprep.subr.bf16.mxu0 %v3718_v12  ;;  %v1383_v12 = vld [vmem:[#allocation3 + $0x478] sm:$0xff] }
 0x290   : > { %v3773_v19 = vcombine.low %v1379_v8, %v1383_v12 }
 0x291   : > { %3003 = vmatpush1.bf16.msra.mxu1 %v3715_v15  ;;  %v3774_v15 = vcombine.high %v1379_v8, %v1383_v12  ;;  %v1435_v8 = vld [vmem:[#allocation3 + $0x618] sm:$0xff] }
 0x292   : > { %3085 = vmatpush1.bf16.msra.mxu0 %v3717_v16  ;;  %3004 = vmatprep.subr.bf16.mxu1 %v3724_v17  ;;  %v1387_v16 = vld [vmem:[#allocation3 + $0x498] sm:$0xff] }
 0x293   : > { %3086 = vmatprep.subr.bf16.mxu0 %v3726_v18  ;;  %v1391_v17 = vld [vmem:[#allocation3 + $0x4b8] sm:$0xff]  ;;  %v3771_v18 = vcombine.low %v1378_v5, %v1382_v6  ;;  %v1434_v6 = vld [vmem:[#allocation3 + $0x610] sm:$0xff] }
 0x294   : > { %v3782_v22 = vcombine.high %v1387_v16, %v1391_v17  ;;  %v1439_v12 = vld [vmem:[#allocation3 + $0x638] sm:$0xff] }
 0x295   : > { %3005 = vmatpush1.bf16.msra.mxu1 %v3723_v24  ;;  %v1398_v24 = vld [vmem:[#allocation3 + $0x4f0] sm:$0xff] }
 0x296   : > { %3087 = vmatpush1.bf16.msra.mxu0 %v3725_v25  ;;  %3006 = vmatprep.subr.bf16.mxu1 %v3732_v26  ;;  %v1395_v25 = vld [vmem:[#allocation3 + $0x4d8] sm:$0xff]  ;;  %v3788_v28 = vcombine.high %v1394_v23, %v1398_v24 }
 0x297   : > { %3088 = vmatprep.subr.bf16.mxu0 %v3734_v27  ;;  %v1399_v26 = vld [vmem:[#allocation3 + $0x4f8] sm:$0xff]  ;;  %v3779_v27 = vcombine.low %v1386_v11, %v1390_v14  ;;  %v3830_v14 = vcombine.high %v1435_v8, %v1439_v12 }
 0x298   : > { %v3790_v29 = vcombine.high %v1395_v25, %v1399_v26 }
 0x299   : > { %3007 = vmatpush1.bf16.msra.mxu1 %v3731_v31  ;;  %v1403_v31 = vld [vmem:[#allocation3 + $0x518] sm:$0xff] }
 0x29a   : > { %3089 = vmatpush1.bf16.msra.mxu0 %v3733_v32  ;;  %3008 = vmatprep.subr.bf16.mxu1 %v3740_v33  ;;  %v1407_v32 = vld [vmem:[#allocation3 + $0x538] sm:$0xff]  ;;  %v3789_v33 = vcombine.low %v1395_v25, %v1399_v26  ;;  %v1454_v25 = vld [vmem:[#allocation3 + $0x6b0] sm:$0xff] }
 0x29b   : > { %3090 = vmatprep.subr.bf16.mxu0 %v3742_v34  ;;  %v3796_v34 = vcombine.high %v1402_v58, %v1406_v30  ;;  %v3798_v35 = vcombine.high %v1403_v31, %v1407_v32  ;;  %v1451_v26 = vld [vmem:[#allocation3 + $0x698] sm:$0xff] }
 0x29d   : > { %3009 = vmatpush1.bf16.msra.mxu1 %v3739_v39  ;;  %v1415_v39 = vld [vmem:[#allocation3 + $0x578] sm:$0xff] }
 0x29e   : > { %3091 = vmatpush1.bf16.msra.mxu0 %v3741_v43  ;;  %3010 = vmatprep.subr.bf16.mxu1 %v3748_v46  ;;  %v3795_v43 = vcombine.low %v1402_v58, %v1406_v30  ;;  %v3797_v46 = vcombine.low %v1403_v31, %v1407_v32  ;;  %v3806_v54 = vcombine.high %v1411_v38, %v1415_v39  ;;  %v1458_v30 = vld [vmem:[#allocation3 + $0x6d0] sm:$0xff]  ;;  %v1459_v32 = vld [vmem:[#allocation3 + $0x6d8] sm:$0xff] }
 0x29f   : > { %3092 = vmatprep.subr.bf16.mxu0 %v3750_v51  ;;  %v3804_v51 = vcombine.high %v1410_v36, %v1414_v37  ;;  %v1462_v31 = vld [vmem:[#allocation3 + $0x6f0] sm:$0xff] }
 0x2a1   : > { %3011 = vmatpush1.bf16.msra.mxu1 %v3747_v62  ;;  %v1423_v62 = vld [vmem:[#allocation3 + $0x5b8] sm:$0xff] }
 0x2a2   : > { %3093 = vmatpush1.bf16.msra.mxu0 %v3749_v63  ;;  %3012 = vmatprep.subr.bf16.mxu1 %v3756_v0  ;;  %v3803_v63 = vcombine.low %v1410_v36, %v1414_v37  ;;  %v3805_v0 = vcombine.low %v1411_v38, %v1415_v39  ;;  %v3814_v41 = vcombine.high %v1419_v61, %v1423_v62  ;;  %v1466_v37 = vld [vmem:[#allocation3 + $0x710] sm:$0xff]  ;;  %v1467_v39 = vld [vmem:[#allocation3 + $0x718] sm:$0xff] }
 0x2a3   : > { %3094 = vmatprep.subr.bf16.mxu0 %v3758_v40  ;;  %v3812_v40 = vcombine.high %v1418_v55, %v1422_v56  ;;  %v1470_v38 = vld [vmem:[#allocation3 + $0x730] sm:$0xff] }
 0x2a5   : > { %3013 = vmatpush1.bf16.msra.mxu1 %v3755_v1  ;;  %v1431_v1 = vld [vmem:[#allocation3 + $0x5f8] sm:$0xff] }
 0x2a6   : > { %3095 = vmatpush1.bf16.msra.mxu0 %v3757_v2  ;;  %3023 = vmatprep.subr.bf16.mxu1 %v3764_v3  ;;  %v3811_v2 = vcombine.low %v1418_v55, %v1422_v56  ;;  %v3813_v3 = vcombine.low %v1419_v61, %v1423_v62  ;;  %v3822_v5 = vcombine.high %v1427_v45, %v1431_v1  ;;  %v1474_v56 = vld [vmem:[#allocation3 + $0x750] sm:$0xff]  ;;  %v1475_v62 = vld [vmem:[#allocation3 + $0x758] sm:$0xff] }
 0x2a7   : > { %3105 = vmatprep.subr.bf16.mxu0 %v3766_v4  ;;  %v3820_v4 = vcombine.high %v1426_v42, %v1430_v44  ;;  %v1478_v61 = vld [vmem:[#allocation3 + $0x770] sm:$0xff] }
 0x2a8   : > { %3015 = vmatmul.mubr.bf16.vlgmr.msra.gmra.mrb[8].mxu1 %v4669_v13 }
 0x2a9   : > { %3097 = vmatmul.mubr.bf16.vlgmr.msra.gmra.mrb[12].mxu0 %v4669_v13  ;;  %3024 = vmatpush1.bf16.msra.mxu1 %v3763_v7  ;;  %v3781_v13 = vcombine.low %v1387_v16, %v1391_v17  ;;  %v1438_v7 = vld [vmem:[#allocation3 + $0x630] sm:$0xff]  ;;  %v1443_v17 = vld [vmem:[#allocation3 + $0x658] sm:$0xff] }
 0x2aa   : > { %3055 = vmatprep.mubr.bf16.mxu1 %v4673_v20  ;;  %3106 = vmatpush1.bf16.msra.mxu0 %v3765_v9  ;;  %v3819_v9 = vcombine.low %v1426_v42, %v1430_v44  ;;  %v3828_v11 = vcombine.high %v1434_v6, %v1438_v7  ;;  %v1446_v16 = vld [vmem:[#allocation3 + $0x670] sm:$0xff] }
 0x2ab   : > { %3137 = vmatprep.mubr.bf16.mxu0 %v4673_v20  ;;  %3025 = vmatprep.subr.bf16.mxu1 %v3772_v10  ;;  %v3787_v20 = vcombine.low %v1394_v23, %v1398_v24  ;;  %v3821_v10 = vcombine.low %v1427_v45, %v1431_v1  ;;  %v1450_v24 = vld [vmem:[#allocation3 + $0x690] sm:$0xff]  ;;  %v1483_v1 = vld [vmem:[#allocation3 + $0x798] sm:$0xff] }
 0x2ac   : > { %3107 = vmatprep.subr.bf16.mxu0 %v3774_v15  ;;  %v1442_v15 = vld [vmem:[#allocation3 + $0x650] sm:$0xff] }
 0x2ad   : > { %3026 = vmatpush1.bf16.msra.mxu1 %v3771_v18  ;;  %v1447_v18 = vld [vmem:[#allocation3 + $0x678] sm:$0xff]  ;;  %v1482_v44 = vld [vmem:[#allocation3 + $0x790] sm:$0xff] }
 0x2ae   : > { %3108 = vmatpush1.bf16.msra.mxu0 %v3773_v19  ;;  %3027 = vmatprep.subr.bf16.mxu1 %v3780_v21  ;;  %v3827_v19 = vcombine.low %v1434_v6, %v1438_v7  ;;  %v3829_v21 = vcombine.low %v1435_v8, %v1439_v12  ;;  %v3838_v23 = vcombine.high %v1443_v17, %v1447_v18  ;;  %v1486_v45 = vld [vmem:[#allocation3 + $0x7b0] sm:$0xff]  ;;  %v1491_v12 = vld [vmem:[#allocation3 + $0x7d8] sm:$0xff] }
 0x2af   : > { %3109 = vmatprep.subr.bf16.mxu0 %v3782_v22  ;;  %v3836_v22 = vcombine.high %v1442_v15, %v1446_v16  ;;  %v1490_v7 = vld [vmem:[#allocation3 + $0x7d0] sm:$0xff] }
 0x2b0   : > { %v1494_v8 = vld [vmem:[#allocation3 + $0x7f0] sm:$0xff] }
 0x2b1   : > { %3028 = vmatpush1.bf16.msra.mxu1 %v3779_v27  ;;  %v1455_v27 = vld [vmem:[#allocation3 + $0x6b8] sm:$0xff] }
 0x2b2   : > { %3110 = vmatpush1.bf16.msra.mxu0 %v3781_v13  ;;  %3029 = vmatprep.subr.bf16.mxu1 %v3788_v28  ;;  %v3835_v13 = vcombine.low %v1442_v15, %v1446_v16  ;;  %v3837_v28 = vcombine.low %v1443_v17, %v1447_v18  ;;  %v3846_v58 = vcombine.high %v1451_v26, %v1455_v27  ;;  %v4697_v18 = vld [vmem:[%s4819_s8] sm:$0xff] }
 0x2b3   : > { %3111 = vmatprep.subr.bf16.mxu0 %v3790_v29  ;;  %v3844_v29 = vcombine.high %v1450_v24, %v1454_v25  ;;  %v3883_v16 = vcombine.low %v1490_v7, %v1494_v8 }
 0x2b5   : > { %3030 = vmatpush1.bf16.msra.mxu1 %v3787_v20  ;;  %v1463_v20 = vld [vmem:[#allocation3 + $0x6f8] sm:$0xff] }
 0x2b6   : > { %3112 = vmatpush1.bf16.msra.mxu0 %v3789_v33  ;;  %3031 = vmatprep.subr.bf16.mxu1 %v3796_v34  ;;  %v3843_v33 = vcombine.low %v1450_v24, %v1454_v25  ;;  %v3845_v34 = vcombine.low %v1451_v26, %v1455_v27  ;;  %v3854_v36 = vcombine.high %v1459_v32, %v1463_v20 }
 0x2b7   : > { %3113 = vmatprep.subr.bf16.mxu0 %v3798_v35  ;;  %v3852_v35 = vcombine.high %v1458_v30, %v1462_v31 }
 0x2b9   : > { %3032 = vmatpush1.bf16.msra.mxu1 %v3795_v43  ;;  %v1471_v43 = vld [vmem:[#allocation3 + $0x738] sm:$0xff] }
 0x2ba   : > { %3114 = vmatpush1.bf16.msra.mxu0 %v3797_v46  ;;  %3033 = vmatprep.subr.bf16.mxu1 %v3804_v51  ;;  %v3851_v46 = vcombine.low %v1458_v30, %v1462_v31  ;;  %v3853_v51 = vcombine.low %v1459_v32, %v1463_v20  ;;  %v3862_v55 = vcombine.high %v1467_v39, %v1471_v43 }
 0x2bb   : > { %3115 = vmatprep.subr.bf16.mxu0 %v3806_v54  ;;  %v3860_v54 = vcombine.high %v1466_v37, %v1470_v38 }
 0x2bd   : > { %3034 = vmatpush1.bf16.msra.mxu1 %v3803_v63  ;;  %v1479_v63 = vld [vmem:[#allocation3 + $0x778] sm:$0xff] }
 0x2be   : > { %3116 = vmatpush1.bf16.msra.mxu0 %v3805_v0  ;;  %3035 = vmatprep.subr.bf16.mxu1 %v3812_v40  ;;  %v3859_v0 = vcombine.low %v1466_v37, %v1470_v38  ;;  %v3861_v40 = vcombine.low %v1467_v39, %v1471_v43  ;;  %v3870_v42 = vcombine.high %v1475_v62, %v1479_v63 }
 0x2bf   : > { %3117 = vmatprep.subr.bf16.mxu0 %v3814_v41  ;;  %v3868_v41 = vcombine.high %v1474_v56, %v1478_v61 }
 0x2c1   : > { %3036 = vmatpush1.bf16.msra.mxu1 %v3811_v2  ;;  %v1487_v2 = vld [vmem:[#allocation3 + $0x7b8] sm:$0xff] }
 0x2c2   : > { %3118 = vmatpush1.bf16.msra.mxu0 %v3813_v3  ;;  %3037 = vmatprep.subr.bf16.mxu1 %v3820_v4  ;;  %v3867_v3 = vcombine.low %v1474_v56, %v1478_v61  ;;  %v3869_v4 = vcombine.low %v1475_v62, %v1479_v63  ;;  %v3878_v6 = vcombine.high %v1483_v1, %v1487_v2  ;;  %v4171_v62 = vmov 1966171168  }
 0x2c3   : > { %3119 = vmatprep.subr.bf16.mxu0 %v3822_v5  ;;  %v3876_v5 = vcombine.high %v1482_v44, %v1486_v45  ;;  %v3232_v63 = vunpack.c.l.s4 %v4171_v62 }
 0x2c5   : > { %3038 = vmatpush1.bf16.msra.mxu1 %v3819_v9  ;;  %v1495_v9 = vld [vmem:[#allocation3 + $0x7f8] sm:$0xff] }
 0x2c6   : > { %3120 = vmatpush1.bf16.msra.mxu0 %v3821_v10  ;;  %3039 = vmatprep.subr.bf16.mxu1 %v3828_v11  ;;  %v3875_v10 = vcombine.low %v1482_v44, %v1486_v45  ;;  %v3877_v11 = vcombine.low %v1483_v1, %v1487_v2  ;;  %v3886_v15 = vcombine.high %v1491_v12, %v1495_v9 }
 0x2c7   : > { %3121 = vmatprep.subr.bf16.mxu0 %v3830_v14  ;;  %v3884_v14 = vcombine.high %v1490_v7, %v1494_v8  ;;  %v3885_v17 = vcombine.low %v1491_v12, %v1495_v9 }
 0x2c9   : > { %3040 = vmatpush1.bf16.msra.mxu1 %v3827_v19  ;;  %v1501_v19 = vrot.slane %v4697_v18, %v4608_v49 }
 0x2ca   : > { %3122 = vmatpush1.bf16.msra.mxu0 %v3829_v21  ;;  %3041 = vmatprep.subr.bf16.mxu1 %v3836_v22  ;;  %v1509_v21 = vrot.slane %v4697_v18, %v4625_v57  ;;  %v1505_v22 = vrot.slane %v4697_v18, %v4611_v50 }
 0x2cb   : > { %3123 = vmatprep.subr.bf16.mxu0 %v3838_v23  ;;  %v1513_v23 = vrot.slane %v4697_v18, %v4657_v59 }
 0x2cd   : > { %3042 = vmatpush1.bf16.msra.mxu1 %v3835_v13 }
 0x2ce   : > { %3124 = vmatpush1.bf16.msra.mxu0 %v3837_v28  ;;  %3043 = vmatprep.subr.bf16.mxu1 %v3844_v29 }
 0x2cf   : > { %3125 = vmatprep.subr.bf16.mxu0 %v3846_v58 }
 0x2d1   : > { %3044 = vmatpush1.bf16.msra.mxu1 %v3843_v33 }
 0x2d2   : > { %3126 = vmatpush1.bf16.msra.mxu0 %v3845_v34  ;;  %3045 = vmatprep.subr.bf16.mxu1 %v3852_v35 }
 0x2d3   : > { %3127 = vmatprep.subr.bf16.mxu0 %v3854_v36 }
 0x2d5   : > { %3046 = vmatpush1.bf16.msra.mxu1 %v3851_v46 }
 0x2d6   : > { %3128 = vmatpush1.bf16.msra.mxu0 %v3853_v51  ;;  %3047 = vmatprep.subr.bf16.mxu1 %v3860_v54 }
 0x2d7   : > { %3129 = vmatprep.subr.bf16.mxu0 %v3862_v55 }
 0x2d9   : > { %3048 = vmatpush1.bf16.msra.mxu1 %v3859_v0 }
 0x2da   : > { %3130 = vmatpush1.bf16.msra.mxu0 %v3861_v40  ;;  %3049 = vmatprep.subr.bf16.mxu1 %v3868_v41 }
 0x2db   : > { %3131 = vmatprep.subr.bf16.mxu0 %v3870_v42 }
 0x2dd   : > { %3050 = vmatpush1.bf16.msra.mxu1 %v3867_v3  ;;  %v3233_v3 = vunpack.c.0.s8 %v3232_v63 }
 0x2de   : > { %3132 = vmatpush1.bf16.msra.mxu0 %v3869_v4  ;;  %3051 = vmatprep.subr.bf16.mxu1 %v3876_v5 }
 0x2df   : > { %3133 = vmatprep.subr.bf16.mxu0 %v3878_v6 }
 0x2e1   : > { %3052 = vmatpush1.bf16.msra.mxu1 %v3875_v10 }
 0x2e2   : > { %3134 = vmatpush1.bf16.msra.mxu0 %v3877_v11  ;;  %3053 = vmatprep.subr.bf16.mxu1 %v3884_v14  ;;  %v4717_v11 = vsub.s32 %v3233_v3, %v4605_v48 }
 0x2e3   : > { %3135 = vmatprep.subr.bf16.mxu0 %v3886_v15 }
 0x2e5   : > { %3054 = vmatpush1.bf16.msra.mxu1 %v3883_v16 }
 0x2e6   : > { %3136 = vmatpush1.bf16.msra.mxu0 %v3885_v17 }
 0x2e8   : > { %3056 = vmatmul.mubr.bf16.vlgmr.msra.gmra.mrb[8].mxu1 %v4682_v47 }
 0x2e9   : > { %3138 = vmatmul.mubr.bf16.vlgmr.msra.gmra.mrb[12].mxu0 %v4682_v47 }
 0x33b   : > { %v2893_v24 = vpop.f32.mrb[4].mxu1  ;;  %v2975_v25 = vpop.f32.mrb[8].mxu0 }
 0x33c   : > { %v3894_v47 = vadd.f32 %v2893_v24, %v1501_v19  ;;  %v3896_v26 = vadd.f32 %v2975_v25, %v1509_v21  ;;  %v2895_v27 = vpop.f32.mrb[5].mxu1  ;;  %v2977_v13 = vpop.f32.mrb[9].mxu0  ;;  %v1525_v24 = vrot.slane %v4697_v18, %v4630_v60  ;;  %v1521_v25 = vrot.slane %v4697_v18, %v4620_v53 }
 0x33d   : > { %v3895_v28 = vadd.f32 %v2895_v27, %v1505_v22  ;;  %v3897_v29 = vadd.f32 %v2977_v13, %v1513_v23  ;;  %v2897_v58 = vpop.f32.mrb[6].mxu1  ;;  %v2979_v30 = vpop.f32.mrb[10].mxu0  ;;  %v1528_v22 = vsub.s32 7, %v4605_v48  ;;  %v1517_v23 = vrot.slane %v4697_v18, %v4617_v52 }
 0x33e   : > { %v3146_v31 = vmax.f32 %v3894_v47, 0.0  ;;  %v3148_v32 = vmax.f32 %v3896_v26, 0.0  ;;  %v2898_v20 = vpop.f32.mrb[7].mxu1  ;;  %v2980_v33 = vpop.f32.mrb[11].mxu0 }
 0x33f   : > { %v3147_v34 = vmax.f32 %v3895_v28, 0.0  ;;  %v3149_v35 = vmax.f32 %v3897_v29, 0.0  ;;  %v1529_v47 = vrot.slane %v4697_v18, %v1528_v22 }
 0x340   : > { %v3162_v36 = vsel %vm3159_vm0, %v3146_v31, -inf  ;;  %v3164_v37 = vsel %vm3159_vm0, %v3148_v32, -inf }
 0x341   : > { %v3171_v38 = vrot.slane %v3162_v36, 4  ;;  %v3183_v39 = vrot.slane %v3164_v37, 4  ;;  %v3163_v43 = vsel %vm3159_vm0, %v3147_v34, -inf  ;;  %v3165_v46 = vsel %vm3159_vm0, %v3149_v35, -inf }
 0x342   : > { %v3177_v51 = vrot.slane %v3163_v43, 4  ;;  %v3189_v54 = vrot.slane %v3165_v46, 4 }
 0x343   : > { %v3172_v55 = vmax.f32 %v3162_v36, %v3171_v38  ;;  %v3184_v56 = vmax.f32 %v3164_v37, %v3183_v39 }
 0x344   : > { %v3178_v61 = vmax.f32 %v3163_v43, %v3177_v51  ;;  %v3190_v0 = vmax.f32 %v3165_v46, %v3189_v54 }
 0x345   : > { %v3173_v40 = vrot.slane %v3172_v55, 2  ;;  %v3185_v41 = vrot.slane %v3184_v56, 2 }
 0x346   : > { %v3179_v42 = vrot.slane %v3178_v61, 2  ;;  %v3191_v44 = vrot.slane %v3190_v0, 2 }
 0x347   : > { %v3174_v45 = vmax.f32 %v3172_v55, %v3173_v40  ;;  %v3186_v1 = vmax.f32 %v3184_v56, %v3185_v41 }
 0x348   : > { %v3180_v2 = vmax.f32 %v3178_v61, %v3179_v42  ;;  %v3192_v4 = vmax.f32 %v3190_v0, %v3191_v44 }
 0x349   : > { %v3175_v5 = vrot.slane %v3174_v45, 1  ;;  %v3187_v6 = vrot.slane %v3186_v1, 1 }
 0x34a   : > { %v3181_v7 = vrot.slane %v3180_v2, 1  ;;  %v3193_v8 = vrot.slane %v3192_v4, 1 }
 0x34b   : > { %v3176_v12 = vmax.f32 %v3174_v45, %v3175_v5  ;;  %v3188_v9 = vmax.f32 %v3186_v1, %v3187_v6 }
 0x34c   : > { %v3182_v10 = vmax.f32 %v3180_v2, %v3181_v7  ;;  %v3194_v14 = vmax.f32 %v3192_v4, %v3193_v8 }
 0x34e   : > { %v3227_v15 = vcombine.low %v3176_v12, %v3182_v10  ;;  %v3228_v16 = vcombine.low %v3188_v9, %v3194_v14 }
 0x350   : > { %v4720_v17 = vrot.slane %v3227_v15, %v4717_v11  ;;  %v4723_v19 = vrot.slane %v3228_v16, %v4717_v11 }
 0x352   : > { %v3259_v21 = vcombine.low %v4720_v17, %v4723_v19 }
 0x3bb   : > { %v3057_v26 = vpop.f32.mrb[8].mxu1 }
 0x3bc   : > { %v3898_v27 = vadd.f32 %v3057_v26, %v1517_v23  ;;  %v3139_v13 = vpop.f32.mrb[12].mxu0  ;;  %v3059_v28 = vpop.f32.mrb[9].mxu1 }
 0x3bd   : > { %v3900_v29 = vadd.f32 %v3139_v13, %v1525_v24  ;;  %v3899_v58 = vadd.f32 %v3059_v28, %v1521_v25  ;;  %v3141_v30 = vpop.f32.mrb[13].mxu0  ;;  %v3061_v31 = vpop.f32.mrb[10].mxu1 }
 0x3be   : > { %v3150_v32 = vmax.f32 %v3898_v27, 0.0  ;;  %v3901_v20 = vadd.f32 %v3141_v30, %v1529_v47  ;;  %v3143_v33 = vpop.f32.mrb[14].mxu0  ;;  %v3062_v34 = vpop.f32.mrb[11].mxu1  ;;  %v3267_v27 = vrot.slane %v3259_v21, %v4717_v11 }
 0x3bf   : > { %v3152_v35 = vmax.f32 %v3900_v29, 0.0  ;;  %v3151_v36 = vmax.f32 %v3899_v58, 0.0  ;;  %v3144_v37 = vpop.f32.mrb[15].mxu0 }
 0x3c0   : > { %v3166_v38 = vsel %vm3159_vm0, %v3150_v32, -inf  ;;  %v3153_v39 = vmax.f32 %v3901_v20, 0.0  ;;  %v3421_v37 = vld [vmem:[%s399_s20] sm:$0xff] }
 0x3c1   : > { %v3195_v18 = vrot.slane %v3166_v38, 4  ;;  %v3168_v43 = vsel %vm3159_vm0, %v3152_v35, -inf  ;;  %v3167_v46 = vsel %vm3159_vm0, %v3151_v36, -inf }
 0x3c2   : > { %v3207_v51 = vrot.slane %v3168_v43, 4  ;;  %v3201_v54 = vrot.slane %v3167_v46, 4  ;;  %v3169_v55 = vsel %vm3159_vm0, %v3153_v39, -inf  ;;  %vm3406_vm0 = vsmask.f32 4352 }
 0x3c3   : > { %v3196_v56 = vmax.f32 %v3166_v38, %v3195_v18  ;;  %v3213_v61 = vrot.slane %v3169_v55, 4  ;;  %vm3407_vm2 = vmand %vm3405_vm15, %vm3406_vm0 }
 0x3c4   : > { %v3208_v62 = vmax.f32 %v3168_v43, %v3207_v51  ;;  %v3202_v63 = vmax.f32 %v3167_v46, %v3201_v54  ;;  %vm4770_vm5 = vmor %vm3407_vm2, %vm3404_vm1 }
 0x3c5   : > { %v3197_v0 = vrot.slane %v3196_v56, 2  ;;  %v3214_v40 = vmax.f32 %v3169_v55, %v3213_v61  ;;  %vm3412_vm9 = vmor %vm4774_vm6, %vm4770_vm5 }
 0x3c6   : > { %v3209_v41 = vrot.slane %v3208_v62, 2  ;;  %v3203_v42 = vrot.slane %v3202_v63, 2  ;;  %vm3416_vm13 = vmor %vm3415_vm10, %vm3412_vm9 }
 0x3c7   : > { %v3198_v44 = vmax.f32 %v3196_v56, %v3197_v0  ;;  %v3215_v45 = vrot.slane %v3214_v40, 2  ;;  %vm3420_vm15 = vmor %vm3419_vm14, %vm3416_vm13 }
 0x3c8   : > { %v3210_v2 = vmax.f32 %v3208_v62, %v3209_v41  ;;  %v3204_v3 = vmax.f32 %v3202_v63, %v3203_v42 }
 0x3c9   : > { %v3199_v5 = vrot.slane %v3198_v44, 1  ;;  %v3216_v6 = vmax.f32 %v3214_v40, %v3215_v45 }
 0x3ca   : > { %v3211_v7 = vrot.slane %v3210_v2, 1  ;;  %v3205_v8 = vrot.slane %v3204_v3, 1 }
 0x3cb   : > { %v3200_v12 = vmax.f32 %v3198_v44, %v3199_v5  ;;  %v3217_v9 = vrot.slane %v3216_v6, 1 }
 0x3cc   : > { %v3212_v10 = vmax.f32 %v3210_v2, %v3211_v7  ;;  %v3206_v14 = vmax.f32 %v3204_v3, %v3205_v8 }
 0x3cd   : > { %v3218_v15 = vmax.f32 %v3216_v6, %v3217_v9 }
 0x3ce   : > { %v3229_v16 = vcombine.low %v3200_v12, %v3206_v14 }
 0x3cf   : > { %v3230_v23 = vcombine.low %v3212_v10, %v3218_v15 }
 0x3d0   : > { %v3251_v25 = vrot.slane %v3229_v16, %v4717_v11 }
 0x3d1   : > { %v3258_v47 = vrot.slane %v3230_v23, %v4717_v11 }
 0x3d3   : > { %v3260_v26 = vcombine.low %v3251_v25, %v3258_v47 }
 0x3d5   : > { %v3274_v13 = vrot.slane %v3260_v26, %v4717_v11 }
 0x3d7   : > { %v3275_v28 = vcombine.low %v3267_v27, %v3274_v13 }
 0x3d9   : > { %v3287_v30 = vrot.slane %v3275_v28, %v4608_v49  ;;  %v3291_v17 = vrot.slane %v3275_v28, %v4611_v50  ;;  %v3295_v19 = vrot.slane %v3275_v28, %v4625_v57  ;;  %v3299_v21 = vrot.slane %v3275_v28, %v4657_v59 }
 0x3da   : > { %v3303_v31 = vrot.slane %v3275_v28, %v4617_v52  ;;  %v3307_v32 = vrot.slane %v3275_v28, %v4620_v53  ;;  %v3311_v20 = vrot.slane %v3275_v28, %v4630_v60  ;;  %v3315_v33 = vrot.slane %v3275_v28, %v1528_v22 }
 0x3db   : > { %v3887_v34 = vpack.c.bf16 %v3291_v17, %v3287_v30  ;;  %v3888_v35 = vpack.c.bf16 %v3299_v21, %v3295_v19 }
 0x3dc   : > { %v3889_v49 = vpack.c.bf16 %v3307_v32, %v3303_v31  ;;  %v3890_v50 = vpack.c.bf16 %v3315_v33, %v3311_v20 }
 0x3dd   : > { %v3350_v52 = vrot.slane %v3887_v34, %v4717_v11  ;;  %v3357_v53 = vrot.slane %v3888_v35, %v4717_v11 }
 0x3de   : > { %v3364_v48 = vrot.slane %v3889_v49, %v4717_v11  ;;  %v3371_v57 = vrot.slane %v3890_v50, %v4717_v11 }
 0x3df   : > { %v3372_v60 = vcombine.low %v3350_v52, %v3357_v53 }
 0x3e0   : > { %v3373_v59 = vcombine.low %v3364_v48, %v3371_v57 }
 0x3e1   : > { %v3380_v22 = vrot.slane %v3372_v60, %v4717_v11 }
 0x3e2   : > { %v3387_v36 = vrot.slane %v3373_v59, %v4717_v11 }
 0x3e4   : > { %v3388_v38 = vcombine.low %v3380_v22, %v3387_v36 }
 0x3e6   : > { %v3422_v39 = vsel %vm3420_vm15, %v3388_v38, %v3421_v37 }
 0x3e7   : > { %3423 = vst [vmem:[%s399_s20] sm:$0xff] %v3422_v39 }
 0x3e8 PF: > { %s20_s11 = sadd.s32 1, %s4163_s11   ;;  %s4839_s30 = smov %s4159_s10 }
 0x3e9   : > { %p17_p4 = scmp.ge.s32.totalorder %s20_s11, 4   ;;  %s4840_s10 = smov %s4842_s13 }
 0x3eb   :  { %19 = sbr.rel (!%p17_p4) target bundleno = 2 (0x2), region = 102 }
 0x3f2   :  { %3443 = vsyncpa [#allocation4], 1 }
 0x3f3   :  { %3445 = vsyncpa [#allocation4 + $0x1], 1 }

// kernel: pointnet_forward.16
= control target key start
LH: loop header
LB: loop body
LE: loop exit
PB: predicated region body
PF: predicated region fallthrough
CT: control target
= control target key end

     0   :  { %s995_s24 = smov 0   ;;  %s1108_s0 = inlined_call_operand.vmem [shape: bf16[64,131], index: 0, kind: input, shape index: {}]   ;;  %s1109_s1 = inlined_call_operand.vmem [shape: bf16[131,128], index: 1, kind: input, shape index: {}]   ;;  %s1110_s2 = inlined_call_operand.vmem [shape: f32[1,128], index: 2, kind: input, shape index: {}]   ;;  %s1111_s3 = inlined_call_operand.vmem [shape: bf16[128,128], index: 3, kind: input, shape index: {}]   ;;  %s1112_s4 = inlined_call_operand.vmem [shape: f32[1,128], index: 4, kind: input, shape index: {}]   ;;  %s1113_s5 = inlined_call_operand.vmem [shape: bf16[128,128], index: 5, kind: input, shape index: {}]   ;;  %s1114_s6 = inlined_call_operand.vmem [shape: f32[1,128], index: 6, kind: input, shape index: {}]   ;;  %s1115_s7 = inlined_call_operand.vmem [shape: bf16[64,128], index: 7, kind: output, shape index: {}]  }
   0x1 LB: > { %s778_s25 = sadd.s32 4294967295, %s951_s24   ;;  %p782_p0 = scmp.ge.s32.totalorder %s951_s24, 1  ;;  %s951_s24 = sphi %s995_s24, %s17_s24  }
   0x2   : > { %p239_p1 = scmp.lt.s32.totalorder %s951_s24, 3 }
   0x4   : > { %p240_p2 = pnand %p782_p0, %p239_p1 }
   0x5   : > { %v914_v0 = vld [vmem:[%s1109_s1] sm:$0xff] (!%p240_p2)   ;;  %v953_v1 = vmov (!%p240_p2), 0   ;;  %v915_v2 = vld [vmem:[%s1109_s1 + $0x8] sm:$0xff] (!%p240_p2)   ;;  %v916_v3 = vld [vmem:[%s1109_s1 + $0x10] sm:$0xff] (!%p240_p2)   ;;  %s783_s9 = sshll.u32 (!%p240_p2), %s778_s25, 2  ;;  %vm383_vm0 = vcmask (!%p240_p2), 23552  }
   0x6   : > { %243 = sbr.rel (%p240_p2) target bundleno = 714 (0x2ca), region = 48  ;;  %397 = vmatprep.subr.bf16.mxu0 (!%p240_p2), %v953_v1  ;;  %p273_p3 = scmp.lt.s32.totalorder (!%p240_p2), %s783_s9, 7  ;;  %v917_v4 = vld [vmem:[%s1109_s1 + $0x18] sm:$0xff] (!%p240_p2)   ;;  %v929_v5 = vld [vmem:[%s1111_s3] sm:$0xff] (!%p240_p2)   ;;  %v930_v6 = vld [vmem:[%s1111_s3 + $0x8] sm:$0xff] (!%p240_p2)   ;;  %vm390_vm1 = vcmask (!%p240_p2), 1040384  }
   0x7   : > { %398 = vmatpush1.bf16.msra.mxu0 (!%p240_p2), %v914_v0  ;;  %864 = vmatprep.subr.bf16.mxu1 (!%p240_p2), %v929_v5  ;;  %v918_v7 = vld [vmem:[%s1109_s1 + $0x20] sm:$0xff] (!%p240_p2)   ;;  %v931_v8 = vld [vmem:[%s1111_s3 + $0x10] sm:$0xff] (!%p240_p2)   ;;  %v932_v10 = vld [vmem:[%s1111_s3 + $0x18] sm:$0xff] (!%p240_p2)   ;;  %vm391_vm2 = vcmask (!%p240_p2), 1041408   ;;  %v954_v13 = vmov (!%p240_p2), 65535  }
   0x8   : > { %399 = vmatprep.subr.bf16.mxu0 (!%p240_p2), %v953_v1  ;;  %865 = vmatpush3.bf16.msra.mxu1 (!%p240_p2), %v929_v5  ;;  %v919_v11 = vld [vmem:[%s1109_s1 + $0x28] sm:$0xff] (!%p240_p2)   ;;  %v920_v12 = vld [vmem:[%s1109_s1 + $0x30] sm:$0xff] (!%p240_p2)   ;;  %v392_v14 = vsel (!%p240_p2), %vm390_vm1, 4294967295, %v954_v13  ;;  %v921_v15 = vld [vmem:[%s1109_s1 + $0x38] sm:$0xff] (!%p240_p2)  }
   0x9   : > { %866 = vmatprep.subr.bf16.mxu1 (!%p240_p2), %v930_v6  ;;  %v922_v16 = vld [vmem:[%s1109_s1 + $0x40] ss:$0 sps:$4 sm:$0x33] (!%p240_p2)   ;;  %v393_v17 = vsel (!%p240_p2), %vm391_vm2, %v392_v14, 0  ;;  %v934_v23 = vld [vmem:[%s1111_s3 + $0x28] sm:$0xff] (!%p240_p2)   ;;  %v935_v24 = vld [vmem:[%s1111_s3 + $0x30] sm:$0xff] (!%p240_p2)  }
   0xa   : > { %v395_v18 = vand.u32 (!%p240_p2), %v922_v16, %v393_v17  ;;  %v933_v22 = vld [vmem:[%s1111_s3 + $0x20] sm:$0xff] (!%p240_p2)   ;;  %v936_v25 = vld [vmem:[%s1111_s3 + $0x38] sm:$0xff] (!%p240_p2)   ;;  %v938_v46 = vld [vmem:[%s1113_s5 + $0x8] sm:$0xff] (!%p240_p2)  }
   0xb   : > { %400 = vmatpush1.bf16.msra.mxu0 (!%p240_p2), %v915_v2  ;;  %v937_v26 = vld [vmem:[%s1113_s5] sm:$0xff] (!%p240_p2)   ;;  %v939_v47 = vld [vmem:[%s1113_s5 + $0x10] sm:$0xff] (!%p240_p2)   ;;  %v940_v48 = vld [vmem:[%s1113_s5 + $0x18] sm:$0xff] (!%p240_p2)  }
   0xc   : > { %401 = vmatprep.subr.bf16.mxu0 (!%p240_p2), %v953_v1  ;;  %867 = vmatpush3.bf16.msra.mxu1 (!%p240_p2), %v930_v6  ;;  %v788_v27 = vld [vmem:[%s1110_s2] ss:$0 sm:$0xff] (!%p240_p2)  ;;  %v942_v50 = vld [vmem:[%s1113_s5 + $0x28] sm:$0xff] (!%p240_p2)   ;;  %v943_v51 = vld [vmem:[%s1113_s5 + $0x30] sm:$0xff] (!%p240_p2)  }
   0xd   : > { %s1117_s9 = smov (!%p273_p3, %s783_s9), 7  ;;  %868 = vmatprep.subr.bf16.mxu1 %v931_v8  ;;  %v941_v49 = vld [vmem:[%s1113_s5 + $0x20] sm:$0xff]   ;;  %v944_v52 = vld [vmem:[%s1113_s5 + $0x38] sm:$0xff]  }
   0xe   : > { %s828_s16 = sshll.u32 %s1117_s9, 3  ;;  %v804_v53 = vld [vmem:[%s1112_s4] ss:$0 sm:$0xff]  ;;  %s787_s22 = sshll.u32 %s1117_s9, 2 }
   0xf   : > { %402 = vmatpush1.bf16.msra.mxu0 %v916_v3  ;;  %s1030_s21 = scalar_lea.vmem %s1108_s0, %s828_s16  ;;  %s283_s26 = scalar_lea.vmem %s1115_s7, %s787_s22 }
  0x10   : > { %403 = vmatprep.subr.bf16.mxu0 %v953_v1  ;;  %v925_v9 = vld [vmem:[%s1030_s21 + $0x4] ss:$8 sps:$4 sm:$0xff]   ;;  %869 = vmatpush3.bf16.msra.mxu1 %v931_v8  ;;  %v923_v19 = vld [vmem:[%s1030_s21] ss:$8 sps:$4 sm:$0xff]   ;;  %v926_v20 = vld [vmem:[%s1030_s21 + $0x14] ss:$8 sps:$4 sm:$0xff]  }
  0x11   : > { %802 = vmatprep.mubr.msk.bf16.mxu0 %vm383_vm0, %v925_v9  ;;  %870 = vmatprep.subr.bf16.mxu1 %v932_v10  ;;  %v928_v21 = vld [vmem:[%s1030_s21 + $0x10] ss:$8 sps:$4 sm:$0xff]  }
  0x13   : > { %404 = vmatpush1.bf16.msra.mxu0 %v917_v4  ;;  %v813_v4 = vld [vmem:[%s1114_s6] ss:$0 sm:$0xff] }
  0x14   : > { %405 = vmatprep.subr.bf16.mxu0 %v953_v1  ;;  %871 = vmatpush3.bf16.msra.mxu1 %v932_v10 }
  0x15   : > { %872 = vmatprep.subr.bf16.mxu1 %v933_v22 }
  0x17   : > { %406 = vmatpush1.bf16.msra.mxu0 %v918_v7 }
  0x18   : > { %407 = vmatprep.subr.bf16.mxu0 %v953_v1  ;;  %873 = vmatpush3.bf16.msra.mxu1 %v933_v22 }
  0x19   : > { %874 = vmatprep.subr.bf16.mxu1 %v934_v23 }
  0x1b   : > { %408 = vmatpush1.bf16.msra.mxu0 %v919_v11 }
  0x1c   : > { %409 = vmatprep.subr.bf16.mxu0 %v953_v1  ;;  %875 = vmatpush3.bf16.msra.mxu1 %v934_v23 }
  0x1d   : > { %876 = vmatprep.subr.bf16.mxu1 %v935_v24 }
  0x1f   : > { %410 = vmatpush1.bf16.msra.mxu0 %v920_v12 }
  0x20   : > { %411 = vmatprep.subr.bf16.mxu0 %v953_v1  ;;  %877 = vmatpush3.bf16.msra.mxu1 %v935_v24 }
  0x21   : > { %878 = vmatprep.subr.bf16.mxu1 %v936_v25 }
  0x23   : > { %412 = vmatpush1.bf16.msra.mxu0 %v921_v15 }
  0x24   : > { %413 = vmatprep.subr.bf16.mxu0 %v953_v1  ;;  %879 = vmatpush3.bf16.msra.mxu1 %v936_v25 }
  0x25   : > { %884 = vmatprep.subr.bf16.mxu1 %v937_v26 }
  0x27   : > { %414 = vmatpush1.bf16.msra.mxu0 %v395_v18 }
  0x2a   : > { %430 = vmatmul.mubr.bf16.vlgmr.msra.gmra.mrb[0].mxu0 %v923_v19 }
  0x2b   : > { %803 = vmatprep.mubr.msk.bf16.mxu0 %vm383_vm0, %v926_v20 }
  0x32   : > { %438 = vmatmul.mubr.bf16.gmra.mrb[4].mxu0 %v928_v21 }
  0xfd   : > { %v431_v28 = vpop.f32.mrb[0].mxu0 }
  0xfe   : > { %v432_v29 = vadd.f32 %v788_v27, %v431_v28  ;;  %v433_v30 = vpop.f32.mrb[1].mxu0 }
  0xff   : > { %v434_v31 = vpop.f32.mrb[2].mxu0 }
 0x100   : > { %v435_v32 = vadd.f32 %v788_v27, %v434_v31  ;;  %v436_v33 = vpop.f32.mrb[3].mxu0  ;;  %v446_v34 = vmax.f32 %v432_v29, 0.0 }
 0x102   : > { %v447_v35 = vmax.f32 %v435_v32, 0.0 }
 0x104   : > { %v450_v36 = vpack.c.bf16 %v447_v35, %v446_v34 }
 0x105   : > { %v439_v37 = vpop.f32.mrb[4].mxu0 }
 0x106   : > { %v440_v38 = vadd.f32 %v788_v27, %v439_v37  ;;  %v441_v39 = vpop.f32.mrb[5].mxu0  ;;  %880 = vmatprep.mubr.bf16.mxu1 %v450_v36 }
 0x107   : > { %v442_v40 = vpop.f32.mrb[6].mxu0 }
 0x108   : > { %v443_v41 = vadd.f32 %v788_v27, %v442_v40  ;;  %v444_v42 = vpop.f32.mrb[7].mxu0  ;;  %v448_v43 = vmax.f32 %v440_v38, 0.0 }
 0x10a   : > { %v449_v44 = vmax.f32 %v443_v41, 0.0 }
 0x10c   : > { %v451_v45 = vpack.c.bf16 %v449_v44, %v448_v43 }
 0x10e   : > { %881 = vmatmul.mubr.bf16.vlgmr.msra.gmra.mrb[0].mxu1 %v451_v45 }
 0x10f   : > { %885 = vmatpush3.bf16.msra.mxu1 %v937_v26 }
 0x110   : > { %886 = vmatprep.subr.bf16.mxu1 %v938_v46 }
 0x113   : > { %887 = vmatpush3.bf16.msra.mxu1 %v938_v46 }
 0x114   : > { %888 = vmatprep.subr.bf16.mxu1 %v939_v47 }
 0x117   : > { %889 = vmatpush3.bf16.msra.mxu1 %v939_v47 }
 0x118   : > { %890 = vmatprep.subr.bf16.mxu1 %v940_v48 }
 0x11b   : > { %891 = vmatpush3.bf16.msra.mxu1 %v940_v48 }
 0x11c   : > { %892 = vmatprep.subr.bf16.mxu1 %v941_v49 }
 0x11f   : > { %893 = vmatpush3.bf16.msra.mxu1 %v941_v49 }
 0x120   : > { %894 = vmatprep.subr.bf16.mxu1 %v942_v50 }
 0x123   : > { %895 = vmatpush3.bf16.msra.mxu1 %v942_v50 }
 0x124   : > { %896 = vmatprep.subr.bf16.mxu1 %v943_v51 }
 0x127   : > { %897 = vmatpush3.bf16.msra.mxu1 %v943_v51 }
 0x128   : > { %898 = vmatprep.subr.bf16.mxu1 %v944_v52 }
 0x12b   : > { %899 = vmatpush3.bf16.msra.mxu1 %v944_v52 }
 0x1e1   : > { %v882_v54 = vpop.f32.mrb[0].mxu1 }
 0x1e2   : > { %v566_v55 = vadd.f32 %v882_v54, %v804_v53  ;;  %v557_v56 = vpop.f32.mrb[1].mxu1 }
 0x1e3   : > { %v558_v57 = vadd.f32 %v804_v53, %v557_v56  ;;  %v883_v58 = vpop.f32.mrb[2].mxu1 }
 0x1e4   : > { %v569_v59 = vadd.f32 %v883_v58, %v804_v53  ;;  %v560_v60 = vpop.f32.mrb[3].mxu1  ;;  %v574_v62 = vmax.f32 %v566_v55, 0.0 }
 0x1e5   : > { %v561_v61 = vadd.f32 %v804_v53, %v560_v60  ;;  %v572_v0 = vmax.f32 %v558_v57, 0.0 }
 0x1e6   : > { %v575_v63 = vmax.f32 %v569_v59, 0.0 }
 0x1e7   : > { %v573_v1 = vmax.f32 %v561_v61, 0.0 }
 0x1e8   : > { %v577_v2 = vpack.c.bf16 %v575_v63, %v574_v62 }
 0x1e9   : > { %v576_v3 = vpack.c.bf16 %v573_v1, %v572_v0 }
 0x1eb   : > { %900 = vmatprep.mubr.bf16.mxu1 %v576_v3 }
 0x1ec   : > { %901 = vmatmul.mubr.bf16.vlgmr.msra.gmra.mrb[4].mxu1 %v577_v2 }
 0x2bf   : > { %v902_v5 = vpop.f32.mrb[4].mxu1 }
 0x2c0   : > { %v692_v6 = vadd.f32 %v902_v5, %v813_v4  ;;  %v683_v7 = vpop.f32.mrb[5].mxu1 }
 0x2c1   : > { %v684_v8 = vadd.f32 %v813_v4, %v683_v7  ;;  %v903_v9 = vpop.f32.mrb[6].mxu1 }
 0x2c2   : > { %v695_v10 = vadd.f32 %v903_v9, %v813_v4  ;;  %v686_v11 = vpop.f32.mrb[7].mxu1  ;;  %v700_v13 = vmax.f32 %v692_v6, 0.0 }
 0x2c3   : > { %v687_v12 = vadd.f32 %v813_v4, %v686_v11  ;;  %v698_v15 = vmax.f32 %v684_v8, 0.0 }
 0x2c4   : > { %v701_v14 = vmax.f32 %v695_v10, 0.0 }
 0x2c5   : > { %v699_v16 = vmax.f32 %v687_v12, 0.0 }
 0x2c6   : > { %v841_v17 = vpack.c.bf16 %v701_v14, %v700_v13 }
 0x2c7   : > { %v836_v18 = vpack.c.bf16 %v699_v16, %v698_v15 }
 0x2c8   : > { %843 = vst [vmem:[%s283_s26 + $0x8] sm:$0xff] %v841_v17  }
 0x2c9   : > { %837 = vst [vmem:[%s283_s26] sm:$0xff] %v836_v18  }
 0x2ca PF: > { %s17_s24 = sadd.s32 1, %s951_s24  }
 0x2cb   : > { %p14_p4 = scmp.ge.s32.totalorder %s17_s24, 4  }
 0x2cd   :  { %16 = sbr.rel (!%p14_p4) target bundleno = 1 (0x1), region = 78 }

// kernel: pointnet_forward.17
= control target key start
LH: loop header
LB: loop body
LE: loop exit
PB: predicated region body
PF: predicated region fallthrough
CT: control target
= control target key end

     0   :  { %s1002_s24 = smov 0   ;;  %s1108_s0 = inlined_call_operand.vmem [shape: bf16[64,128], index: 0, kind: input, shape index: {}]   ;;  %s1109_s1 = inlined_call_operand.vmem [shape: bf16[128,128], index: 1, kind: input, shape index: {}]   ;;  %s1110_s2 = inlined_call_operand.vmem [shape: f32[1,128], index: 2, kind: input, shape index: {}]   ;;  %s1111_s3 = inlined_call_operand.vmem [shape: bf16[128,128], index: 3, kind: input, shape index: {}]   ;;  %s1112_s4 = inlined_call_operand.vmem [shape: f32[1,128], index: 4, kind: input, shape index: {}]   ;;  %s1113_s5 = inlined_call_operand.vmem [shape: bf16[128,128], index: 5, kind: input, shape index: {}]   ;;  %s1114_s6 = inlined_call_operand.vmem [shape: f32[1,128], index: 6, kind: input, shape index: {}]   ;;  %s1115_s7 = inlined_call_operand.vmem [shape: f32[64,128], index: 7, kind: output, shape index: {}]  }
   0x1 LB: > { %s774_s25 = sadd.s32 4294967295, %s960_s24   ;;  %p778_p0 = scmp.ge.s32.totalorder %s960_s24, 1  ;;  %s960_s24 = sphi %s1002_s24, %s17_s24  }
   0x2   : > { %p238_p1 = scmp.lt.s32.totalorder %s960_s24, 3 }
   0x4   : > { %p239_p2 = pnand %p778_p0, %p238_p1 }
   0x5   : > { %v912_v0 = vld [vmem:[%s1109_s1] sm:$0xff] (!%p239_p2)   ;;  %s779_s28 = sshll.u32 (!%p239_p2), %s774_s25, 2  ;;  %v913_v1 = vld [vmem:[%s1109_s1 + $0x8] sm:$0xff] (!%p239_p2)   ;;  %v914_v2 = vld [vmem:[%s1109_s1 + $0x10] sm:$0xff] (!%p239_p2)   ;;  %v667_v52 = vlaneseq (!%p239_p2) }
   0x6   : > { %242 = sbr.rel (%p239_p2) target bundleno = 1019 (0x3fb), region = 48  ;;  %p271_p3 = scmp.lt.s32.totalorder (!%p239_p2), %s779_s28, 7  ;;  %844 = vmatprep.subr.bf16.mxu0 (!%p239_p2), %v912_v0  ;;  %v915_v3 = vld [vmem:[%s1109_s1 + $0x18] sm:$0xff] (!%p239_p2)   ;;  %v922_v5 = vld [vmem:[%s1111_s3] sm:$0xff] (!%p239_p2)   ;;  %v923_v6 = vld [vmem:[%s1111_s3 + $0x8] sm:$0xff] (!%p239_p2)  }
   0x7   : > { %845 = vmatpush3.bf16.msra.mxu0 (!%p239_p2), %v912_v0  ;;  %v916_v7 = vld [vmem:[%s1109_s1 + $0x20] sm:$0xff] (!%p239_p2)   ;;  %864 = vmatprep.subr.bf16.mxu1 (!%p239_p2), %v922_v5  ;;  %v924_v8 = vld [vmem:[%s1111_s3 + $0x10] sm:$0xff] (!%p239_p2)   ;;  %v917_v9 = vld [vmem:[%s1109_s1 + $0x28] sm:$0xff] (!%p239_p2)   ;;  %v668_v53 = vand.u32 (!%p239_p2), 127, %v667_v52 }
   0x8   : > { %846 = vmatprep.subr.bf16.mxu0 (!%p239_p2), %v913_v1  ;;  %865 = vmatpush3.bf16.msra.mxu1 (!%p239_p2), %v922_v5  ;;  %v925_v10 = vld [vmem:[%s1111_s3 + $0x18] sm:$0xff] (!%p239_p2)   ;;  %v918_v11 = vld [vmem:[%s1109_s1 + $0x30] sm:$0xff] (!%p239_p2)   ;;  %v926_v12 = vld [vmem:[%s1111_s3 + $0x20] sm:$0xff] (!%p239_p2)  }
   0x9   : > { %866 = vmatprep.subr.bf16.mxu1 (!%p239_p2), %v923_v6  ;;  %v919_v13 = vld [vmem:[%s1109_s1 + $0x38] sm:$0xff] (!%p239_p2)   ;;  %v927_v14 = vld [vmem:[%s1111_s3 + $0x28] sm:$0xff] (!%p239_p2)   ;;  %v928_v16 = vld [vmem:[%s1111_s3 + $0x30] sm:$0xff] (!%p239_p2)   ;;  %vm669_vm0 = vcmp.lt.s32.totalorder (!%p239_p2), %v668_v53, 10 }
   0xa   : > { %v929_v17 = vld [vmem:[%s1111_s3 + $0x38] sm:$0xff] (!%p239_p2)   ;;  %v930_v18 = vld [vmem:[%s1113_s5] sm:$0xff] (!%p239_p2)   ;;  %v931_v19 = vld [vmem:[%s1113_s5 + $0x8] sm:$0xff] (!%p239_p2)  }
   0xb   : > { %847 = vmatpush3.bf16.msra.mxu0 (!%p239_p2), %v913_v1  ;;  %v932_v20 = vld [vmem:[%s1113_s5 + $0x10] sm:$0xff] (!%p239_p2)   ;;  %v933_v21 = vld [vmem:[%s1113_s5 + $0x18] sm:$0xff] (!%p239_p2)   ;;  %v934_v22 = vld [vmem:[%s1113_s5 + $0x20] sm:$0xff] (!%p239_p2)  }
   0xc   : > { %848 = vmatprep.subr.bf16.mxu0 (!%p239_p2), %v914_v2  ;;  %867 = vmatpush3.bf16.msra.mxu1 (!%p239_p2), %v923_v6  ;;  %v935_v23 = vld [vmem:[%s1113_s5 + $0x28] sm:$0xff] (!%p239_p2)   ;;  %v783_v24 = vld [vmem:[%s1110_s2] ss:$0 sm:$0xff] (!%p239_p2)  ;;  %v936_v39 = vld [vmem:[%s1113_s5 + $0x30] sm:$0xff] (!%p239_p2)  }
   0xd   : > { %s1117_s28 = smov (!%p271_p3, %s779_s28), 7  ;;  %868 = vmatprep.subr.bf16.mxu1 %v924_v8  ;;  %v937_v40 = vld [vmem:[%s1113_s5 + $0x38] sm:$0xff]   ;;  %v794_v42 = vld [vmem:[%s1112_s4] ss:$0 sm:$0xff] }
   0xe   : > { %s780_s10 = sshll.u32 %s1117_s28, 2  ;;  %v803_v54 = vld [vmem:[%s1114_s6] ss:$0 sm:$0xff]  ;;  %s782_s21 = sshll.u32 %s1117_s28, 3 }
   0xf   : > { %s1025_s13 = scalar_lea.vmem %s1108_s0, %s780_s10  ;;  %849 = vmatpush3.bf16.msra.mxu0 %v914_v2  ;;  %s280_s23 = scalar_lea.vmem %s1115_s7, %s782_s21 }
  0x10   : > { %v920_v4 = vld [vmem:[%s1025_s13] sm:$0xff]   ;;  %850 = vmatprep.subr.bf16.mxu0 %v915_v3  ;;  %869 = vmatpush3.bf16.msra.mxu1 %v924_v8  ;;  %v921_v15 = vld [vmem:[%s1025_s13 + $0x8] sm:$0xff]  }
  0x11   : > { %860 = vmatprep.mubr.bf16.mxu0 %v920_v4  ;;  %870 = vmatprep.subr.bf16.mxu1 %v925_v10 }
  0x13   : > { %851 = vmatpush3.bf16.msra.mxu0 %v915_v3 }
  0x14   : > { %852 = vmatprep.subr.bf16.mxu0 %v916_v7  ;;  %871 = vmatpush3.bf16.msra.mxu1 %v925_v10 }
  0x15   : > { %872 = vmatprep.subr.bf16.mxu1 %v926_v12 }
  0x17   : > { %853 = vmatpush3.bf16.msra.mxu0 %v916_v7 }
  0x18   : > { %854 = vmatprep.subr.bf16.mxu0 %v917_v9  ;;  %873 = vmatpush3.bf16.msra.mxu1 %v926_v12 }
  0x19   : > { %874 = vmatprep.subr.bf16.mxu1 %v927_v14 }
  0x1b   : > { %855 = vmatpush3.bf16.msra.mxu0 %v917_v9 }
  0x1c   : > { %856 = vmatprep.subr.bf16.mxu0 %v918_v11  ;;  %875 = vmatpush3.bf16.msra.mxu1 %v927_v14 }
  0x1d   : > { %876 = vmatprep.subr.bf16.mxu1 %v928_v16 }
  0x1f   : > { %857 = vmatpush3.bf16.msra.mxu0 %v918_v11 }
  0x20   : > { %858 = vmatprep.subr.bf16.mxu0 %v919_v13  ;;  %877 = vmatpush3.bf16.msra.mxu1 %v928_v16 }
  0x21   : > { %878 = vmatprep.subr.bf16.mxu1 %v929_v17 }
  0x23   : > { %859 = vmatpush3.bf16.msra.mxu0 %v919_v13 }
  0x24   : > { %879 = vmatpush3.bf16.msra.mxu1 %v929_v17  ;;  %884 = vmatprep.subr.bf16.mxu0 %v930_v18 }
  0x26   : > { %861 = vmatmul.mubr.bf16.vlgmr.msra.gmra.mrb[0].mxu0 %v921_v15 }
  0x27   : > { %885 = vmatpush3.bf16.msra.mxu0 %v930_v18 }
  0x28   : > { %886 = vmatprep.subr.bf16.mxu0 %v931_v19 }
  0x2b   : > { %887 = vmatpush3.bf16.msra.mxu0 %v931_v19 }
  0x2c   : > { %888 = vmatprep.subr.bf16.mxu0 %v932_v20 }
  0x2f   : > { %889 = vmatpush3.bf16.msra.mxu0 %v932_v20 }
  0x30   : > { %890 = vmatprep.subr.bf16.mxu0 %v933_v21 }
  0x33   : > { %891 = vmatpush3.bf16.msra.mxu0 %v933_v21 }
  0x34   : > { %892 = vmatprep.subr.bf16.mxu0 %v934_v22 }
  0x37   : > { %893 = vmatpush3.bf16.msra.mxu0 %v934_v22 }
  0x38   : > { %894 = vmatprep.subr.bf16.mxu0 %v935_v23 }
  0x3b   : > { %895 = vmatpush3.bf16.msra.mxu0 %v935_v23 }
  0x3c   : > { %896 = vmatprep.subr.bf16.mxu0 %v936_v39 }
  0x3f   : > { %897 = vmatpush3.bf16.msra.mxu0 %v936_v39 }
  0x40   : > { %898 = vmatprep.subr.bf16.mxu0 %v937_v40 }
  0x43   : > { %899 = vmatpush3.bf16.msra.mxu0 %v937_v40 }
  0xf9   : > { %v862_v25 = vpop.f32.mrb[0].mxu0 }
  0xfa   : > { %v413_v26 = vadd.f32 %v862_v25, %v783_v24  ;;  %v404_v27 = vpop.f32.mrb[1].mxu0 }
  0xfb   : > { %v405_v28 = vadd.f32 %v783_v24, %v404_v27  ;;  %v863_v29 = vpop.f32.mrb[2].mxu0 }
  0xfc   : > { %v416_v30 = vadd.f32 %v863_v29, %v783_v24  ;;  %v407_v31 = vpop.f32.mrb[3].mxu0  ;;  %v421_v33 = vmax.f32 %v413_v26, 0.0 }
  0xfd   : > { %v408_v32 = vadd.f32 %v783_v24, %v407_v31  ;;  %v419_v35 = vmax.f32 %v405_v28, 0.0 }
  0xfe   : > { %v422_v34 = vmax.f32 %v416_v30, 0.0 }
  0xff   : > { %v420_v36 = vmax.f32 %v408_v32, 0.0 }
 0x100   : > { %v424_v37 = vpack.c.bf16 %v422_v34, %v421_v33 }
 0x101   : > { %v423_v38 = vpack.c.bf16 %v420_v36, %v419_v35 }
 0x103   : > { %880 = vmatprep.mubr.bf16.mxu1 %v423_v38 }
 0x104   : > { %881 = vmatmul.mubr.bf16.vlgmr.msra.gmra.mrb[0].mxu1 %v424_v37 }
 0x1d7   : > { %v882_v41 = vpop.f32.mrb[0].mxu1 }
 0x1d8   : > { %v530_v43 = vpop.f32.mrb[1].mxu1  ;;  %v539_v45 = vadd.f32 %v882_v41, %v794_v42 }
 0x1d9   : > { %v883_v44 = vpop.f32.mrb[2].mxu1  ;;  %v531_v48 = vadd.f32 %v794_v42, %v530_v43 }
 0x1da   : > { %v542_v46 = vadd.f32 %v883_v44, %v794_v42  ;;  %v533_v47 = vpop.f32.mrb[3].mxu1 }
 0x1db   : > { %v534_v49 = vadd.f32 %v794_v42, %v533_v47 }
 0x1dc   : > { %v546_v50 = vpack.c.bf16 %v542_v46, %v539_v45 }
 0x1dd   : > { %v545_v51 = vpack.c.bf16 %v534_v49, %v531_v48 }
 0x1df   : > { %900 = vmatprep.mubr.bf16.mxu0 %v545_v51 }
 0x1e0   : > { %901 = vmatmul.mubr.bf16.vlgmr.msra.gmra.mrb[4].mxu0 %v546_v50 }
 0x2b3   : > { %v902_v55 = vpop.f32.mrb[4].mxu0 }
 0x2b4   : > { %v661_v56 = vadd.f32 %v902_v55, %v803_v54  ;;  %v652_v57 = vpop.f32.mrb[5].mxu0 }
 0x2b5   : > { %v653_v58 = vadd.f32 %v803_v54, %v652_v57  ;;  %v903_v59 = vpop.f32.mrb[6].mxu0 }
 0x2b6   : > { %v664_v60 = vadd.f32 %v903_v59, %v803_v54  ;;  %v655_v61 = vpop.f32.mrb[7].mxu0  ;;  %v672_v62 = vsel %vm669_vm0, %v661_v56, -inf }
 0x2b7   : > { %v656_v63 = vadd.f32 %v803_v54, %v655_v61  ;;  %678 = vmax.xlane.f32.xlu1 %v672_v62  ;;  %v670_v0 = vsel %vm669_vm0, %v653_v58, -inf }
 0x2b8   : > { %674 = vmax.xlane.f32.xlu0 %v670_v0  ;;  %v673_v1 = vsel %vm669_vm0, %v664_v60, -inf }
 0x2b9   : > { %v671_v2 = vsel %vm669_vm0, %v656_v63, -inf }
 0x2bb   : > { %680 = vmax.xlane.f32.xlu1 %v673_v1 }
 0x2bc   : > { %676 = vmax.xlane.f32.xlu0 %v671_v2 }
 0x344   : > { %v679_v3 = vpop.xlane.xlu1 %678 }
 0x345   : > { %v684_v4 = vsub.f32 %v672_v62, %v679_v3  ;;  %v675_v5 = vpop.xlane.xlu0 %674 }
 0x346   : > { %v682_v6 = vsub.f32 %v670_v0, %v675_v5 }
 0x347   : > { %v690_v9 = vmul.f32 1.442695, %v684_v4 }
 0x348   : > { %v686_v7 = vmul.f32 1.442695, %v682_v6  ;;  %v681_v8 = vpop.xlane.xlu1 %680 }
 0x349   : > { %v677_v10 = vpop.xlane.xlu0 %676  ;;  %v685_v11 = vsub.f32 %v673_v1, %v681_v8 }
 0x34a   : > { %938 = vpow2.f32 %v686_v7  ;;  %v683_v12 = vsub.f32 %v671_v2, %v677_v10 }
 0x34b   : > { %940 = vpow2.f32 %v690_v9  ;;  %v692_v14 = vmul.f32 1.442695, %v685_v11 }
 0x34c   : > { %v688_v13 = vmul.f32 1.442695, %v683_v12 }
 0x34e   : > { %942 = vpow2.f32 %v688_v13 }
 0x34f   : > { %944 = vpow2.f32 %v692_v14 }
 0x354   : > { %v939_v15 = vpop.eup %938 }
 0x355   : > { %694 = vadd.xlane.f32.xlu0 %v939_v15  ;;  %v941_v16 = vpop.eup %940 }
 0x358   : > { %v943_v17 = vpop.eup %942 }
 0x359   : > { %698 = vadd.xlane.f32.xlu0 %v941_v16  ;;  %696 = vadd.xlane.f32.xlu1 %v943_v17  ;;  %v945_v18 = vpop.eup %944 }
 0x35d   : > { %700 = vadd.xlane.f32.xlu1 %v945_v18 }
 0x3e2   : > { %v695_v19 = vpop.xlane.xlu0 %694 }
 0x3e3   : > { %946 = vlog2.f32 %v695_v19 }
 0x3e6   : > { %v697_v20 = vpop.xlane.xlu1 %696  ;;  %v699_v21 = vpop.xlane.xlu0 %698 }
 0x3e7   : > { %948 = vlog2.f32 %v697_v20 }
 0x3e8   : > { %950 = vlog2.f32 %v699_v21 }
 0x3ea   : > { %v701_v22 = vpop.xlane.xlu1 %700 }
 0x3eb   : > { %952 = vlog2.f32 %v701_v22 }
 0x3ed   : > { %v947_v23 = vpop.eup %946 }
 0x3ee   : > { %v703_v24 = vmul.f32 0.6931472, %v947_v23 }
 0x3f0   : > { %v710_v25 = vsub.f32 %v682_v6, %v703_v24 }
 0x3f1   : > { %v949_v26 = vpop.eup %948 }
 0x3f2   : > { %v951_v27 = vpop.eup %950  ;;  %714 = vst [vmem:[%s280_s23] sm:$0xff] %v710_v25  ;;  %v705_v28 = vmul.f32 0.6931472, %v949_v26 }
 0x3f3   : > { %v707_v29 = vmul.f32 0.6931472, %v951_v27 }
 0x3f4   : > { %v711_v30 = vsub.f32 %v683_v12, %v705_v28 }
 0x3f5   : > { %v953_v31 = vpop.eup %952  ;;  %v712_v32 = vsub.f32 %v684_v4, %v707_v29 }
 0x3f6   : > { %715 = vst [vmem:[%s280_s23 + $0x8] sm:$0xff] %v711_v30  ;;  %v709_v33 = vmul.f32 0.6931472, %v953_v31 }
 0x3f7   : > { %716 = vst [vmem:[%s280_s23 + $0x10] sm:$0xff] %v712_v32 }
 0x3f8   : > { %v713_v34 = vsub.f32 %v685_v11, %v709_v33 }
 0x3fa   : > { %717 = vst [vmem:[%s280_s23 + $0x18] sm:$0xff] %v713_v34 }
 0x3fb PF: > { %s17_s24 = sadd.s32 1, %s960_s24  }
 0x3fc   : > { %p14_p4 = scmp.ge.s32.totalorder %s17_s24, 4  }
 0x3fe   :  { %16 = sbr.rel (!%p14_p4) target bundleno = 1 (0x1), region = 78 }

</bundles_post_ra>
